<compile_context>
chip_gen: v7x
topology: tpu7x:2x2x1
jax: 0.10.0
libtpu: 0.0.40
codegen_flags: <defaults>
</compile_context>

<pallas_src>
import functools

import jax
import jax.numpy as jnp
from jax import lax
from jax.experimental import pallas as pl
from jax.experimental.pallas import tpu as pltpu


def _round_up(x, m):
    return (x + m - 1) // m * m


def lstm_head_kernel(x_ref, w_ih_ref, w_hh_ref, b_ref, w_out_ref, b_out_ref,
                     out_ref, ig_sc, h_sc, c_sc, *, hidden_size, time_block,
                     seq_len, needs_mask, unroll):
    """One (batch tile, time block) grid step of the LSTM recurrence.

    x_ref     : (TT, BB, E_pad)  bf16 time-major input slab (lane-dense E)
    w_ih_ref  : (E_pad, 4H)      bf16 input->gate weights, gate order [i,f,g,o]
    w_hh_ref  : (H, 4H)          bf16 hidden->gate weights
    b_ref     : (1, 4H)          f32  b_ih + b_hh (per-gate zero padded)
    w_out_ref : (H, O_pad)       bf16
    b_out_ref : (1, O_pad)       f32
    out_ref   : (BB, O_pad)      f32, written only on the last time block
    ig_sc     : (TT, BB, 4H)     f32 VMEM scratch: hoisted x@W_ih + b
    h_sc/c_sc : (BB, H)          f32 VMEM scratch, persist across time blocks
    """
    t_idx = pl.program_id(1)
    n_t = pl.num_programs(1)
    H = hidden_size
    TT = time_block
    BB = h_sc.shape[0]
    E_pad = x_ref.shape[-1]

    @pl.when(t_idx == 0)
    def _init():
        h_sc[...] = jnp.zeros_like(h_sc)
        c_sc[...] = jnp.zeros_like(c_sc)

    # Hoisted input projection: one big MXU matmul for the whole time block
    # instead of TT tiny (M=BB, K=E+H) matmuls on the serial critical path.
    x_all = x_ref[...].reshape(TT * BB, E_pad)                        # bf16
    ig = jnp.dot(x_all, w_ih_ref[...],
                 preferred_element_type=jnp.float32) + b_ref[...]     # (TT*BB, 4H) f32
    ig_sc[...] = ig.reshape(TT, BB, 4 * H)

    # Grid-invariant operands loaded once per grid step (outside the loop).
    w_hh = w_hh_ref[...]
    t_base = t_idx * TT

    def make_step(masked):
        def step(tt, carry):
            h, c = carry                                              # f32 (BB, H)
            gates = ig_sc[tt] + jnp.dot(h.astype(jnp.bfloat16), w_hh,
                                        preferred_element_type=jnp.float32)
            # Lane-aligned slices: H is a multiple of 128.
            i_g = jax.nn.sigmoid(gates[:, 0 * H:1 * H])
            f_g = jax.nn.sigmoid(gates[:, 1 * H:2 * H])
            g_g = jnp.tanh(gates[:, 2 * H:3 * H])
            o_g = jax.nn.sigmoid(gates[:, 3 * H:4 * H])
            c_new = f_g * c + i_g * g_g
            h_new = o_g * jnp.tanh(c_new)
            if masked:
                # Freeze state on padded timesteps of the ragged last block.
                valid = (t_base + tt) < seq_len
                h_new = jnp.where(valid, h_new, h)
                c_new = jnp.where(valid, c_new, c)
            return h_new, c_new
        return step

    def run(masked):
        h, c = lax.fori_loop(0, TT, make_step(masked),
                             (h_sc[...], c_sc[...]), unroll=unroll)
        h_sc[...] = h
        c_sc[...] = c

    if needs_mask:
        # Compile the freeze mask only into the (single) ragged last block.
        is_last = t_idx == n_t - 1
        pl.when(t_idx < n_t - 1)(lambda: run(False))
        pl.when(is_last)(lambda: run(True))
    else:
        run(False)

    @pl.when(t_idx == n_t - 1)
    def _finalize():
        # TODO(synk): at production O_pad*H_pad, move this Linear+sigmoid out
        # of the kernel so w_out is not VMEM-resident for the whole recurrence
        # (mainly a v7x 64 MiB concern).
        logits = (jnp.dot(h_sc[...].astype(jnp.bfloat16), w_out_ref[...],
                          preferred_element_type=jnp.float32) + b_out_ref[...])
        out_ref[...] = jax.nn.sigmoid(logits)


def _prepare_weights(params, E, E_pad, H, H_pad, O, O_pad):
    """Per-gate pad gate columns to H_pad, pad K dims, cast weights to bf16.

    Per-gate zero padding of weights and bias keeps the padded hidden columns
    exactly 0 through the recurrence (tanh(0)=0 for the g gate, c starts at 0).
    """
    def pad_gate_cols(w):                      # (K, 4H) -> (K, 4*H_pad)
        k = w.shape[0]
        w4 = w.reshape(k, 4, H)
        w4 = jnp.pad(w4, ((0, 0), (0, 0), (0, H_pad - H)))
        return w4.reshape(k, 4 * H_pad)

    w_ih = pad_gate_cols(params["w_ih"])                               # (E, 4H_pad)
    w_ih = jnp.pad(w_ih, ((0, E_pad - E), (0, 0))).astype(jnp.bfloat16)
    w_hh = pad_gate_cols(params["w_hh"])                               # (H, 4H_pad)
    w_hh = jnp.pad(w_hh, ((0, H_pad - H), (0, 0))).astype(jnp.bfloat16)
    b = pad_gate_cols(params["b"]).astype(jnp.float32)                 # (1, 4H_pad)
    w_out = jnp.pad(params["w_out"],
                    ((0, H_pad - H), (0, O_pad - O))).astype(jnp.bfloat16)
    b_out = jnp.pad(params["b_out"],
                    ((0, 0), (0, O_pad - O))).astype(jnp.float32)
    return w_ih, w_hh, b, w_out, b_out


def rnn_forward(inputs, params, *, time_block=64, batch_block=8):
    """inputs: (B, T) int32 token ids.  Returns sigmoid(Linear(h_T)): (B, O)."""
    B, T = inputs.shape
    E = params["w_ih"].shape[0]
    H = params["w_hh"].shape[0]
    O = params["w_out"].shape[1]

    BB = _round_up(min(batch_block, _round_up(B, 8)), 8)   # batch tile
    B_pad = _round_up(B, BB)
    E_pad = _round_up(E, 128)          # lane-dense x slab
    H_pad = _round_up(H, 128)          # lane-aligned gate slices
    O_pad = _round_up(O, 128)          # lane-dense output store
    TT = min(time_block, T)            # timesteps per grid step
    T_pad = _round_up(T, TT)
    needs_mask = T_pad != T

    # Embedding token-id gather stays in the wrapper (plain XLA), emitted
    # directly time-major so the kernel streams contiguous (TT, BB, E_pad) slabs.
    ids = jnp.pad(inputs, ((0, B_pad - B), (0, 0)))
    x = jnp.take(params["embedding"], ids.T, axis=0)                   # (T, B_pad, E)
    x = jnp.pad(x, ((0, T_pad - T), (0, 0), (0, E_pad - E))).astype(jnp.bfloat16)

    w_ih, w_hh, b, w_out, b_out = _prepare_weights(params, E, E_pad, H, H_pad,
                                                   O, O_pad)

    # Explicit scoped-VMEM budget (defaults are 16/32 MiB; a production-size
    # resident W_hh would otherwise fail long before physical VMEM runs out).
    # Conservatively assume everything double-buffered; stay <= v7x's 64 MiB.
    est = (2 * TT * BB * E_pad * 2                                   # x slab bf16
           + 2 * (E_pad + H_pad) * 4 * H_pad * 2                     # W_ih, W_hh bf16
           + 2 * H_pad * O_pad * 2                                   # W_out bf16
           + 2 * (4 * H_pad + O_pad) * 4                             # biases f32
           + 2 * BB * O_pad * 4                                      # out block f32
           + (TT * BB * 4 * H_pad + 2 * BB * H_pad) * 4)             # VMEM scratch
    vmem_limit = int(min(64 * 2 ** 20, max(32 * 2 ** 20, 2 * est)))

    kernel = functools.partial(
        lstm_head_kernel, hidden_size=H_pad, time_block=TT, seq_len=T,
        needs_mask=needs_mask, unroll=(True if TT <= 64 else 8))

    def call(single_buffer_weights):
        if single_buffer_weights:
            # Grid-invariant operands: one VMEM buffer each (constant index
            # map -> never re-fetched; halves resident weight VMEM on v7x).
            def const(shape):
                return pl.BlockSpec(shape, lambda bi, ti: (0,) * len(shape),
                                    pipeline_mode=pl.Buffered(1))
        else:
            def const(shape):
                return pl.BlockSpec(shape, lambda bi, ti: (0,) * len(shape))

        out = pl.pallas_call(
            kernel,
            out_shape=jax.ShapeDtypeStruct((B_pad, O_pad), jnp.float32),
            grid_spec=pltpu.PrefetchScalarGridSpec(
                num_scalar_prefetch=0,
                grid=(B_pad // BB, T_pad // TT),   # (parallel batch, serial time)
                in_specs=[
                    pl.BlockSpec((TT, BB, E_pad), lambda bi, ti: (ti, bi, 0)),  # x slab
                    const((E_pad, 4 * H_pad)),                                   # W_ih
                    const((H_pad, 4 * H_pad)),                                   # W_hh
                    const((1, 4 * H_pad)),                                       # bias
                    const((H_pad, O_pad)),                                       # W_out
                    const((1, O_pad)),                                           # b_out
                ],
                out_specs=pl.BlockSpec((BB, O_pad), lambda bi, ti: (bi, 0)),
                scratch_shapes=[
                    pltpu.VMEM((TT, BB, 4 * H_pad), jnp.float32),   # hoisted x@W_ih + b
                    pltpu.VMEM((BB, H_pad), jnp.float32),           # h state
                    pltpu.VMEM((BB, H_pad), jnp.float32),           # c state
                ],
            ),
            compiler_params=pltpu.CompilerParams(
                dimension_semantics=("parallel", "arbitrary"),
                vmem_limit_bytes=vmem_limit),
        )(x, w_ih, w_hh, b, w_out, b_out)
        return jax.block_until_ready(out)

    try:
        out = call(single_buffer_weights=True)
    except Exception:
        # pipeline_mode=pl.Buffered(1) unsupported on this jax/libtpu build:
        # fall back to default double-buffered (still never re-DMA'd) weights.
        out = call(single_buffer_weights=False)
    return out[:B, :O]


def make_params(key, vocab_size, embed_size, hidden_size, output_size):
    ks = jax.random.split(key, 7)
    scale = 0.1
    embedding = scale * jax.random.normal(ks[0], (vocab_size, embed_size), jnp.float32)
    # Stored pre-transposed: (in, 4H) / (H, 4H), gate order [i, f, g, o].
    w_ih = scale * jax.random.normal(ks[1], (embed_size, 4 * hidden_size), jnp.float32)
    w_hh = scale * jax.random.normal(ks[2], (hidden_size, 4 * hidden_size), jnp.float32)
    b_ih = scale * jax.random.normal(ks[3], (4 * hidden_size,), jnp.float32)
    b_hh = scale * jax.random.normal(ks[4], (4 * hidden_size,), jnp.float32)
    w_out = scale * jax.random.normal(ks[5], (hidden_size, output_size), jnp.float32)
    b_out = scale * jax.random.normal(ks[6], (output_size,), jnp.float32)
    return {
        "embedding": embedding,
        "w_ih": w_ih,
        "w_hh": w_hh,
        "b": (b_ih + b_hh).reshape(1, 4 * hidden_size),
        "w_out": w_out,
        "b_out": b_out.reshape(1, output_size),
    }


def rnn_reference(inputs, params):
    """Pure-JAX f32 reference matching torch.nn.LSTM semantics (1 layer, unidir)."""
    emb = jnp.take(params["embedding"], inputs, axis=0)       # (B, T, E)
    B, T, E = emb.shape
    H = params["w_hh"].shape[0]
    h = jnp.zeros((B, H), jnp.float32)
    c = jnp.zeros((B, H), jnp.float32)

    def step(carry, x_t):
        h, c = carry
        gates = x_t @ params["w_ih"] + h @ params["w_hh"] + params["b"]
        i_g = jax.nn.sigmoid(gates[:, 0 * H:1 * H])
        f_g = jax.nn.sigmoid(gates[:, 1 * H:2 * H])
        g_g = jnp.tanh(gates[:, 2 * H:3 * H])
        o_g = jax.nn.sigmoid(gates[:, 3 * H:4 * H])
        c = f_g * c + i_g * g_g
        h = o_g * jnp.tanh(c)
        return (h, c), None

    (h, c), _ = jax.lax.scan(step, (h, c), jnp.transpose(emb, (1, 0, 2)))
    return jax.nn.sigmoid(h @ params["w_out"] + params["b_out"])


if __name__ == "__main__":
    vocab_size, embed_size, hidden_size, output_size = 50, 32, 32, 4
    B, T = 4, 12

    key = jax.random.PRNGKey(0)
    k_tok, k_par = jax.random.split(key)
    inputs = jax.random.randint(k_tok, (B, T), 0, vocab_size, dtype=jnp.int32)
    params = make_params(k_par, vocab_size, embed_size, hidden_size, output_size)

    ref = rnn_reference(inputs, params)

    # time_block=8 -> grid (1 batch tile, 2 time blocks) with a masked ragged
    # tail (T_pad=16): exercises the carried h/c state and the tail guard.
    out = jax.block_until_ready(rnn_forward(inputs, params, time_block=8))
    assert out.shape == (B, output_size)
    assert jnp.allclose(out, ref, atol=1e-2, rtol=1e-2), float(
        jnp.max(jnp.abs(out - ref)))

    # time_block=4 divides T exactly -> no tail mask compiled anywhere.
    out2 = jax.block_until_ready(rnn_forward(inputs, params, time_block=4))
    assert jnp.allclose(out2, ref, atol=1e-2, rtol=1e-2), float(
        jnp.max(jnp.abs(out2 - ref)))

    print("KERNEL_OK")
</pallas_src>

<mosaic_0001>
module attributes {stable_mosaic.version = 11 : i64} {
  func.func @lstm_head_kernel(%arg0: i32, %arg1: i32, %arg2: memref<8x8x128xbf16, #tpu.memory_space<vmem>>, %arg3: memref<128x512xbf16, #tpu.memory_space<vmem>>, %arg4: memref<128x512xbf16, #tpu.memory_space<vmem>>, %arg5: memref<1x512xf32, #tpu.memory_space<vmem>>, %arg6: memref<128x128xbf16, #tpu.memory_space<vmem>>, %arg7: memref<1x128xf32, #tpu.memory_space<vmem>>, %arg8: memref<8x128xf32, #tpu.memory_space<vmem>>, %arg9: memref<8x8x512xf32, #tpu.memory_space<vmem>>, %arg10: memref<8x128xf32, #tpu.memory_space<vmem>>, %arg11: memref<8x128xf32, #tpu.memory_space<vmem>>) attributes {dimension_semantics = [#tpu.dimension_semantics<parallel>, #tpu.dimension_semantics<arbitrary>], iteration_bounds = array<i64: 1, 2>, scalar_prefetch = 0 : i64, scratch_operands = 3 : i64, tpu.core_type = #tpu.core_type<tc>, window_params = [{transform_indices = @transform_0, window_bounds = array<i64: 8, 8, 128>}, {pipeline_mode = #tpu.pipeline_mode<synchronous>, transform_indices = @transform_1, window_bounds = array<i64: 128, 512>}, {pipeline_mode = #tpu.pipeline_mode<synchronous>, transform_indices = @transform_2, window_bounds = array<i64: 128, 512>}, {pipeline_mode = #tpu.pipeline_mode<synchronous>, transform_indices = @transform_3, window_bounds = array<i64: 1, 512>}, {pipeline_mode = #tpu.pipeline_mode<synchronous>, transform_indices = @transform_4, window_bounds = array<i64: 128, 128>}, {pipeline_mode = #tpu.pipeline_mode<synchronous>, transform_indices = @transform_5, window_bounds = array<i64: 1, 128>}, {transform_indices = @transform_6, window_bounds = array<i64: 8, 128>}]} {
    %c0_i32 = arith.constant 0 : i32
    %0 = arith.cmpi eq, %arg1, %c0_i32 : i32
    %1 = arith.extui %0 : i1 to i32
    %c0_i32_0 = arith.constant 0 : i32
    %2 = arith.cmpi ne, %1, %c0_i32_0 : i32
    scf.if %2 {
      %cst_17 = arith.constant 0.000000e+00 : f32
      %23 = vector.broadcast %cst_17 : f32 to vector<8x128xf32>
      %c0_18 = arith.constant 0 : index
      %c0_19 = arith.constant 0 : index
      %24 = vector.load %arg10[%c0_18, %c0_19] : memref<8x128xf32, #tpu.memory_space<vmem>>, vector<8x128xf32>
      tpu.vector_store %arg10[%c0_18, %c0_19], %23 {strides = array<i32>} : memref<8x128xf32, #tpu.memory_space<vmem>>, vector<8x128xf32>,
      %cst_20 = arith.constant 0.000000e+00 : f32
      %25 = vector.broadcast %cst_20 : f32 to vector<8x128xf32>
      %c0_21 = arith.constant 0 : index
      %c0_22 = arith.constant 0 : index
      %26 = vector.load %arg11[%c0_21, %c0_22] : memref<8x128xf32, #tpu.memory_space<vmem>>, vector<8x128xf32>
      tpu.vector_store %arg11[%c0_21, %c0_22], %25 {strides = array<i32>} : memref<8x128xf32, #tpu.memory_space<vmem>>, vector<8x128xf32>,
    } else {
    }
    %c0 = arith.constant 0 : index
    %c0_1 = arith.constant 0 : index
    %c0_2 = arith.constant 0 : index
    %3 = vector.load %arg2[%c0, %c0_1, %c0_2] : memref<8x8x128xbf16, #tpu.memory_space<vmem>>, vector<8x8x128xbf16>
    %4 = vector.shape_cast %3 : vector<8x8x128xbf16> to vector<64x128xbf16>
    %c0_3 = arith.constant 0 : index
    %c0_4 = arith.constant 0 : index
    %5 = vector.load %arg3[%c0_3, %c0_4] : memref<128x512xbf16, #tpu.memory_space<vmem>>, vector<128x512xbf16>
    %cst = arith.constant dense<0.000000e+00> : vector<64x512xf32>
    %6 = tpu.matmul %4, %5, %cst {dimension_numbers = #tpu.dot_dimension_numbers<[1], [0], [0], [1], [0, 0, 1, 1], [], []>} : vector<64x128xbf16>, vector<128x512xbf16>, vector<64x512xf32> -> vector<64x512xf32>
    %c0_5 = arith.constant 0 : index
    %c0_6 = arith.constant 0 : index
    %7 = vector.load %arg5[%c0_5, %c0_6] : memref<1x512xf32, #tpu.memory_space<vmem>>, vector<1x512xf32>
    %8 = vector.broadcast %7 : vector<1x512xf32> to vector<64x512xf32>
    %9 = arith.addf %6, %8 : vector<64x512xf32>
    %10 = vector.shape_cast %9 : vector<64x512xf32> to vector<8x8x512xf32>
    %c0_7 = arith.constant 0 : index
    %c0_8 = arith.constant 0 : index
    %c0_9 = arith.constant 0 : index
    %11 = vector.load %arg9[%c0_7, %c0_8, %c0_9] : memref<8x8x512xf32, #tpu.memory_space<vmem>>, vector<8x8x512xf32>
    tpu.vector_store %arg9[%c0_7, %c0_8, %c0_9], %10 {strides = array<i32>} : memref<8x8x512xf32, #tpu.memory_space<vmem>>, vector<8x8x512xf32>,
    %c0_10 = arith.constant 0 : index
    %c0_11 = arith.constant 0 : index
    %12 = vector.load %arg4[%c0_10, %c0_11] : memref<128x512xbf16, #tpu.memory_space<vmem>>, vector<128x512xbf16>
    %c8_i32 = arith.constant 8 : i32
    %13 = arith.muli %arg1, %c8_i32 : i32
    %c1_i32 = arith.constant 1 : i32
    %14 = arith.cmpi eq, %arg1, %c1_i32 : i32
    %c1_i32_12 = arith.constant 1 : i32
    %15 = arith.cmpi slt, %arg1, %c1_i32_12 : i32
    %16 = arith.extui %15 : i1 to i32
    %c0_i32_13 = arith.constant 0 : i32
    %17 = arith.cmpi ne, %16, %c0_i32_13 : i32
    scf.if %17 {
      %c0_17 = arith.constant 0 : index
      %c0_18 = arith.constant 0 : index
      %23 = vector.load %arg10[%c0_17, %c0_18] : memref<8x128xf32, #tpu.memory_space<vmem>>, vector<8x128xf32>
      %c0_19 = arith.constant 0 : index
      %c0_20 = arith.constant 0 : index
      %24 = vector.load %arg11[%c0_19, %c0_20] : memref<8x128xf32, #tpu.memory_space<vmem>>, vector<8x128xf32>
      %c0_i32_21 = arith.constant 0 : i32
      %25 = arith.index_cast %c0_i32_21 : i32 to index
      %c0_22 = arith.constant 0 : index
      %c0_23 = arith.constant 0 : index
      %26 = vector.load %arg9[%25, %c0_22, %c0_23] : memref<8x8x512xf32, #tpu.memory_space<vmem>>, vector<1x8x512xf32>
      %27 = vector.shape_cast %26 : vector<1x8x512xf32> to vector<8x512xf32>
      %28 = arith.truncf %23 : vector<8x128xf32> to vector<8x128xbf16>
      %cst_24 = arith.constant dense<0.000000e+00> : vector<8x512xf32>
      %29 = tpu.matmul %28, %12, %cst_24 {dimension_numbers = #tpu.dot_dimension_numbers<[1], [0], [0], [1], [0, 0, 1, 1], [], []>} : vector<8x128xbf16>, vector<128x512xbf16>, vector<8x512xf32> -> vector<8x512xf32>
      %30 = arith.addf %27, %29 : vector<8x512xf32>
      %31 = vector.extract_strided_slice %30 {offsets = [0, 0], sizes = [8, 128], strides = [1, 1]} : vector<8x512xf32> to vector<8x128xf32>
      %32 = arith.negf %31 : vector<8x128xf32>
      %33 = math.exp %32 : vector<8x128xf32>
      %cst_25 = arith.constant 1.000000e+00 : f32
      %34 = vector.broadcast %cst_25 : f32 to vector<8x128xf32>
      %35 = arith.addf %34, %33 : vector<8x128xf32>
      %36 = arith.divf %34, %35 : vector<8x128xf32>
      %37 = vector.extract_strided_slice %30 {offsets = [0, 128], sizes = [8, 128], strides = [1, 1]} : vector<8x512xf32> to vector<8x128xf32>
      %38 = arith.negf %37 : vector<8x128xf32>
      %39 = math.exp %38 : vector<8x128xf32>
      %cst_26 = arith.constant 1.000000e+00 : f32
      %40 = vector.broadcast %cst_26 : f32 to vector<8x128xf32>
      %41 = arith.addf %40, %39 : vector<8x128xf32>
      %42 = arith.divf %40, %41 : vector<8x128xf32>
      %43 = vector.extract_strided_slice %30 {offsets = [0, 256], sizes = [8, 128], strides = [1, 1]} : vector<8x512xf32> to vector<8x128xf32>
      %44 = math.tanh %43 : vector<8x128xf32>
      %45 = vector.extract_strided_slice %30 {offsets = [0, 384], sizes = [8, 128], strides = [1, 1]} : vector<8x512xf32> to vector<8x128xf32>
      %46 = arith.negf %45 : vector<8x128xf32>
      %47 = math.exp %46 : vector<8x128xf32>
      %cst_27 = arith.constant 1.000000e+00 : f32
      %48 = vector.broadcast %cst_27 : f32 to vector<8x128xf32>
      %49 = arith.addf %48, %47 : vector<8x128xf32>
      %50 = arith.divf %48, %49 : vector<8x128xf32>
      %51 = arith.mulf %42, %24 : vector<8x128xf32>
      %52 = arith.mulf %36, %44 : vector<8x128xf32>
      %53 = arith.addf %51, %52 : vector<8x128xf32>
      %54 = math.tanh %53 : vector<8x128xf32>
      %55 = arith.mulf %50, %54 : vector<8x128xf32>
      %c1_i32_28 = arith.constant 1 : i32
      %56 = arith.index_cast %c1_i32_28 : i32 to index
      %c0_29 = arith.constant 0 : index
      %c0_30 = arith.constant 0 : index
      %57 = vector.load %arg9[%56, %c0_29, %c0_30] : memref<8x8x512xf32, #tpu.memory_space<vmem>>, vector<1x8x512xf32>
      %58 = vector.shape_cast %57 : vector<1x8x512xf32> to vector<8x512xf32>
      %59 = arith.truncf %55 : vector<8x128xf32> to vector<8x128xbf16>
      %cst_31 = arith.constant dense<0.000000e+00> : vector<8x512xf32>
      %60 = tpu.matmul %59, %12, %cst_31 {dimension_numbers = #tpu.dot_dimension_numbers<[1], [0], [0], [1], [0, 0, 1, 1], [], []>} : vector<8x128xbf16>, vector<128x512xbf16>, vector<8x512xf32> -> vector<8x512xf32>
      %61 = arith.addf %58, %60 : vector<8x512xf32>
      %62 = vector.extract_strided_slice %61 {offsets = [0, 0], sizes = [8, 128], strides = [1, 1]} : vector<8x512xf32> to vector<8x128xf32>
      %63 = arith.negf %62 : vector<8x128xf32>
      %64 = math.exp %63 : vector<8x128xf32>
      %cst_32 = arith.constant 1.000000e+00 : f32
      %65 = vector.broadcast %cst_32 : f32 to vector<8x128xf32>
      %66 = arith.addf %65, %64 : vector<8x128xf32>
      %67 = arith.divf %65, %66 : vector<8x128xf32>
      %68 = vector.extract_strided_slice %61 {offsets = [0, 128], sizes = [8, 128], strides = [1, 1]} : vector<8x512xf32> to vector<8x128xf32>
      %69 = arith.negf %68 : vector<8x128xf32>
      %70 = math.exp %69 : vector<8x128xf32>
      %cst_33 = arith.constant 1.000000e+00 : f32
      %71 = vector.broadcast %cst_33 : f32 to vector<8x128xf32>
      %72 = arith.addf %71, %70 : vector<8x128xf32>
      %73 = arith.divf %71, %72 : vector<8x128xf32>
      %74 = vector.extract_strided_slice %61 {offsets = [0, 256], sizes = [8, 128], strides = [1, 1]} : vector<8x512xf32> to vector<8x128xf32>
      %75 = math.tanh %74 : vector<8x128xf32>
      %76 = vector.extract_strided_slice %61 {offsets = [0, 384], sizes = [8, 128], strides = [1, 1]} : vector<8x512xf32> to vector<8x128xf32>
      %77 = arith.negf %76 : vector<8x128xf32>
      %78 = math.exp %77 : vector<8x128xf32>
      %cst_34 = arith.constant 1.000000e+00 : f32
      %79 = vector.broadcast %cst_34 : f32 to vector<8x128xf32>
      %80 = arith.addf %79, %78 : vector<8x128xf32>
      %81 = arith.divf %79, %80 : vector<8x128xf32>
      %82 = arith.mulf %73, %53 : vector<8x128xf32>
      %83 = arith.mulf %67, %75 : vector<8x128xf32>
      %84 = arith.addf %82, %83 : vector<8x128xf32>
      %85 = math.tanh %84 : vector<8x128xf32>
      %86 = arith.mulf %81, %85 : vector<8x128xf32>
      %c2_i32 = arith.constant 2 : i32
      %87 = arith.index_cast %c2_i32 : i32 to index
      %c0_35 = arith.constant 0 : index
      %c0_36 = arith.constant 0 : index
      %88 = vector.load %arg9[%87, %c0_35, %c0_36] : memref<8x8x512xf32, #tpu.memory_space<vmem>>, vector<1x8x512xf32>
      %89 = vector.shape_cast %88 : vector<1x8x512xf32> to vector<8x512xf32>
      %90 = arith.truncf %86 : vector<8x128xf32> to vector<8x128xbf16>
      %cst_37 = arith.constant dense<0.000000e+00> : vector<8x512xf32>
      %91 = tpu.matmul %90, %12, %cst_37 {dimension_numbers = #tpu.dot_dimension_numbers<[1], [0], [0], [1], [0, 0, 1, 1], [], []>} : vector<8x128xbf16>, vector<128x512xbf16>, vector<8x512xf32> -> vector<8x512xf32>
      %92 = arith.addf %89, %91 : vector<8x512xf32>
      %93 = vector.extract_strided_slice %92 {offsets = [0, 0], sizes = [8, 128], strides = [1, 1]} : vector<8x512xf32> to vector<8x128xf32>
      %94 = arith.negf %93 : vector<8x128xf32>
      %95 = math.exp %94 : vector<8x128xf32>
      %cst_38 = arith.constant 1.000000e+00 : f32
      %96 = vector.broadcast %cst_38 : f32 to vector<8x128xf32>
      %97 = arith.addf %96, %95 : vector<8x128xf32>
      %98 = arith.divf %96, %97 : vector<8x128xf32>
      %99 = vector.extract_strided_slice %92 {offsets = [0, 128], sizes = [8, 128], strides = [1, 1]} : vector<8x512xf32> to vector<8x128xf32>
      %100 = arith.negf %99 : vector<8x128xf32>
      %101 = math.exp %100 : vector<8x128xf32>
      %cst_39 = arith.constant 1.000000e+00 : f32
      %102 = vector.broadcast %cst_39 : f32 to vector<8x128xf32>
      %103 = arith.addf %102, %101 : vector<8x128xf32>
      %104 = arith.divf %102, %103 : vector<8x128xf32>
      %105 = vector.extract_strided_slice %92 {offsets = [0, 256], sizes = [8, 128], strides = [1, 1]} : vector<8x512xf32> to vector<8x128xf32>
      %106 = math.tanh %105 : vector<8x128xf32>
      %107 = vector.extract_strided_slice %92 {offsets = [0, 384], sizes = [8, 128], strides = [1, 1]} : vector<8x512xf32> to vector<8x128xf32>
      %108 = arith.negf %107 : vector<8x128xf32>
      %109 = math.exp %108 : vector<8x128xf32>
      %cst_40 = arith.constant 1.000000e+00 : f32
      %110 = vector.broadcast %cst_40 : f32 to vector<8x128xf32>
      %111 = arith.addf %110, %109 : vector<8x128xf32>
      %112 = arith.divf %110, %111 : vector<8x128xf32>
      %113 = arith.mulf %104, %84 : vector<8x128xf32>
      %114 = arith.mulf %98, %106 : vector<8x128xf32>
      %115 = arith.addf %113, %114 : vector<8x128xf32>
      %116 = math.tanh %115 : vector<8x128xf32>
      %117 = arith.mulf %112, %116 : vector<8x128xf32>
      %c3_i32 = arith.constant 3 : i32
      %118 = arith.index_cast %c3_i32 : i32 to index
      %c0_41 = arith.constant 0 : index
      %c0_42 = arith.constant 0 : index
      %119 = vector.load %arg9[%118, %c0_41, %c0_42] : memref<8x8x512xf32, #tpu.memory_space<vmem>>, vector<1x8x512xf32>
      %120 = vector.shape_cast %119 : vector<1x8x512xf32> to vector<8x512xf32>
      %121 = arith.truncf %117 : vector<8x128xf32> to vector<8x128xbf16>
      %cst_43 = arith.constant dense<0.000000e+00> : vector<8x512xf32>
      %122 = tpu.matmul %121, %12, %cst_43 {dimension_numbers = #tpu.dot_dimension_numbers<[1], [0], [0], [1], [0, 0, 1, 1], [], []>} : vector<8x128xbf16>, vector<128x512xbf16>, vector<8x512xf32> -> vector<8x512xf32>
      %123 = arith.addf %120, %122 : vector<8x512xf32>
      %124 = vector.extract_strided_slice %123 {offsets = [0, 0], sizes = [8, 128], strides = [1, 1]} : vector<8x512xf32> to vector<8x128xf32>
      %125 = arith.negf %124 : vector<8x128xf32>
      %126 = math.exp %125 : vector<8x128xf32>
      %cst_44 = arith.constant 1.000000e+00 : f32
      %127 = vector.broadcast %cst_44 : f32 to vector<8x128xf32>
      %128 = arith.addf %127, %126 : vector<8x128xf32>
      %129 = arith.divf %127, %128 : vector<8x128xf32>
      %130 = vector.extract_strided_slice %123 {offsets = [0, 128], sizes = [8, 128], strides = [1, 1]} : vector<8x512xf32> to vector<8x128xf32>
      %131 = arith.negf %130 : vector<8x128xf32>
      %132 = math.exp %131 : vector<8x128xf32>
      %cst_45 = arith.constant 1.000000e+00 : f32
      %133 = vector.broadcast %cst_45 : f32 to vector<8x128xf32>
      %134 = arith.addf %133, %132 : vector<8x128xf32>
      %135 = arith.divf %133, %134 : vector<8x128xf32>
      %136 = vector.extract_strided_slice %123 {offsets = [0, 256], sizes = [8, 128], strides = [1, 1]} : vector<8x512xf32> to vector<8x128xf32>
      %137 = math.tanh %136 : vector<8x128xf32>
      %138 = vector.extract_strided_slice %123 {offsets = [0, 384], sizes = [8, 128], strides = [1, 1]} : vector<8x512xf32> to vector<8x128xf32>
      %139 = arith.negf %138 : vector<8x128xf32>
      %140 = math.exp %139 : vector<8x128xf32>
      %cst_46 = arith.constant 1.000000e+00 : f32
      %141 = vector.broadcast %cst_46 : f32 to vector<8x128xf32>
      %142 = arith.addf %141, %140 : vector<8x128xf32>
      %143 = arith.divf %141, %142 : vector<8x128xf32>
      %144 = arith.mulf %135, %115 : vector<8x128xf32>
      %145 = arith.mulf %129, %137 : vector<8x128xf32>
      %146 = arith.addf %144, %145 : vector<8x128xf32>
      %147 = math.tanh %146 : vector<8x128xf32>
      %148 = arith.mulf %143, %147 : vector<8x128xf32>
      %c4_i32 = arith.constant 4 : i32
      %149 = arith.index_cast %c4_i32 : i32 to index
      %c0_47 = arith.constant 0 : index
      %c0_48 = arith.constant 0 : index
      %150 = vector.load %arg9[%149, %c0_47, %c0_48] : memref<8x8x512xf32, #tpu.memory_space<vmem>>, vector<1x8x512xf32>
      %151 = vector.shape_cast %150 : vector<1x8x512xf32> to vector<8x512xf32>
      %152 = arith.truncf %148 : vector<8x128xf32> to vector<8x128xbf16>
      %cst_49 = arith.constant dense<0.000000e+00> : vector<8x512xf32>
      %153 = tpu.matmul %152, %12, %cst_49 {dimension_numbers = #tpu.dot_dimension_numbers<[1], [0], [0], [1], [0, 0, 1, 1], [], []>} : vector<8x128xbf16>, vector<128x512xbf16>, vector<8x512xf32> -> vector<8x512xf32>
      %154 = arith.addf %151, %153 : vector<8x512xf32>
      %155 = vector.extract_strided_slice %154 {offsets = [0, 0], sizes = [8, 128], strides = [1, 1]} : vector<8x512xf32> to vector<8x128xf32>
      %156 = arith.negf %155 : vector<8x128xf32>
      %157 = math.exp %156 : vector<8x128xf32>
      %cst_50 = arith.constant 1.000000e+00 : f32
      %158 = vector.broadcast %cst_50 : f32 to vector<8x128xf32>
      %159 = arith.addf %158, %157 : vector<8x128xf32>
      %160 = arith.divf %158, %159 : vector<8x128xf32>
      %161 = vector.extract_strided_slice %154 {offsets = [0, 128], sizes = [8, 128], strides = [1, 1]} : vector<8x512xf32> to vector<8x128xf32>
      %162 = arith.negf %161 : vector<8x128xf32>
      %163 = math.exp %162 : vector<8x128xf32>
      %cst_51 = arith.constant 1.000000e+00 : f32
      %164 = vector.broadcast %cst_51 : f32 to vector<8x128xf32>
      %165 = arith.addf %164, %163 : vector<8x128xf32>
      %166 = arith.divf %164, %165 : vector<8x128xf32>
      %167 = vector.extract_strided_slice %154 {offsets = [0, 256], sizes = [8, 128], strides = [1, 1]} : vector<8x512xf32> to vector<8x128xf32>
      %168 = math.tanh %167 : vector<8x128xf32>
      %169 = vector.extract_strided_slice %154 {offsets = [0, 384], sizes = [8, 128], strides = [1, 1]} : vector<8x512xf32> to vector<8x128xf32>
      %170 = arith.negf %169 : vector<8x128xf32>
      %171 = math.exp %170 : vector<8x128xf32>
      %cst_52 = arith.constant 1.000000e+00 : f32
      %172 = vector.broadcast %cst_52 : f32 to vector<8x128xf32>
      %173 = arith.addf %172, %171 : vector<8x128xf32>
      %174 = arith.divf %172, %173 : vector<8x128xf32>
      %175 = arith.mulf %166, %146 : vector<8x128xf32>
      %176 = arith.mulf %160, %168 : vector<8x128xf32>
      %177 = arith.addf %175, %176 : vector<8x128xf32>
      %178 = math.tanh %177 : vector<8x128xf32>
      %179 = arith.mulf %174, %178 : vector<8x128xf32>
      %c5_i32 = arith.constant 5 : i32
      %180 = arith.index_cast %c5_i32 : i32 to index
      %c0_53 = arith.constant 0 : index
      %c0_54 = arith.constant 0 : index
      %181 = vector.load %arg9[%180, %c0_53, %c0_54] : memref<8x8x512xf32, #tpu.memory_space<vmem>>, vector<1x8x512xf32>
      %182 = vector.shape_cast %181 : vector<1x8x512xf32> to vector<8x512xf32>
      %183 = arith.truncf %179 : vector<8x128xf32> to vector<8x128xbf16>
      %cst_55 = arith.constant dense<0.000000e+00> : vector<8x512xf32>
      %184 = tpu.matmul %183, %12, %cst_55 {dimension_numbers = #tpu.dot_dimension_numbers<[1], [0], [0], [1], [0, 0, 1, 1], [], []>} : vector<8x128xbf16>, vector<128x512xbf16>, vector<8x512xf32> -> vector<8x512xf32>
      %185 = arith.addf %182, %184 : vector<8x512xf32>
      %186 = vector.extract_strided_slice %185 {offsets = [0, 0], sizes = [8, 128], strides = [1, 1]} : vector<8x512xf32> to vector<8x128xf32>
      %187 = arith.negf %186 : vector<8x128xf32>
      %188 = math.exp %187 : vector<8x128xf32>
      %cst_56 = arith.constant 1.000000e+00 : f32
      %189 = vector.broadcast %cst_56 : f32 to vector<8x128xf32>
      %190 = arith.addf %189, %188 : vector<8x128xf32>
      %191 = arith.divf %189, %190 : vector<8x128xf32>
      %192 = vector.extract_strided_slice %185 {offsets = [0, 128], sizes = [8, 128], strides = [1, 1]} : vector<8x512xf32> to vector<8x128xf32>
      %193 = arith.negf %192 : vector<8x128xf32>
      %194 = math.exp %193 : vector<8x128xf32>
      %cst_57 = arith.constant 1.000000e+00 : f32
      %195 = vector.broadcast %cst_57 : f32 to vector<8x128xf32>
      %196 = arith.addf %195, %194 : vector<8x128xf32>
      %197 = arith.divf %195, %196 : vector<8x128xf32>
      %198 = vector.extract_strided_slice %185 {offsets = [0, 256], sizes = [8, 128], strides = [1, 1]} : vector<8x512xf32> to vector<8x128xf32>
      %199 = math.tanh %198 : vector<8x128xf32>
      %200 = vector.extract_strided_slice %185 {offsets = [0, 384], sizes = [8, 128], strides = [1, 1]} : vector<8x512xf32> to vector<8x128xf32>
      %201 = arith.negf %200 : vector<8x128xf32>
      %202 = math.exp %201 : vector<8x128xf32>
      %cst_58 = arith.constant 1.000000e+00 : f32
      %203 = vector.broadcast %cst_58 : f32 to vector<8x128xf32>
      %204 = arith.addf %203, %202 : vector<8x128xf32>
      %205 = arith.divf %203, %204 : vector<8x128xf32>
      %206 = arith.mulf %197, %177 : vector<8x128xf32>
      %207 = arith.mulf %191, %199 : vector<8x128xf32>
      %208 = arith.addf %206, %207 : vector<8x128xf32>
      %209 = math.tanh %208 : vector<8x128xf32>
      %210 = arith.mulf %205, %209 : vector<8x128xf32>
      %c6_i32 = arith.constant 6 : i32
      %211 = arith.index_cast %c6_i32 : i32 to index
      %c0_59 = arith.constant 0 : index
      %c0_60 = arith.constant 0 : index
      %212 = vector.load %arg9[%211, %c0_59, %c0_60] : memref<8x8x512xf32, #tpu.memory_space<vmem>>, vector<1x8x512xf32>
      %213 = vector.shape_cast %212 : vector<1x8x512xf32> to vector<8x512xf32>
      %214 = arith.truncf %210 : vector<8x128xf32> to vector<8x128xbf16>
      %cst_61 = arith.constant dense<0.000000e+00> : vector<8x512xf32>
      %215 = tpu.matmul %214, %12, %cst_61 {dimension_numbers = #tpu.dot_dimension_numbers<[1], [0], [0], [1], [0, 0, 1, 1], [], []>} : vector<8x128xbf16>, vector<128x512xbf16>, vector<8x512xf32> -> vector<8x512xf32>
      %216 = arith.addf %213, %215 : vector<8x512xf32>
      %217 = vector.extract_strided_slice %216 {offsets = [0, 0], sizes = [8, 128], strides = [1, 1]} : vector<8x512xf32> to vector<8x128xf32>
      %218 = arith.negf %217 : vector<8x128xf32>
      %219 = math.exp %218 : vector<8x128xf32>
      %cst_62 = arith.constant 1.000000e+00 : f32
      %220 = vector.broadcast %cst_62 : f32 to vector<8x128xf32>
      %221 = arith.addf %220, %219 : vector<8x128xf32>
      %222 = arith.divf %220, %221 : vector<8x128xf32>
      %223 = vector.extract_strided_slice %216 {offsets = [0, 128], sizes = [8, 128], strides = [1, 1]} : vector<8x512xf32> to vector<8x128xf32>
      %224 = arith.negf %223 : vector<8x128xf32>
      %225 = math.exp %224 : vector<8x128xf32>
      %cst_63 = arith.constant 1.000000e+00 : f32
      %226 = vector.broadcast %cst_63 : f32 to vector<8x128xf32>
      %227 = arith.addf %226, %225 : vector<8x128xf32>
      %228 = arith.divf %226, %227 : vector<8x128xf32>
      %229 = vector.extract_strided_slice %216 {offsets = [0, 256], sizes = [8, 128], strides = [1, 1]} : vector<8x512xf32> to vector<8x128xf32>
      %230 = math.tanh %229 : vector<8x128xf32>
      %231 = vector.extract_strided_slice %216 {offsets = [0, 384], sizes = [8, 128], strides = [1, 1]} : vector<8x512xf32> to vector<8x128xf32>
      %232 = arith.negf %231 : vector<8x128xf32>
      %233 = math.exp %232 : vector<8x128xf32>
      %cst_64 = arith.constant 1.000000e+00 : f32
      %234 = vector.broadcast %cst_64 : f32 to vector<8x128xf32>
      %235 = arith.addf %234, %233 : vector<8x128xf32>
      %236 = arith.divf %234, %235 : vector<8x128xf32>
      %237 = arith.mulf %228, %208 : vector<8x128xf32>
      %238 = arith.mulf %222, %230 : vector<8x128xf32>
      %239 = arith.addf %237, %238 : vector<8x128xf32>
      %240 = math.tanh %239 : vector<8x128xf32>
      %241 = arith.mulf %236, %240 : vector<8x128xf32>
      %c7_i32 = arith.constant 7 : i32
      %242 = arith.index_cast %c7_i32 : i32 to index
      %c0_65 = arith.constant 0 : index
      %c0_66 = arith.constant 0 : index
      %243 = vector.load %arg9[%242, %c0_65, %c0_66] : memref<8x8x512xf32, #tpu.memory_space<vmem>>, vector<1x8x512xf32>
      %244 = vector.shape_cast %243 : vector<1x8x512xf32> to vector<8x512xf32>
      %245 = arith.truncf %241 : vector<8x128xf32> to vector<8x128xbf16>
      %cst_67 = arith.constant dense<0.000000e+00> : vector<8x512xf32>
      %246 = tpu.matmul %245, %12, %cst_67 {dimension_numbers = #tpu.dot_dimension_numbers<[1], [0], [0], [1], [0, 0, 1, 1], [], []>} : vector<8x128xbf16>, vector<128x512xbf16>, vector<8x512xf32> -> vector<8x512xf32>
      %247 = arith.addf %244, %246 : vector<8x512xf32>
      %248 = vector.extract_strided_slice %247 {offsets = [0, 0], sizes = [8, 128], strides = [1, 1]} : vector<8x512xf32> to vector<8x128xf32>
      %249 = arith.negf %248 : vector<8x128xf32>
      %250 = math.exp %249 : vector<8x128xf32>
      %cst_68 = arith.constant 1.000000e+00 : f32
      %251 = vector.broadcast %cst_68 : f32 to vector<8x128xf32>
      %252 = arith.addf %251, %250 : vector<8x128xf32>
      %253 = arith.divf %251, %252 : vector<8x128xf32>
      %254 = vector.extract_strided_slice %247 {offsets = [0, 128], sizes = [8, 128], strides = [1, 1]} : vector<8x512xf32> to vector<8x128xf32>
      %255 = arith.negf %254 : vector<8x128xf32>
      %256 = math.exp %255 : vector<8x128xf32>
      %cst_69 = arith.constant 1.000000e+00 : f32
      %257 = vector.broadcast %cst_69 : f32 to vector<8x128xf32>
      %258 = arith.addf %257, %256 : vector<8x128xf32>
      %259 = arith.divf %257, %258 : vector<8x128xf32>
      %260 = vector.extract_strided_slice %247 {offsets = [0, 256], sizes = [8, 128], strides = [1, 1]} : vector<8x512xf32> to vector<8x128xf32>
      %261 = math.tanh %260 : vector<8x128xf32>
      %262 = vector.extract_strided_slice %247 {offsets = [0, 384], sizes = [8, 128], strides = [1, 1]} : vector<8x512xf32> to vector<8x128xf32>
      %263 = arith.negf %262 : vector<8x128xf32>
      %264 = math.exp %263 : vector<8x128xf32>
      %cst_70 = arith.constant 1.000000e+00 : f32
      %265 = vector.broadcast %cst_70 : f32 to vector<8x128xf32>
      %266 = arith.addf %265, %264 : vector<8x128xf32>
      %267 = arith.divf %265, %266 : vector<8x128xf32>
      %268 = arith.mulf %259, %239 : vector<8x128xf32>
      %269 = arith.mulf %253, %261 : vector<8x128xf32>
      %270 = arith.addf %268, %269 : vector<8x128xf32>
      %271 = math.tanh %270 : vector<8x128xf32>
      %272 = arith.mulf %267, %271 : vector<8x128xf32>
      %c8_i32_71 = arith.constant 8 : i32
      %c0_72 = arith.constant 0 : index
      %c0_73 = arith.constant 0 : index
      %273 = vector.load %arg10[%c0_72, %c0_73] : memref<8x128xf32, #tpu.memory_space<vmem>>, vector<8x128xf32>
      tpu.vector_store %arg10[%c0_72, %c0_73], %272 {strides = array<i32>} : memref<8x128xf32, #tpu.memory_space<vmem>>, vector<8x128xf32>,
      %c0_74 = arith.constant 0 : index
      %c0_75 = arith.constant 0 : index
      %274 = vector.load %arg11[%c0_74, %c0_75] : memref<8x128xf32, #tpu.memory_space<vmem>>, vector<8x128xf32>
      tpu.vector_store %arg11[%c0_74, %c0_75], %270 {strides = array<i32>} : memref<8x128xf32, #tpu.memory_space<vmem>>, vector<8x128xf32>,
    } else {
    }
    %18 = arith.extui %14 : i1 to i32
    %c0_i32_14 = arith.constant 0 : i32
    %19 = arith.cmpi ne, %18, %c0_i32_14 : i32
    scf.if %19 {
      %c0_17 = arith.constant 0 : index
      %c0_18 = arith.constant 0 : index
      %23 = vector.load %arg10[%c0_17, %c0_18] : memref<8x128xf32, #tpu.memory_space<vmem>>, vector<8x128xf32>
      %c0_19 = arith.constant 0 : index
      %c0_20 = arith.constant 0 : index
      %24 = vector.load %arg11[%c0_19, %c0_20] : memref<8x128xf32, #tpu.memory_space<vmem>>, vector<8x128xf32>
      %c0_i32_21 = arith.constant 0 : i32
      %25 = arith.index_cast %c0_i32_21 : i32 to index
      %c0_22 = arith.constant 0 : index
      %c0_23 = arith.constant 0 : index
      %26 = vector.load %arg9[%25, %c0_22, %c0_23] : memref<8x8x512xf32, #tpu.memory_space<vmem>>, vector<1x8x512xf32>
      %27 = vector.shape_cast %26 : vector<1x8x512xf32> to vector<8x512xf32>
      %28 = arith.truncf %23 : vector<8x128xf32> to vector<8x128xbf16>
      %cst_24 = arith.constant dense<0.000000e+00> : vector<8x512xf32>
      %29 = tpu.matmul %28, %12, %cst_24 {dimension_numbers = #tpu.dot_dimension_numbers<[1], [0], [0], [1], [0, 0, 1, 1], [], []>} : vector<8x128xbf16>, vector<128x512xbf16>, vector<8x512xf32> -> vector<8x512xf32>
      %30 = arith.addf %27, %29 : vector<8x512xf32>
      %31 = vector.extract_strided_slice %30 {offsets = [0, 0], sizes = [8, 128], strides = [1, 1]} : vector<8x512xf32> to vector<8x128xf32>
      %32 = arith.negf %31 : vector<8x128xf32>
      %33 = math.exp %32 : vector<8x128xf32>
      %cst_25 = arith.constant 1.000000e+00 : f32
      %34 = vector.broadcast %cst_25 : f32 to vector<8x128xf32>
      %35 = arith.addf %34, %33 : vector<8x128xf32>
      %36 = arith.divf %34, %35 : vector<8x128xf32>
      %37 = vector.extract_strided_slice %30 {offsets = [0, 128], sizes = [8, 128], strides = [1, 1]} : vector<8x512xf32> to vector<8x128xf32>
      %38 = arith.negf %37 : vector<8x128xf32>
      %39 = math.exp %38 : vector<8x128xf32>
      %cst_26 = arith.constant 1.000000e+00 : f32
      %40 = vector.broadcast %cst_26 : f32 to vector<8x128xf32>
      %41 = arith.addf %40, %39 : vector<8x128xf32>
      %42 = arith.divf %40, %41 : vector<8x128xf32>
      %43 = vector.extract_strided_slice %30 {offsets = [0, 256], sizes = [8, 128], strides = [1, 1]} : vector<8x512xf32> to vector<8x128xf32>
      %44 = math.tanh %43 : vector<8x128xf32>
      %45 = vector.extract_strided_slice %30 {offsets = [0, 384], sizes = [8, 128], strides = [1, 1]} : vector<8x512xf32> to vector<8x128xf32>
      %46 = arith.negf %45 : vector<8x128xf32>
      %47 = math.exp %46 : vector<8x128xf32>
      %cst_27 = arith.constant 1.000000e+00 : f32
      %48 = vector.broadcast %cst_27 : f32 to vector<8x128xf32>
      %49 = arith.addf %48, %47 : vector<8x128xf32>
      %50 = arith.divf %48, %49 : vector<8x128xf32>
      %51 = arith.mulf %42, %24 : vector<8x128xf32>
      %52 = arith.mulf %36, %44 : vector<8x128xf32>
      %53 = arith.addf %51, %52 : vector<8x128xf32>
      %54 = math.tanh %53 : vector<8x128xf32>
      %55 = arith.mulf %50, %54 : vector<8x128xf32>
      %56 = arith.addi %13, %c0_i32_21 : i32
      %c12_i32 = arith.constant 12 : i32
      %57 = arith.cmpi slt, %56, %c12_i32 : i32
      %58 = arith.select %57, %55, %23 : vector<8x128xf32>
      %59 = arith.select %57, %53, %24 : vector<8x128xf32>
      %c1_i32_28 = arith.constant 1 : i32
      %60 = arith.index_cast %c1_i32_28 : i32 to index
      %c0_29 = arith.constant 0 : index
      %c0_30 = arith.constant 0 : index
      %61 = vector.load %arg9[%60, %c0_29, %c0_30] : memref<8x8x512xf32, #tpu.memory_space<vmem>>, vector<1x8x512xf32>
      %62 = vector.shape_cast %61 : vector<1x8x512xf32> to vector<8x512xf32>
      %63 = arith.truncf %58 : vector<8x128xf32> to vector<8x128xbf16>
      %cst_31 = arith.constant dense<0.000000e+00> : vector<8x512xf32>
      %64 = tpu.matmul %63, %12, %cst_31 {dimension_numbers = #tpu.dot_dimension_numbers<[1], [0], [0], [1], [0, 0, 1, 1], [], []>} : vector<8x128xbf16>, vector<128x512xbf16>, vector<8x512xf32> -> vector<8x512xf32>
      %65 = arith.addf %62, %64 : vector<8x512xf32>
      %66 = vector.extract_strided_slice %65 {offsets = [0, 0], sizes = [8, 128], strides = [1, 1]} : vector<8x512xf32> to vector<8x128xf32>
      %67 = arith.negf %66 : vector<8x128xf32>
      %68 = math.exp %67 : vector<8x128xf32>
      %cst_32 = arith.constant 1.000000e+00 : f32
      %69 = vector.broadcast %cst_32 : f32 to vector<8x128xf32>
      %70 = arith.addf %69, %68 : vector<8x128xf32>
      %71 = arith.divf %69, %70 : vector<8x128xf32>
      %72 = vector.extract_strided_slice %65 {offsets = [0, 128], sizes = [8, 128], strides = [1, 1]} : vector<8x512xf32> to vector<8x128xf32>
      %73 = arith.negf %72 : vector<8x128xf32>
      %74 = math.exp %73 : vector<8x128xf32>
      %cst_33 = arith.constant 1.000000e+00 : f32
      %75 = vector.broadcast %cst_33 : f32 to vector<8x128xf32>
      %76 = arith.addf %75, %74 : vector<8x128xf32>
      %77 = arith.divf %75, %76 : vector<8x128xf32>
      %78 = vector.extract_strided_slice %65 {offsets = [0, 256], sizes = [8, 128], strides = [1, 1]} : vector<8x512xf32> to vector<8x128xf32>
      %79 = math.tanh %78 : vector<8x128xf32>
      %80 = vector.extract_strided_slice %65 {offsets = [0, 384], sizes = [8, 128], strides = [1, 1]} : vector<8x512xf32> to vector<8x128xf32>
      %81 = arith.negf %80 : vector<8x128xf32>
      %82 = math.exp %81 : vector<8x128xf32>
      %cst_34 = arith.constant 1.000000e+00 : f32
      %83 = vector.broadcast %cst_34 : f32 to vector<8x128xf32>
      %84 = arith.addf %83, %82 : vector<8x128xf32>
      %85 = arith.divf %83, %84 : vector<8x128xf32>
      %86 = arith.mulf %77, %59 : vector<8x128xf32>
      %87 = arith.mulf %71, %79 : vector<8x128xf32>
      %88 = arith.addf %86, %87 : vector<8x128xf32>
      %89 = math.tanh %88 : vector<8x128xf32>
      %90 = arith.mulf %85, %89 : vector<8x128xf32>
      %91 = arith.addi %13, %c1_i32_28 : i32
      %c12_i32_35 = arith.constant 12 : i32
      %92 = arith.cmpi slt, %91, %c12_i32_35 : i32
      %93 = arith.select %92, %90, %58 : vector<8x128xf32>
      %94 = arith.select %92, %88, %59 : vector<8x128xf32>
      %c2_i32 = arith.constant 2 : i32
      %95 = arith.index_cast %c2_i32 : i32 to index
      %c0_36 = arith.constant 0 : index
      %c0_37 = arith.constant 0 : index
      %96 = vector.load %arg9[%95, %c0_36, %c0_37] : memref<8x8x512xf32, #tpu.memory_space<vmem>>, vector<1x8x512xf32>
      %97 = vector.shape_cast %96 : vector<1x8x512xf32> to vector<8x512xf32>
      %98 = arith.truncf %93 : vector<8x128xf32> to vector<8x128xbf16>
      %cst_38 = arith.constant dense<0.000000e+00> : vector<8x512xf32>
      %99 = tpu.matmul %98, %12, %cst_38 {dimension_numbers = #tpu.dot_dimension_numbers<[1], [0], [0], [1], [0, 0, 1, 1], [], []>} : vector<8x128xbf16>, vector<128x512xbf16>, vector<8x512xf32> -> vector<8x512xf32>
      %100 = arith.addf %97, %99 : vector<8x512xf32>
      %101 = vector.extract_strided_slice %100 {offsets = [0, 0], sizes = [8, 128], strides = [1, 1]} : vector<8x512xf32> to vector<8x128xf32>
      %102 = arith.negf %101 : vector<8x128xf32>
      %103 = math.exp %102 : vector<8x128xf32>
      %cst_39 = arith.constant 1.000000e+00 : f32
      %104 = vector.broadcast %cst_39 : f32 to vector<8x128xf32>
      %105 = arith.addf %104, %103 : vector<8x128xf32>
      %106 = arith.divf %104, %105 : vector<8x128xf32>
      %107 = vector.extract_strided_slice %100 {offsets = [0, 128], sizes = [8, 128], strides = [1, 1]} : vector<8x512xf32> to vector<8x128xf32>
      %108 = arith.negf %107 : vector<8x128xf32>
      %109 = math.exp %108 : vector<8x128xf32>
      %cst_40 = arith.constant 1.000000e+00 : f32
      %110 = vector.broadcast %cst_40 : f32 to vector<8x128xf32>
      %111 = arith.addf %110, %109 : vector<8x128xf32>
      %112 = arith.divf %110, %111 : vector<8x128xf32>
      %113 = vector.extract_strided_slice %100 {offsets = [0, 256], sizes = [8, 128], strides = [1, 1]} : vector<8x512xf32> to vector<8x128xf32>
      %114 = math.tanh %113 : vector<8x128xf32>
      %115 = vector.extract_strided_slice %100 {offsets = [0, 384], sizes = [8, 128], strides = [1, 1]} : vector<8x512xf32> to vector<8x128xf32>
      %116 = arith.negf %115 : vector<8x128xf32>
      %117 = math.exp %116 : vector<8x128xf32>
      %cst_41 = arith.constant 1.000000e+00 : f32
      %118 = vector.broadcast %cst_41 : f32 to vector<8x128xf32>
      %119 = arith.addf %118, %117 : vector<8x128xf32>
      %120 = arith.divf %118, %119 : vector<8x128xf32>
      %121 = arith.mulf %112, %94 : vector<8x128xf32>
      %122 = arith.mulf %106, %114 : vector<8x128xf32>
      %123 = arith.addf %121, %122 : vector<8x128xf32>
      %124 = math.tanh %123 : vector<8x128xf32>
      %125 = arith.mulf %120, %124 : vector<8x128xf32>
      %126 = arith.addi %13, %c2_i32 : i32
      %c12_i32_42 = arith.constant 12 : i32
      %127 = arith.cmpi slt, %126, %c12_i32_42 : i32
      %128 = arith.select %127, %125, %93 : vector<8x128xf32>
      %129 = arith.select %127, %123, %94 : vector<8x128xf32>
      %c3_i32 = arith.constant 3 : i32
      %130 = arith.index_cast %c3_i32 : i32 to index
      %c0_43 = arith.constant 0 : index
      %c0_44 = arith.constant 0 : index
      %131 = vector.load %arg9[%130, %c0_43, %c0_44] : memref<8x8x512xf32, #tpu.memory_space<vmem>>, vector<1x8x512xf32>
      %132 = vector.shape_cast %131 : vector<1x8x512xf32> to vector<8x512xf32>
      %133 = arith.truncf %128 : vector<8x128xf32> to vector<8x128xbf16>
      %cst_45 = arith.constant dense<0.000000e+00> : vector<8x512xf32>
      %134 = tpu.matmul %133, %12, %cst_45 {dimension_numbers = #tpu.dot_dimension_numbers<[1], [0], [0], [1], [0, 0, 1, 1], [], []>} : vector<8x128xbf16>, vector<128x512xbf16>, vector<8x512xf32> -> vector<8x512xf32>
      %135 = arith.addf %132, %134 : vector<8x512xf32>
      %136 = vector.extract_strided_slice %135 {offsets = [0, 0], sizes = [8, 128], strides = [1, 1]} : vector<8x512xf32> to vector<8x128xf32>
      %137 = arith.negf %136 : vector<8x128xf32>
      %138 = math.exp %137 : vector<8x128xf32>
      %cst_46 = arith.constant 1.000000e+00 : f32
      %139 = vector.broadcast %cst_46 : f32 to vector<8x128xf32>
      %140 = arith.addf %139, %138 : vector<8x128xf32>
      %141 = arith.divf %139, %140 : vector<8x128xf32>
      %142 = vector.extract_strided_slice %135 {offsets = [0, 128], sizes = [8, 128], strides = [1, 1]} : vector<8x512xf32> to vector<8x128xf32>
      %143 = arith.negf %142 : vector<8x128xf32>
      %144 = math.exp %143 : vector<8x128xf32>
      %cst_47 = arith.constant 1.000000e+00 : f32
      %145 = vector.broadcast %cst_47 : f32 to vector<8x128xf32>
      %146 = arith.addf %145, %144 : vector<8x128xf32>
      %147 = arith.divf %145, %146 : vector<8x128xf32>
      %148 = vector.extract_strided_slice %135 {offsets = [0, 256], sizes = [8, 128], strides = [1, 1]} : vector<8x512xf32> to vector<8x128xf32>
      %149 = math.tanh %148 : vector<8x128xf32>
      %150 = vector.extract_strided_slice %135 {offsets = [0, 384], sizes = [8, 128], strides = [1, 1]} : vector<8x512xf32> to vector<8x128xf32>
      %151 = arith.negf %150 : vector<8x128xf32>
      %152 = math.exp %151 : vector<8x128xf32>
      %cst_48 = arith.constant 1.000000e+00 : f32
      %153 = vector.broadcast %cst_48 : f32 to vector<8x128xf32>
      %154 = arith.addf %153, %152 : vector<8x128xf32>
      %155 = arith.divf %153, %154 : vector<8x128xf32>
      %156 = arith.mulf %147, %129 : vector<8x128xf32>
      %157 = arith.mulf %141, %149 : vector<8x128xf32>
      %158 = arith.addf %156, %157 : vector<8x128xf32>
      %159 = math.tanh %158 : vector<8x128xf32>
      %160 = arith.mulf %155, %159 : vector<8x128xf32>
      %161 = arith.addi %13, %c3_i32 : i32
      %c12_i32_49 = arith.constant 12 : i32
      %162 = arith.cmpi slt, %161, %c12_i32_49 : i32
      %163 = arith.select %162, %160, %128 : vector<8x128xf32>
      %164 = arith.select %162, %158, %129 : vector<8x128xf32>
      %c4_i32 = arith.constant 4 : i32
      %165 = arith.index_cast %c4_i32 : i32 to index
      %c0_50 = arith.constant 0 : index
      %c0_51 = arith.constant 0 : index
      %166 = vector.load %arg9[%165, %c0_50, %c0_51] : memref<8x8x512xf32, #tpu.memory_space<vmem>>, vector<1x8x512xf32>
      %167 = vector.shape_cast %166 : vector<1x8x512xf32> to vector<8x512xf32>
      %168 = arith.truncf %163 : vector<8x128xf32> to vector<8x128xbf16>
      %cst_52 = arith.constant dense<0.000000e+00> : vector<8x512xf32>
      %169 = tpu.matmul %168, %12, %cst_52 {dimension_numbers = #tpu.dot_dimension_numbers<[1], [0], [0], [1], [0, 0, 1, 1], [], []>} : vector<8x128xbf16>, vector<128x512xbf16>, vector<8x512xf32> -> vector<8x512xf32>
      %170 = arith.addf %167, %169 : vector<8x512xf32>
      %171 = vector.extract_strided_slice %170 {offsets = [0, 0], sizes = [8, 128], strides = [1, 1]} : vector<8x512xf32> to vector<8x128xf32>
      %172 = arith.negf %171 : vector<8x128xf32>
      %173 = math.exp %172 : vector<8x128xf32>
      %cst_53 = arith.constant 1.000000e+00 : f32
      %174 = vector.broadcast %cst_53 : f32 to vector<8x128xf32>
      %175 = arith.addf %174, %173 : vector<8x128xf32>
      %176 = arith.divf %174, %175 : vector<8x128xf32>
      %177 = vector.extract_strided_slice %170 {offsets = [0, 128], sizes = [8, 128], strides = [1, 1]} : vector<8x512xf32> to vector<8x128xf32>
      %178 = arith.negf %177 : vector<8x128xf32>
      %179 = math.exp %178 : vector<8x128xf32>
      %cst_54 = arith.constant 1.000000e+00 : f32
      %180 = vector.broadcast %cst_54 : f32 to vector<8x128xf32>
      %181 = arith.addf %180, %179 : vector<8x128xf32>
      %182 = arith.divf %180, %181 : vector<8x128xf32>
      %183 = vector.extract_strided_slice %170 {offsets = [0, 256], sizes = [8, 128], strides = [1, 1]} : vector<8x512xf32> to vector<8x128xf32>
      %184 = math.tanh %183 : vector<8x128xf32>
      %185 = vector.extract_strided_slice %170 {offsets = [0, 384], sizes = [8, 128], strides = [1, 1]} : vector<8x512xf32> to vector<8x128xf32>
      %186 = arith.negf %185 : vector<8x128xf32>
      %187 = math.exp %186 : vector<8x128xf32>
      %cst_55 = arith.constant 1.000000e+00 : f32
      %188 = vector.broadcast %cst_55 : f32 to vector<8x128xf32>
      %189 = arith.addf %188, %187 : vector<8x128xf32>
      %190 = arith.divf %188, %189 : vector<8x128xf32>
      %191 = arith.mulf %182, %164 : vector<8x128xf32>
      %192 = arith.mulf %176, %184 : vector<8x128xf32>
      %193 = arith.addf %191, %192 : vector<8x128xf32>
      %194 = math.tanh %193 : vector<8x128xf32>
      %195 = arith.mulf %190, %194 : vector<8x128xf32>
      %196 = arith.addi %13, %c4_i32 : i32
      %c12_i32_56 = arith.constant 12 : i32
      %197 = arith.cmpi slt, %196, %c12_i32_56 : i32
      %198 = arith.select %197, %195, %163 : vector<8x128xf32>
      %199 = arith.select %197, %193, %164 : vector<8x128xf32>
      %c5_i32 = arith.constant 5 : i32
      %200 = arith.index_cast %c5_i32 : i32 to index
      %c0_57 = arith.constant 0 : index
      %c0_58 = arith.constant 0 : index
      %201 = vector.load %arg9[%200, %c0_57, %c0_58] : memref<8x8x512xf32, #tpu.memory_space<vmem>>, vector<1x8x512xf32>
      %202 = vector.shape_cast %201 : vector<1x8x512xf32> to vector<8x512xf32>
      %203 = arith.truncf %198 : vector<8x128xf32> to vector<8x128xbf16>
      %cst_59 = arith.constant dense<0.000000e+00> : vector<8x512xf32>
      %204 = tpu.matmul %203, %12, %cst_59 {dimension_numbers = #tpu.dot_dimension_numbers<[1], [0], [0], [1], [0, 0, 1, 1], [], []>} : vector<8x128xbf16>, vector<128x512xbf16>, vector<8x512xf32> -> vector<8x512xf32>
      %205 = arith.addf %202, %204 : vector<8x512xf32>
      %206 = vector.extract_strided_slice %205 {offsets = [0, 0], sizes = [8, 128], strides = [1, 1]} : vector<8x512xf32> to vector<8x128xf32>
      %207 = arith.negf %206 : vector<8x128xf32>
      %208 = math.exp %207 : vector<8x128xf32>
      %cst_60 = arith.constant 1.000000e+00 : f32
      %209 = vector.broadcast %cst_60 : f32 to vector<8x128xf32>
      %210 = arith.addf %209, %208 : vector<8x128xf32>
      %211 = arith.divf %209, %210 : vector<8x128xf32>
      %212 = vector.extract_strided_slice %205 {offsets = [0, 128], sizes = [8, 128], strides = [1, 1]} : vector<8x512xf32> to vector<8x128xf32>
      %213 = arith.negf %212 : vector<8x128xf32>
      %214 = math.exp %213 : vector<8x128xf32>
      %cst_61 = arith.constant 1.000000e+00 : f32
      %215 = vector.broadcast %cst_61 : f32 to vector<8x128xf32>
      %216 = arith.addf %215, %214 : vector<8x128xf32>
      %217 = arith.divf %215, %216 : vector<8x128xf32>
      %218 = vector.extract_strided_slice %205 {offsets = [0, 256], sizes = [8, 128], strides = [1, 1]} : vector<8x512xf32> to vector<8x128xf32>
      %219 = math.tanh %218 : vector<8x128xf32>
      %220 = vector.extract_strided_slice %205 {offsets = [0, 384], sizes = [8, 128], strides = [1, 1]} : vector<8x512xf32> to vector<8x128xf32>
      %221 = arith.negf %220 : vector<8x128xf32>
      %222 = math.exp %221 : vector<8x128xf32>
      %cst_62 = arith.constant 1.000000e+00 : f32
      %223 = vector.broadcast %cst_62 : f32 to vector<8x128xf32>
      %224 = arith.addf %223, %222 : vector<8x128xf32>
      %225 = arith.divf %223, %224 : vector<8x128xf32>
      %226 = arith.mulf %217, %199 : vector<8x128xf32>
      %227 = arith.mulf %211, %219 : vector<8x128xf32>
      %228 = arith.addf %226, %227 : vector<8x128xf32>
      %229 = math.tanh %228 : vector<8x128xf32>
      %230 = arith.mulf %225, %229 : vector<8x128xf32>
      %231 = arith.addi %13, %c5_i32 : i32
      %c12_i32_63 = arith.constant 12 : i32
      %232 = arith.cmpi slt, %231, %c12_i32_63 : i32
      %233 = arith.select %232, %230, %198 : vector<8x128xf32>
      %234 = arith.select %232, %228, %199 : vector<8x128xf32>
      %c6_i32 = arith.constant 6 : i32
      %235 = arith.index_cast %c6_i32 : i32 to index
      %c0_64 = arith.constant 0 : index
      %c0_65 = arith.constant 0 : index
      %236 = vector.load %arg9[%235, %c0_64, %c0_65] : memref<8x8x512xf32, #tpu.memory_space<vmem>>, vector<1x8x512xf32>
      %237 = vector.shape_cast %236 : vector<1x8x512xf32> to vector<8x512xf32>
      %238 = arith.truncf %233 : vector<8x128xf32> to vector<8x128xbf16>
      %cst_66 = arith.constant dense<0.000000e+00> : vector<8x512xf32>
      %239 = tpu.matmul %238, %12, %cst_66 {dimension_numbers = #tpu.dot_dimension_numbers<[1], [0], [0], [1], [0, 0, 1, 1], [], []>} : vector<8x128xbf16>, vector<128x512xbf16>, vector<8x512xf32> -> vector<8x512xf32>
      %240 = arith.addf %237, %239 : vector<8x512xf32>
      %241 = vector.extract_strided_slice %240 {offsets = [0, 0], sizes = [8, 128], strides = [1, 1]} : vector<8x512xf32> to vector<8x128xf32>
      %242 = arith.negf %241 : vector<8x128xf32>
      %243 = math.exp %242 : vector<8x128xf32>
      %cst_67 = arith.constant 1.000000e+00 : f32
      %244 = vector.broadcast %cst_67 : f32 to vector<8x128xf32>
      %245 = arith.addf %244, %243 : vector<8x128xf32>
      %246 = arith.divf %244, %245 : vector<8x128xf32>
      %247 = vector.extract_strided_slice %240 {offsets = [0, 128], sizes = [8, 128], strides = [1, 1]} : vector<8x512xf32> to vector<8x128xf32>
      %248 = arith.negf %247 : vector<8x128xf32>
      %249 = math.exp %248 : vector<8x128xf32>
      %cst_68 = arith.constant 1.000000e+00 : f32
      %250 = vector.broadcast %cst_68 : f32 to vector<8x128xf32>
      %251 = arith.addf %250, %249 : vector<8x128xf32>
      %252 = arith.divf %250, %251 : vector<8x128xf32>
      %253 = vector.extract_strided_slice %240 {offsets = [0, 256], sizes = [8, 128], strides = [1, 1]} : vector<8x512xf32> to vector<8x128xf32>
      %254 = math.tanh %253 : vector<8x128xf32>
      %255 = vector.extract_strided_slice %240 {offsets = [0, 384], sizes = [8, 128], strides = [1, 1]} : vector<8x512xf32> to vector<8x128xf32>
      %256 = arith.negf %255 : vector<8x128xf32>
      %257 = math.exp %256 : vector<8x128xf32>
      %cst_69 = arith.constant 1.000000e+00 : f32
      %258 = vector.broadcast %cst_69 : f32 to vector<8x128xf32>
      %259 = arith.addf %258, %257 : vector<8x128xf32>
      %260 = arith.divf %258, %259 : vector<8x128xf32>
      %261 = arith.mulf %252, %234 : vector<8x128xf32>
      %262 = arith.mulf %246, %254 : vector<8x128xf32>
      %263 = arith.addf %261, %262 : vector<8x128xf32>
      %264 = math.tanh %263 : vector<8x128xf32>
      %265 = arith.mulf %260, %264 : vector<8x128xf32>
      %266 = arith.addi %13, %c6_i32 : i32
      %c12_i32_70 = arith.constant 12 : i32
      %267 = arith.cmpi slt, %266, %c12_i32_70 : i32
      %268 = arith.select %267, %265, %233 : vector<8x128xf32>
      %269 = arith.select %267, %263, %234 : vector<8x128xf32>
      %c7_i32 = arith.constant 7 : i32
      %270 = arith.index_cast %c7_i32 : i32 to index
      %c0_71 = arith.constant 0 : index
      %c0_72 = arith.constant 0 : index
      %271 = vector.load %arg9[%270, %c0_71, %c0_72] : memref<8x8x512xf32, #tpu.memory_space<vmem>>, vector<1x8x512xf32>
      %272 = vector.shape_cast %271 : vector<1x8x512xf32> to vector<8x512xf32>
      %273 = arith.truncf %268 : vector<8x128xf32> to vector<8x128xbf16>
      %cst_73 = arith.constant dense<0.000000e+00> : vector<8x512xf32>
      %274 = tpu.matmul %273, %12, %cst_73 {dimension_numbers = #tpu.dot_dimension_numbers<[1], [0], [0], [1], [0, 0, 1, 1], [], []>} : vector<8x128xbf16>, vector<128x512xbf16>, vector<8x512xf32> -> vector<8x512xf32>
      %275 = arith.addf %272, %274 : vector<8x512xf32>
      %276 = vector.extract_strided_slice %275 {offsets = [0, 0], sizes = [8, 128], strides = [1, 1]} : vector<8x512xf32> to vector<8x128xf32>
      %277 = arith.negf %276 : vector<8x128xf32>
      %278 = math.exp %277 : vector<8x128xf32>
      %cst_74 = arith.constant 1.000000e+00 : f32
      %279 = vector.broadcast %cst_74 : f32 to vector<8x128xf32>
      %280 = arith.addf %279, %278 : vector<8x128xf32>
      %281 = arith.divf %279, %280 : vector<8x128xf32>
      %282 = vector.extract_strided_slice %275 {offsets = [0, 128], sizes = [8, 128], strides = [1, 1]} : vector<8x512xf32> to vector<8x128xf32>
      %283 = arith.negf %282 : vector<8x128xf32>
      %284 = math.exp %283 : vector<8x128xf32>
      %cst_75 = arith.constant 1.000000e+00 : f32
      %285 = vector.broadcast %cst_75 : f32 to vector<8x128xf32>
      %286 = arith.addf %285, %284 : vector<8x128xf32>
      %287 = arith.divf %285, %286 : vector<8x128xf32>
      %288 = vector.extract_strided_slice %275 {offsets = [0, 256], sizes = [8, 128], strides = [1, 1]} : vector<8x512xf32> to vector<8x128xf32>
      %289 = math.tanh %288 : vector<8x128xf32>
      %290 = vector.extract_strided_slice %275 {offsets = [0, 384], sizes = [8, 128], strides = [1, 1]} : vector<8x512xf32> to vector<8x128xf32>
      %291 = arith.negf %290 : vector<8x128xf32>
      %292 = math.exp %291 : vector<8x128xf32>
      %cst_76 = arith.constant 1.000000e+00 : f32
      %293 = vector.broadcast %cst_76 : f32 to vector<8x128xf32>
      %294 = arith.addf %293, %292 : vector<8x128xf32>
      %295 = arith.divf %293, %294 : vector<8x128xf32>
      %296 = arith.mulf %287, %269 : vector<8x128xf32>
      %297 = arith.mulf %281, %289 : vector<8x128xf32>
      %298 = arith.addf %296, %297 : vector<8x128xf32>
      %299 = math.tanh %298 : vector<8x128xf32>
      %300 = arith.mulf %295, %299 : vector<8x128xf32>
      %301 = arith.addi %13, %c7_i32 : i32
      %c12_i32_77 = arith.constant 12 : i32
      %302 = arith.cmpi slt, %301, %c12_i32_77 : i32
      %303 = arith.select %302, %300, %268 : vector<8x128xf32>
      %304 = arith.select %302, %298, %269 : vector<8x128xf32>
      %c8_i32_78 = arith.constant 8 : i32
      %c0_79 = arith.constant 0 : index
      %c0_80 = arith.constant 0 : index
      %305 = vector.load %arg10[%c0_79, %c0_80] : memref<8x128xf32, #tpu.memory_space<vmem>>, vector<8x128xf32>
      tpu.vector_store %arg10[%c0_79, %c0_80], %303 {strides = array<i32>} : memref<8x128xf32, #tpu.memory_space<vmem>>, vector<8x128xf32>,
      %c0_81 = arith.constant 0 : index
      %c0_82 = arith.constant 0 : index
      %306 = vector.load %arg11[%c0_81, %c0_82] : memref<8x128xf32, #tpu.memory_space<vmem>>, vector<8x128xf32>
      tpu.vector_store %arg11[%c0_81, %c0_82], %304 {strides = array<i32>} : memref<8x128xf32, #tpu.memory_space<vmem>>, vector<8x128xf32>,
    } else {
    }
    %c1_i32_15 = arith.constant 1 : i32
    %20 = arith.cmpi eq, %arg1, %c1_i32_15 : i32
    %21 = arith.extui %20 : i1 to i32
    %c0_i32_16 = arith.constant 0 : i32
    %22 = arith.cmpi ne, %21, %c0_i32_16 : i32
    scf.if %22 {
      %c0_17 = arith.constant 0 : index
      %c0_18 = arith.constant 0 : index
      %23 = vector.load %arg10[%c0_17, %c0_18] : memref<8x128xf32, #tpu.memory_space<vmem>>, vector<8x128xf32>
      %24 = arith.truncf %23 : vector<8x128xf32> to vector<8x128xbf16>
      %c0_19 = arith.constant 0 : index
      %c0_20 = arith.constant 0 : index
      %25 = vector.load %arg6[%c0_19, %c0_20] : memref<128x128xbf16, #tpu.memory_space<vmem>>, vector<128x128xbf16>
      %cst_21 = arith.constant dense<0.000000e+00> : vector<8x128xf32>
      %26 = tpu.matmul %24, %25, %cst_21 {dimension_numbers = #tpu.dot_dimension_numbers<[1], [0], [0], [1], [0, 0, 1, 1], [], []>} : vector<8x128xbf16>, vector<128x128xbf16>, vector<8x128xf32> -> vector<8x128xf32>
      %c0_22 = arith.constant 0 : index
      %c0_23 = arith.constant 0 : index
      %27 = vector.load %arg7[%c0_22, %c0_23] : memref<1x128xf32, #tpu.memory_space<vmem>>, vector<1x128xf32>
      %28 = vector.broadcast %27 : vector<1x128xf32> to vector<8x128xf32>
      %29 = arith.addf %26, %28 : vector<8x128xf32>
      %30 = arith.negf %29 : vector<8x128xf32>
      %31 = math.exp %30 : vector<8x128xf32>
      %cst_24 = arith.constant 1.000000e+00 : f32
      %32 = vector.broadcast %cst_24 : f32 to vector<8x128xf32>
      %33 = arith.addf %32, %31 : vector<8x128xf32>
      %34 = arith.divf %32, %33 : vector<8x128xf32>
      %c0_25 = arith.constant 0 : index
      %c0_26 = arith.constant 0 : index
      %35 = vector.load %arg8[%c0_25, %c0_26] : memref<8x128xf32, #tpu.memory_space<vmem>>, vector<8x128xf32>
      tpu.vector_store %arg8[%c0_25, %c0_26], %34 {strides = array<i32>} : memref<8x128xf32, #tpu.memory_space<vmem>>, vector<8x128xf32>,
    } else {
    }
    return
  }
  func.func @transform_0(%arg0: i32, %arg1: i32) -> (i32, i32, i32) {
    %c0_i32 = arith.constant 0 : i32
    %c0_i32_0 = arith.constant 0 : i32
    return %arg1, %arg0, %c0_i32 : i32, i32, i32
  }
  func.func @transform_1(%arg0: i32, %arg1: i32) -> (i32, i32) {
    %c0_i32 = arith.constant 0 : i32
    %c0_i32_0 = arith.constant 0 : i32
    %c0_i32_1 = arith.constant 0 : i32
    return %c0_i32, %c0_i32_0 : i32, i32
  }
  func.func @transform_2(%arg0: i32, %arg1: i32) -> (i32, i32) {
    %c0_i32 = arith.constant 0 : i32
    %c0_i32_0 = arith.constant 0 : i32
    %c0_i32_1 = arith.constant 0 : i32
    return %c0_i32, %c0_i32_0 : i32, i32
  }
  func.func @transform_3(%arg0: i32, %arg1: i32) -> (i32, i32) {
    %c0_i32 = arith.constant 0 : i32
    %c0_i32_0 = arith.constant 0 : i32
    %c0_i32_1 = arith.constant 0 : i32
    return %c0_i32, %c0_i32_0 : i32, i32
  }
  func.func @transform_4(%arg0: i32, %arg1: i32) -> (i32, i32) {
    %c0_i32 = arith.constant 0 : i32
    %c0_i32_0 = arith.constant 0 : i32
    %c0_i32_1 = arith.constant 0 : i32
    return %c0_i32, %c0_i32_0 : i32, i32
  }
  func.func @transform_5(%arg0: i32, %arg1: i32) -> (i32, i32) {
    %c0_i32 = arith.constant 0 : i32
    %c0_i32_0 = arith.constant 0 : i32
    %c0_i32_1 = arith.constant 0 : i32
    return %c0_i32, %c0_i32_0 : i32, i32
  }
  func.func @transform_6(%arg0: i32, %arg1: i32) -> (i32, i32) {
    %c0_i32 = arith.constant 0 : i32
    %c0_i32_0 = arith.constant 0 : i32
    return %arg0, %c0_i32 : i32, i32
  }
}

module attributes {stable_mosaic.version = 11 : i64} {
  func.func @lstm_head_kernel(%arg0: i32, %arg1: i32, %arg2: memref<8x8x128xbf16, #tpu.memory_space<vmem>>, %arg3: memref<128x512xbf16, #tpu.memory_space<vmem>>, %arg4: memref<128x512xbf16, #tpu.memory_space<vmem>>, %arg5: memref<1x512xf32, #tpu.memory_space<vmem>>, %arg6: memref<128x128xbf16, #tpu.memory_space<vmem>>, %arg7: memref<1x128xf32, #tpu.memory_space<vmem>>, %arg8: memref<8x128xf32, #tpu.memory_space<vmem>>, %arg9: memref<8x8x512xf32, #tpu.memory_space<vmem>>, %arg10: memref<8x128xf32, #tpu.memory_space<vmem>>, %arg11: memref<8x128xf32, #tpu.memory_space<vmem>>) attributes {dimension_semantics = [#tpu.dimension_semantics<parallel>, #tpu.dimension_semantics<arbitrary>], iteration_bounds = array<i64: 1, 2>, scalar_prefetch = 0 : i64, scratch_operands = 3 : i64, tpu.core_type = #tpu.core_type<tc>, window_params = [{transform_indices = @transform_0, window_bounds = array<i64: 8, 8, 128>}, {pipeline_mode = #tpu.pipeline_mode<synchronous>, transform_indices = @transform_1, window_bounds = array<i64: 128, 512>}, {pipeline_mode = #tpu.pipeline_mode<synchronous>, transform_indices = @transform_2, window_bounds = array<i64: 128, 512>}, {pipeline_mode = #tpu.pipeline_mode<synchronous>, transform_indices = @transform_3, window_bounds = array<i64: 1, 512>}, {pipeline_mode = #tpu.pipeline_mode<synchronous>, transform_indices = @transform_4, window_bounds = array<i64: 128, 128>}, {pipeline_mode = #tpu.pipeline_mode<synchronous>, transform_indices = @transform_5, window_bounds = array<i64: 1, 128>}, {transform_indices = @transform_6, window_bounds = array<i64: 8, 128>}]} {
    %c0_i32 = arith.constant 0 : i32
    %0 = arith.cmpi eq, %arg1, %c0_i32 : i32
    %1 = arith.extui %0 : i1 to i32
    %c0_i32_0 = arith.constant 0 : i32
    %2 = arith.cmpi ne, %1, %c0_i32_0 : i32
    scf.if %2 {
      %cst_17 = arith.constant 0.000000e+00 : f32
      %23 = vector.broadcast %cst_17 : f32 to vector<8x128xf32>
      %c0_18 = arith.constant 0 : index
      %c0_19 = arith.constant 0 : index
      %24 = vector.load %arg10[%c0_18, %c0_19] : memref<8x128xf32, #tpu.memory_space<vmem>>, vector<8x128xf32>
      tpu.vector_store %arg10[%c0_18, %c0_19], %23 {strides = array<i32>} : memref<8x128xf32, #tpu.memory_space<vmem>>, vector<8x128xf32>,
      %cst_20 = arith.constant 0.000000e+00 : f32
      %25 = vector.broadcast %cst_20 : f32 to vector<8x128xf32>
      %c0_21 = arith.constant 0 : index
      %c0_22 = arith.constant 0 : index
      %26 = vector.load %arg11[%c0_21, %c0_22] : memref<8x128xf32, #tpu.memory_space<vmem>>, vector<8x128xf32>
      tpu.vector_store %arg11[%c0_21, %c0_22], %25 {strides = array<i32>} : memref<8x128xf32, #tpu.memory_space<vmem>>, vector<8x128xf32>,
    } else {
    }
    %c0 = arith.constant 0 : index
    %c0_1 = arith.constant 0 : index
    %c0_2 = arith.constant 0 : index
    %3 = vector.load %arg2[%c0, %c0_1, %c0_2] : memref<8x8x128xbf16, #tpu.memory_space<vmem>>, vector<8x8x128xbf16>
    %4 = vector.shape_cast %3 : vector<8x8x128xbf16> to vector<64x128xbf16>
    %c0_3 = arith.constant 0 : index
    %c0_4 = arith.constant 0 : index
    %5 = vector.load %arg3[%c0_3, %c0_4] : memref<128x512xbf16, #tpu.memory_space<vmem>>, vector<128x512xbf16>
    %cst = arith.constant dense<0.000000e+00> : vector<64x512xf32>
    %6 = tpu.matmul %4, %5, %cst {dimension_numbers = #tpu.dot_dimension_numbers<[1], [0], [0], [1], [0, 0, 1, 1], [], []>} : vector<64x128xbf16>, vector<128x512xbf16>, vector<64x512xf32> -> vector<64x512xf32>
    %c0_5 = arith.constant 0 : index
    %c0_6 = arith.constant 0 : index
    %7 = vector.load %arg5[%c0_5, %c0_6] : memref<1x512xf32, #tpu.memory_space<vmem>>, vector<1x512xf32>
    %8 = vector.broadcast %7 : vector<1x512xf32> to vector<64x512xf32>
    %9 = arith.addf %6, %8 : vector<64x512xf32>
    %10 = vector.shape_cast %9 : vector<64x512xf32> to vector<8x8x512xf32>
    %c0_7 = arith.constant 0 : index
    %c0_8 = arith.constant 0 : index
    %c0_9 = arith.constant 0 : index
    %11 = vector.load %arg9[%c0_7, %c0_8, %c0_9] : memref<8x8x512xf32, #tpu.memory_space<vmem>>, vector<8x8x512xf32>
    tpu.vector_store %arg9[%c0_7, %c0_8, %c0_9], %10 {strides = array<i32>} : memref<8x8x512xf32, #tpu.memory_space<vmem>>, vector<8x8x512xf32>,
    %c0_10 = arith.constant 0 : index
    %c0_11 = arith.constant 0 : index
    %12 = vector.load %arg4[%c0_10, %c0_11] : memref<128x512xbf16, #tpu.memory_space<vmem>>, vector<128x512xbf16>
    %c8_i32 = arith.constant 8 : i32
    %13 = arith.muli %arg1, %c8_i32 : i32
    %c1_i32 = arith.constant 1 : i32
    %14 = arith.cmpi eq, %arg1, %c1_i32 : i32
    %c1_i32_12 = arith.constant 1 : i32
    %15 = arith.cmpi slt, %arg1, %c1_i32_12 : i32
    %16 = arith.extui %15 : i1 to i32
    %c0_i32_13 = arith.constant 0 : i32
    %17 = arith.cmpi ne, %16, %c0_i32_13 : i32
    scf.if %17 {
      %c0_17 = arith.constant 0 : index
      %c0_18 = arith.constant 0 : index
      %23 = vector.load %arg10[%c0_17, %c0_18] : memref<8x128xf32, #tpu.memory_space<vmem>>, vector<8x128xf32>
      %c0_19 = arith.constant 0 : index
      %c0_20 = arith.constant 0 : index
      %24 = vector.load %arg11[%c0_19, %c0_20] : memref<8x128xf32, #tpu.memory_space<vmem>>, vector<8x128xf32>
      %c0_i32_21 = arith.constant 0 : i32
      %25 = arith.index_cast %c0_i32_21 : i32 to index
      %c0_22 = arith.constant 0 : index
      %c0_23 = arith.constant 0 : index
      %26 = vector.load %arg9[%25, %c0_22, %c0_23] : memref<8x8x512xf32, #tpu.memory_space<vmem>>, vector<1x8x512xf32>
      %27 = vector.shape_cast %26 : vector<1x8x512xf32> to vector<8x512xf32>
      %28 = arith.truncf %23 : vector<8x128xf32> to vector<8x128xbf16>
      %cst_24 = arith.constant dense<0.000000e+00> : vector<8x512xf32>
      %29 = tpu.matmul %28, %12, %cst_24 {dimension_numbers = #tpu.dot_dimension_numbers<[1], [0], [0], [1], [0, 0, 1, 1], [], []>} : vector<8x128xbf16>, vector<128x512xbf16>, vector<8x512xf32> -> vector<8x512xf32>
      %30 = arith.addf %27, %29 : vector<8x512xf32>
      %31 = vector.extract_strided_slice %30 {offsets = [0, 0], sizes = [8, 128], strides = [1, 1]} : vector<8x512xf32> to vector<8x128xf32>
      %32 = arith.negf %31 : vector<8x128xf32>
      %33 = math.exp %32 : vector<8x128xf32>
      %cst_25 = arith.constant 1.000000e+00 : f32
      %34 = vector.broadcast %cst_25 : f32 to vector<8x128xf32>
      %35 = arith.addf %34, %33 : vector<8x128xf32>
      %36 = arith.divf %34, %35 : vector<8x128xf32>
      %37 = vector.extract_strided_slice %30 {offsets = [0, 128], sizes = [8, 128], strides = [1, 1]} : vector<8x512xf32> to vector<8x128xf32>
      %38 = arith.negf %37 : vector<8x128xf32>
      %39 = math.exp %38 : vector<8x128xf32>
      %cst_26 = arith.constant 1.000000e+00 : f32
      %40 = vector.broadcast %cst_26 : f32 to vector<8x128xf32>
      %41 = arith.addf %40, %39 : vector<8x128xf32>
      %42 = arith.divf %40, %41 : vector<8x128xf32>
      %43 = vector.extract_strided_slice %30 {offsets = [0, 256], sizes = [8, 128], strides = [1, 1]} : vector<8x512xf32> to vector<8x128xf32>
      %44 = math.tanh %43 : vector<8x128xf32>
      %45 = vector.extract_strided_slice %30 {offsets = [0, 384], sizes = [8, 128], strides = [1, 1]} : vector<8x512xf32> to vector<8x128xf32>
      %46 = arith.negf %45 : vector<8x128xf32>
      %47 = math.exp %46 : vector<8x128xf32>
      %cst_27 = arith.constant 1.000000e+00 : f32
      %48 = vector.broadcast %cst_27 : f32 to vector<8x128xf32>
      %49 = arith.addf %48, %47 : vector<8x128xf32>
      %50 = arith.divf %48, %49 : vector<8x128xf32>
      %51 = arith.mulf %42, %24 : vector<8x128xf32>
      %52 = arith.mulf %36, %44 : vector<8x128xf32>
      %53 = arith.addf %51, %52 : vector<8x128xf32>
      %54 = math.tanh %53 : vector<8x128xf32>
      %55 = arith.mulf %50, %54 : vector<8x128xf32>
      %c1_i32_28 = arith.constant 1 : i32
      %56 = arith.index_cast %c1_i32_28 : i32 to index
      %c0_29 = arith.constant 0 : index
      %c0_30 = arith.constant 0 : index
      %57 = vector.load %arg9[%56, %c0_29, %c0_30] : memref<8x8x512xf32, #tpu.memory_space<vmem>>, vector<1x8x512xf32>
      %58 = vector.shape_cast %57 : vector<1x8x512xf32> to vector<8x512xf32>
      %59 = arith.truncf %55 : vector<8x128xf32> to vector<8x128xbf16>
      %cst_31 = arith.constant dense<0.000000e+00> : vector<8x512xf32>
      %60 = tpu.matmul %59, %12, %cst_31 {dimension_numbers = #tpu.dot_dimension_numbers<[1], [0], [0], [1], [0, 0, 1, 1], [], []>} : vector<8x128xbf16>, vector<128x512xbf16>, vector<8x512xf32> -> vector<8x512xf32>
      %61 = arith.addf %58, %60 : vector<8x512xf32>
      %62 = vector.extract_strided_slice %61 {offsets = [0, 0], sizes = [8, 128], strides = [1, 1]} : vector<8x512xf32> to vector<8x128xf32>
      %63 = arith.negf %62 : vector<8x128xf32>
      %64 = math.exp %63 : vector<8x128xf32>
      %cst_32 = arith.constant 1.000000e+00 : f32
      %65 = vector.broadcast %cst_32 : f32 to vector<8x128xf32>
      %66 = arith.addf %65, %64 : vector<8x128xf32>
      %67 = arith.divf %65, %66 : vector<8x128xf32>
      %68 = vector.extract_strided_slice %61 {offsets = [0, 128], sizes = [8, 128], strides = [1, 1]} : vector<8x512xf32> to vector<8x128xf32>
      %69 = arith.negf %68 : vector<8x128xf32>
      %70 = math.exp %69 : vector<8x128xf32>
      %cst_33 = arith.constant 1.000000e+00 : f32
      %71 = vector.broadcast %cst_33 : f32 to vector<8x128xf32>
      %72 = arith.addf %71, %70 : vector<8x128xf32>
      %73 = arith.divf %71, %72 : vector<8x128xf32>
      %74 = vector.extract_strided_slice %61 {offsets = [0, 256], sizes = [8, 128], strides = [1, 1]} : vector<8x512xf32> to vector<8x128xf32>
      %75 = math.tanh %74 : vector<8x128xf32>
      %76 = vector.extract_strided_slice %61 {offsets = [0, 384], sizes = [8, 128], strides = [1, 1]} : vector<8x512xf32> to vector<8x128xf32>
      %77 = arith.negf %76 : vector<8x128xf32>
      %78 = math.exp %77 : vector<8x128xf32>
      %cst_34 = arith.constant 1.000000e+00 : f32
      %79 = vector.broadcast %cst_34 : f32 to vector<8x128xf32>
      %80 = arith.addf %79, %78 : vector<8x128xf32>
      %81 = arith.divf %79, %80 : vector<8x128xf32>
      %82 = arith.mulf %73, %53 : vector<8x128xf32>
      %83 = arith.mulf %67, %75 : vector<8x128xf32>
      %84 = arith.addf %82, %83 : vector<8x128xf32>
      %85 = math.tanh %84 : vector<8x128xf32>
      %86 = arith.mulf %81, %85 : vector<8x128xf32>
      %c2_i32 = arith.constant 2 : i32
      %87 = arith.index_cast %c2_i32 : i32 to index
      %c0_35 = arith.constant 0 : index
      %c0_36 = arith.constant 0 : index
      %88 = vector.load %arg9[%87, %c0_35, %c0_36] : memref<8x8x512xf32, #tpu.memory_space<vmem>>, vector<1x8x512xf32>
      %89 = vector.shape_cast %88 : vector<1x8x512xf32> to vector<8x512xf32>
      %90 = arith.truncf %86 : vector<8x128xf32> to vector<8x128xbf16>
      %cst_37 = arith.constant dense<0.000000e+00> : vector<8x512xf32>
      %91 = tpu.matmul %90, %12, %cst_37 {dimension_numbers = #tpu.dot_dimension_numbers<[1], [0], [0], [1], [0, 0, 1, 1], [], []>} : vector<8x128xbf16>, vector<128x512xbf16>, vector<8x512xf32> -> vector<8x512xf32>
      %92 = arith.addf %89, %91 : vector<8x512xf32>
      %93 = vector.extract_strided_slice %92 {offsets = [0, 0], sizes = [8, 128], strides = [1, 1]} : vector<8x512xf32> to vector<8x128xf32>
      %94 = arith.negf %93 : vector<8x128xf32>
      %95 = math.exp %94 : vector<8x128xf32>
      %cst_38 = arith.constant 1.000000e+00 : f32
      %96 = vector.broadcast %cst_38 : f32 to vector<8x128xf32>
      %97 = arith.addf %96, %95 : vector<8x128xf32>
      %98 = arith.divf %96, %97 : vector<8x128xf32>
      %99 = vector.extract_strided_slice %92 {offsets = [0, 128], sizes = [8, 128], strides = [1, 1]} : vector<8x512xf32> to vector<8x128xf32>
      %100 = arith.negf %99 : vector<8x128xf32>
      %101 = math.exp %100 : vector<8x128xf32>
      %cst_39 = arith.constant 1.000000e+00 : f32
      %102 = vector.broadcast %cst_39 : f32 to vector<8x128xf32>
      %103 = arith.addf %102, %101 : vector<8x128xf32>
      %104 = arith.divf %102, %103 : vector<8x128xf32>
      %105 = vector.extract_strided_slice %92 {offsets = [0, 256], sizes = [8, 128], strides = [1, 1]} : vector<8x512xf32> to vector<8x128xf32>
      %106 = math.tanh %105 : vector<8x128xf32>
      %107 = vector.extract_strided_slice %92 {offsets = [0, 384], sizes = [8, 128], strides = [1, 1]} : vector<8x512xf32> to vector<8x128xf32>
      %108 = arith.negf %107 : vector<8x128xf32>
      %109 = math.exp %108 : vector<8x128xf32>
      %cst_40 = arith.constant 1.000000e+00 : f32
      %110 = vector.broadcast %cst_40 : f32 to vector<8x128xf32>
      %111 = arith.addf %110, %109 : vector<8x128xf32>
      %112 = arith.divf %110, %111 : vector<8x128xf32>
      %113 = arith.mulf %104, %84 : vector<8x128xf32>
      %114 = arith.mulf %98, %106 : vector<8x128xf32>
      %115 = arith.addf %113, %114 : vector<8x128xf32>
      %116 = math.tanh %115 : vector<8x128xf32>
      %117 = arith.mulf %112, %116 : vector<8x128xf32>
      %c3_i32 = arith.constant 3 : i32
      %118 = arith.index_cast %c3_i32 : i32 to index
      %c0_41 = arith.constant 0 : index
      %c0_42 = arith.constant 0 : index
      %119 = vector.load %arg9[%118, %c0_41, %c0_42] : memref<8x8x512xf32, #tpu.memory_space<vmem>>, vector<1x8x512xf32>
      %120 = vector.shape_cast %119 : vector<1x8x512xf32> to vector<8x512xf32>
      %121 = arith.truncf %117 : vector<8x128xf32> to vector<8x128xbf16>
      %cst_43 = arith.constant dense<0.000000e+00> : vector<8x512xf32>
      %122 = tpu.matmul %121, %12, %cst_43 {dimension_numbers = #tpu.dot_dimension_numbers<[1], [0], [0], [1], [0, 0, 1, 1], [], []>} : vector<8x128xbf16>, vector<128x512xbf16>, vector<8x512xf32> -> vector<8x512xf32>
      %123 = arith.addf %120, %122 : vector<8x512xf32>
      %124 = vector.extract_strided_slice %123 {offsets = [0, 0], sizes = [8, 128], strides = [1, 1]} : vector<8x512xf32> to vector<8x128xf32>
      %125 = arith.negf %124 : vector<8x128xf32>
      %126 = math.exp %125 : vector<8x128xf32>
      %cst_44 = arith.constant 1.000000e+00 : f32
      %127 = vector.broadcast %cst_44 : f32 to vector<8x128xf32>
      %128 = arith.addf %127, %126 : vector<8x128xf32>
      %129 = arith.divf %127, %128 : vector<8x128xf32>
      %130 = vector.extract_strided_slice %123 {offsets = [0, 128], sizes = [8, 128], strides = [1, 1]} : vector<8x512xf32> to vector<8x128xf32>
      %131 = arith.negf %130 : vector<8x128xf32>
      %132 = math.exp %131 : vector<8x128xf32>
      %cst_45 = arith.constant 1.000000e+00 : f32
      %133 = vector.broadcast %cst_45 : f32 to vector<8x128xf32>
      %134 = arith.addf %133, %132 : vector<8x128xf32>
      %135 = arith.divf %133, %134 : vector<8x128xf32>
      %136 = vector.extract_strided_slice %123 {offsets = [0, 256], sizes = [8, 128], strides = [1, 1]} : vector<8x512xf32> to vector<8x128xf32>
      %137 = math.tanh %136 : vector<8x128xf32>
      %138 = vector.extract_strided_slice %123 {offsets = [0, 384], sizes = [8, 128], strides = [1, 1]} : vector<8x512xf32> to vector<8x128xf32>
      %139 = arith.negf %138 : vector<8x128xf32>
      %140 = math.exp %139 : vector<8x128xf32>
      %cst_46 = arith.constant 1.000000e+00 : f32
      %141 = vector.broadcast %cst_46 : f32 to vector<8x128xf32>
      %142 = arith.addf %141, %140 : vector<8x128xf32>
      %143 = arith.divf %141, %142 : vector<8x128xf32>
      %144 = arith.mulf %135, %115 : vector<8x128xf32>
      %145 = arith.mulf %129, %137 : vector<8x128xf32>
      %146 = arith.addf %144, %145 : vector<8x128xf32>
      %147 = math.tanh %146 : vector<8x128xf32>
      %148 = arith.mulf %143, %147 : vector<8x128xf32>
      %c4_i32 = arith.constant 4 : i32
      %149 = arith.index_cast %c4_i32 : i32 to index
      %c0_47 = arith.constant 0 : index
      %c0_48 = arith.constant 0 : index
      %150 = vector.load %arg9[%149, %c0_47, %c0_48] : memref<8x8x512xf32, #tpu.memory_space<vmem>>, vector<1x8x512xf32>
      %151 = vector.shape_cast %150 : vector<1x8x512xf32> to vector<8x512xf32>
      %152 = arith.truncf %148 : vector<8x128xf32> to vector<8x128xbf16>
      %cst_49 = arith.constant dense<0.000000e+00> : vector<8x512xf32>
      %153 = tpu.matmul %152, %12, %cst_49 {dimension_numbers = #tpu.dot_dimension_numbers<[1], [0], [0], [1], [0, 0, 1, 1], [], []>} : vector<8x128xbf16>, vector<128x512xbf16>, vector<8x512xf32> -> vector<8x512xf32>
      %154 = arith.addf %151, %153 : vector<8x512xf32>
      %155 = vector.extract_strided_slice %154 {offsets = [0, 0], sizes = [8, 128], strides = [1, 1]} : vector<8x512xf32> to vector<8x128xf32>
      %156 = arith.negf %155 : vector<8x128xf32>
      %157 = math.exp %156 : vector<8x128xf32>
      %cst_50 = arith.constant 1.000000e+00 : f32
      %158 = vector.broadcast %cst_50 : f32 to vector<8x128xf32>
      %159 = arith.addf %158, %157 : vector<8x128xf32>
      %160 = arith.divf %158, %159 : vector<8x128xf32>
      %161 = vector.extract_strided_slice %154 {offsets = [0, 128], sizes = [8, 128], strides = [1, 1]} : vector<8x512xf32> to vector<8x128xf32>
      %162 = arith.negf %161 : vector<8x128xf32>
      %163 = math.exp %162 : vector<8x128xf32>
      %cst_51 = arith.constant 1.000000e+00 : f32
      %164 = vector.broadcast %cst_51 : f32 to vector<8x128xf32>
      %165 = arith.addf %164, %163 : vector<8x128xf32>
      %166 = arith.divf %164, %165 : vector<8x128xf32>
      %167 = vector.extract_strided_slice %154 {offsets = [0, 256], sizes = [8, 128], strides = [1, 1]} : vector<8x512xf32> to vector<8x128xf32>
      %168 = math.tanh %167 : vector<8x128xf32>
      %169 = vector.extract_strided_slice %154 {offsets = [0, 384], sizes = [8, 128], strides = [1, 1]} : vector<8x512xf32> to vector<8x128xf32>
      %170 = arith.negf %169 : vector<8x128xf32>
      %171 = math.exp %170 : vector<8x128xf32>
      %cst_52 = arith.constant 1.000000e+00 : f32
      %172 = vector.broadcast %cst_52 : f32 to vector<8x128xf32>
      %173 = arith.addf %172, %171 : vector<8x128xf32>
      %174 = arith.divf %172, %173 : vector<8x128xf32>
      %175 = arith.mulf %166, %146 : vector<8x128xf32>
      %176 = arith.mulf %160, %168 : vector<8x128xf32>
      %177 = arith.addf %175, %176 : vector<8x128xf32>
      %178 = math.tanh %177 : vector<8x128xf32>
      %179 = arith.mulf %174, %178 : vector<8x128xf32>
      %c5_i32 = arith.constant 5 : i32
      %180 = arith.index_cast %c5_i32 : i32 to index
      %c0_53 = arith.constant 0 : index
      %c0_54 = arith.constant 0 : index
      %181 = vector.load %arg9[%180, %c0_53, %c0_54] : memref<8x8x512xf32, #tpu.memory_space<vmem>>, vector<1x8x512xf32>
      %182 = vector.shape_cast %181 : vector<1x8x512xf32> to vector<8x512xf32>
      %183 = arith.truncf %179 : vector<8x128xf32> to vector<8x128xbf16>
      %cst_55 = arith.constant dense<0.000000e+00> : vector<8x512xf32>
      %184 = tpu.matmul %183, %12, %cst_55 {dimension_numbers = #tpu.dot_dimension_numbers<[1], [0], [0], [1], [0, 0, 1, 1], [], []>} : vector<8x128xbf16>, vector<128x512xbf16>, vector<8x512xf32> -> vector<8x512xf32>
      %185 = arith.addf %182, %184 : vector<8x512xf32>
      %186 = vector.extract_strided_slice %185 {offsets = [0, 0], sizes = [8, 128], strides = [1, 1]} : vector<8x512xf32> to vector<8x128xf32>
      %187 = arith.negf %186 : vector<8x128xf32>
      %188 = math.exp %187 : vector<8x128xf32>
      %cst_56 = arith.constant 1.000000e+00 : f32
      %189 = vector.broadcast %cst_56 : f32 to vector<8x128xf32>
      %190 = arith.addf %189, %188 : vector<8x128xf32>
      %191 = arith.divf %189, %190 : vector<8x128xf32>
      %192 = vector.extract_strided_slice %185 {offsets = [0, 128], sizes = [8, 128], strides = [1, 1]} : vector<8x512xf32> to vector<8x128xf32>
      %193 = arith.negf %192 : vector<8x128xf32>
      %194 = math.exp %193 : vector<8x128xf32>
      %cst_57 = arith.constant 1.000000e+00 : f32
      %195 = vector.broadcast %cst_57 : f32 to vector<8x128xf32>
      %196 = arith.addf %195, %194 : vector<8x128xf32>
      %197 = arith.divf %195, %196 : vector<8x128xf32>
      %198 = vector.extract_strided_slice %185 {offsets = [0, 256], sizes = [8, 128], strides = [1, 1]} : vector<8x512xf32> to vector<8x128xf32>
      %199 = math.tanh %198 : vector<8x128xf32>
      %200 = vector.extract_strided_slice %185 {offsets = [0, 384], sizes = [8, 128], strides = [1, 1]} : vector<8x512xf32> to vector<8x128xf32>
      %201 = arith.negf %200 : vector<8x128xf32>
      %202 = math.exp %201 : vector<8x128xf32>
      %cst_58 = arith.constant 1.000000e+00 : f32
      %203 = vector.broadcast %cst_58 : f32 to vector<8x128xf32>
      %204 = arith.addf %203, %202 : vector<8x128xf32>
      %205 = arith.divf %203, %204 : vector<8x128xf32>
      %206 = arith.mulf %197, %177 : vector<8x128xf32>
      %207 = arith.mulf %191, %199 : vector<8x128xf32>
      %208 = arith.addf %206, %207 : vector<8x128xf32>
      %209 = math.tanh %208 : vector<8x128xf32>
      %210 = arith.mulf %205, %209 : vector<8x128xf32>
      %c6_i32 = arith.constant 6 : i32
      %211 = arith.index_cast %c6_i32 : i32 to index
      %c0_59 = arith.constant 0 : index
      %c0_60 = arith.constant 0 : index
      %212 = vector.load %arg9[%211, %c0_59, %c0_60] : memref<8x8x512xf32, #tpu.memory_space<vmem>>, vector<1x8x512xf32>
      %213 = vector.shape_cast %212 : vector<1x8x512xf32> to vector<8x512xf32>
      %214 = arith.truncf %210 : vector<8x128xf32> to vector<8x128xbf16>
      %cst_61 = arith.constant dense<0.000000e+00> : vector<8x512xf32>
      %215 = tpu.matmul %214, %12, %cst_61 {dimension_numbers = #tpu.dot_dimension_numbers<[1], [0], [0], [1], [0, 0, 1, 1], [], []>} : vector<8x128xbf16>, vector<128x512xbf16>, vector<8x512xf32> -> vector<8x512xf32>
      %216 = arith.addf %213, %215 : vector<8x512xf32>
      %217 = vector.extract_strided_slice %216 {offsets = [0, 0], sizes = [8, 128], strides = [1, 1]} : vector<8x512xf32> to vector<8x128xf32>
      %218 = arith.negf %217 : vector<8x128xf32>
      %219 = math.exp %218 : vector<8x128xf32>
      %cst_62 = arith.constant 1.000000e+00 : f32
      %220 = vector.broadcast %cst_62 : f32 to vector<8x128xf32>
      %221 = arith.addf %220, %219 : vector<8x128xf32>
      %222 = arith.divf %220, %221 : vector<8x128xf32>
      %223 = vector.extract_strided_slice %216 {offsets = [0, 128], sizes = [8, 128], strides = [1, 1]} : vector<8x512xf32> to vector<8x128xf32>
      %224 = arith.negf %223 : vector<8x128xf32>
      %225 = math.exp %224 : vector<8x128xf32>
      %cst_63 = arith.constant 1.000000e+00 : f32
      %226 = vector.broadcast %cst_63 : f32 to vector<8x128xf32>
      %227 = arith.addf %226, %225 : vector<8x128xf32>
      %228 = arith.divf %226, %227 : vector<8x128xf32>
      %229 = vector.extract_strided_slice %216 {offsets = [0, 256], sizes = [8, 128], strides = [1, 1]} : vector<8x512xf32> to vector<8x128xf32>
      %230 = math.tanh %229 : vector<8x128xf32>
      %231 = vector.extract_strided_slice %216 {offsets = [0, 384], sizes = [8, 128], strides = [1, 1]} : vector<8x512xf32> to vector<8x128xf32>
      %232 = arith.negf %231 : vector<8x128xf32>
      %233 = math.exp %232 : vector<8x128xf32>
      %cst_64 = arith.constant 1.000000e+00 : f32
      %234 = vector.broadcast %cst_64 : f32 to vector<8x128xf32>
      %235 = arith.addf %234, %233 : vector<8x128xf32>
      %236 = arith.divf %234, %235 : vector<8x128xf32>
      %237 = arith.mulf %228, %208 : vector<8x128xf32>
      %238 = arith.mulf %222, %230 : vector<8x128xf32>
      %239 = arith.addf %237, %238 : vector<8x128xf32>
      %240 = math.tanh %239 : vector<8x128xf32>
      %241 = arith.mulf %236, %240 : vector<8x128xf32>
      %c7_i32 = arith.constant 7 : i32
      %242 = arith.index_cast %c7_i32 : i32 to index
      %c0_65 = arith.constant 0 : index
      %c0_66 = arith.constant 0 : index
      %243 = vector.load %arg9[%242, %c0_65, %c0_66] : memref<8x8x512xf32, #tpu.memory_space<vmem>>, vector<1x8x512xf32>
      %244 = vector.shape_cast %243 : vector<1x8x512xf32> to vector<8x512xf32>
      %245 = arith.truncf %241 : vector<8x128xf32> to vector<8x128xbf16>
      %cst_67 = arith.constant dense<0.000000e+00> : vector<8x512xf32>
      %246 = tpu.matmul %245, %12, %cst_67 {dimension_numbers = #tpu.dot_dimension_numbers<[1], [0], [0], [1], [0, 0, 1, 1], [], []>} : vector<8x128xbf16>, vector<128x512xbf16>, vector<8x512xf32> -> vector<8x512xf32>
      %247 = arith.addf %244, %246 : vector<8x512xf32>
      %248 = vector.extract_strided_slice %247 {offsets = [0, 0], sizes = [8, 128], strides = [1, 1]} : vector<8x512xf32> to vector<8x128xf32>
      %249 = arith.negf %248 : vector<8x128xf32>
      %250 = math.exp %249 : vector<8x128xf32>
      %cst_68 = arith.constant 1.000000e+00 : f32
      %251 = vector.broadcast %cst_68 : f32 to vector<8x128xf32>
      %252 = arith.addf %251, %250 : vector<8x128xf32>
      %253 = arith.divf %251, %252 : vector<8x128xf32>
      %254 = vector.extract_strided_slice %247 {offsets = [0, 128], sizes = [8, 128], strides = [1, 1]} : vector<8x512xf32> to vector<8x128xf32>
      %255 = arith.negf %254 : vector<8x128xf32>
      %256 = math.exp %255 : vector<8x128xf32>
      %cst_69 = arith.constant 1.000000e+00 : f32
      %257 = vector.broadcast %cst_69 : f32 to vector<8x128xf32>
      %258 = arith.addf %257, %256 : vector<8x128xf32>
      %259 = arith.divf %257, %258 : vector<8x128xf32>
      %260 = vector.extract_strided_slice %247 {offsets = [0, 256], sizes = [8, 128], strides = [1, 1]} : vector<8x512xf32> to vector<8x128xf32>
      %261 = math.tanh %260 : vector<8x128xf32>
      %262 = vector.extract_strided_slice %247 {offsets = [0, 384], sizes = [8, 128], strides = [1, 1]} : vector<8x512xf32> to vector<8x128xf32>
      %263 = arith.negf %262 : vector<8x128xf32>
      %264 = math.exp %263 : vector<8x128xf32>
      %cst_70 = arith.constant 1.000000e+00 : f32
      %265 = vector.broadcast %cst_70 : f32 to vector<8x128xf32>
      %266 = arith.addf %265, %264 : vector<8x128xf32>
      %267 = arith.divf %265, %266 : vector<8x128xf32>
      %268 = arith.mulf %259, %239 : vector<8x128xf32>
      %269 = arith.mulf %253, %261 : vector<8x128xf32>
      %270 = arith.addf %268, %269 : vector<8x128xf32>
      %271 = math.tanh %270 : vector<8x128xf32>
      %272 = arith.mulf %267, %271 : vector<8x128xf32>
      %c8_i32_71 = arith.constant 8 : i32
      %c0_72 = arith.constant 0 : index
      %c0_73 = arith.constant 0 : index
      %273 = vector.load %arg10[%c0_72, %c0_73] : memref<8x128xf32, #tpu.memory_space<vmem>>, vector<8x128xf32>
      tpu.vector_store %arg10[%c0_72, %c0_73], %272 {strides = array<i32>} : memref<8x128xf32, #tpu.memory_space<vmem>>, vector<8x128xf32>,
      %c0_74 = arith.constant 0 : index
      %c0_75 = arith.constant 0 : index
      %274 = vector.load %arg11[%c0_74, %c0_75] : memref<8x128xf32, #tpu.memory_space<vmem>>, vector<8x128xf32>
      tpu.vector_store %arg11[%c0_74, %c0_75], %270 {strides = array<i32>} : memref<8x128xf32, #tpu.memory_space<vmem>>, vector<8x128xf32>,
    } else {
    }
    %18 = arith.extui %14 : i1 to i32
    %c0_i32_14 = arith.constant 0 : i32
    %19 = arith.cmpi ne, %18, %c0_i32_14 : i32
    scf.if %19 {
      %c0_17 = arith.constant 0 : index
      %c0_18 = arith.constant 0 : index
      %23 = vector.load %arg10[%c0_17, %c0_18] : memref<8x128xf32, #tpu.memory_space<vmem>>, vector<8x128xf32>
      %c0_19 = arith.constant 0 : index
      %c0_20 = arith.constant 0 : index
      %24 = vector.load %arg11[%c0_19, %c0_20] : memref<8x128xf32, #tpu.memory_space<vmem>>, vector<8x128xf32>
      %c0_i32_21 = arith.constant 0 : i32
      %25 = arith.index_cast %c0_i32_21 : i32 to index
      %c0_22 = arith.constant 0 : index
      %c0_23 = arith.constant 0 : index
      %26 = vector.load %arg9[%25, %c0_22, %c0_23] : memref<8x8x512xf32, #tpu.memory_space<vmem>>, vector<1x8x512xf32>
      %27 = vector.shape_cast %26 : vector<1x8x512xf32> to vector<8x512xf32>
      %28 = arith.truncf %23 : vector<8x128xf32> to vector<8x128xbf16>
      %cst_24 = arith.constant dense<0.000000e+00> : vector<8x512xf32>
      %29 = tpu.matmul %28, %12, %cst_24 {dimension_numbers = #tpu.dot_dimension_numbers<[1], [0], [0], [1], [0, 0, 1, 1], [], []>} : vector<8x128xbf16>, vector<128x512xbf16>, vector<8x512xf32> -> vector<8x512xf32>
      %30 = arith.addf %27, %29 : vector<8x512xf32>
      %31 = vector.extract_strided_slice %30 {offsets = [0, 0], sizes = [8, 128], strides = [1, 1]} : vector<8x512xf32> to vector<8x128xf32>
      %32 = arith.negf %31 : vector<8x128xf32>
      %33 = math.exp %32 : vector<8x128xf32>
      %cst_25 = arith.constant 1.000000e+00 : f32
      %34 = vector.broadcast %cst_25 : f32 to vector<8x128xf32>
      %35 = arith.addf %34, %33 : vector<8x128xf32>
      %36 = arith.divf %34, %35 : vector<8x128xf32>
      %37 = vector.extract_strided_slice %30 {offsets = [0, 128], sizes = [8, 128], strides = [1, 1]} : vector<8x512xf32> to vector<8x128xf32>
      %38 = arith.negf %37 : vector<8x128xf32>
      %39 = math.exp %38 : vector<8x128xf32>
      %cst_26 = arith.constant 1.000000e+00 : f32
      %40 = vector.broadcast %cst_26 : f32 to vector<8x128xf32>
      %41 = arith.addf %40, %39 : vector<8x128xf32>
      %42 = arith.divf %40, %41 : vector<8x128xf32>
      %43 = vector.extract_strided_slice %30 {offsets = [0, 256], sizes = [8, 128], strides = [1, 1]} : vector<8x512xf32> to vector<8x128xf32>
      %44 = math.tanh %43 : vector<8x128xf32>
      %45 = vector.extract_strided_slice %30 {offsets = [0, 384], sizes = [8, 128], strides = [1, 1]} : vector<8x512xf32> to vector<8x128xf32>
      %46 = arith.negf %45 : vector<8x128xf32>
      %47 = math.exp %46 : vector<8x128xf32>
      %cst_27 = arith.constant 1.000000e+00 : f32
      %48 = vector.broadcast %cst_27 : f32 to vector<8x128xf32>
      %49 = arith.addf %48, %47 : vector<8x128xf32>
      %50 = arith.divf %48, %49 : vector<8x128xf32>
      %51 = arith.mulf %42, %24 : vector<8x128xf32>
      %52 = arith.mulf %36, %44 : vector<8x128xf32>
      %53 = arith.addf %51, %52 : vector<8x128xf32>
      %54 = math.tanh %53 : vector<8x128xf32>
      %55 = arith.mulf %50, %54 : vector<8x128xf32>
      %56 = arith.addi %13, %c0_i32_21 : i32
      %c12_i32 = arith.constant 12 : i32
      %57 = arith.cmpi slt, %56, %c12_i32 : i32
      %58 = arith.select %57, %55, %23 : vector<8x128xf32>
      %59 = arith.select %57, %53, %24 : vector<8x128xf32>
      %c1_i32_28 = arith.constant 1 : i32
      %60 = arith.index_cast %c1_i32_28 : i32 to index
      %c0_29 = arith.constant 0 : index
      %c0_30 = arith.constant 0 : index
      %61 = vector.load %arg9[%60, %c0_29, %c0_30] : memref<8x8x512xf32, #tpu.memory_space<vmem>>, vector<1x8x512xf32>
      %62 = vector.shape_cast %61 : vector<1x8x512xf32> to vector<8x512xf32>
      %63 = arith.truncf %58 : vector<8x128xf32> to vector<8x128xbf16>
      %cst_31 = arith.constant dense<0.000000e+00> : vector<8x512xf32>
      %64 = tpu.matmul %63, %12, %cst_31 {dimension_numbers = #tpu.dot_dimension_numbers<[1], [0], [0], [1], [0, 0, 1, 1], [], []>} : vector<8x128xbf16>, vector<128x512xbf16>, vector<8x512xf32> -> vector<8x512xf32>
      %65 = arith.addf %62, %64 : vector<8x512xf32>
      %66 = vector.extract_strided_slice %65 {offsets = [0, 0], sizes = [8, 128], strides = [1, 1]} : vector<8x512xf32> to vector<8x128xf32>
      %67 = arith.negf %66 : vector<8x128xf32>
      %68 = math.exp %67 : vector<8x128xf32>
      %cst_32 = arith.constant 1.000000e+00 : f32
      %69 = vector.broadcast %cst_32 : f32 to vector<8x128xf32>
      %70 = arith.addf %69, %68 : vector<8x128xf32>
      %71 = arith.divf %69, %70 : vector<8x128xf32>
      %72 = vector.extract_strided_slice %65 {offsets = [0, 128], sizes = [8, 128], strides = [1, 1]} : vector<8x512xf32> to vector<8x128xf32>
      %73 = arith.negf %72 : vector<8x128xf32>
      %74 = math.exp %73 : vector<8x128xf32>
      %cst_33 = arith.constant 1.000000e+00 : f32
      %75 = vector.broadcast %cst_33 : f32 to vector<8x128xf32>
      %76 = arith.addf %75, %74 : vector<8x128xf32>
      %77 = arith.divf %75, %76 : vector<8x128xf32>
      %78 = vector.extract_strided_slice %65 {offsets = [0, 256], sizes = [8, 128], strides = [1, 1]} : vector<8x512xf32> to vector<8x128xf32>
      %79 = math.tanh %78 : vector<8x128xf32>
      %80 = vector.extract_strided_slice %65 {offsets = [0, 384], sizes = [8, 128], strides = [1, 1]} : vector<8x512xf32> to vector<8x128xf32>
      %81 = arith.negf %80 : vector<8x128xf32>
      %82 = math.exp %81 : vector<8x128xf32>
      %cst_34 = arith.constant 1.000000e+00 : f32
      %83 = vector.broadcast %cst_34 : f32 to vector<8x128xf32>
      %84 = arith.addf %83, %82 : vector<8x128xf32>
      %85 = arith.divf %83, %84 : vector<8x128xf32>
      %86 = arith.mulf %77, %59 : vector<8x128xf32>
      %87 = arith.mulf %71, %79 : vector<8x128xf32>
      %88 = arith.addf %86, %87 : vector<8x128xf32>
      %89 = math.tanh %88 : vector<8x128xf32>
      %90 = arith.mulf %85, %89 : vector<8x128xf32>
      %91 = arith.addi %13, %c1_i32_28 : i32
      %c12_i32_35 = arith.constant 12 : i32
      %92 = arith.cmpi slt, %91, %c12_i32_35 : i32
      %93 = arith.select %92, %90, %58 : vector<8x128xf32>
      %94 = arith.select %92, %88, %59 : vector<8x128xf32>
      %c2_i32 = arith.constant 2 : i32
      %95 = arith.index_cast %c2_i32 : i32 to index
      %c0_36 = arith.constant 0 : index
      %c0_37 = arith.constant 0 : index
      %96 = vector.load %arg9[%95, %c0_36, %c0_37] : memref<8x8x512xf32, #tpu.memory_space<vmem>>, vector<1x8x512xf32>
      %97 = vector.shape_cast %96 : vector<1x8x512xf32> to vector<8x512xf32>
      %98 = arith.truncf %93 : vector<8x128xf32> to vector<8x128xbf16>
      %cst_38 = arith.constant dense<0.000000e+00> : vector<8x512xf32>
      %99 = tpu.matmul %98, %12, %cst_38 {dimension_numbers = #tpu.dot_dimension_numbers<[1], [0], [0], [1], [0, 0, 1, 1], [], []>} : vector<8x128xbf16>, vector<128x512xbf16>, vector<8x512xf32> -> vector<8x512xf32>
      %100 = arith.addf %97, %99 : vector<8x512xf32>
      %101 = vector.extract_strided_slice %100 {offsets = [0, 0], sizes = [8, 128], strides = [1, 1]} : vector<8x512xf32> to vector<8x128xf32>
      %102 = arith.negf %101 : vector<8x128xf32>
      %103 = math.exp %102 : vector<8x128xf32>
      %cst_39 = arith.constant 1.000000e+00 : f32
      %104 = vector.broadcast %cst_39 : f32 to vector<8x128xf32>
      %105 = arith.addf %104, %103 : vector<8x128xf32>
      %106 = arith.divf %104, %105 : vector<8x128xf32>
      %107 = vector.extract_strided_slice %100 {offsets = [0, 128], sizes = [8, 128], strides = [1, 1]} : vector<8x512xf32> to vector<8x128xf32>
      %108 = arith.negf %107 : vector<8x128xf32>
      %109 = math.exp %108 : vector<8x128xf32>
      %cst_40 = arith.constant 1.000000e+00 : f32
      %110 = vector.broadcast %cst_40 : f32 to vector<8x128xf32>
      %111 = arith.addf %110, %109 : vector<8x128xf32>
      %112 = arith.divf %110, %111 : vector<8x128xf32>
      %113 = vector.extract_strided_slice %100 {offsets = [0, 256], sizes = [8, 128], strides = [1, 1]} : vector<8x512xf32> to vector<8x128xf32>
      %114 = math.tanh %113 : vector<8x128xf32>
      %115 = vector.extract_strided_slice %100 {offsets = [0, 384], sizes = [8, 128], strides = [1, 1]} : vector<8x512xf32> to vector<8x128xf32>
      %116 = arith.negf %115 : vector<8x128xf32>
      %117 = math.exp %116 : vector<8x128xf32>
      %cst_41 = arith.constant 1.000000e+00 : f32
      %118 = vector.broadcast %cst_41 : f32 to vector<8x128xf32>
      %119 = arith.addf %118, %117 : vector<8x128xf32>
      %120 = arith.divf %118, %119 : vector<8x128xf32>
      %121 = arith.mulf %112, %94 : vector<8x128xf32>
      %122 = arith.mulf %106, %114 : vector<8x128xf32>
      %123 = arith.addf %121, %122 : vector<8x128xf32>
      %124 = math.tanh %123 : vector<8x128xf32>
      %125 = arith.mulf %120, %124 : vector<8x128xf32>
      %126 = arith.addi %13, %c2_i32 : i32
      %c12_i32_42 = arith.constant 12 : i32
      %127 = arith.cmpi slt, %126, %c12_i32_42 : i32
      %128 = arith.select %127, %125, %93 : vector<8x128xf32>
      %129 = arith.select %127, %123, %94 : vector<8x128xf32>
      %c3_i32 = arith.constant 3 : i32
      %130 = arith.index_cast %c3_i32 : i32 to index
      %c0_43 = arith.constant 0 : index
      %c0_44 = arith.constant 0 : index
      %131 = vector.load %arg9[%130, %c0_43, %c0_44] : memref<8x8x512xf32, #tpu.memory_space<vmem>>, vector<1x8x512xf32>
      %132 = vector.shape_cast %131 : vector<1x8x512xf32> to vector<8x512xf32>
      %133 = arith.truncf %128 : vector<8x128xf32> to vector<8x128xbf16>
      %cst_45 = arith.constant dense<0.000000e+00> : vector<8x512xf32>
      %134 = tpu.matmul %133, %12, %cst_45 {dimension_numbers = #tpu.dot_dimension_numbers<[1], [0], [0], [1], [0, 0, 1, 1], [], []>} : vector<8x128xbf16>, vector<128x512xbf16>, vector<8x512xf32> -> vector<8x512xf32>
      %135 = arith.addf %132, %134 : vector<8x512xf32>
      %136 = vector.extract_strided_slice %135 {offsets = [0, 0], sizes = [8, 128], strides = [1, 1]} : vector<8x512xf32> to vector<8x128xf32>
      %137 = arith.negf %136 : vector<8x128xf32>
      %138 = math.exp %137 : vector<8x128xf32>
      %cst_46 = arith.constant 1.000000e+00 : f32
      %139 = vector.broadcast %cst_46 : f32 to vector<8x128xf32>
      %140 = arith.addf %139, %138 : vector<8x128xf32>
      %141 = arith.divf %139, %140 : vector<8x128xf32>
      %142 = vector.extract_strided_slice %135 {offsets = [0, 128], sizes = [8, 128], strides = [1, 1]} : vector<8x512xf32> to vector<8x128xf32>
      %143 = arith.negf %142 : vector<8x128xf32>
      %144 = math.exp %143 : vector<8x128xf32>
      %cst_47 = arith.constant 1.000000e+00 : f32
      %145 = vector.broadcast %cst_47 : f32 to vector<8x128xf32>
      %146 = arith.addf %145, %144 : vector<8x128xf32>
      %147 = arith.divf %145, %146 : vector<8x128xf32>
      %148 = vector.extract_strided_slice %135 {offsets = [0, 256], sizes = [8, 128], strides = [1, 1]} : vector<8x512xf32> to vector<8x128xf32>
      %149 = math.tanh %148 : vector<8x128xf32>
      %150 = vector.extract_strided_slice %135 {offsets = [0, 384], sizes = [8, 128], strides = [1, 1]} : vector<8x512xf32> to vector<8x128xf32>
      %151 = arith.negf %150 : vector<8x128xf32>
      %152 = math.exp %151 : vector<8x128xf32>
      %cst_48 = arith.constant 1.000000e+00 : f32
      %153 = vector.broadcast %cst_48 : f32 to vector<8x128xf32>
      %154 = arith.addf %153, %152 : vector<8x128xf32>
      %155 = arith.divf %153, %154 : vector<8x128xf32>
      %156 = arith.mulf %147, %129 : vector<8x128xf32>
      %157 = arith.mulf %141, %149 : vector<8x128xf32>
      %158 = arith.addf %156, %157 : vector<8x128xf32>
      %159 = math.tanh %158 : vector<8x128xf32>
      %160 = arith.mulf %155, %159 : vector<8x128xf32>
      %161 = arith.addi %13, %c3_i32 : i32
      %c12_i32_49 = arith.constant 12 : i32
      %162 = arith.cmpi slt, %161, %c12_i32_49 : i32
      %163 = arith.select %162, %160, %128 : vector<8x128xf32>
      %164 = arith.select %162, %158, %129 : vector<8x128xf32>
      %c4_i32 = arith.constant 4 : i32
      %165 = arith.index_cast %c4_i32 : i32 to index
      %c0_50 = arith.constant 0 : index
      %c0_51 = arith.constant 0 : index
      %166 = vector.load %arg9[%165, %c0_50, %c0_51] : memref<8x8x512xf32, #tpu.memory_space<vmem>>, vector<1x8x512xf32>
      %167 = vector.shape_cast %166 : vector<1x8x512xf32> to vector<8x512xf32>
      %168 = arith.truncf %163 : vector<8x128xf32> to vector<8x128xbf16>
      %cst_52 = arith.constant dense<0.000000e+00> : vector<8x512xf32>
      %169 = tpu.matmul %168, %12, %cst_52 {dimension_numbers = #tpu.dot_dimension_numbers<[1], [0], [0], [1], [0, 0, 1, 1], [], []>} : vector<8x128xbf16>, vector<128x512xbf16>, vector<8x512xf32> -> vector<8x512xf32>
      %170 = arith.addf %167, %169 : vector<8x512xf32>
      %171 = vector.extract_strided_slice %170 {offsets = [0, 0], sizes = [8, 128], strides = [1, 1]} : vector<8x512xf32> to vector<8x128xf32>
      %172 = arith.negf %171 : vector<8x128xf32>
      %173 = math.exp %172 : vector<8x128xf32>
      %cst_53 = arith.constant 1.000000e+00 : f32
      %174 = vector.broadcast %cst_53 : f32 to vector<8x128xf32>
      %175 = arith.addf %174, %173 : vector<8x128xf32>
      %176 = arith.divf %174, %175 : vector<8x128xf32>
      %177 = vector.extract_strided_slice %170 {offsets = [0, 128], sizes = [8, 128], strides = [1, 1]} : vector<8x512xf32> to vector<8x128xf32>
      %178 = arith.negf %177 : vector<8x128xf32>
      %179 = math.exp %178 : vector<8x128xf32>
      %cst_54 = arith.constant 1.000000e+00 : f32
      %180 = vector.broadcast %cst_54 : f32 to vector<8x128xf32>
      %181 = arith.addf %180, %179 : vector<8x128xf32>
      %182 = arith.divf %180, %181 : vector<8x128xf32>
      %183 = vector.extract_strided_slice %170 {offsets = [0, 256], sizes = [8, 128], strides = [1, 1]} : vector<8x512xf32> to vector<8x128xf32>
      %184 = math.tanh %183 : vector<8x128xf32>
      %185 = vector.extract_strided_slice %170 {offsets = [0, 384], sizes = [8, 128], strides = [1, 1]} : vector<8x512xf32> to vector<8x128xf32>
      %186 = arith.negf %185 : vector<8x128xf32>
      %187 = math.exp %186 : vector<8x128xf32>
      %cst_55 = arith.constant 1.000000e+00 : f32
      %188 = vector.broadcast %cst_55 : f32 to vector<8x128xf32>
      %189 = arith.addf %188, %187 : vector<8x128xf32>
      %190 = arith.divf %188, %189 : vector<8x128xf32>
      %191 = arith.mulf %182, %164 : vector<8x128xf32>
      %192 = arith.mulf %176, %184 : vector<8x128xf32>
      %193 = arith.addf %191, %192 : vector<8x128xf32>
      %194 = math.tanh %193 : vector<8x128xf32>
      %195 = arith.mulf %190, %194 : vector<8x128xf32>
      %196 = arith.addi %13, %c4_i32 : i32
      %c12_i32_56 = arith.constant 12 : i32
      %197 = arith.cmpi slt, %196, %c12_i32_56 : i32
      %198 = arith.select %197, %195, %163 : vector<8x128xf32>
      %199 = arith.select %197, %193, %164 : vector<8x128xf32>
      %c5_i32 = arith.constant 5 : i32
      %200 = arith.index_cast %c5_i32 : i32 to index
      %c0_57 = arith.constant 0 : index
      %c0_58 = arith.constant 0 : index
      %201 = vector.load %arg9[%200, %c0_57, %c0_58] : memref<8x8x512xf32, #tpu.memory_space<vmem>>, vector<1x8x512xf32>
      %202 = vector.shape_cast %201 : vector<1x8x512xf32> to vector<8x512xf32>
      %203 = arith.truncf %198 : vector<8x128xf32> to vector<8x128xbf16>
      %cst_59 = arith.constant dense<0.000000e+00> : vector<8x512xf32>
      %204 = tpu.matmul %203, %12, %cst_59 {dimension_numbers = #tpu.dot_dimension_numbers<[1], [0], [0], [1], [0, 0, 1, 1], [], []>} : vector<8x128xbf16>, vector<128x512xbf16>, vector<8x512xf32> -> vector<8x512xf32>
      %205 = arith.addf %202, %204 : vector<8x512xf32>
      %206 = vector.extract_strided_slice %205 {offsets = [0, 0], sizes = [8, 128], strides = [1, 1]} : vector<8x512xf32> to vector<8x128xf32>
      %207 = arith.negf %206 : vector<8x128xf32>
      %208 = math.exp %207 : vector<8x128xf32>
      %cst_60 = arith.constant 1.000000e+00 : f32
      %209 = vector.broadcast %cst_60 : f32 to vector<8x128xf32>
      %210 = arith.addf %209, %208 : vector<8x128xf32>
      %211 = arith.divf %209, %210 : vector<8x128xf32>
      %212 = vector.extract_strided_slice %205 {offsets = [0, 128], sizes = [8, 128], strides = [1, 1]} : vector<8x512xf32> to vector<8x128xf32>
      %213 = arith.negf %212 : vector<8x128xf32>
      %214 = math.exp %213 : vector<8x128xf32>
      %cst_61 = arith.constant 1.000000e+00 : f32
      %215 = vector.broadcast %cst_61 : f32 to vector<8x128xf32>
      %216 = arith.addf %215, %214 : vector<8x128xf32>
      %217 = arith.divf %215, %216 : vector<8x128xf32>
      %218 = vector.extract_strided_slice %205 {offsets = [0, 256], sizes = [8, 128], strides = [1, 1]} : vector<8x512xf32> to vector<8x128xf32>
      %219 = math.tanh %218 : vector<8x128xf32>
      %220 = vector.extract_strided_slice %205 {offsets = [0, 384], sizes = [8, 128], strides = [1, 1]} : vector<8x512xf32> to vector<8x128xf32>
      %221 = arith.negf %220 : vector<8x128xf32>
      %222 = math.exp %221 : vector<8x128xf32>
      %cst_62 = arith.constant 1.000000e+00 : f32
      %223 = vector.broadcast %cst_62 : f32 to vector<8x128xf32>
      %224 = arith.addf %223, %222 : vector<8x128xf32>
      %225 = arith.divf %223, %224 : vector<8x128xf32>
      %226 = arith.mulf %217, %199 : vector<8x128xf32>
      %227 = arith.mulf %211, %219 : vector<8x128xf32>
      %228 = arith.addf %226, %227 : vector<8x128xf32>
      %229 = math.tanh %228 : vector<8x128xf32>
      %230 = arith.mulf %225, %229 : vector<8x128xf32>
      %231 = arith.addi %13, %c5_i32 : i32
      %c12_i32_63 = arith.constant 12 : i32
      %232 = arith.cmpi slt, %231, %c12_i32_63 : i32
      %233 = arith.select %232, %230, %198 : vector<8x128xf32>
      %234 = arith.select %232, %228, %199 : vector<8x128xf32>
      %c6_i32 = arith.constant 6 : i32
      %235 = arith.index_cast %c6_i32 : i32 to index
      %c0_64 = arith.constant 0 : index
      %c0_65 = arith.constant 0 : index
      %236 = vector.load %arg9[%235, %c0_64, %c0_65] : memref<8x8x512xf32, #tpu.memory_space<vmem>>, vector<1x8x512xf32>
      %237 = vector.shape_cast %236 : vector<1x8x512xf32> to vector<8x512xf32>
      %238 = arith.truncf %233 : vector<8x128xf32> to vector<8x128xbf16>
      %cst_66 = arith.constant dense<0.000000e+00> : vector<8x512xf32>
      %239 = tpu.matmul %238, %12, %cst_66 {dimension_numbers = #tpu.dot_dimension_numbers<[1], [0], [0], [1], [0, 0, 1, 1], [], []>} : vector<8x128xbf16>, vector<128x512xbf16>, vector<8x512xf32> -> vector<8x512xf32>
      %240 = arith.addf %237, %239 : vector<8x512xf32>
      %241 = vector.extract_strided_slice %240 {offsets = [0, 0], sizes = [8, 128], strides = [1, 1]} : vector<8x512xf32> to vector<8x128xf32>
      %242 = arith.negf %241 : vector<8x128xf32>
      %243 = math.exp %242 : vector<8x128xf32>
      %cst_67 = arith.constant 1.000000e+00 : f32
      %244 = vector.broadcast %cst_67 : f32 to vector<8x128xf32>
      %245 = arith.addf %244, %243 : vector<8x128xf32>
      %246 = arith.divf %244, %245 : vector<8x128xf32>
      %247 = vector.extract_strided_slice %240 {offsets = [0, 128], sizes = [8, 128], strides = [1, 1]} : vector<8x512xf32> to vector<8x128xf32>
      %248 = arith.negf %247 : vector<8x128xf32>
      %249 = math.exp %248 : vector<8x128xf32>
      %cst_68 = arith.constant 1.000000e+00 : f32
      %250 = vector.broadcast %cst_68 : f32 to vector<8x128xf32>
      %251 = arith.addf %250, %249 : vector<8x128xf32>
      %252 = arith.divf %250, %251 : vector<8x128xf32>
      %253 = vector.extract_strided_slice %240 {offsets = [0, 256], sizes = [8, 128], strides = [1, 1]} : vector<8x512xf32> to vector<8x128xf32>
      %254 = math.tanh %253 : vector<8x128xf32>
      %255 = vector.extract_strided_slice %240 {offsets = [0, 384], sizes = [8, 128], strides = [1, 1]} : vector<8x512xf32> to vector<8x128xf32>
      %256 = arith.negf %255 : vector<8x128xf32>
      %257 = math.exp %256 : vector<8x128xf32>
      %cst_69 = arith.constant 1.000000e+00 : f32
      %258 = vector.broadcast %cst_69 : f32 to vector<8x128xf32>
      %259 = arith.addf %258, %257 : vector<8x128xf32>
      %260 = arith.divf %258, %259 : vector<8x128xf32>
      %261 = arith.mulf %252, %234 : vector<8x128xf32>
      %262 = arith.mulf %246, %254 : vector<8x128xf32>
      %263 = arith.addf %261, %262 : vector<8x128xf32>
      %264 = math.tanh %263 : vector<8x128xf32>
      %265 = arith.mulf %260, %264 : vector<8x128xf32>
      %266 = arith.addi %13, %c6_i32 : i32
      %c12_i32_70 = arith.constant 12 : i32
      %267 = arith.cmpi slt, %266, %c12_i32_70 : i32
      %268 = arith.select %267, %265, %233 : vector<8x128xf32>
      %269 = arith.select %267, %263, %234 : vector<8x128xf32>
      %c7_i32 = arith.constant 7 : i32
      %270 = arith.index_cast %c7_i32 : i32 to index
      %c0_71 = arith.constant 0 : index
      %c0_72 = arith.constant 0 : index
      %271 = vector.load %arg9[%270, %c0_71, %c0_72] : memref<8x8x512xf32, #tpu.memory_space<vmem>>, vector<1x8x512xf32>
      %272 = vector.shape_cast %271 : vector<1x8x512xf32> to vector<8x512xf32>
      %273 = arith.truncf %268 : vector<8x128xf32> to vector<8x128xbf16>
      %cst_73 = arith.constant dense<0.000000e+00> : vector<8x512xf32>
      %274 = tpu.matmul %273, %12, %cst_73 {dimension_numbers = #tpu.dot_dimension_numbers<[1], [0], [0], [1], [0, 0, 1, 1], [], []>} : vector<8x128xbf16>, vector<128x512xbf16>, vector<8x512xf32> -> vector<8x512xf32>
      %275 = arith.addf %272, %274 : vector<8x512xf32>
      %276 = vector.extract_strided_slice %275 {offsets = [0, 0], sizes = [8, 128], strides = [1, 1]} : vector<8x512xf32> to vector<8x128xf32>
      %277 = arith.negf %276 : vector<8x128xf32>
      %278 = math.exp %277 : vector<8x128xf32>
      %cst_74 = arith.constant 1.000000e+00 : f32
      %279 = vector.broadcast %cst_74 : f32 to vector<8x128xf32>
      %280 = arith.addf %279, %278 : vector<8x128xf32>
      %281 = arith.divf %279, %280 : vector<8x128xf32>
      %282 = vector.extract_strided_slice %275 {offsets = [0, 128], sizes = [8, 128], strides = [1, 1]} : vector<8x512xf32> to vector<8x128xf32>
      %283 = arith.negf %282 : vector<8x128xf32>
      %284 = math.exp %283 : vector<8x128xf32>
      %cst_75 = arith.constant 1.000000e+00 : f32
      %285 = vector.broadcast %cst_75 : f32 to vector<8x128xf32>
      %286 = arith.addf %285, %284 : vector<8x128xf32>
      %287 = arith.divf %285, %286 : vector<8x128xf32>
      %288 = vector.extract_strided_slice %275 {offsets = [0, 256], sizes = [8, 128], strides = [1, 1]} : vector<8x512xf32> to vector<8x128xf32>
      %289 = math.tanh %288 : vector<8x128xf32>
      %290 = vector.extract_strided_slice %275 {offsets = [0, 384], sizes = [8, 128], strides = [1, 1]} : vector<8x512xf32> to vector<8x128xf32>
      %291 = arith.negf %290 : vector<8x128xf32>
      %292 = math.exp %291 : vector<8x128xf32>
      %cst_76 = arith.constant 1.000000e+00 : f32
      %293 = vector.broadcast %cst_76 : f32 to vector<8x128xf32>
      %294 = arith.addf %293, %292 : vector<8x128xf32>
      %295 = arith.divf %293, %294 : vector<8x128xf32>
      %296 = arith.mulf %287, %269 : vector<8x128xf32>
      %297 = arith.mulf %281, %289 : vector<8x128xf32>
      %298 = arith.addf %296, %297 : vector<8x128xf32>
      %299 = math.tanh %298 : vector<8x128xf32>
      %300 = arith.mulf %295, %299 : vector<8x128xf32>
      %301 = arith.addi %13, %c7_i32 : i32
      %c12_i32_77 = arith.constant 12 : i32
      %302 = arith.cmpi slt, %301, %c12_i32_77 : i32
      %303 = arith.select %302, %300, %268 : vector<8x128xf32>
      %304 = arith.select %302, %298, %269 : vector<8x128xf32>
      %c8_i32_78 = arith.constant 8 : i32
      %c0_79 = arith.constant 0 : index
      %c0_80 = arith.constant 0 : index
      %305 = vector.load %arg10[%c0_79, %c0_80] : memref<8x128xf32, #tpu.memory_space<vmem>>, vector<8x128xf32>
      tpu.vector_store %arg10[%c0_79, %c0_80], %303 {strides = array<i32>} : memref<8x128xf32, #tpu.memory_space<vmem>>, vector<8x128xf32>,
      %c0_81 = arith.constant 0 : index
      %c0_82 = arith.constant 0 : index
      %306 = vector.load %arg11[%c0_81, %c0_82] : memref<8x128xf32, #tpu.memory_space<vmem>>, vector<8x128xf32>
      tpu.vector_store %arg11[%c0_81, %c0_82], %304 {strides = array<i32>} : memref<8x128xf32, #tpu.memory_space<vmem>>, vector<8x128xf32>,
    } else {
    }
    %c1_i32_15 = arith.constant 1 : i32
    %20 = arith.cmpi eq, %arg1, %c1_i32_15 : i32
    %21 = arith.extui %20 : i1 to i32
    %c0_i32_16 = arith.constant 0 : i32
    %22 = arith.cmpi ne, %21, %c0_i32_16 : i32
    scf.if %22 {
      %c0_17 = arith.constant 0 : index
      %c0_18 = arith.constant 0 : index
      %23 = vector.load %arg10[%c0_17, %c0_18] : memref<8x128xf32, #tpu.memory_space<vmem>>, vector<8x128xf32>
      %24 = arith.truncf %23 : vector<8x128xf32> to vector<8x128xbf16>
      %c0_19 = arith.constant 0 : index
      %c0_20 = arith.constant 0 : index
      %25 = vector.load %arg6[%c0_19, %c0_20] : memref<128x128xbf16, #tpu.memory_space<vmem>>, vector<128x128xbf16>
      %cst_21 = arith.constant dense<0.000000e+00> : vector<8x128xf32>
      %26 = tpu.matmul %24, %25, %cst_21 {dimension_numbers = #tpu.dot_dimension_numbers<[1], [0], [0], [1], [0, 0, 1, 1], [], []>} : vector<8x128xbf16>, vector<128x128xbf16>, vector<8x128xf32> -> vector<8x128xf32>
      %c0_22 = arith.constant 0 : index
      %c0_23 = arith.constant 0 : index
      %27 = vector.load %arg7[%c0_22, %c0_23] : memref<1x128xf32, #tpu.memory_space<vmem>>, vector<1x128xf32>
      %28 = vector.broadcast %27 : vector<1x128xf32> to vector<8x128xf32>
      %29 = arith.addf %26, %28 : vector<8x128xf32>
      %30 = arith.negf %29 : vector<8x128xf32>
      %31 = math.exp %30 : vector<8x128xf32>
      %cst_24 = arith.constant 1.000000e+00 : f32
      %32 = vector.broadcast %cst_24 : f32 to vector<8x128xf32>
      %33 = arith.addf %32, %31 : vector<8x128xf32>
      %34 = arith.divf %32, %33 : vector<8x128xf32>
      %c0_25 = arith.constant 0 : index
      %c0_26 = arith.constant 0 : index
      %35 = vector.load %arg8[%c0_25, %c0_26] : memref<8x128xf32, #tpu.memory_space<vmem>>, vector<8x128xf32>
      tpu.vector_store %arg8[%c0_25, %c0_26], %34 {strides = array<i32>} : memref<8x128xf32, #tpu.memory_space<vmem>>, vector<8x128xf32>,
    } else {
    }
    return
  }
  func.func @transform_0(%arg0: i32, %arg1: i32) -> (i32, i32, i32) {
    %c0_i32 = arith.constant 0 : i32
    %c0_i32_0 = arith.constant 0 : i32
    return %arg1, %arg0, %c0_i32 : i32, i32, i32
  }
  func.func @transform_1(%arg0: i32, %arg1: i32) -> (i32, i32) {
    %c0_i32 = arith.constant 0 : i32
    %c0_i32_0 = arith.constant 0 : i32
    %c0_i32_1 = arith.constant 0 : i32
    return %c0_i32, %c0_i32_0 : i32, i32
  }
  func.func @transform_2(%arg0: i32, %arg1: i32) -> (i32, i32) {
    %c0_i32 = arith.constant 0 : i32
    %c0_i32_0 = arith.constant 0 : i32
    %c0_i32_1 = arith.constant 0 : i32
    return %c0_i32, %c0_i32_0 : i32, i32
  }
  func.func @transform_3(%arg0: i32, %arg1: i32) -> (i32, i32) {
    %c0_i32 = arith.constant 0 : i32
    %c0_i32_0 = arith.constant 0 : i32
    %c0_i32_1 = arith.constant 0 : i32
    return %c0_i32, %c0_i32_0 : i32, i32
  }
  func.func @transform_4(%arg0: i32, %arg1: i32) -> (i32, i32) {
    %c0_i32 = arith.constant 0 : i32
    %c0_i32_0 = arith.constant 0 : i32
    %c0_i32_1 = arith.constant 0 : i32
    return %c0_i32, %c0_i32_0 : i32, i32
  }
  func.func @transform_5(%arg0: i32, %arg1: i32) -> (i32, i32) {
    %c0_i32 = arith.constant 0 : i32
    %c0_i32_0 = arith.constant 0 : i32
    %c0_i32_1 = arith.constant 0 : i32
    return %c0_i32, %c0_i32_0 : i32, i32
  }
  func.func @transform_6(%arg0: i32, %arg1: i32) -> (i32, i32) {
    %c0_i32 = arith.constant 0 : i32
    %c0_i32_0 = arith.constant 0 : i32
    return %arg0, %c0_i32 : i32, i32
  }
}

</mosaic_0001>

<bundles_post_ra>
// kernel: tpu_custom_call.1
= control target key start
LH: loop header
LB: loop body
LE: loop exit
PB: predicated region body
PF: predicated region fallthrough
CT: control target
= control target key end

     0   :  { %11 = vsyncpa [#allocation6], 0  ;;  %s5424_s0 = inlined_call_operand.hbm [shape: bf16[16,8,128], index: 0, kind: input, shape index: {}]   ;;  %s5425_s1 = inlined_call_operand.hbm [shape: bf16[128,512], index: 1, kind: input, shape index: {}]   ;;  %s5426_s2 = inlined_call_operand.hbm [shape: bf16[128,512], index: 2, kind: input, shape index: {}]   ;;  %s5427_s3 = inlined_call_operand.vmem [shape: f32[1,512], index: 3, kind: input, shape index: {}]   ;;  %s5428_s4 = inlined_call_operand.hbm [shape: bf16[128,128], index: 4, kind: input, shape index: {}]   ;;  %s5429_s5 = inlined_call_operand.vmem [shape: f32[1,128], index: 5, kind: input, shape index: {}]   ;;  %s5430_s6 = inlined_call_operand.hbm [shape: f32[8,128], index: 6, kind: output, shape index: {}]  }
   0x1   :  { %13 = vsyncpa [#allocation6 + $0x1], 0 }
   0x2   :  { %14 = vsyncpa [#allocation9], 0 }
   0x3   :  { %15 = vsyncpa [#allocation12], 0 }
   0x4   :  { %16 = vsyncpa [#allocation7], 0  ;;  %s4140_s21 = smov 0   ;;  %s4142_s22 = smov 0  }
   0x5   :  { %s4144_s23 = smov 0   ;;  %s4146_s24 = smov 0  }
   0x6   :  { %s4148_s25 = smov 0   ;;  %s4150_s26 = smov 0  }
   0x7 LB: > { %s5433_s27 = sadd.s32 4294967295, %s4088_s26   ;;  %p56_p0 = scmp.ne.s32.totalorder %s4072_s22, %s4068_s21  ;;  %s4088_s26 = sphi %s4150_s26, %s22_s26   ;;  %s4084_s25 = sphi %s4148_s25, %s5551_s25   ;;  %s4080_s24 = sphi %s4146_s24, %s5550_s24   ;;  %s4076_s23 = sphi %s4144_s23, %s5549_s23   ;;  %s4072_s22 = sphi %s4142_s22, %s5548_s22   ;;  %s4068_s21 = sphi %s4140_s21, %s5547_s21  }
   0x8   : > { %p4172_p1 = scmp.eq.s32.totalorder %s5433_s27, 0  ;;  %p3254_p2 = scmp.ge.s32.totalorder %s4088_s26, 1 }
   0x9   : > { %p198_p3 = scmp.lt.s32.totalorder %s4088_s26, 3  ;;  %s4090_s7 = smov [#allocation8]  }
   0xa   : > { %s5486_s28 = scalar_select %p4172_p1, 1, 0 }
   0xb   : > { %p4180_p4 = por %p4172_p1, %p56_p0  ;;  %p4184_p5 = pnand %p3254_p2, %p198_p3 }
   0xc   : > { %s210_s8 = sshll.u32 %s4090_s7, 4  ;;  %s4091_s10 = smov [#allocation10]   ;;  %s4188_s8 = int_to_ptr.vmem [resolvable:$true] %s210_s8 }
   0xd   : > { %s5487_s29 = scalar_select %p4180_p4, 1, 0 }
   0xe   : > { %s5488_s30 = scalar_select %p4184_p5, 1, 0 }
   0xf   : > { %p3481_p6 = pneg %p4184_p5  ;;  %s223_s11 = sshll.u32 %s4091_s10, 4  ;;  %s4198_s11 = int_to_ptr.vmem [resolvable:$true] %s223_s11 }
  0x10   : > { %s4092_s12 = smov [#allocation11]   ;;  %s3886_s16 = scalar_lea.hbm %s5425_s1, 4096 }
  0x11   : > { %p4194_p7 = pnand %p3481_p6, %p4172_p1  ;;  %s4200_s13 = sshll.u32 %s4092_s12, 4  ;;  %s240_s13 = int_to_ptr.vmem [resolvable:$true] %s4200_s13 }
  0x12   : > { %p3887_p8 = scmp.ne.s32.totalorder %s5425_s1, %s3886_s16  ;;  %p3893_p12 = scmp.lt.u32.totalorder %s3886_s16, %s5425_s1 }
  0x13   : > { %p4210_p9 = pneg %p4194_p7 }
  0x15   : > { %p3889_p10 = pnand %p4210_p9, %p3887_p8 }
  0x17   : > { %p3890_p11 = pneg %p3889_p10 }
  0x19   : > { %p3895_p13 = pnand %p3893_p12, %p3890_p11 }
  0x1b   : > { %3898 = shalt.err (!%p3895_p13)
}
  0x1c   : > { %s3899_s7 = scalar_lea.vmem %s4188_s8, 4096  ;;  %p3907_p6 = scmp.lt.s32.totalorder %s4188_s8, %s4188_s8 }
  0x1d   : > { %p3900_p0 = scmp.ne.s32.totalorder %s4188_s8, %s3899_s7  ;;  %p3908_p1 = scmp.lt.s32.totalorder %s3899_s7, %s3899_s7 }
  0x1f   : > { %p3902_p2 = pnand %p3900_p0, %p4210_p9  ;;  %p3909_p8 = por %p3908_p1, %p3907_p6 }
  0x21   : > { %p3903_p3 = pneg %p3902_p2 }
  0x23   : > { %p3910_p10 = pnand %p3909_p8, %p3903_p3 }
  0x25   : > { %3913 = shalt.err (!%p3910_p10)
}
  0x26   : > { %s4093_s10 = smov 256   ;;  %s4094_s12 = smov 16  }
  0x27   : > { %3484 = dma.hbm_to_vmem [thread:$0]  (!%p4194_p7), %s5425_s1, 4096, %s4188_s8, [#allocation9], %s4093_s10, %s4093_s10, %s4094_s12  }
  0x28   : > { %s3914_s18 = scalar_lea.hbm %s5426_s2, 4096 }
  0x29   : > { %p3915_p1 = scmp.ne.s32.totalorder %s5426_s2, %s3914_s18  ;;  %p3921_p13 = scmp.lt.u32.totalorder %s3914_s18, %s5426_s2 }
  0x2b   : > { %p3917_p11 = pnand %p3915_p1, %p4210_p9 }
  0x2d   : > { %p3918_p12 = pneg %p3917_p11 }
  0x2f   : > { %p3923_p0 = pnand %p3921_p13, %p3918_p12 }
  0x31   : > { %3926 = shalt.err (!%p3923_p0)
}
  0x32   : > { %s3927_s8 = scalar_lea.vmem %s4198_s11, 4096  ;;  %p3935_p8 = scmp.lt.s32.totalorder %s4198_s11, %s4198_s11 }
  0x33   : > { %p3928_p2 = scmp.ne.s32.totalorder %s4198_s11, %s3927_s8  ;;  %p3936_p10 = scmp.lt.s32.totalorder %s3927_s8, %s3927_s8 }
  0x35   : > { %p3930_p3 = pnand %p3928_p2, %p4210_p9  ;;  %p3937_p1 = por %p3936_p10, %p3935_p8 }
  0x37   : > { %p3931_p6 = pneg %p3930_p3 }
  0x39   : > { %p3938_p11 = pnand %p3937_p1, %p3931_p6 }
  0x3b   : > { %3941 = shalt.err (!%p3938_p11)
}
  0x3c   : > { %3487 = dma.hbm_to_vmem [thread:$0]  (!%p4194_p7), %s5426_s2, 4096, %s4198_s11, [#allocation9], %s4093_s10, %s4093_s10, %s4094_s12  }
  0x3d   : > { %s3942_s17 = scalar_lea.hbm %s5428_s4, 1024 }
  0x3e   : > { %p3943_p12 = scmp.ne.s32.totalorder %s5428_s4, %s3942_s17  ;;  %p3949_p2 = scmp.lt.u32.totalorder %s3942_s17, %s5428_s4 }
  0x40   : > { %p3945_p13 = pnand %p3943_p12, %p4210_p9 }
  0x42   : > { %p3946_p0 = pneg %p3945_p13 }
  0x44   : > { %p3951_p3 = pnand %p3949_p2, %p3946_p0 }
  0x46   : > { %3954 = shalt.err (!%p3951_p3)
}
  0x47   : > { %s3955_s8 = scalar_lea.vmem %s240_s13, 1024  ;;  %p3963_p1 = scmp.lt.s32.totalorder %s240_s13, %s240_s13 }
  0x48   : > { %p3956_p6 = scmp.ne.s32.totalorder %s240_s13, %s3955_s8  ;;  %p3964_p11 = scmp.lt.s32.totalorder %s3955_s8, %s3955_s8 }
  0x4a   : > { %p3958_p8 = pnand %p3956_p6, %p4210_p9  ;;  %p3965_p4 = por %p3964_p11, %p3963_p1 }
  0x4c   : > { %p3959_p10 = pneg %p3958_p8 }
  0x4e   : > { %p3966_p5 = pnand %p3965_p4, %p3959_p10 }
  0x50   : > { %3969 = shalt.err (!%p3966_p5)
}
  0x51   : > { %s4095_s11 = smov 64   ;;  %s4096_s10 = smov 4  }
  0x52   : > { %3490 = dma.hbm_to_vmem [thread:$0]  (!%p4194_p7), %s5428_s4, 1024, %s240_s13, [#allocation12], %s4095_s11, %s4095_s11, %s4096_s10  }
  0x53   : > { %s31_s27 = sadd.s32 1, %s4084_s25  ;;  %p50_p4 = scmp.ne.s32.totalorder %s4076_s23, %s4072_s22 }
  0x54   : > { %p32_p5 = scmp.ge.s32.totalorder %s31_s27, 2  ;;  %p51_p9 = scmp.eq.s32.totalorder %s4088_s26, 0 }
  0x55   : > { %s43_s14 = sadd.s32 1, %s4076_s23  ;;  %s256_s15 = sand.u32 1, %s4076_s23  }
  0x56   : > { %s5553_s27 = smov (%p32_p5, %s31_s27), 0  ;;  %p52_p12 = por %p51_p9, %p50_p4 }
  0x57   : > { %p3498_p13 = scmp.lt.s32.totalorder %s4088_s26, 2  ;;  %s38_s9 = ssub.s32 %s4084_s25, %s5553_s27 }
  0x58   : > { %s3259_s16 = sshll.u32 %s256_s15, 5  ;;  %p41_p0 = scmp.eq.s32.totalorder %s38_s9, 0 }
  0x59   : > { %s3433_s17 = sshll.u32 %s4084_s25, 9  ;;  %s260_s18 = scalar_lea.vmem [#allocation5], %s3259_s16 }
  0x5a   : > { %s268_s20 = sshll.u32 %s260_s18, 4  ;;  %s4294_s8 = scalar_lea.hbm %s5424_s0, %s3433_s17  ;;  %s4296_s20 = int_to_ptr.vmem [resolvable:$true] %s268_s20 }
  0x5b   : > { %s4289_s21 = scalar_select %p41_p0, %s4076_s23, %s43_s14  }
  0x5c   : > { %p4298_p7 = pnand %p3498_p13, %p52_p12  ;;  %s4302_s12 = scalar_lea.sflag [#allocation6], %s256_s15 }
  0x5d   : > { %s3970_s14 = scalar_lea.hbm %s4294_s8, 512  ;;  %s3975_s17 = scalar_lea.hbm %s5424_s0, 1024 }
  0x5e   : > { %p3971_p2 = scmp.ne.s32.totalorder %s4294_s8, %s3970_s14  ;;  %p3972_p3 = pneg %p4298_p7 }
  0x5f   : > { %p3976_p10 = scmp.lt.u32.totalorder %s4294_s8, %s5424_s0  ;;  %p3977_p1 = scmp.lt.u32.totalorder %s3975_s17, %s3970_s14 }
  0x60   : > { %p3973_p6 = pnand %p3972_p3, %p3971_p2  ;;  %p3979_p4 = scmp.lt.u32.totalorder %s3970_s14, %s4294_s8 }
  0x61   : > { %p3978_p11 = por %p3977_p1, %p3976_p10 }
  0x62   : > { %p3974_p8 = pneg %p3973_p6 }
  0x63   : > { %p3980_p5 = por %p3979_p4, %p3978_p11 }
  0x65   : > { %p3981_p9 = pnand %p3980_p5, %p3974_p8 }
  0x67   : > { %3984 = shalt.err (!%p3981_p9)
}
  0x68   : > { %s3985_s15 = scalar_lea.vmem %s4296_s20, 512  ;;  %s4097_s7 = smov [#allocation5]  }
  0x69   : > { %p3986_p12 = scmp.ne.s32.totalorder %s4296_s20, %s3985_s15  ;;  %s3990_s9 = sshll.u32 %s4097_s7, 4  ;;  %s3991_s9 = int_to_ptr.vmem [resolvable:$false] %s3990_s9 }
  0x6a   : > { %s3992_s16 = scalar_lea.vmem %s3991_s9, 1024  ;;  %p3993_p2 = scmp.lt.s32.totalorder %s4296_s20, %s3991_s9 }
  0x6b   : > { %p3988_p13 = pnand %p3986_p12, %p3972_p3  ;;  %p3994_p6 = scmp.lt.s32.totalorder %s3992_s16, %s3985_s15 }
  0x6d   : > { %p3989_p0 = pneg %p3988_p13  ;;  %p3995_p10 = por %p3994_p6, %p3993_p2 }
  0x6f   : > { %p3996_p1 = pnand %p3995_p10, %p3989_p0 }
  0x71   : > { %3999 = shalt.err (!%p3996_p1)
}
  0x72   : > { %3494 = dma.hbm_to_vmem [thread:$0]  (!%p4298_p7), %s4294_s8, 512, %s4296_s20, %s4302_s12, %s4095_s11, %s4095_s11, %s4096_s10  }
  0x73   : > { %p5492_p3 = scmp.ne.s32.totalorder %s5488_s30, 0 }
  0x75   : > { %280 = sbr.rel (%p5492_p3) target bundleno = 4916 (0x1334), region = 44 }
  0x7c   : > { %s282_s14 = sand.u32 1, %s4072_s22   ;;  %p5493_p8 = scmp.ne.s32.totalorder %s5487_s29, 0 }
  0x7d   : > { %s3263_s17 = sshll.u32 %s282_s14, 5  ;;  %s283_s18 = scalar_lea.sflag [#allocation6], %s282_s14 }
  0x7e   : > { %s4336_s13 = scalar_lea.vmem [#allocation5], %s3263_s17 }
  0x7f   : > { %4051 = dma.done.wait (%p5493_p8), %s283_s18, 512  }
  0x80   : > { %4053 = vsyncadd (%p5493_p8), %s283_s18, 4294966784  ;;  %p5494_p11 = scmp.ne.s32.totalorder %s5486_s28, 0 }
  0x82   : > { %4055 = dma.done.wait (%p5494_p11), [#allocation9], 8192  }
  0x83   : > { %4057 = vsyncadd (%p5494_p11), [#allocation9], 4294959104 }
  0x84   : > { %4059 = dma.done.wait (%p5494_p11), [#allocation12], 1024  }
  0x85   : > { %4061 = vsyncadd (%p5494_p11), [#allocation12], 4294966272  ;;  %p3267_p7 = scmp.ne.s32.totalorder %s4080_s24, 0 }
  0x86   : > { %v4098_v0 = vmov (!%p3267_p7), 0.0  }
  0x87   : > { %327 = sbr.rel (%p3267_p7) target bundleno = 142 (0x8e), region = 64  ;;  %328 = vst [vmem:[#allocation3] sm:$0xff] (!%p3267_p7), %v4098_v0  ;;  %329 = vst [vmem:[#allocation4] sm:$0xff] (!%p3267_p7), %v4098_v0 }
  0x8e PF: > { %v3566_v1 = vld [vmem:[#allocation8 + $0x4] ss:$16 sps:$4 sm:$0xff]   ;;  %v3568_v2 = vld [vmem:[#allocation8 + $0xc] ss:$16 sps:$4 sm:$0xff]   ;;  %v4099_v3 = vmov 0   ;;  %s4370_s28 = sshll.u32 %s4080_s24, 3 }
  0x8f   : > { %608 = vmatprep.mubr.bf16.mxu0 %v4099_v3  ;;  %681 = vmatprep.mubr.bf16.mxu1 %v4099_v3  ;;  %v3570_v4 = vld [vmem:[#allocation8] ss:$16 sps:$4 sm:$0xff]   ;;  %v3571_v5 = vld [vmem:[#allocation8 + $0x8] ss:$16 sps:$4 sm:$0xff]   ;;  %v3572_v6 = vld [vmem:[#allocation8 + $0x24] ss:$16 sps:$4 sm:$0xff]  }
  0x90   : > { %576 = vmatprep.subr.bf16.mxu0 %v3566_v1  ;;  %649 = vmatprep.subr.bf16.mxu1 %v3568_v2  ;;  %v3574_v7 = vld [vmem:[#allocation8 + $0x2c] ss:$16 sps:$4 sm:$0xff]   ;;  %v3576_v8 = vld [vmem:[#allocation8 + $0x20] ss:$16 sps:$4 sm:$0xff]   ;;  %v3577_v9 = vld [vmem:[#allocation8 + $0x28] ss:$16 sps:$4 sm:$0xff]  }
  0x91   : > { %577 = vmatpush1.bf16.msra.mxu0 %v3570_v4  ;;  %650 = vmatpush1.bf16.msra.mxu1 %v3571_v5  ;;  %v3578_v10 = vld [vmem:[#allocation8 + $0x44] ss:$16 sps:$4 sm:$0xff]   ;;  %v3580_v11 = vld [vmem:[#allocation8 + $0x4c] ss:$16 sps:$4 sm:$0xff]   ;;  %v3582_v12 = vld [vmem:[#allocation8 + $0x40] ss:$16 sps:$4 sm:$0xff]  }
  0x92   : > { %578 = vmatprep.subr.bf16.mxu0 %v3572_v6  ;;  %651 = vmatprep.subr.bf16.mxu1 %v3574_v7  ;;  %v3583_v13 = vld [vmem:[#allocation8 + $0x48] ss:$16 sps:$4 sm:$0xff]   ;;  %v3584_v14 = vld [vmem:[#allocation8 + $0x64] ss:$16 sps:$4 sm:$0xff]   ;;  %v3586_v15 = vld [vmem:[#allocation8 + $0x6c] ss:$16 sps:$4 sm:$0xff]   ;;  %v372_v6 = vlaneseq }
  0x93   : > { %v3588_v16 = vld [vmem:[#allocation8 + $0x60] ss:$16 sps:$4 sm:$0xff]   ;;  %v3589_v17 = vld [vmem:[#allocation8 + $0x68] ss:$16 sps:$4 sm:$0xff]   ;;  %v3590_v18 = vld [vmem:[#allocation8 + $0x84] ss:$16 sps:$4 sm:$0xff]  }
  0x94   : > { %v3592_v19 = vld [vmem:[#allocation8 + $0x8c] ss:$16 sps:$4 sm:$0xff]   ;;  %v3594_v20 = vld [vmem:[#allocation8 + $0x80] ss:$16 sps:$4 sm:$0xff]   ;;  %v3595_v21 = vld [vmem:[#allocation8 + $0x88] ss:$16 sps:$4 sm:$0xff]  }
  0x95   : > { %579 = vmatpush1.bf16.msra.mxu0 %v3576_v8  ;;  %652 = vmatpush1.bf16.msra.mxu1 %v3577_v9  ;;  %v3596_v22 = vld [vmem:[#allocation8 + $0xa4] ss:$16 sps:$4 sm:$0xff]   ;;  %v3598_v23 = vld [vmem:[#allocation8 + $0xac] ss:$16 sps:$4 sm:$0xff]   ;;  %v3600_v24 = vld [vmem:[#allocation8 + $0xa0] ss:$16 sps:$4 sm:$0xff]  }
  0x96   : > { %580 = vmatprep.subr.bf16.mxu0 %v3578_v10  ;;  %653 = vmatprep.subr.bf16.mxu1 %v3580_v11  ;;  %v3601_v25 = vld [vmem:[#allocation8 + $0xa8] ss:$16 sps:$4 sm:$0xff]   ;;  %v3602_v26 = vld [vmem:[#allocation8 + $0xc4] ss:$16 sps:$4 sm:$0xff]   ;;  %v3604_v27 = vld [vmem:[#allocation8 + $0xcc] ss:$16 sps:$4 sm:$0xff]  }
  0x97   : > { %v3606_v28 = vld [vmem:[#allocation8 + $0xc0] ss:$16 sps:$4 sm:$0xff]   ;;  %v3607_v29 = vld [vmem:[#allocation8 + $0xc8] ss:$16 sps:$4 sm:$0xff]   ;;  %v3608_v30 = vld [vmem:[#allocation8 + $0xe4] ss:$16 sps:$4 sm:$0xff]  }
  0x98   : > { %v3610_v31 = vld [vmem:[#allocation8 + $0xec] ss:$16 sps:$4 sm:$0xff]   ;;  %v3612_v32 = vld [vmem:[#allocation8 + $0xe0] ss:$16 sps:$4 sm:$0xff]   ;;  %v3613_v33 = vld [vmem:[#allocation8 + $0xe8] ss:$16 sps:$4 sm:$0xff]  }
  0x99   : > { %581 = vmatpush1.bf16.msra.mxu0 %v3582_v12  ;;  %654 = vmatpush1.bf16.msra.mxu1 %v3583_v13  ;;  %v3614_v34 = vld [vmem:[%s4336_s13] sm:$0xff]   ;;  %v3615_v35 = vld [vmem:[%s4336_s13 + $0x8] sm:$0xff]   ;;  %v3616_v36 = vld [vmem:[%s4336_s13 + $0x10] sm:$0xff]   ;;  %v373_v7 = vshrl.u32 %v372_v6, 7  ;;  %p3305_p4 = scmp.ge.s32.totalorder %s4080_s24, 1 }
  0x9a   : > { %582 = vmatprep.subr.bf16.mxu0 %v3584_v14  ;;  %655 = vmatprep.subr.bf16.mxu1 %v3586_v15  ;;  %v3617_v37 = vld [vmem:[%s4336_s13 + $0x18] sm:$0xff]   ;;  %v4363_v38 = vld [vmem:[#allocation10] sm:$0xff]  ;;  %v4365_v39 = vld [vmem:[#allocation10 + $0x8] sm:$0xff] }
  0x9b   : > { %v4367_v40 = vld [vmem:[#allocation10 + $0x10] sm:$0xff]  ;;  %v4372_v41 = vld [vmem:[#allocation10 + $0x18] sm:$0xff]  ;;  %v4374_v42 = vld [vmem:[#allocation10 + $0x20] sm:$0xff]  ;;  %v374_v8 = vsub.s32 0, %v373_v7  ;;  %v382_v9 = vsub.s32 2, %v373_v7  ;;  %v378_v11 = vsub.s32 1, %v373_v7 }
  0x9c   : > { %v4376_v43 = vld [vmem:[#allocation10 + $0x28] sm:$0xff]  ;;  %v4378_v44 = vld [vmem:[#allocation10 + $0x30] sm:$0xff]  ;;  %v4380_v45 = vld [vmem:[#allocation10 + $0x38] sm:$0xff]  ;;  %v386_v12 = vsub.s32 3, %v373_v7 }
  0x9d   : > { %583 = vmatpush1.bf16.msra.mxu0 %v3588_v16  ;;  %656 = vmatpush1.bf16.msra.mxu1 %v3589_v17  ;;  %v4382_v46 = vld [vmem:[#allocation10 + $0x40] sm:$0xff]  ;;  %v4384_v47 = vld [vmem:[#allocation10 + $0x48] sm:$0xff]  ;;  %v4386_v48 = vld [vmem:[#allocation10 + $0x50] sm:$0xff] }
  0x9e   : > { %584 = vmatprep.subr.bf16.mxu0 %v3590_v18  ;;  %657 = vmatprep.subr.bf16.mxu1 %v3592_v19  ;;  %5495 = vst [vmem:[#allocation18_spill] sm:$0xff] %v4382_v46  ;;  %5496 = vst [vmem:[#allocation19_spill] sm:$0xff] %v4384_v47  ;;  %v4388_v49 = vld [vmem:[#allocation10 + $0x58] sm:$0xff]  ;;  %v4390_v50 = vld [vmem:[#allocation10 + $0x60] sm:$0xff] }
  0x9f   : > { %5497 = vst [vmem:[#allocation20_spill] sm:$0xff] %v4386_v48  ;;  %5498 = vst [vmem:[#allocation21_spill] sm:$0xff] %v4388_v49  ;;  %v4392_v51 = vld [vmem:[#allocation10 + $0x68] sm:$0xff]  ;;  %v4394_v52 = vld [vmem:[#allocation10 + $0x70] sm:$0xff] }
  0xa0   : > { %5499 = vst [vmem:[#allocation22_spill] sm:$0xff] %v4390_v50  ;;  %5500 = vst [vmem:[#allocation23_spill] sm:$0xff] %v4392_v51  ;;  %v4396_v53 = vld [vmem:[#allocation10 + $0x78] sm:$0xff]  ;;  %v4398_v54 = vld [vmem:[#allocation10 + $0x80] sm:$0xff] }
  0xa1   : > { %585 = vmatpush1.bf16.msra.mxu0 %v3594_v20  ;;  %658 = vmatpush1.bf16.msra.mxu1 %v3595_v21  ;;  %5501 = vst [vmem:[#allocation24_spill] sm:$0xff] %v4394_v52  ;;  %5502 = vst [vmem:[#allocation25_spill] sm:$0xff] %v4396_v53  ;;  %v4400_v55 = vld [vmem:[#allocation10 + $0x88] sm:$0xff]  ;;  %v4402_v56 = vld [vmem:[#allocation10 + $0x90] sm:$0xff] }
  0xa2   : > { %586 = vmatprep.subr.bf16.mxu0 %v3596_v22  ;;  %659 = vmatprep.subr.bf16.mxu1 %v3598_v23  ;;  %5503 = vst [vmem:[#allocation26_spill] sm:$0xff] %v4398_v54  ;;  %5504 = vst [vmem:[#allocation27_spill] sm:$0xff] %v4400_v55  ;;  %v4404_v57 = vld [vmem:[#allocation10 + $0x98] sm:$0xff]  ;;  %v4406_v58 = vld [vmem:[#allocation10 + $0xa0] sm:$0xff] }
  0xa3   : > { %5505 = vst [vmem:[#allocation28_spill] sm:$0xff] %v4402_v56  ;;  %5506 = vst [vmem:[#allocation29_spill] sm:$0xff] %v4404_v57  ;;  %v4408_v59 = vld [vmem:[#allocation10 + $0xa8] sm:$0xff]  ;;  %v4410_v60 = vld [vmem:[#allocation10 + $0xb0] sm:$0xff] }
  0xa4   : > { %5507 = vst [vmem:[#allocation30_spill] sm:$0xff] %v4406_v58  ;;  %5508 = vst [vmem:[#allocation31_spill] sm:$0xff] %v4408_v59  ;;  %v4412_v61 = vld [vmem:[#allocation10 + $0xb8] sm:$0xff]  ;;  %v4414_v62 = vld [vmem:[#allocation10 + $0xc0] sm:$0xff] }
  0xa5   : > { %587 = vmatpush1.bf16.msra.mxu0 %v3600_v24  ;;  %660 = vmatpush1.bf16.msra.mxu1 %v3601_v25  ;;  %5509 = vst [vmem:[#allocation32_spill] sm:$0xff] %v4410_v60  ;;  %5510 = vst [vmem:[#allocation33_spill] sm:$0xff] %v4412_v61  ;;  %v4416_v63 = vld [vmem:[#allocation10 + $0xc8] sm:$0xff]  ;;  %v4418_v0 = vld [vmem:[#allocation10 + $0xd0] sm:$0xff] }
  0xa6   : > { %588 = vmatprep.subr.bf16.mxu0 %v3602_v26  ;;  %661 = vmatprep.subr.bf16.mxu1 %v3604_v27  ;;  %5511 = vst [vmem:[#allocation34_spill] sm:$0xff] %v4414_v62  ;;  %5512 = vst [vmem:[#allocation35_spill] sm:$0xff] %v4416_v63  ;;  %v4420_v1 = vld [vmem:[#allocation10 + $0xd8] sm:$0xff]  ;;  %v4422_v2 = vld [vmem:[#allocation10 + $0xe0] sm:$0xff] }
  0xa7   : > { %5513 = vst [vmem:[#allocation36_spill] sm:$0xff] %v4418_v0  ;;  %5514 = vst [vmem:[#allocation37_spill] sm:$0xff] %v4420_v1  ;;  %v4426_v4 = vld [vmem:[#allocation10 + $0xf0] sm:$0xff]  ;;  %v4428_v5 = vld [vmem:[#allocation10 + $0xf8] sm:$0xff] }
  0xa8   : > { %5515 = vst [vmem:[#allocation38_spill] sm:$0xff] %v4422_v2  ;;  %5517 = vst [vmem:[#allocation40_spill] sm:$0xff] %v4426_v4  ;;  %v370_v10 = vld [vmem:[%s5427_s3] sm:$0xf] }
  0xa9   : > { %589 = vmatpush1.bf16.msra.mxu0 %v3606_v28  ;;  %662 = vmatpush1.bf16.msra.mxu1 %v3607_v29  ;;  %5518 = vst [vmem:[#allocation41_spill] sm:$0xff] %v4428_v5  ;;  %v4433_v13 = vrot.slane %v370_v10, %v374_v8  ;;  %v4435_v14 = vrot.slane %v370_v10, %v382_v9 }
  0xaa   : > { %590 = vmatprep.subr.bf16.mxu0 %v3608_v30  ;;  %663 = vmatprep.subr.bf16.mxu1 %v3610_v31  ;;  %v4437_v15 = vrot.slane %v370_v10, %v378_v11  ;;  %v4439_v16 = vrot.slane %v370_v10, %v386_v12 }
  0xad   : > { %591 = vmatpush1.bf16.msra.mxu0 %v3612_v32  ;;  %664 = vmatpush1.bf16.msra.mxu1 %v3613_v33 }
  0xb0   : > { %609 = vmatmul.mubr.bf16.vlgmr.msra.gmra.mrb[0].mxu0 %v3614_v34  ;;  %682 = vmatmul.mubr.bf16.vlgmr.msra.gmra.mrb[0].mxu1 %v3614_v34 }
  0xb1   : > { %618 = vmatprep.mubr.bf16.mxu0 %v4099_v3  ;;  %691 = vmatprep.mubr.bf16.mxu1 %v4099_v3 }
  0xb8   : > { %619 = vmatmul.mubr.bf16.gmra.mrb[4].mxu0 %v3615_v35  ;;  %692 = vmatmul.mubr.bf16.gmra.mrb[4].mxu1 %v3615_v35 }
  0xb9   : > { %628 = vmatprep.mubr.bf16.mxu0 %v4099_v3  ;;  %701 = vmatprep.mubr.bf16.mxu1 %v4099_v3 }
  0xc0   : > { %629 = vmatmul.mubr.bf16.gmra.mrb[8].mxu0 %v3616_v36  ;;  %702 = vmatmul.mubr.bf16.gmra.mrb[8].mxu1 %v3616_v36 }
  0xc1   : > { %638 = vmatprep.mubr.bf16.mxu0 %v4099_v3  ;;  %711 = vmatprep.mubr.bf16.mxu1 %v4099_v3  ;;  %v4424_v3 = vld [vmem:[#allocation10 + $0xe8] sm:$0xff] }
  0xc2   : > { %5516 = vst [vmem:[#allocation39_spill] sm:$0xff] %v4424_v3 }
  0xc8   : > { %639 = vmatmul.mubr.bf16.gmra.mrb[12].mxu0 %v3617_v37  ;;  %712 = vmatmul.mubr.bf16.gmra.mrb[12].mxu1 %v3617_v37 }
 0x183   : > { %v610_v17 = vpop.f32.mrb[0].mxu0  ;;  %v683_v18 = vpop.f32.mrb[0].mxu1 }
 0x184   : > { %v611_v19 = vadd.f32 %v610_v17, %v4433_v13  ;;  %v684_v20 = vadd.f32 %v683_v18, %v4435_v14  ;;  %v612_v21 = vpop.f32.mrb[1].mxu0  ;;  %v685_v22 = vpop.f32.mrb[1].mxu1 }
 0x185   : > { %v613_v23 = vadd.f32 %v612_v21, %v4437_v15  ;;  %v686_v24 = vadd.f32 %v685_v22, %v4439_v16  ;;  %v614_v25 = vpop.f32.mrb[2].mxu0  ;;  %v687_v26 = vpop.f32.mrb[2].mxu1 }
 0x186   : > { %722 = vst [vmem:[#allocation2] sm:$0xff] %v611_v19  ;;  %724 = vst [vmem:[#allocation2 + $0x10] sm:$0xff] %v684_v20  ;;  %v615_v27 = vadd.f32 %v614_v25, %v4433_v13  ;;  %v688_v28 = vadd.f32 %v687_v26, %v4435_v14  ;;  %v616_v29 = vpop.f32.mrb[3].mxu0  ;;  %v689_v30 = vpop.f32.mrb[3].mxu1 }
 0x187   : > { %723 = vst [vmem:[#allocation2 + $0x8] sm:$0xff] %v613_v23  ;;  %725 = vst [vmem:[#allocation2 + $0x18] sm:$0xff] %v686_v24  ;;  %v617_v31 = vadd.f32 %v616_v29, %v4437_v15  ;;  %v690_v32 = vadd.f32 %v689_v30, %v4439_v16 }
 0x188   : > { %726 = vst [vmem:[#allocation2 + $0x20] sm:$0xff] %v615_v27  ;;  %728 = vst [vmem:[#allocation2 + $0x30] sm:$0xff] %v688_v28 }
 0x189   : > { %727 = vst [vmem:[#allocation2 + $0x28] sm:$0xff] %v617_v31  ;;  %729 = vst [vmem:[#allocation2 + $0x38] sm:$0xff] %v690_v32 }
 0x18b   : > { %v620_v33 = vpop.f32.mrb[4].mxu0  ;;  %v693_v34 = vpop.f32.mrb[4].mxu1 }
 0x18c   : > { %v621_v35 = vadd.f32 %v620_v33, %v4433_v13  ;;  %v694_v36 = vadd.f32 %v693_v34, %v4435_v14  ;;  %v622_v37 = vpop.f32.mrb[5].mxu0  ;;  %v695_v6 = vpop.f32.mrb[5].mxu1 }
 0x18d   : > { %v623_v7 = vadd.f32 %v622_v37, %v4437_v15  ;;  %v696_v8 = vadd.f32 %v695_v6, %v4439_v16  ;;  %v624_v9 = vpop.f32.mrb[6].mxu0  ;;  %v697_v10 = vpop.f32.mrb[6].mxu1 }
 0x18e   : > { %730 = vst [vmem:[#allocation2 + $0x40] sm:$0xff] %v621_v35  ;;  %732 = vst [vmem:[#allocation2 + $0x50] sm:$0xff] %v694_v36  ;;  %v625_v11 = vadd.f32 %v624_v9, %v4433_v13  ;;  %v698_v12 = vadd.f32 %v697_v10, %v4435_v14  ;;  %v626_v17 = vpop.f32.mrb[7].mxu0  ;;  %v699_v18 = vpop.f32.mrb[7].mxu1 }
 0x18f   : > { %731 = vst [vmem:[#allocation2 + $0x48] sm:$0xff] %v623_v7  ;;  %733 = vst [vmem:[#allocation2 + $0x58] sm:$0xff] %v696_v8  ;;  %v627_v19 = vadd.f32 %v626_v17, %v4437_v15  ;;  %v700_v20 = vadd.f32 %v699_v18, %v4439_v16 }
 0x190   : > { %734 = vst [vmem:[#allocation2 + $0x60] sm:$0xff] %v625_v11  ;;  %736 = vst [vmem:[#allocation2 + $0x70] sm:$0xff] %v698_v12 }
 0x191   : > { %735 = vst [vmem:[#allocation2 + $0x68] sm:$0xff] %v627_v19  ;;  %737 = vst [vmem:[#allocation2 + $0x78] sm:$0xff] %v700_v20 }
 0x193   : > { %v630_v21 = vpop.f32.mrb[8].mxu0  ;;  %v703_v22 = vpop.f32.mrb[8].mxu1 }
 0x194   : > { %v631_v23 = vadd.f32 %v630_v21, %v4433_v13  ;;  %v704_v24 = vadd.f32 %v703_v22, %v4435_v14  ;;  %v632_v25 = vpop.f32.mrb[9].mxu0  ;;  %v705_v26 = vpop.f32.mrb[9].mxu1 }
 0x195   : > { %v633_v27 = vadd.f32 %v632_v25, %v4437_v15  ;;  %v706_v28 = vadd.f32 %v705_v26, %v4439_v16  ;;  %v634_v29 = vpop.f32.mrb[10].mxu0  ;;  %v707_v30 = vpop.f32.mrb[10].mxu1  ;;  %v4493_v25 = vcombine.low (!%p3305_p4), %v4365_v39, %v4372_v41  ;;  %v4497_v26 = vcombine.high (!%p3305_p4), %v4376_v43, %v4380_v45 }
 0x196   : > { %738 = vst [vmem:[#allocation2 + $0x80] sm:$0xff] %v631_v23  ;;  %740 = vst [vmem:[#allocation2 + $0x90] sm:$0xff] %v704_v24  ;;  %v635_v31 = vadd.f32 %v634_v29, %v4433_v13  ;;  %v708_v32 = vadd.f32 %v707_v30, %v4435_v14  ;;  %v636_v33 = vpop.f32.mrb[11].mxu0  ;;  %v709_v34 = vpop.f32.mrb[11].mxu1  ;;  %v4513_v29 = vcombine.low (!%p3305_p4), %v4376_v43, %v4380_v45 }
 0x197   : > { %739 = vst [vmem:[#allocation2 + $0x88] sm:$0xff] %v633_v27  ;;  %741 = vst [vmem:[#allocation2 + $0x98] sm:$0xff] %v706_v28  ;;  %v637_v35 = vadd.f32 %v636_v33, %v4437_v15  ;;  %v710_v36 = vadd.f32 %v709_v34, %v4439_v16  ;;  %v4502_v27 = vcombine.low (!%p3305_p4), %v4374_v42, %v4378_v44 }
 0x198   : > { %742 = vst [vmem:[#allocation2 + $0xa0] sm:$0xff] %v635_v31  ;;  %744 = vst [vmem:[#allocation2 + $0xb0] sm:$0xff] %v708_v32  ;;  %v4508_v28 = vcombine.high (!%p3305_p4), %v4382_v46, %v4386_v48  ;;  %v4518_v30 = vcombine.high (!%p3305_p4), %v4384_v47, %v4388_v49  ;;  %v5436_v31 = vmov (!%p3305_p4), 0   ;;  %v4524_v32 = vcombine.low (!%p3305_p4), %v4382_v46, %v4386_v48 }
 0x199   : > { %743 = vst [vmem:[#allocation2 + $0xa8] sm:$0xff] %v637_v35  ;;  %745 = vst [vmem:[#allocation2 + $0xb8] sm:$0xff] %v710_v36  ;;  %991 = vmatprep.mubr.bf16.mxu0 (!%p3305_p4), %v5436_v31  ;;  %v4529_v33 = vcombine.high (!%p3305_p4), %v4390_v50, %v4394_v52  ;;  %v4534_v34 = vcombine.low (!%p3305_p4), %v4384_v47, %v4388_v49  ;;  %v4539_v35 = vcombine.high (!%p3305_p4), %v4392_v51, %v4396_v53 }
 0x19a   : > { %1032 = vmatprep.mubr.bf16.mxu1 (!%p3305_p4), %v5436_v31  ;;  %v4545_v36 = vcombine.low (!%p3305_p4), %v4390_v50, %v4394_v52  ;;  %v792_v31 = vld [vmem:[#allocation3] sm:$0xff] (!%p3305_p4) }
 0x19b   : > { %v640_v37 = vpop.f32.mrb[12].mxu0  ;;  %v713_v6 = vpop.f32.mrb[12].mxu1  ;;  %791 = sbr.rel (%p3305_p4) target bundleno = 2527 (0x9df), region = 68 }
 0x19c   : > { %v641_v7 = vadd.f32 %v640_v37, %v4433_v13  ;;  %v714_v8 = vadd.f32 %v713_v6, %v4435_v14  ;;  %v642_v9 = vpop.f32.mrb[13].mxu0  ;;  %v715_v10 = vpop.f32.mrb[13].mxu1  ;;  %v4550_v37 = vcombine.high (!%p3305_p4), %v4398_v54, %v4402_v56  ;;  %v4555_v6 = vcombine.low (!%p3305_p4), %v4392_v51, %v4396_v53  ;;  %v796_v53 = vld [vmem:[#allocation2 + $0x10] sm:$0xff] (!%p3305_p4) }
 0x19d   : > { %v643_v11 = vadd.f32 %v642_v9, %v4437_v15  ;;  %v716_v12 = vadd.f32 %v715_v10, %v4439_v16  ;;  %v644_v17 = vpop.f32.mrb[14].mxu0  ;;  %v717_v18 = vpop.f32.mrb[14].mxu1  ;;  %v4570_v9 = vcombine.high (!%p3305_p4), %v4406_v58, %v4410_v60  ;;  %v4575_v10 = vcombine.low (!%p3305_p4), %v4400_v55, %v4404_v57 }
 0x19e   : > { %746 = vst [vmem:[#allocation2 + $0xc0] sm:$0xff] %v641_v7  ;;  %748 = vst [vmem:[#allocation2 + $0xd0] sm:$0xff] %v714_v8  ;;  %v645_v19 = vadd.f32 %v644_v17, %v4433_v13  ;;  %v718_v20 = vadd.f32 %v717_v18, %v4435_v14  ;;  %v646_v21 = vpop.f32.mrb[15].mxu0  ;;  %v719_v22 = vpop.f32.mrb[15].mxu1  ;;  %v4476_v13 = vcombine.high (!%p3305_p4), %v4363_v38, %v4367_v40 }
 0x19f   : > { %747 = vst [vmem:[#allocation2 + $0xc8] sm:$0xff] %v643_v11  ;;  %749 = vst [vmem:[#allocation2 + $0xd8] sm:$0xff] %v716_v12  ;;  %v647_v23 = vadd.f32 %v646_v21, %v4437_v15  ;;  %v720_v24 = vadd.f32 %v719_v22, %v4439_v16  ;;  %v4480_v14 = vcombine.low (!%p3305_p4), %v4363_v38, %v4367_v40 }
 0x1a0   : > { %750 = vst [vmem:[#allocation2 + $0xe0] sm:$0xff] %v645_v19  ;;  %752 = vst [vmem:[#allocation2 + $0xf0] sm:$0xff] %v718_v20  ;;  %v4484_v15 = vcombine.high (!%p3305_p4), %v4374_v42, %v4378_v44  ;;  %v4488_v16 = vcombine.high (!%p3305_p4), %v4365_v39, %v4372_v41  ;;  %959 = vmatprep.subr.bf16.mxu0 (!%p3305_p4), %v4476_v13  ;;  %v4560_v7 = vcombine.high (!%p3305_p4), %v4400_v55, %v4404_v57 }
 0x1a1   : > { %751 = vst [vmem:[#allocation2 + $0xe8] sm:$0xff] %v647_v23  ;;  %753 = vst [vmem:[#allocation2 + $0xf8] sm:$0xff] %v720_v24  ;;  %960 = vmatpush1.bf16.msra.mxu0 (!%p3305_p4), %v4480_v14  ;;  %v4565_v8 = vcombine.low (!%p3305_p4), %v4398_v54, %v4402_v56  ;;  %v4580_v11 = vcombine.high (!%p3305_p4), %v4408_v59, %v4412_v61  ;;  %v4585_v12 = vcombine.low (!%p3305_p4), %v4406_v58, %v4410_v60  ;;  %v797_v54 = vld [vmem:[#allocation2 + $0x18] sm:$0xff] (!%p3305_p4) }
 0x1a2   : > { %1000 = vmatprep.subr.bf16.mxu1 %v4488_v16  ;;  %961 = vmatprep.subr.bf16.mxu0 %v4484_v15  ;;  %v4590_v17 = vcombine.high %v4414_v62, %v4418_v0  ;;  %v4595_v18 = vcombine.low %v4408_v59, %v4412_v61  ;;  %v4600_v19 = vcombine.high %v4416_v63, %v4420_v1 }
 0x1a3   : > { %1001 = vmatpush1.bf16.msra.mxu1 %v4493_v25  ;;  %v4605_v20 = vcombine.low %v4414_v62, %v4418_v0  ;;  %v4610_v21 = vcombine.high %v4422_v2, %v4426_v4  ;;  %v4615_v22 = vcombine.low %v4416_v63, %v4420_v1  ;;  %v4620_v23 = vcombine.high %v4424_v3, %v4428_v5 }
 0x1a4   : > { %1002 = vmatprep.subr.bf16.mxu1 %v4497_v26  ;;  %v4625_v24 = vcombine.low %v4422_v2, %v4426_v4  ;;  %v4631_v63 = vcombine.low %v4424_v3, %v4428_v5  ;;  %v798_v1 = vpack.c.bf16 %v792_v31, %v792_v31  ;;  %v5519_v3 = vmov 0   ;;  %v795_v31 = vld [vmem:[#allocation2 + $0x8] sm:$0xff] }
 0x1a5   : > { %962 = vmatpush1.bf16.msra.mxu0 %v4502_v27 }
 0x1a6   : > { %963 = vmatprep.subr.bf16.mxu0 %v4508_v28 }
 0x1a7   : > { %1003 = vmatpush1.bf16.msra.mxu1 %v4513_v29 }
 0x1a8   : > { %1004 = vmatprep.subr.bf16.mxu1 %v4518_v30 }
 0x1a9   : > { %964 = vmatpush1.bf16.msra.mxu0 %v4524_v32 }
 0x1aa   : > { %965 = vmatprep.subr.bf16.mxu0 %v4529_v33 }
 0x1ab   : > { %1005 = vmatpush1.bf16.msra.mxu1 %v4534_v34 }
 0x1ac   : > { %1006 = vmatprep.subr.bf16.mxu1 %v4539_v35 }
 0x1ad   : > { %966 = vmatpush1.bf16.msra.mxu0 %v4545_v36 }
 0x1ae   : > { %967 = vmatprep.subr.bf16.mxu0 %v4550_v37 }
 0x1af   : > { %1007 = vmatpush1.bf16.msra.mxu1 %v4555_v6 }
 0x1b0   : > { %1008 = vmatprep.subr.bf16.mxu1 %v4560_v7 }
 0x1b1   : > { %968 = vmatpush1.bf16.msra.mxu0 %v4565_v8 }
 0x1b2   : > { %969 = vmatprep.subr.bf16.mxu0 %v4570_v9 }
 0x1b3   : > { %1009 = vmatpush1.bf16.msra.mxu1 %v4575_v10 }
 0x1b4   : > { %1010 = vmatprep.subr.bf16.mxu1 %v4580_v11 }
 0x1b5   : > { %970 = vmatpush1.bf16.msra.mxu0 %v4585_v12 }
 0x1b6   : > { %971 = vmatprep.subr.bf16.mxu0 %v4590_v17 }
 0x1b7   : > { %1011 = vmatpush1.bf16.msra.mxu1 %v4595_v18 }
 0x1b8   : > { %1012 = vmatprep.subr.bf16.mxu1 %v4600_v19 }
 0x1b9   : > { %972 = vmatpush1.bf16.msra.mxu0 %v4605_v20 }
 0x1ba   : > { %973 = vmatprep.subr.bf16.mxu0 %v4610_v21 }
 0x1bb   : > { %1013 = vmatpush1.bf16.msra.mxu1 %v4615_v22 }
 0x1bc   : > { %1014 = vmatprep.subr.bf16.mxu1 %v4620_v23 }
 0x1bd   : > { %974 = vmatpush1.bf16.msra.mxu0 %v4625_v24 }
 0x1be   : > { %1075 = vmatprep.subr.bf16.mxu0 %v4476_v13 }
 0x1bf   : > { %1015 = vmatpush1.bf16.msra.mxu1 %v4631_v63 }
 0x1c0   : > { %1116 = vmatprep.subr.bf16.mxu1 %v4488_v16  ;;  %992 = vmatmul.mubr.bf16.vlgmr.msra.gmra.mrb[0].mxu0 %v798_v1 }
 0x1c1   : > { %1076 = vmatpush1.bf16.msra.mxu0 %v4480_v14  ;;  %1107 = vmatprep.mubr.bf16.mxu0 %v5519_v3 }
 0x1c2   : > { %1033 = vmatmul.mubr.bf16.vlgmr.msra.gmra.mrb[0].mxu1 %v798_v1  ;;  %1077 = vmatprep.subr.bf16.mxu0 %v4484_v15  ;;  %v794_v1 = vld [vmem:[#allocation2] sm:$0xff] }
 0x1c3   : > { %1117 = vmatpush1.bf16.msra.mxu1 %v4493_v25  ;;  %1148 = vmatprep.mubr.bf16.mxu1 %v5519_v3 }
 0x1c4   : > { %1118 = vmatprep.subr.bf16.mxu1 %v4497_v26 }
 0x1c5   : > { %1078 = vmatpush1.bf16.msra.mxu0 %v4502_v27 }
 0x1c6   : > { %1079 = vmatprep.subr.bf16.mxu0 %v4508_v28 }
 0x1c7   : > { %1119 = vmatpush1.bf16.msra.mxu1 %v4513_v29 }
 0x1c8   : > { %1120 = vmatprep.subr.bf16.mxu1 %v4518_v30 }
 0x1c9   : > { %1080 = vmatpush1.bf16.msra.mxu0 %v4524_v32 }
 0x1ca   : > { %1081 = vmatprep.subr.bf16.mxu0 %v4529_v33 }
 0x1cb   : > { %1121 = vmatpush1.bf16.msra.mxu1 %v4534_v34 }
 0x1cc   : > { %1122 = vmatprep.subr.bf16.mxu1 %v4539_v35 }
 0x1cd   : > { %1082 = vmatpush1.bf16.msra.mxu0 %v4545_v36 }
 0x1ce   : > { %1083 = vmatprep.subr.bf16.mxu0 %v4550_v37 }
 0x1cf   : > { %1123 = vmatpush1.bf16.msra.mxu1 %v4555_v6 }
 0x1d0   : > { %1124 = vmatprep.subr.bf16.mxu1 %v4560_v7 }
 0x1d1   : > { %1084 = vmatpush1.bf16.msra.mxu0 %v4565_v8 }
 0x1d2   : > { %1085 = vmatprep.subr.bf16.mxu0 %v4570_v9 }
 0x1d3   : > { %1125 = vmatpush1.bf16.msra.mxu1 %v4575_v10 }
 0x1d4   : > { %1126 = vmatprep.subr.bf16.mxu1 %v4580_v11 }
 0x1d5   : > { %1086 = vmatpush1.bf16.msra.mxu0 %v4585_v12 }
 0x1d6   : > { %1087 = vmatprep.subr.bf16.mxu0 %v4590_v17 }
 0x1d7   : > { %1127 = vmatpush1.bf16.msra.mxu1 %v4595_v18 }
 0x1d8   : > { %1128 = vmatprep.subr.bf16.mxu1 %v4600_v19 }
 0x1d9   : > { %1088 = vmatpush1.bf16.msra.mxu0 %v4605_v20 }
 0x1da   : > { %1089 = vmatprep.subr.bf16.mxu0 %v4610_v21 }
 0x1db   : > { %1129 = vmatpush1.bf16.msra.mxu1 %v4615_v22 }
 0x1dc   : > { %1130 = vmatprep.subr.bf16.mxu1 %v4620_v23 }
 0x1dd   : > { %1090 = vmatpush1.bf16.msra.mxu0 %v4625_v24 }
 0x1de   : > { %1191 = vmatprep.subr.bf16.mxu0 %v4476_v13 }
 0x1df   : > { %1131 = vmatpush1.bf16.msra.mxu1 %v4631_v63 }
 0x1e0   : > { %1232 = vmatprep.subr.bf16.mxu1 %v4488_v16 }
 0x293   : > { %v993_v5 = vpop.f32.mrb[0].mxu0 }
 0x294   : > { %v1041_v2 = vadd.f32 %v993_v5, %v794_v1  ;;  %v995_v4 = vpop.f32.mrb[1].mxu0 }
 0x295   : > { %v1034_v62 = vpop.f32.mrb[0].mxu1  ;;  %v1042_v0 = vadd.f32 %v995_v4, %v795_v31  ;;  %v997_v59 = vpop.f32.mrb[2].mxu0 }
 0x296   : > { %v1036_v61 = vpop.f32.mrb[1].mxu1  ;;  %v3338_v58 = vmul.f32 -1.442695, %v1041_v2  ;;  %v998_v60 = vpop.f32.mrb[3].mxu0  ;;  %v1043_v52 = vadd.f32 %v1034_v62, %v796_v53  ;;  %v1070_v53 = vld [vmem:[#allocation2 + $0x20] sm:$0xff] }
 0x297   : > { %v1038_v55 = vpop.f32.mrb[2].mxu1  ;;  %v3339_v57 = vmul.f32 -1.442695, %v1042_v0  ;;  %v1044_v51 = vadd.f32 %v1036_v61, %v797_v54  ;;  %v1071_v61 = vld [vmem:[#allocation2 + $0x28] sm:$0xff] }
 0x298   : > { %v1039_v56 = vpop.f32.mrb[3].mxu1  ;;  %3618 = vpow2.f32 %v3338_v58  ;;  %v793_v55 = vld [vmem:[#allocation4] sm:$0xff] }
 0x299   : > { %3620 = vpow2.f32 %v3339_v57  ;;  %v3340_v50 = vmul.f32 -1.442695, %v1044_v51 }
 0x29b   : > { %3622 = vpow2.f32 %v3340_v50 }
 0x29c   : > { %3624 = vtanh.f32 %v1043_v52 }
 0x2a2   : > { %v3619_v47 = vpop.eup %3618 }
 0x2a3   : > { %v3621_v5 = vpop.eup %3620  ;;  %v1048_v1 = vadd.f32 1.0, %v3619_v47 }
 0x2a4   : > { %v1054_v4 = vadd.f32 1.0, %v3621_v5 }
 0x2a5   : > { %3626 = vrcp.f32 %v1048_v1  ;;  %v3623_v59 = vpop.eup %3622 }
 0x2a6   : > { %3628 = vrcp.f32 %v1054_v4  ;;  %v3625_v60 = vpop.eup %3624  ;;  %v1061_v2 = vadd.f32 1.0, %v3623_v59 }
 0x2a8   : > { %3630 = vrcp.f32 %v1061_v2 }
 0x2af   : > { %v3627_v0 = vpop.eup %3626 }
 0x2b0   : > { %v3629_v56 = vpop.eup %3628  ;;  %v1065_v58 = vmul.f32 %v3627_v0, %v3625_v60 }
 0x2b1   : > { %v1064_v57 = vmul.f32 %v3629_v56, %v793_v55 }
 0x2b2   : > { %v3631_v50 = vpop.eup %3630 }
 0x2b3   : > { %v4672_v54 = vadd.f32 %v1065_v58, %v1064_v57  ;;  %v1073_v57 = vld [vmem:[#allocation2 + $0x38] sm:$0xff] }
 0x2b5   : > { %3632 = vtanh.f32 %v4672_v54 }
 0x2bf   : > { %v3633_v51 = vpop.eup %3632 }
 0x2c0   : > { %v1068_v47 = vmul.f32 %v3633_v51, %v3631_v50  ;;  %v1072_v51 = vld [vmem:[#allocation2 + $0x30] sm:$0xff] }
 0x2c2   : > { %v1074_v52 = vpack.c.bf16 %v1068_v47, %v1068_v47 }
 0x2c4   : > { %1108 = vmatmul.mubr.bf16.vlgmr.msra.gmra.mrb[4].mxu0 %v1074_v52  ;;  %1149 = vmatmul.mubr.bf16.vlgmr.msra.gmra.mrb[4].mxu1 %v1074_v52 }
 0x2c5   : > { %1192 = vmatpush1.bf16.msra.mxu0 %v4480_v14  ;;  %1233 = vmatpush1.bf16.msra.mxu1 %v4493_v25 }
 0x2c6   : > { %1193 = vmatprep.subr.bf16.mxu0 %v4484_v15  ;;  %1234 = vmatprep.subr.bf16.mxu1 %v4497_v26 }
 0x2c7   : > { %1223 = vmatprep.mubr.bf16.mxu0 %v5519_v3  ;;  %1264 = vmatprep.mubr.bf16.mxu1 %v5519_v3 }
 0x2c9   : > { %1194 = vmatpush1.bf16.msra.mxu0 %v4502_v27  ;;  %1235 = vmatpush1.bf16.msra.mxu1 %v4513_v29 }
 0x2ca   : > { %1195 = vmatprep.subr.bf16.mxu0 %v4508_v28  ;;  %1236 = vmatprep.subr.bf16.mxu1 %v4518_v30 }
 0x2cd   : > { %1196 = vmatpush1.bf16.msra.mxu0 %v4524_v32  ;;  %1237 = vmatpush1.bf16.msra.mxu1 %v4534_v34 }
 0x2ce   : > { %1197 = vmatprep.subr.bf16.mxu0 %v4529_v33  ;;  %1238 = vmatprep.subr.bf16.mxu1 %v4539_v35 }
 0x2d1   : > { %1198 = vmatpush1.bf16.msra.mxu0 %v4545_v36  ;;  %1239 = vmatpush1.bf16.msra.mxu1 %v4555_v6 }
 0x2d2   : > { %1199 = vmatprep.subr.bf16.mxu0 %v4550_v37  ;;  %1240 = vmatprep.subr.bf16.mxu1 %v4560_v7 }
 0x2d5   : > { %1200 = vmatpush1.bf16.msra.mxu0 %v4565_v8  ;;  %1241 = vmatpush1.bf16.msra.mxu1 %v4575_v10 }
 0x2d6   : > { %1201 = vmatprep.subr.bf16.mxu0 %v4570_v9  ;;  %1242 = vmatprep.subr.bf16.mxu1 %v4580_v11 }
 0x2d9   : > { %1202 = vmatpush1.bf16.msra.mxu0 %v4585_v12  ;;  %1243 = vmatpush1.bf16.msra.mxu1 %v4595_v18 }
 0x2da   : > { %1203 = vmatprep.subr.bf16.mxu0 %v4590_v17  ;;  %1244 = vmatprep.subr.bf16.mxu1 %v4600_v19 }
 0x2dd   : > { %1204 = vmatpush1.bf16.msra.mxu0 %v4605_v20  ;;  %1245 = vmatpush1.bf16.msra.mxu1 %v4615_v22 }
 0x2de   : > { %1205 = vmatprep.subr.bf16.mxu0 %v4610_v21  ;;  %1246 = vmatprep.subr.bf16.mxu1 %v4620_v23 }
 0x2e1   : > { %1206 = vmatpush1.bf16.msra.mxu0 %v4625_v24  ;;  %1247 = vmatpush1.bf16.msra.mxu1 %v4631_v63 }
 0x2e2   : > { %1307 = vmatprep.subr.bf16.mxu0 %v4476_v13  ;;  %1348 = vmatprep.subr.bf16.mxu1 %v4488_v16 }
 0x397   : > { %v1109_v62 = vpop.f32.mrb[4].mxu0  ;;  %v1150_v31 = vpop.f32.mrb[4].mxu1 }
 0x398   : > { %v1157_v5 = vadd.f32 %v1109_v62, %v1070_v53  ;;  %v1111_v1 = vpop.f32.mrb[5].mxu0  ;;  %v1152_v4 = vpop.f32.mrb[5].mxu1  ;;  %v1159_v52 = vadd.f32 %v1150_v31, %v1072_v51 }
 0x399   : > { %v1158_v59 = vadd.f32 %v1111_v1, %v1071_v61  ;;  %v1113_v60 = vpop.f32.mrb[6].mxu0  ;;  %v1154_v55 = vpop.f32.mrb[6].mxu1  ;;  %v1160_v50 = vadd.f32 %v1152_v4, %v1073_v57 }
 0x39a   : > { %v3341_v0 = vmul.f32 -1.442695, %v1157_v5  ;;  %v1114_v2 = vpop.f32.mrb[7].mxu0  ;;  %v1155_v56 = vpop.f32.mrb[7].mxu1 }
 0x39b   : > { %v3342_v58 = vmul.f32 -1.442695, %v1158_v59  ;;  %v3343_v47 = vmul.f32 -1.442695, %v1160_v50 }
 0x39c   : > { %3634 = vpow2.f32 %v3341_v0 }
 0x39d   : > { %3636 = vpow2.f32 %v3342_v58 }
 0x39e   : > { %3638 = vpow2.f32 %v3343_v47 }
 0x39f   : > { %3640 = vtanh.f32 %v1159_v52 }
 0x3a6   : > { %v3635_v49 = vpop.eup %3634 }
 0x3a7   : > { %v3637_v46 = vpop.eup %3636  ;;  %v1164_v48 = vadd.f32 1.0, %v3635_v49 }
 0x3a8   : > { %v1170_v53 = vadd.f32 1.0, %v3637_v46  ;;  %v3639_v61 = vpop.eup %3638  ;;  %v1186_v46 = vld [vmem:[#allocation2 + $0x40] sm:$0xff] }
 0x3a9   : > { %3642 = vrcp.f32 %v1164_v48  ;;  %v3641_v62 = vpop.eup %3640  ;;  %v1177_v60 = vadd.f32 1.0, %v3639_v61  ;;  %v1187_v48 = vld [vmem:[#allocation2 + $0x48] sm:$0xff] }
 0x3aa   : > { %3644 = vrcp.f32 %v1170_v53 }
 0x3ab   : > { %3646 = vrcp.f32 %v1177_v60  ;;  %v1188_v60 = vld [vmem:[#allocation2 + $0x50] sm:$0xff] }
 0x3b3   : > { %v3643_v5 = vpop.eup %3642 }
 0x3b4   : > { %v3645_v1 = vpop.eup %3644  ;;  %v1181_v59 = vmul.f32 %v3643_v5, %v3641_v62 }
 0x3b5   : > { %v1180_v55 = vmul.f32 %v3645_v1, %v4672_v54  ;;  %v3647_v31 = vpop.eup %3646  ;;  %v1189_v1 = vld [vmem:[#allocation2 + $0x58] sm:$0xff] }
 0x3b7   : > { %v4710_v4 = vadd.f32 %v1181_v59, %v1180_v55 }
 0x3b9   : > { %3648 = vtanh.f32 %v4710_v4 }
 0x3c3   : > { %v3649_v49 = vpop.eup %3648 }
 0x3c4   : > { %v1184_v0 = vmul.f32 %v3649_v49, %v3647_v31 }
 0x3c6   : > { %v1190_v2 = vpack.c.bf16 %v1184_v0, %v1184_v0 }
 0x3c8   : > { %1224 = vmatmul.mubr.bf16.vlgmr.msra.gmra.mrb[8].mxu0 %v1190_v2  ;;  %1265 = vmatmul.mubr.bf16.vlgmr.msra.gmra.mrb[8].mxu1 %v1190_v2 }
 0x3c9   : > { %1308 = vmatpush1.bf16.msra.mxu0 %v4480_v14  ;;  %1349 = vmatpush1.bf16.msra.mxu1 %v4493_v25 }
 0x3ca   : > { %1309 = vmatprep.subr.bf16.mxu0 %v4484_v15  ;;  %1350 = vmatprep.subr.bf16.mxu1 %v4497_v26 }
 0x3cb   : > { %1339 = vmatprep.mubr.bf16.mxu0 %v5519_v3  ;;  %1380 = vmatprep.mubr.bf16.mxu1 %v5519_v3 }
 0x3cd   : > { %1310 = vmatpush1.bf16.msra.mxu0 %v4502_v27  ;;  %1351 = vmatpush1.bf16.msra.mxu1 %v4513_v29 }
 0x3ce   : > { %1311 = vmatprep.subr.bf16.mxu0 %v4508_v28  ;;  %1352 = vmatprep.subr.bf16.mxu1 %v4518_v30 }
 0x3d1   : > { %1312 = vmatpush1.bf16.msra.mxu0 %v4524_v32  ;;  %1353 = vmatpush1.bf16.msra.mxu1 %v4534_v34 }
 0x3d2   : > { %1313 = vmatprep.subr.bf16.mxu0 %v4529_v33  ;;  %1354 = vmatprep.subr.bf16.mxu1 %v4539_v35 }
 0x3d5   : > { %1314 = vmatpush1.bf16.msra.mxu0 %v4545_v36  ;;  %1355 = vmatpush1.bf16.msra.mxu1 %v4555_v6 }
 0x3d6   : > { %1315 = vmatprep.subr.bf16.mxu0 %v4550_v37  ;;  %1356 = vmatprep.subr.bf16.mxu1 %v4560_v7 }
 0x3d9   : > { %1316 = vmatpush1.bf16.msra.mxu0 %v4565_v8  ;;  %1357 = vmatpush1.bf16.msra.mxu1 %v4575_v10 }
 0x3da   : > { %1317 = vmatprep.subr.bf16.mxu0 %v4570_v9  ;;  %1358 = vmatprep.subr.bf16.mxu1 %v4580_v11 }
 0x3dd   : > { %1318 = vmatpush1.bf16.msra.mxu0 %v4585_v12  ;;  %1359 = vmatpush1.bf16.msra.mxu1 %v4595_v18 }
 0x3de   : > { %1319 = vmatprep.subr.bf16.mxu0 %v4590_v17  ;;  %1360 = vmatprep.subr.bf16.mxu1 %v4600_v19 }
 0x3e1   : > { %1320 = vmatpush1.bf16.msra.mxu0 %v4605_v20  ;;  %1361 = vmatpush1.bf16.msra.mxu1 %v4615_v22 }
 0x3e2   : > { %1321 = vmatprep.subr.bf16.mxu0 %v4610_v21  ;;  %1362 = vmatprep.subr.bf16.mxu1 %v4620_v23 }
 0x3e5   : > { %1322 = vmatpush1.bf16.msra.mxu0 %v4625_v24  ;;  %1363 = vmatpush1.bf16.msra.mxu1 %v4631_v63 }
 0x3e6   : > { %1423 = vmatprep.subr.bf16.mxu0 %v4476_v13  ;;  %1464 = vmatprep.subr.bf16.mxu1 %v4488_v16 }
 0x49b   : > { %v1225_v54 = vpop.f32.mrb[8].mxu0  ;;  %v1266_v56 = vpop.f32.mrb[8].mxu1 }
 0x49c   : > { %v1273_v58 = vadd.f32 %v1225_v54, %v1186_v46  ;;  %v1227_v57 = vpop.f32.mrb[9].mxu0  ;;  %v1268_v50 = vpop.f32.mrb[9].mxu1  ;;  %v1275_v31 = vadd.f32 %v1266_v56, %v1188_v60 }
 0x49d   : > { %v1274_v51 = vadd.f32 %v1227_v57, %v1187_v48  ;;  %v1229_v47 = vpop.f32.mrb[10].mxu0  ;;  %v1270_v52 = vpop.f32.mrb[10].mxu1  ;;  %v1276_v59 = vadd.f32 %v1268_v50, %v1189_v1 }
 0x49e   : > { %v3344_v53 = vmul.f32 -1.442695, %v1273_v58  ;;  %v1230_v61 = vpop.f32.mrb[11].mxu0  ;;  %v1271_v62 = vpop.f32.mrb[11].mxu1 }
 0x49f   : > { %v3345_v5 = vmul.f32 -1.442695, %v1274_v51  ;;  %v3346_v55 = vmul.f32 -1.442695, %v1276_v59 }
 0x4a0   : > { %3650 = vpow2.f32 %v3344_v53 }
 0x4a1   : > { %3652 = vpow2.f32 %v3345_v5  ;;  %v1303_v5 = vld [vmem:[#allocation2 + $0x68] sm:$0xff] }
 0x4a2   : > { %3654 = vpow2.f32 %v3346_v55 }
 0x4a3   : > { %3656 = vtanh.f32 %v1275_v31 }
 0x4aa   : > { %v3651_v49 = vpop.eup %3650 }
 0x4ab   : > { %v3653_v0 = vpop.eup %3652  ;;  %v1280_v2 = vadd.f32 1.0, %v3651_v49 }
 0x4ac   : > { %v1286_v46 = vadd.f32 1.0, %v3653_v0  ;;  %v3655_v48 = vpop.eup %3654 }
 0x4ad   : > { %3658 = vrcp.f32 %v1280_v2  ;;  %v3657_v54 = vpop.eup %3656  ;;  %v1293_v47 = vadd.f32 1.0, %v3655_v48 }
 0x4ae   : > { %3660 = vrcp.f32 %v1286_v46 }
 0x4af   : > { %3662 = vrcp.f32 %v1293_v47  ;;  %v1304_v47 = vld [vmem:[#allocation2 + $0x70] sm:$0xff] }
 0x4b7   : > { %v3659_v58 = vpop.eup %3658 }
 0x4b8   : > { %v3661_v57 = vpop.eup %3660  ;;  %v1297_v51 = vmul.f32 %v3659_v58, %v3657_v54 }
 0x4b9   : > { %v1296_v52 = vmul.f32 %v3661_v57, %v4710_v4  ;;  %v3663_v56 = vpop.eup %3662  ;;  %v1302_v4 = vld [vmem:[#allocation2 + $0x60] sm:$0xff]  ;;  %v1305_v57 = vld [vmem:[#allocation2 + $0x78] sm:$0xff] }
 0x4bb   : > { %v4748_v50 = vadd.f32 %v1297_v51, %v1296_v52 }
 0x4bd   : > { %3664 = vtanh.f32 %v4748_v50 }
 0x4c7   : > { %v3665_v53 = vpop.eup %3664 }
 0x4c8   : > { %v1300_v61 = vmul.f32 %v3665_v53, %v3663_v56 }
 0x4ca   : > { %v1306_v62 = vpack.c.bf16 %v1300_v61, %v1300_v61 }
 0x4cc   : > { %1340 = vmatmul.mubr.bf16.vlgmr.msra.gmra.mrb[12].mxu0 %v1306_v62  ;;  %1381 = vmatmul.mubr.bf16.vlgmr.msra.gmra.mrb[12].mxu1 %v1306_v62 }
 0x4cd   : > { %1424 = vmatpush1.bf16.msra.mxu0 %v4480_v14  ;;  %1465 = vmatpush1.bf16.msra.mxu1 %v4493_v25 }
 0x4ce   : > { %1425 = vmatprep.subr.bf16.mxu0 %v4484_v15  ;;  %1466 = vmatprep.subr.bf16.mxu1 %v4497_v26 }
 0x4cf   : > { %1455 = vmatprep.mubr.bf16.mxu0 %v5519_v3  ;;  %1496 = vmatprep.mubr.bf16.mxu1 %v5519_v3 }
 0x4d1   : > { %1426 = vmatpush1.bf16.msra.mxu0 %v4502_v27  ;;  %1467 = vmatpush1.bf16.msra.mxu1 %v4513_v29 }
 0x4d2   : > { %1427 = vmatprep.subr.bf16.mxu0 %v4508_v28  ;;  %1468 = vmatprep.subr.bf16.mxu1 %v4518_v30 }
 0x4d5   : > { %1428 = vmatpush1.bf16.msra.mxu0 %v4524_v32  ;;  %1469 = vmatpush1.bf16.msra.mxu1 %v4534_v34 }
 0x4d6   : > { %1429 = vmatprep.subr.bf16.mxu0 %v4529_v33  ;;  %1470 = vmatprep.subr.bf16.mxu1 %v4539_v35 }
 0x4d9   : > { %1430 = vmatpush1.bf16.msra.mxu0 %v4545_v36  ;;  %1471 = vmatpush1.bf16.msra.mxu1 %v4555_v6 }
 0x4da   : > { %1431 = vmatprep.subr.bf16.mxu0 %v4550_v37  ;;  %1472 = vmatprep.subr.bf16.mxu1 %v4560_v7 }
 0x4dd   : > { %1432 = vmatpush1.bf16.msra.mxu0 %v4565_v8  ;;  %1473 = vmatpush1.bf16.msra.mxu1 %v4575_v10 }
 0x4de   : > { %1433 = vmatprep.subr.bf16.mxu0 %v4570_v9  ;;  %1474 = vmatprep.subr.bf16.mxu1 %v4580_v11 }
 0x4e1   : > { %1434 = vmatpush1.bf16.msra.mxu0 %v4585_v12  ;;  %1475 = vmatpush1.bf16.msra.mxu1 %v4595_v18 }
 0x4e2   : > { %1435 = vmatprep.subr.bf16.mxu0 %v4590_v17  ;;  %1476 = vmatprep.subr.bf16.mxu1 %v4600_v19 }
 0x4e5   : > { %1436 = vmatpush1.bf16.msra.mxu0 %v4605_v20  ;;  %1477 = vmatpush1.bf16.msra.mxu1 %v4615_v22 }
 0x4e6   : > { %1437 = vmatprep.subr.bf16.mxu0 %v4610_v21  ;;  %1478 = vmatprep.subr.bf16.mxu1 %v4620_v23 }
 0x4e9   : > { %1438 = vmatpush1.bf16.msra.mxu0 %v4625_v24  ;;  %1479 = vmatpush1.bf16.msra.mxu1 %v4631_v63 }
 0x4ea   : > { %1539 = vmatprep.subr.bf16.mxu0 %v4476_v13  ;;  %1580 = vmatprep.subr.bf16.mxu1 %v4488_v16 }
 0x59f   : > { %v1341_v1 = vpop.f32.mrb[12].mxu0  ;;  %v1382_v59 = vpop.f32.mrb[12].mxu1 }
 0x5a0   : > { %v1389_v60 = vadd.f32 %v1341_v1, %v1302_v4  ;;  %v1343_v55 = vpop.f32.mrb[13].mxu0  ;;  %v1384_v31 = vpop.f32.mrb[13].mxu1  ;;  %v1391_v56 = vadd.f32 %v1382_v59, %v1304_v47 }
 0x5a1   : > { %v1390_v49 = vadd.f32 %v1343_v55, %v1303_v5  ;;  %v1345_v0 = vpop.f32.mrb[14].mxu0  ;;  %v1386_v2 = vpop.f32.mrb[14].mxu1  ;;  %v1392_v51 = vadd.f32 %v1384_v31, %v1305_v57 }
 0x5a2   : > { %v3347_v46 = vmul.f32 -1.442695, %v1389_v60  ;;  %v1346_v48 = vpop.f32.mrb[15].mxu0  ;;  %v1387_v54 = vpop.f32.mrb[15].mxu1 }
 0x5a3   : > { %v3348_v58 = vmul.f32 -1.442695, %v1390_v49  ;;  %v3349_v52 = vmul.f32 -1.442695, %v1392_v51 }
 0x5a4   : > { %3666 = vpow2.f32 %v3347_v46 }
 0x5a5   : > { %3668 = vpow2.f32 %v3348_v58  ;;  %v1419_v58 = vld [vmem:[#allocation2 + $0x88] sm:$0xff] }
 0x5a6   : > { %3670 = vpow2.f32 %v3349_v52 }
 0x5a7   : > { %3672 = vtanh.f32 %v1391_v56 }
 0x5ae   : > { %v3667_v53 = vpop.eup %3666 }
 0x5af   : > { %v3669_v61 = vpop.eup %3668  ;;  %v1396_v62 = vadd.f32 1.0, %v3667_v53 }
 0x5b0   : > { %v1402_v4 = vadd.f32 1.0, %v3669_v61  ;;  %v3671_v5 = vpop.eup %3670 }
 0x5b1   : > { %3674 = vrcp.f32 %v1396_v62  ;;  %v3673_v1 = vpop.eup %3672  ;;  %v1409_v0 = vadd.f32 1.0, %v3671_v5 }
 0x5b2   : > { %3676 = vrcp.f32 %v1402_v4 }
 0x5b3   : > { %3678 = vrcp.f32 %v1409_v0  ;;  %v1420_v0 = vld [vmem:[#allocation2 + $0x90] sm:$0xff] }
 0x5bb   : > { %v3675_v60 = vpop.eup %3674 }
 0x5bc   : > { %v3677_v55 = vpop.eup %3676  ;;  %v1413_v49 = vmul.f32 %v3675_v60, %v3673_v1 }
 0x5bd   : > { %v1412_v2 = vmul.f32 %v3677_v55, %v4748_v50  ;;  %v3679_v59 = vpop.eup %3678  ;;  %v1418_v50 = vld [vmem:[#allocation2 + $0x80] sm:$0xff]  ;;  %v1421_v55 = vld [vmem:[#allocation2 + $0x98] sm:$0xff] }
 0x5bf   : > { %v4786_v31 = vadd.f32 %v1413_v49, %v1412_v2 }
 0x5c1   : > { %3680 = vtanh.f32 %v4786_v31 }
 0x5cb   : > { %v3681_v46 = vpop.eup %3680 }
 0x5cc   : > { %v1416_v48 = vmul.f32 %v3681_v46, %v3679_v59 }
 0x5ce   : > { %v1422_v54 = vpack.c.bf16 %v1416_v48, %v1416_v48 }
 0x5d0   : > { %1456 = vmatmul.mubr.bf16.vlgmr.msra.gmra.mrb[16].mxu0 %v1422_v54  ;;  %1497 = vmatmul.mubr.bf16.vlgmr.msra.gmra.mrb[16].mxu1 %v1422_v54 }
 0x5d1   : > { %1540 = vmatpush1.bf16.msra.mxu0 %v4480_v14  ;;  %1581 = vmatpush1.bf16.msra.mxu1 %v4493_v25 }
 0x5d2   : > { %1541 = vmatprep.subr.bf16.mxu0 %v4484_v15  ;;  %1582 = vmatprep.subr.bf16.mxu1 %v4497_v26 }
 0x5d3   : > { %1571 = vmatprep.mubr.bf16.mxu0 %v5519_v3  ;;  %1612 = vmatprep.mubr.bf16.mxu1 %v5519_v3 }
 0x5d5   : > { %1542 = vmatpush1.bf16.msra.mxu0 %v4502_v27  ;;  %1583 = vmatpush1.bf16.msra.mxu1 %v4513_v29 }
 0x5d6   : > { %1543 = vmatprep.subr.bf16.mxu0 %v4508_v28  ;;  %1584 = vmatprep.subr.bf16.mxu1 %v4518_v30 }
 0x5d9   : > { %1544 = vmatpush1.bf16.msra.mxu0 %v4524_v32  ;;  %1585 = vmatpush1.bf16.msra.mxu1 %v4534_v34 }
 0x5da   : > { %1545 = vmatprep.subr.bf16.mxu0 %v4529_v33  ;;  %1586 = vmatprep.subr.bf16.mxu1 %v4539_v35 }
 0x5dd   : > { %1546 = vmatpush1.bf16.msra.mxu0 %v4545_v36  ;;  %1587 = vmatpush1.bf16.msra.mxu1 %v4555_v6 }
 0x5de   : > { %1547 = vmatprep.subr.bf16.mxu0 %v4550_v37  ;;  %1588 = vmatprep.subr.bf16.mxu1 %v4560_v7 }
 0x5e1   : > { %1548 = vmatpush1.bf16.msra.mxu0 %v4565_v8  ;;  %1589 = vmatpush1.bf16.msra.mxu1 %v4575_v10 }
 0x5e2   : > { %1549 = vmatprep.subr.bf16.mxu0 %v4570_v9  ;;  %1590 = vmatprep.subr.bf16.mxu1 %v4580_v11 }
 0x5e5   : > { %1550 = vmatpush1.bf16.msra.mxu0 %v4585_v12  ;;  %1591 = vmatpush1.bf16.msra.mxu1 %v4595_v18 }
 0x5e6   : > { %1551 = vmatprep.subr.bf16.mxu0 %v4590_v17  ;;  %1592 = vmatprep.subr.bf16.mxu1 %v4600_v19 }
 0x5e9   : > { %1552 = vmatpush1.bf16.msra.mxu0 %v4605_v20  ;;  %1593 = vmatpush1.bf16.msra.mxu1 %v4615_v22 }
 0x5ea   : > { %1553 = vmatprep.subr.bf16.mxu0 %v4610_v21  ;;  %1594 = vmatprep.subr.bf16.mxu1 %v4620_v23 }
 0x5ed   : > { %1554 = vmatpush1.bf16.msra.mxu0 %v4625_v24  ;;  %1595 = vmatpush1.bf16.msra.mxu1 %v4631_v63 }
 0x5ee   : > { %1655 = vmatprep.subr.bf16.mxu0 %v4476_v13  ;;  %1696 = vmatprep.subr.bf16.mxu1 %v4488_v16 }
 0x6a3   : > { %v1457_v57 = vpop.f32.mrb[16].mxu0  ;;  %v1498_v51 = vpop.f32.mrb[16].mxu1 }
 0x6a4   : > { %v1505_v47 = vadd.f32 %v1457_v57, %v1418_v50  ;;  %v1459_v52 = vpop.f32.mrb[17].mxu0  ;;  %v1500_v56 = vpop.f32.mrb[17].mxu1  ;;  %v1507_v59 = vadd.f32 %v1498_v51, %v1420_v0 }
 0x6a5   : > { %v1506_v53 = vadd.f32 %v1459_v52, %v1419_v58  ;;  %v1461_v61 = vpop.f32.mrb[18].mxu0  ;;  %v1502_v62 = vpop.f32.mrb[18].mxu1  ;;  %v1508_v49 = vadd.f32 %v1500_v56, %v1421_v55 }
 0x6a6   : > { %v3350_v4 = vmul.f32 -1.442695, %v1505_v47  ;;  %v1462_v5 = vpop.f32.mrb[19].mxu0  ;;  %v1503_v1 = vpop.f32.mrb[19].mxu1 }
 0x6a7   : > { %v3351_v60 = vmul.f32 -1.442695, %v1506_v53  ;;  %v3352_v2 = vmul.f32 -1.442695, %v1508_v49 }
 0x6a8   : > { %3682 = vpow2.f32 %v3350_v4 }
 0x6a9   : > { %3684 = vpow2.f32 %v3351_v60  ;;  %v1535_v60 = vld [vmem:[#allocation2 + $0xa8] sm:$0xff] }
 0x6aa   : > { %3686 = vpow2.f32 %v3352_v2 }
 0x6ab   : > { %3688 = vtanh.f32 %v1507_v59 }
 0x6b2   : > { %v3683_v46 = vpop.eup %3682 }
 0x6b3   : > { %v3685_v48 = vpop.eup %3684  ;;  %v1512_v54 = vadd.f32 1.0, %v3683_v46 }
 0x6b4   : > { %v1518_v50 = vadd.f32 1.0, %v3685_v48  ;;  %v3687_v58 = vpop.eup %3686 }
 0x6b5   : > { %3690 = vrcp.f32 %v1512_v54  ;;  %v3689_v57 = vpop.eup %3688  ;;  %v1525_v61 = vadd.f32 1.0, %v3687_v58 }
 0x6b6   : > { %3692 = vrcp.f32 %v1518_v50 }
 0x6b7   : > { %3694 = vrcp.f32 %v1525_v61 }
 0x6bf   : > { %v3691_v47 = vpop.eup %3690 }
 0x6c0   : > { %v3693_v52 = vpop.eup %3692  ;;  %v1529_v53 = vmul.f32 %v3691_v47, %v3689_v57 }
 0x6c1   : > { %v1528_v62 = vmul.f32 %v3693_v52, %v4786_v31  ;;  %v3695_v51 = vpop.eup %3694  ;;  %v1534_v31 = vld [vmem:[#allocation2 + $0xa0] sm:$0xff]  ;;  %v1537_v52 = vld [vmem:[#allocation2 + $0xb8] sm:$0xff] }
 0x6c3   : > { %v4824_v56 = vadd.f32 %v1529_v53, %v1528_v62  ;;  %v1536_v53 = vld [vmem:[#allocation2 + $0xb0] sm:$0xff] }
 0x6c5   : > { %3696 = vtanh.f32 %v4824_v56 }
 0x6cf   : > { %v3697_v4 = vpop.eup %3696 }
 0x6d0   : > { %v1532_v5 = vmul.f32 %v3697_v4, %v3695_v51 }
 0x6d2   : > { %v1538_v1 = vpack.c.bf16 %v1532_v5, %v1532_v5 }
 0x6d4   : > { %1572 = vmatmul.mubr.bf16.vlgmr.msra.gmra.mrb[20].mxu0 %v1538_v1  ;;  %1613 = vmatmul.mubr.bf16.vlgmr.msra.gmra.mrb[20].mxu1 %v1538_v1 }
 0x6d5   : > { %1656 = vmatpush1.bf16.msra.mxu0 %v4480_v14  ;;  %1697 = vmatpush1.bf16.msra.mxu1 %v4493_v25 }
 0x6d6   : > { %1657 = vmatprep.subr.bf16.mxu0 %v4484_v15  ;;  %1698 = vmatprep.subr.bf16.mxu1 %v4497_v26 }
 0x6d7   : > { %1687 = vmatprep.mubr.bf16.mxu0 %v5519_v3  ;;  %1728 = vmatprep.mubr.bf16.mxu1 %v5519_v3 }
 0x6d9   : > { %1658 = vmatpush1.bf16.msra.mxu0 %v4502_v27  ;;  %1699 = vmatpush1.bf16.msra.mxu1 %v4513_v29 }
 0x6da   : > { %1659 = vmatprep.subr.bf16.mxu0 %v4508_v28  ;;  %1700 = vmatprep.subr.bf16.mxu1 %v4518_v30 }
 0x6dd   : > { %1660 = vmatpush1.bf16.msra.mxu0 %v4524_v32  ;;  %1701 = vmatpush1.bf16.msra.mxu1 %v4534_v34 }
 0x6de   : > { %1661 = vmatprep.subr.bf16.mxu0 %v4529_v33  ;;  %1702 = vmatprep.subr.bf16.mxu1 %v4539_v35 }
 0x6e1   : > { %1662 = vmatpush1.bf16.msra.mxu0 %v4545_v36  ;;  %1703 = vmatpush1.bf16.msra.mxu1 %v4555_v6 }
 0x6e2   : > { %1663 = vmatprep.subr.bf16.mxu0 %v4550_v37  ;;  %1704 = vmatprep.subr.bf16.mxu1 %v4560_v7 }
 0x6e5   : > { %1664 = vmatpush1.bf16.msra.mxu0 %v4565_v8  ;;  %1705 = vmatpush1.bf16.msra.mxu1 %v4575_v10 }
 0x6e6   : > { %1665 = vmatprep.subr.bf16.mxu0 %v4570_v9  ;;  %1706 = vmatprep.subr.bf16.mxu1 %v4580_v11 }
 0x6e9   : > { %1666 = vmatpush1.bf16.msra.mxu0 %v4585_v12  ;;  %1707 = vmatpush1.bf16.msra.mxu1 %v4595_v18 }
 0x6ea   : > { %1667 = vmatprep.subr.bf16.mxu0 %v4590_v17  ;;  %1708 = vmatprep.subr.bf16.mxu1 %v4600_v19 }
 0x6ed   : > { %1668 = vmatpush1.bf16.msra.mxu0 %v4605_v20  ;;  %1709 = vmatpush1.bf16.msra.mxu1 %v4615_v22 }
 0x6ee   : > { %1669 = vmatprep.subr.bf16.mxu0 %v4610_v21  ;;  %1710 = vmatprep.subr.bf16.mxu1 %v4620_v23 }
 0x6f1   : > { %1670 = vmatpush1.bf16.msra.mxu0 %v4625_v24  ;;  %1711 = vmatpush1.bf16.msra.mxu1 %v4631_v63 }
 0x6f2   : > { %1771 = vmatprep.subr.bf16.mxu0 %v4476_v13  ;;  %1812 = vmatprep.subr.bf16.mxu1 %v4488_v16 }
 0x7a7   : > { %v1573_v55 = vpop.f32.mrb[20].mxu0  ;;  %v1614_v49 = vpop.f32.mrb[20].mxu1 }
 0x7a8   : > { %v1621_v0 = vadd.f32 %v1573_v55, %v1534_v31  ;;  %v1575_v2 = vpop.f32.mrb[21].mxu0  ;;  %v1616_v59 = vpop.f32.mrb[21].mxu1  ;;  %v1623_v61 = vadd.f32 %v1614_v49, %v1536_v53 }
 0x7a9   : > { %v1622_v46 = vadd.f32 %v1575_v2, %v1535_v60  ;;  %v1577_v48 = vpop.f32.mrb[22].mxu0  ;;  %v1618_v54 = vpop.f32.mrb[22].mxu1  ;;  %v1624_v13 = vadd.f32 %v1616_v59, %v1537_v52  ;;  %v1766_v52 = vld [vmem:[#allocation2 + $0xe0] sm:$0xff] }
 0x7aa   : > { %v3353_v50 = vmul.f32 -1.442695, %v1621_v0  ;;  %v1578_v58 = vpop.f32.mrb[23].mxu0  ;;  %v1619_v57 = vpop.f32.mrb[23].mxu1 }
 0x7ab   : > { %v3354_v47 = vmul.f32 -1.442695, %v1622_v46  ;;  %v3355_v16 = vmul.f32 -1.442695, %v1624_v13  ;;  %v1767_v13 = vld [vmem:[#allocation2 + $0xe8] sm:$0xff] }
 0x7ac   : > { %3698 = vpow2.f32 %v3353_v50 }
 0x7ad   : > { %3700 = vpow2.f32 %v3354_v47 }
 0x7ae   : > { %3702 = vpow2.f32 %v3355_v16 }
 0x7af   : > { %3704 = vtanh.f32 %v1623_v61 }
 0x7b6   : > { %v3699_v62 = vpop.eup %3698 }
 0x7b7   : > { %v3701_v51 = vpop.eup %3700  ;;  %v1628_v4 = vadd.f32 1.0, %v3699_v62 }
 0x7b8   : > { %v1634_v5 = vadd.f32 1.0, %v3701_v51  ;;  %v3703_v1 = vpop.eup %3702 }
 0x7b9   : > { %3706 = vrcp.f32 %v1628_v4  ;;  %v3705_v31 = vpop.eup %3704  ;;  %v1641_v2 = vadd.f32 1.0, %v3703_v1 }
 0x7ba   : > { %3708 = vrcp.f32 %v1634_v5 }
 0x7bb   : > { %3710 = vrcp.f32 %v1641_v2  ;;  %v1769_v2 = vld [vmem:[#allocation2 + $0xf8] sm:$0xff] }
 0x7c3   : > { %v3707_v60 = vpop.eup %3706 }
 0x7c4   : > { %v3709_v55 = vpop.eup %3708  ;;  %v1645_v0 = vmul.f32 %v3707_v60, %v3705_v31 }
 0x7c5   : > { %v1644_v46 = vmul.f32 %v3709_v55, %v4824_v56  ;;  %v3711_v49 = vpop.eup %3710 }
 0x7c7   : > { %v4862_v59 = vadd.f32 %v1645_v0, %v1644_v46 }
 0x7c9   : > { %3712 = vtanh.f32 %v4862_v59 }
 0x7d3   : > { %v3713_v48 = vpop.eup %3712 }
 0x7d4   : > { %v1648_v54 = vmul.f32 %v3713_v48, %v3711_v49 }
 0x7d6   : > { %v1654_v50 = vpack.c.bf16 %v1648_v54, %v1648_v54 }
 0x7d8   : > { %1688 = vmatmul.mubr.bf16.vlgmr.msra.gmra.mrb[24].mxu0 %v1654_v50  ;;  %1729 = vmatmul.mubr.bf16.vlgmr.msra.gmra.mrb[24].mxu1 %v1654_v50 }
 0x7d9   : > { %1772 = vmatpush1.bf16.msra.mxu0 %v4480_v14  ;;  %1813 = vmatpush1.bf16.msra.mxu1 %v4493_v25  ;;  %v1651_v14 = vld [vmem:[#allocation2 + $0xc8] sm:$0xff] }
 0x7da   : > { %1773 = vmatprep.subr.bf16.mxu0 %v4484_v15  ;;  %1814 = vmatprep.subr.bf16.mxu1 %v4497_v26 }
 0x7db   : > { %1803 = vmatprep.mubr.bf16.mxu0 %v5519_v3  ;;  %1844 = vmatprep.mubr.bf16.mxu1 %v5519_v3  ;;  %v1650_v3 = vld [vmem:[#allocation2 + $0xc0] sm:$0xff] }
 0x7dd   : > { %1774 = vmatpush1.bf16.msra.mxu0 %v4502_v27  ;;  %1815 = vmatpush1.bf16.msra.mxu1 %v4513_v29 }
 0x7de   : > { %1775 = vmatprep.subr.bf16.mxu0 %v4508_v28  ;;  %1816 = vmatprep.subr.bf16.mxu1 %v4518_v30 }
 0x7e1   : > { %1776 = vmatpush1.bf16.msra.mxu0 %v4524_v32  ;;  %1817 = vmatpush1.bf16.msra.mxu1 %v4534_v34 }
 0x7e2   : > { %1777 = vmatprep.subr.bf16.mxu0 %v4529_v33  ;;  %1818 = vmatprep.subr.bf16.mxu1 %v4539_v35 }
 0x7e5   : > { %1778 = vmatpush1.bf16.msra.mxu0 %v4545_v36  ;;  %1819 = vmatpush1.bf16.msra.mxu1 %v4555_v6 }
 0x7e6   : > { %1779 = vmatprep.subr.bf16.mxu0 %v4550_v37  ;;  %1820 = vmatprep.subr.bf16.mxu1 %v4560_v7  ;;  %v1653_v37 = vld [vmem:[#allocation2 + $0xd8] sm:$0xff]  ;;  %v1652_v7 = vld [vmem:[#allocation2 + $0xd0] sm:$0xff] }
 0x7e9   : > { %1780 = vmatpush1.bf16.msra.mxu0 %v4565_v8  ;;  %1821 = vmatpush1.bf16.msra.mxu1 %v4575_v10 }
 0x7ea   : > { %1781 = vmatprep.subr.bf16.mxu0 %v4570_v9  ;;  %1822 = vmatprep.subr.bf16.mxu1 %v4580_v11 }
 0x7ed   : > { %1782 = vmatpush1.bf16.msra.mxu0 %v4585_v12  ;;  %1823 = vmatpush1.bf16.msra.mxu1 %v4595_v18 }
 0x7ee   : > { %1783 = vmatprep.subr.bf16.mxu0 %v4590_v17  ;;  %1824 = vmatprep.subr.bf16.mxu1 %v4600_v19 }
 0x7f1   : > { %1784 = vmatpush1.bf16.msra.mxu0 %v4605_v20  ;;  %1825 = vmatpush1.bf16.msra.mxu1 %v4615_v22 }
 0x7f2   : > { %1785 = vmatprep.subr.bf16.mxu0 %v4610_v21  ;;  %1826 = vmatprep.subr.bf16.mxu1 %v4620_v23 }
 0x7f5   : > { %1786 = vmatpush1.bf16.msra.mxu0 %v4625_v24  ;;  %1827 = vmatpush1.bf16.msra.mxu1 %v4631_v63 }
 0x8ab   : > { %v1689_v15 = vpop.f32.mrb[24].mxu0  ;;  %v1730_v25 = vpop.f32.mrb[24].mxu1 }
 0x8ac   : > { %v1737_v26 = vadd.f32 %v1689_v15, %v1650_v3  ;;  %v1691_v27 = vpop.f32.mrb[25].mxu0  ;;  %v1732_v28 = vpop.f32.mrb[25].mxu1  ;;  %v1739_v8 = vadd.f32 %v1730_v25, %v1652_v7 }
 0x8ad   : > { %v1738_v29 = vadd.f32 %v1691_v27, %v1651_v14  ;;  %v1693_v30 = vpop.f32.mrb[26].mxu0  ;;  %v1734_v32 = vpop.f32.mrb[26].mxu1  ;;  %v1740_v6 = vadd.f32 %v1732_v28, %v1653_v37 }
 0x8ae   : > { %v3356_v33 = vmul.f32 -1.442695, %v1737_v26  ;;  %v1694_v34 = vpop.f32.mrb[27].mxu0  ;;  %v1735_v35 = vpop.f32.mrb[27].mxu1 }
 0x8af   : > { %v3357_v36 = vmul.f32 -1.442695, %v1738_v29  ;;  %v3358_v63 = vmul.f32 -1.442695, %v1740_v6 }
 0x8b0   : > { %3714 = vpow2.f32 %v3356_v33 }
 0x8b1   : > { %3716 = vpow2.f32 %v3357_v36 }
 0x8b2   : > { %3718 = vpow2.f32 %v3358_v63 }
 0x8b3   : > { %3720 = vtanh.f32 %v1739_v8 }
 0x8ba   : > { %v3715_v9 = vpop.eup %3714 }
 0x8bb   : > { %v3717_v10 = vpop.eup %3716  ;;  %v1744_v11 = vadd.f32 1.0, %v3715_v9 }
 0x8bc   : > { %v1750_v12 = vadd.f32 1.0, %v3717_v10  ;;  %v3719_v17 = vpop.eup %3718 }
 0x8bd   : > { %3722 = vrcp.f32 %v1744_v11  ;;  %v3721_v18 = vpop.eup %3720  ;;  %v1757_v22 = vadd.f32 1.0, %v3719_v17 }
 0x8be   : > { %3724 = vrcp.f32 %v1750_v12 }
 0x8bf   : > { %3726 = vrcp.f32 %v1757_v22 }
 0x8c7   : > { %v3723_v19 = vpop.eup %3722 }
 0x8c8   : > { %v3725_v20 = vpop.eup %3724  ;;  %v1761_v21 = vmul.f32 %v3723_v19, %v3721_v18 }
 0x8c9   : > { %v1760_v23 = vmul.f32 %v3725_v20, %v4862_v59  ;;  %v3727_v56 = vpop.eup %3726  ;;  %v1768_v59 = vld [vmem:[#allocation2 + $0xf0] sm:$0xff] }
 0x8cb   : > { %v1762_v24 = vadd.f32 %v1761_v21, %v1760_v23 }
 0x8cd   : > { %3728 = vtanh.f32 %v1762_v24 }
 0x8d7   : > { %v3729_v58 = vpop.eup %3728 }
 0x8d8   : > { %v1764_v57 = vmul.f32 %v3729_v58, %v3727_v56 }
 0x8da   : > { %v1770_v47 = vpack.c.bf16 %v1764_v57, %v1764_v57 }
 0x8dc   : > { %1804 = vmatmul.mubr.bf16.vlgmr.msra.gmra.mrb[28].mxu0 %v1770_v47  ;;  %1845 = vmatmul.mubr.bf16.vlgmr.msra.gmra.mrb[28].mxu1 %v1770_v47 }
 0x9af   : > { %v1805_v53 = vpop.f32.mrb[28].mxu0  ;;  %v1846_v16 = vpop.f32.mrb[28].mxu1 }
 0x9b0   : > { %v1853_v61 = vadd.f32 %v1805_v53, %v1766_v52  ;;  %v1807_v62 = vpop.f32.mrb[29].mxu0  ;;  %v1848_v51 = vpop.f32.mrb[29].mxu1  ;;  %v1855_v48 = vadd.f32 %v1846_v16, %v1768_v59 }
 0x9b1   : > { %v1854_v4 = vadd.f32 %v1807_v62, %v1767_v13  ;;  %v1809_v5 = vpop.f32.mrb[30].mxu0  ;;  %v1850_v1 = vpop.f32.mrb[30].mxu1  ;;  %v1856_v46 = vadd.f32 %v1848_v51, %v1769_v2 }
 0x9b2   : > { %v3359_v31 = vmul.f32 -1.442695, %v1853_v61  ;;  %v1810_v60 = vpop.f32.mrb[31].mxu0  ;;  %v1851_v55 = vpop.f32.mrb[31].mxu1 }
 0x9b3   : > { %v3360_v0 = vmul.f32 -1.442695, %v1854_v4  ;;  %v3361_v49 = vmul.f32 -1.442695, %v1856_v46 }
 0x9b4   : > { %3730 = vpow2.f32 %v3359_v31 }
 0x9b5   : > { %3732 = vpow2.f32 %v3360_v0 }
 0x9b6   : > { %3734 = vpow2.f32 %v3361_v49 }
 0x9b7   : > { %3736 = vtanh.f32 %v1855_v48 }
 0x9be   : > { %v3731_v54 = vpop.eup %3730 }
 0x9bf   : > { %v3733_v50 = vpop.eup %3732  ;;  %v1860_v3 = vadd.f32 1.0, %v3731_v54 }
 0x9c0   : > { %v1866_v14 = vadd.f32 1.0, %v3733_v50  ;;  %v3735_v15 = vpop.eup %3734 }
 0x9c1   : > { %3738 = vrcp.f32 %v1860_v3  ;;  %v3737_v25 = vpop.eup %3736  ;;  %v1873_v29 = vadd.f32 1.0, %v3735_v15 }
 0x9c2   : > { %3740 = vrcp.f32 %v1866_v14 }
 0x9c3   : > { %3742 = vrcp.f32 %v1873_v29 }
 0x9cb   : > { %v3739_v26 = vpop.eup %3738 }
 0x9cc   : > { %v3741_v27 = vpop.eup %3740  ;;  %v1877_v28 = vmul.f32 %v3739_v26, %v3737_v25 }
 0x9cd   : > { %v1876_v30 = vmul.f32 %v3741_v27, %v1762_v24  ;;  %v3743_v33 = vpop.eup %3742 }
 0x9cf   : > { %v1878_v32 = vadd.f32 %v1877_v28, %v1876_v30 }
 0x9d1   : > { %3744 = vtanh.f32 %v1878_v32  ;;  %1882 = vst [vmem:[#allocation4] sm:$0xff] %v1878_v32 }
 0x9db   : > { %v3745_v34 = vpop.eup %3744 }
 0x9dc   : > { %v1880_v35 = vmul.f32 %v3745_v34, %v3743_v33 }
 0x9de   : > { %1881 = vst [vmem:[#allocation3] sm:$0xff] %v1880_v35 }
 0x9df PF: > { %p3362_p5 = scmp.ne.s32.totalorder %s4080_s24, 1 }
 0x9e0   : > { %v4901_v36 = vcombine.high (!%p3362_p5), %v4363_v38, %v4367_v40  ;;  %v4905_v37 = vcombine.low (!%p3362_p5), %v4363_v38, %v4367_v40  ;;  %v4909_v6 = vcombine.high (!%p3362_p5), %v4374_v42, %v4378_v44  ;;  %v4913_v7 = vcombine.high (!%p3362_p5), %v4365_v39, %v4372_v41  ;;  %v5520_v40 = vld [vmem:[#allocation20_spill] sm:$0xff] (!%p3362_p5)  ;;  %v5521_v9 = vld [vmem:[#allocation18_spill] sm:$0xff] (!%p3362_p5)  ;;  %v5523_v11 = vld [vmem:[#allocation19_spill] sm:$0xff] (!%p3362_p5)  ;;  %p2163_p9 = scmp.lt.s32.totalorder (!%p3362_p5), %s4370_s28, 12  ;;  %s2285_s11 = sadd.s32 (!%p3362_p5), 1, %s4370_s28 }
 0x9e1   : > { %1885 = sbr.rel (%p3362_p5) target bundleno = 4891 (0x131b), region = 72  ;;  %v4918_v63 = vcombine.low (!%p3362_p5), %v4365_v39, %v4372_v41  ;;  %v4922_v8 = vcombine.high (!%p3362_p5), %v4376_v43, %v4380_v45  ;;  %v4927_v38 = vcombine.low (!%p3362_p5), %v4374_v42, %v4378_v44  ;;  %v4933_v10 = vcombine.high (!%p3362_p5), %v5521_v9, %v5520_v40  ;;  %v5522_v41 = vld [vmem:[#allocation21_spill] sm:$0xff] (!%p3362_p5)  ;;  %v5524_v17 = vld [vmem:[#allocation24_spill] sm:$0xff] (!%p3362_p5)  ;;  %v5527_v20 = vld [vmem:[#allocation23_spill] sm:$0xff] (!%p3362_p5)  ;;  %p2286_p12 = scmp.lt.s32.totalorder (!%p3362_p5), %s2285_s11, 12 }
 0x9e2   : > { %2053 = vmatprep.subr.bf16.mxu0 (!%p3362_p5), %v4901_v36  ;;  %2094 = vmatprep.subr.bf16.mxu1 (!%p3362_p5), %v4913_v7  ;;  %v4938_v39 = vcombine.low (!%p3362_p5), %v4376_v43, %v4380_v45  ;;  %v4943_v42 = vcombine.high (!%p3362_p5), %v5523_v11, %v5522_v41  ;;  %v4101_v44 = vmov (!%p3362_p5), 0   ;;  %v4949_v12 = vcombine.low (!%p3362_p5), %v5521_v9, %v5520_v40  ;;  %v5525_v43 = vld [vmem:[#allocation22_spill] sm:$0xff] (!%p3362_p5)  ;;  %v5526_v19 = vld [vmem:[#allocation25_spill] sm:$0xff] (!%p3362_p5)  ;;  %v5528_v23 = vld [vmem:[#allocation28_spill] sm:$0xff] (!%p3362_p5)  ;;  %s2408_s20 = sadd.s32 (!%p3362_p5), 2, %s4370_s28  ;;  %s2531_s19 = sadd.s32 (!%p3362_p5), 3, %s4370_s28 }
 0x9e3   : > { %2054 = vmatpush1.bf16.msra.mxu0 (!%p3362_p5), %v4905_v37  ;;  %2095 = vmatpush1.bf16.msra.mxu1 (!%p3362_p5), %v4918_v63  ;;  %v4954_v45 = vcombine.high (!%p3362_p5), %v5525_v43, %v5524_v17  ;;  %v4959_v18 = vcombine.low (!%p3362_p5), %v5523_v11, %v5522_v41  ;;  %v4964_v21 = vcombine.high (!%p3362_p5), %v5527_v20, %v5526_v19  ;;  %v5529_v24 = vld [vmem:[#allocation26_spill] sm:$0xff] (!%p3362_p5)  ;;  %v5530_v57 = vld [vmem:[#allocation29_spill] sm:$0xff] (!%p3362_p5)  ;;  %v5531_v47 = vld [vmem:[#allocation27_spill] sm:$0xff] (!%p3362_p5)  ;;  %p2409_p13 = scmp.lt.s32.totalorder (!%p3362_p5), %s2408_s20, 12  ;;  %p2532_p0 = scmp.lt.s32.totalorder (!%p3362_p5), %s2531_s19, 12  ;;  %vm4103_vm7 = vmmov (!%p3362_p5), 0  }
 0x9e4   : > { %2055 = vmatprep.subr.bf16.mxu0 (!%p3362_p5), %v4909_v6  ;;  %2096 = vmatprep.subr.bf16.mxu1 (!%p3362_p5), %v4922_v8  ;;  %v4970_v22 = vcombine.low (!%p3362_p5), %v5525_v43, %v5524_v17  ;;  %v4975_v56 = vcombine.high (!%p3362_p5), %v5529_v24, %v5528_v23  ;;  %v4980_v58 = vcombine.low (!%p3362_p5), %v5527_v20, %v5526_v19  ;;  %v5532_v53 = vld [vmem:[#allocation32_spill] sm:$0xff] (!%p3362_p5)  ;;  %v5533_v16 = vld [vmem:[#allocation30_spill] sm:$0xff] (!%p3362_p5)  ;;  %v5534_v51 = vld [vmem:[#allocation33_spill] sm:$0xff] (!%p3362_p5)  ;;  %s2654_s15 = sadd.s32 (!%p3362_p5), 4, %s4370_s28  ;;  %s2777_s9 = sadd.s32 (!%p3362_p5), 5, %s4370_s28 }
 0x9e5   : > { %2085 = vmatprep.mubr.bf16.mxu0 (!%p3362_p5), %v4101_v44  ;;  %2126 = vmatprep.mubr.bf16.mxu1 (!%p3362_p5), %v4101_v44  ;;  %v4985_v52 = vcombine.high (!%p3362_p5), %v5531_v47, %v5530_v57  ;;  %v4990_v13 = vcombine.low (!%p3362_p5), %v5529_v24, %v5528_v23  ;;  %v4995_v61 = vcombine.high (!%p3362_p5), %v5533_v16, %v5532_v53  ;;  %v5535_v4 = vld [vmem:[#allocation31_spill] sm:$0xff] (!%p3362_p5)  ;;  %v5536_v31 = vld [vmem:[#allocation36_spill] sm:$0xff] (!%p3362_p5)  ;;  %v5537_v60 = vld [vmem:[#allocation34_spill] sm:$0xff] (!%p3362_p5)  ;;  %p2655_p2 = scmp.lt.s32.totalorder (!%p3362_p5), %s2654_s15, 12  ;;  %p2778_p6 = scmp.lt.s32.totalorder (!%p3362_p5), %s2777_s9, 12 }
 0x9e6   : > { %v5000_v62 = vcombine.low (!%p3362_p5), %v5531_v47, %v5530_v57  ;;  %v5005_v5 = vcombine.high (!%p3362_p5), %v5535_v4, %v5534_v51  ;;  %v5010_v1 = vcombine.low (!%p3362_p5), %v5533_v16, %v5532_v53  ;;  %v5015_v55 = vcombine.high (!%p3362_p5), %v5537_v60, %v5536_v31  ;;  %v5538_v2 = vld [vmem:[#allocation37_spill] sm:$0xff] (!%p3362_p5)  ;;  %v5539_v46 = vld [vmem:[#allocation35_spill] sm:$0xff] (!%p3362_p5)  ;;  %v5540_v48 = vld [vmem:[#allocation40_spill] sm:$0xff] (!%p3362_p5)  ;;  %s2900_s14 = sadd.s32 (!%p3362_p5), 6, %s4370_s28  ;;  %s3023_s18 = sadd.s32 (!%p3362_p5), 7, %s4370_s28 }
 0x9e7   : > { %2056 = vmatpush1.bf16.msra.mxu0 (!%p3362_p5), %v4927_v38  ;;  %2097 = vmatpush1.bf16.msra.mxu1 (!%p3362_p5), %v4938_v39  ;;  %v5020_v0 = vcombine.low (!%p3362_p5), %v5535_v4, %v5534_v51  ;;  %v5025_v59 = vcombine.high (!%p3362_p5), %v5539_v46, %v5538_v2  ;;  %v5030_v49 = vcombine.low (!%p3362_p5), %v5537_v60, %v5536_v31  ;;  %v5541_v54 = vld [vmem:[#allocation38_spill] sm:$0xff] (!%p3362_p5)  ;;  %v5542_v14 = vld [vmem:[#allocation41_spill] sm:$0xff] (!%p3362_p5)  ;;  %v5543_v15 = vld [vmem:[#allocation39_spill] sm:$0xff] (!%p3362_p5)  ;;  %p2901_p10 = scmp.lt.s32.totalorder (!%p3362_p5), %s2900_s14, 12  ;;  %p3024_p1 = scmp.lt.s32.totalorder (!%p3362_p5), %s3023_s18, 12 }
 0x9e8   : > { %2057 = vmatprep.subr.bf16.mxu0 %v4933_v10  ;;  %2098 = vmatprep.subr.bf16.mxu1 %v4943_v42  ;;  %v5035_v50 = vcombine.high %v5541_v54, %v5540_v48  ;;  %v5040_v3 = vcombine.low %v5539_v46, %v5538_v2  ;;  %v5045_v25 = vcombine.high %v5543_v15, %v5542_v14  ;;  %v5052_v27 = vld [vmem:[#allocation3] sm:$0xff]  ;;  %v1889_v32 = vld [vmem:[#allocation2 + $0x8] sm:$0xff]  ;;  %v1891_v23 = vld [vmem:[#allocation2 + $0x18] sm:$0xff]  ;;  %s2164_s24 = scalar_select %p2163_p9, 1, 0 }
 0x9e9   : > { %v5050_v26 = vcombine.low %v5541_v54, %v5540_v48  ;;  %v5058_v28 = vcombine.low %v5543_v15, %v5542_v14  ;;  %v1892_v29 = vpack.c.bf16 %v5052_v27, %v5052_v27  ;;  %v1888_v30 = vld [vmem:[#allocation2] sm:$0xff]  ;;  %v1890_v47 = vld [vmem:[#allocation2 + $0x10] sm:$0xff]  ;;  %v1887_v48 = vld [vmem:[#allocation4] sm:$0xff]  ;;  %s2287_s10 = scalar_select %p2286_p12, 1, 0 }
 0x9ea   : > { %v2165_v15 = vstv %s2164_s24  ;;  %s2410_s8 = scalar_select %p2409_p13, 1, 0 }
 0x9eb   : > { %2058 = vmatpush1.bf16.msra.mxu0 %v4949_v12  ;;  %2099 = vmatpush1.bf16.msra.mxu1 %v4959_v18  ;;  %vm2166_vm0 = vcmp.eq.s32.totalorder %v2165_v15, 1  ;;  %s2533_s12 = scalar_select %p2532_p0, 1, 0 }
 0x9ec   : > { %2059 = vmatprep.subr.bf16.mxu0 %v4954_v45  ;;  %2100 = vmatprep.subr.bf16.mxu1 %v4964_v21  ;;  %s2656_s7 = scalar_select %p2655_p2, 1, 0 }
 0x9ed   : > { %s2779_s16 = scalar_select %p2778_p6, 1, 0 }
 0x9ee   : > { %s2902_s17 = scalar_select %p2901_p10, 1, 0 }
 0x9ef   : > { %2060 = vmatpush1.bf16.msra.mxu0 %v4970_v22  ;;  %2101 = vmatpush1.bf16.msra.mxu1 %v4980_v58  ;;  %s3025_s13 = scalar_select %p3024_p1, 1, 0 }
 0x9f0   : > { %2061 = vmatprep.subr.bf16.mxu0 %v4975_v56  ;;  %2102 = vmatprep.subr.bf16.mxu1 %v4985_v52 }
 0x9f3   : > { %2062 = vmatpush1.bf16.msra.mxu0 %v4990_v13  ;;  %2103 = vmatpush1.bf16.msra.mxu1 %v5000_v62 }
 0x9f4   : > { %2063 = vmatprep.subr.bf16.mxu0 %v4995_v61  ;;  %2104 = vmatprep.subr.bf16.mxu1 %v5005_v5 }
 0x9f7   : > { %2064 = vmatpush1.bf16.msra.mxu0 %v5010_v1  ;;  %2105 = vmatpush1.bf16.msra.mxu1 %v5020_v0 }
 0x9f8   : > { %2065 = vmatprep.subr.bf16.mxu0 %v5015_v55  ;;  %2106 = vmatprep.subr.bf16.mxu1 %v5025_v59 }
 0x9fb   : > { %2066 = vmatpush1.bf16.msra.mxu0 %v5030_v49  ;;  %2107 = vmatpush1.bf16.msra.mxu1 %v5040_v3 }
 0x9fc   : > { %2067 = vmatprep.subr.bf16.mxu0 %v5035_v50  ;;  %2108 = vmatprep.subr.bf16.mxu1 %v5045_v25 }
 0x9ff   : > { %2068 = vmatpush1.bf16.msra.mxu0 %v5050_v26  ;;  %2109 = vmatpush1.bf16.msra.mxu1 %v5058_v28 }
 0xa00   : > { %2175 = vmatprep.subr.bf16.mxu0 %v4901_v36  ;;  %2216 = vmatprep.subr.bf16.mxu1 %v4913_v7 }
 0xa02   : > { %2086 = vmatmul.mubr.bf16.vlgmr.msra.gmra.mrb[0].mxu0 %v1892_v29  ;;  %2127 = vmatmul.mubr.bf16.vlgmr.msra.gmra.mrb[0].mxu1 %v1892_v29 }
 0xa03   : > { %2176 = vmatpush1.bf16.msra.mxu0 %v4905_v37  ;;  %2217 = vmatpush1.bf16.msra.mxu1 %v4918_v63 }
 0xa04   : > { %2177 = vmatprep.subr.bf16.mxu0 %v4909_v6  ;;  %2218 = vmatprep.subr.bf16.mxu1 %v4922_v8 }
 0xa05   : > { %2207 = vmatprep.mubr.bf16.mxu0 %v4101_v44  ;;  %2248 = vmatprep.mubr.bf16.mxu1 %v4101_v44 }
 0xa07   : > { %2178 = vmatpush1.bf16.msra.mxu0 %v4927_v38  ;;  %2219 = vmatpush1.bf16.msra.mxu1 %v4938_v39 }
 0xa08   : > { %2179 = vmatprep.subr.bf16.mxu0 %v4933_v10  ;;  %2220 = vmatprep.subr.bf16.mxu1 %v4943_v42 }
 0xa0b   : > { %2180 = vmatpush1.bf16.msra.mxu0 %v4949_v12  ;;  %2221 = vmatpush1.bf16.msra.mxu1 %v4959_v18 }
 0xa0c   : > { %2181 = vmatprep.subr.bf16.mxu0 %v4954_v45  ;;  %2222 = vmatprep.subr.bf16.mxu1 %v4964_v21 }
 0xa0f   : > { %2182 = vmatpush1.bf16.msra.mxu0 %v4970_v22  ;;  %2223 = vmatpush1.bf16.msra.mxu1 %v4980_v58 }
 0xa10   : > { %2183 = vmatprep.subr.bf16.mxu0 %v4975_v56  ;;  %2224 = vmatprep.subr.bf16.mxu1 %v4985_v52 }
 0xa13   : > { %2184 = vmatpush1.bf16.msra.mxu0 %v4990_v13  ;;  %2225 = vmatpush1.bf16.msra.mxu1 %v5000_v62 }
 0xa14   : > { %2185 = vmatprep.subr.bf16.mxu0 %v4995_v61  ;;  %2226 = vmatprep.subr.bf16.mxu1 %v5005_v5 }
 0xa17   : > { %2186 = vmatpush1.bf16.msra.mxu0 %v5010_v1  ;;  %2227 = vmatpush1.bf16.msra.mxu1 %v5020_v0 }
 0xa18   : > { %2187 = vmatprep.subr.bf16.mxu0 %v5015_v55  ;;  %2228 = vmatprep.subr.bf16.mxu1 %v5025_v59 }
 0xa1b   : > { %2188 = vmatpush1.bf16.msra.mxu0 %v5030_v49  ;;  %2229 = vmatpush1.bf16.msra.mxu1 %v5040_v3 }
 0xa1c   : > { %2189 = vmatprep.subr.bf16.mxu0 %v5035_v50  ;;  %2230 = vmatprep.subr.bf16.mxu1 %v5045_v25 }
 0xa1f   : > { %2190 = vmatpush1.bf16.msra.mxu0 %v5050_v26  ;;  %2231 = vmatpush1.bf16.msra.mxu1 %v5058_v28 }
 0xa20   : > { %2298 = vmatprep.subr.bf16.mxu0 %v4901_v36  ;;  %2339 = vmatprep.subr.bf16.mxu1 %v4913_v7 }
 0xad5   : > { %v2087_v33 = vpop.f32.mrb[0].mxu0  ;;  %v2128_v40 = vpop.f32.mrb[0].mxu1 }
 0xad6   : > { %v2135_v34 = vadd.f32 %v2087_v33, %v1888_v30  ;;  %v2089_v35 = vpop.f32.mrb[1].mxu0  ;;  %v2130_v11 = vpop.f32.mrb[1].mxu1  ;;  %v2137_v16 = vadd.f32 %v2128_v40, %v1890_v47 }
 0xad7   : > { %v2136_v9 = vadd.f32 %v2089_v35, %v1889_v32  ;;  %v2091_v41 = vpop.f32.mrb[2].mxu0  ;;  %v2132_v19 = vpop.f32.mrb[2].mxu1  ;;  %v2138_v57 = vadd.f32 %v2130_v11, %v1891_v23 }
 0xad8   : > { %v3395_v17 = vmul.f32 -1.442695, %v2135_v34  ;;  %v2092_v43 = vpop.f32.mrb[3].mxu0  ;;  %v2133_v24 = vpop.f32.mrb[3].mxu1 }
 0xad9   : > { %v3396_v20 = vmul.f32 -1.442695, %v2136_v9  ;;  %v3397_v53 = vmul.f32 -1.442695, %v2138_v57 }
 0xada   : > { %3754 = vpow2.f32 %v3395_v17  ;;  %v2171_v17 = vld [vmem:[#allocation2 + $0x28] sm:$0xff] }
 0xadb   : > { %3756 = vpow2.f32 %v3396_v20 }
 0xadc   : > { %3758 = vpow2.f32 %v3397_v53 }
 0xadd   : > { %3760 = vtanh.f32 %v2137_v16 }
 0xae4   : > { %v3755_v51 = vpop.eup %3754 }
 0xae5   : > { %v3757_v4 = vpop.eup %3756  ;;  %v2142_v31 = vadd.f32 1.0, %v3755_v51 }
 0xae6   : > { %v2148_v60 = vadd.f32 1.0, %v3757_v4  ;;  %v3759_v2 = vpop.eup %3758 }
 0xae7   : > { %3762 = vrcp.f32 %v2142_v31  ;;  %v3761_v46 = vpop.eup %3760  ;;  %v2155_v14 = vadd.f32 1.0, %v3759_v2 }
 0xae8   : > { %3764 = vrcp.f32 %v2148_v60  ;;  %v2173_v60 = vld [vmem:[#allocation2 + $0x38] sm:$0xff] }
 0xae9   : > { %3766 = vrcp.f32 %v2155_v14 }
 0xaf1   : > { %v3763_v54 = vpop.eup %3762 }
 0xaf2   : > { %v3765_v29 = vpop.eup %3764  ;;  %v2159_v30 = vmul.f32 %v3763_v54, %v3761_v46  ;;  %v2172_v46 = vld [vmem:[#allocation2 + $0x30] sm:$0xff] }
 0xaf3   : > { %v2158_v32 = vmul.f32 %v3765_v29, %v1887_v48  ;;  %v3767_v35 = vpop.eup %3766 }
 0xaf5   : > { %v2160_v33 = vadd.f32 %v2159_v30, %v2158_v32 }
 0xaf7   : > { %3768 = vtanh.f32 %v2160_v33  ;;  %v5102_v34 = vsel %vm2166_vm0, %v2160_v33, %v1887_v48 }
 0xb01   : > { %v3769_v40 = vpop.eup %3768 }
 0xb02   : > { %v2162_v9 = vmul.f32 %v3769_v40, %v3767_v35  ;;  %v2288_v40 = vstv %s2287_s10 }
 0xb03   : > { %vm2289_vm1 = vcmp.eq.s32.totalorder %v2288_v40, 1 }
 0xb04   : > { %v5105_v41 = vsel %vm2166_vm0, %v2162_v9, %v5052_v27  ;;  %v2170_v27 = vld [vmem:[#allocation2 + $0x20] sm:$0xff] }
 0xb05   : > { %v2174_v11 = vpack.c.bf16 %v5105_v41, %v5105_v41 }
 0xb07   : > { %2208 = vmatmul.mubr.bf16.vlgmr.msra.gmra.mrb[4].mxu0 %v2174_v11  ;;  %2249 = vmatmul.mubr.bf16.vlgmr.msra.gmra.mrb[4].mxu1 %v2174_v11 }
 0xb08   : > { %2299 = vmatpush1.bf16.msra.mxu0 %v4905_v37  ;;  %2340 = vmatpush1.bf16.msra.mxu1 %v4918_v63 }
 0xb09   : > { %2300 = vmatprep.subr.bf16.mxu0 %v4909_v6  ;;  %2341 = vmatprep.subr.bf16.mxu1 %v4922_v8 }
 0xb0a   : > { %2330 = vmatprep.mubr.bf16.mxu0 %v4101_v44  ;;  %2371 = vmatprep.mubr.bf16.mxu1 %v4101_v44 }
 0xb0c   : > { %2301 = vmatpush1.bf16.msra.mxu0 %v4927_v38  ;;  %2342 = vmatpush1.bf16.msra.mxu1 %v4938_v39 }
 0xb0d   : > { %2302 = vmatprep.subr.bf16.mxu0 %v4933_v10  ;;  %2343 = vmatprep.subr.bf16.mxu1 %v4943_v42 }
 0xb10   : > { %2303 = vmatpush1.bf16.msra.mxu0 %v4949_v12  ;;  %2344 = vmatpush1.bf16.msra.mxu1 %v4959_v18 }
 0xb11   : > { %2304 = vmatprep.subr.bf16.mxu0 %v4954_v45  ;;  %2345 = vmatprep.subr.bf16.mxu1 %v4964_v21 }
 0xb14   : > { %2305 = vmatpush1.bf16.msra.mxu0 %v4970_v22  ;;  %2346 = vmatpush1.bf16.msra.mxu1 %v4980_v58 }
 0xb15   : > { %2306 = vmatprep.subr.bf16.mxu0 %v4975_v56  ;;  %2347 = vmatprep.subr.bf16.mxu1 %v4985_v52 }
 0xb18   : > { %2307 = vmatpush1.bf16.msra.mxu0 %v4990_v13  ;;  %2348 = vmatpush1.bf16.msra.mxu1 %v5000_v62 }
 0xb19   : > { %2308 = vmatprep.subr.bf16.mxu0 %v4995_v61  ;;  %2349 = vmatprep.subr.bf16.mxu1 %v5005_v5 }
 0xb1c   : > { %2309 = vmatpush1.bf16.msra.mxu0 %v5010_v1  ;;  %2350 = vmatpush1.bf16.msra.mxu1 %v5020_v0 }
 0xb1d   : > { %2310 = vmatprep.subr.bf16.mxu0 %v5015_v55  ;;  %2351 = vmatprep.subr.bf16.mxu1 %v5025_v59 }
 0xb20   : > { %2311 = vmatpush1.bf16.msra.mxu0 %v5030_v49  ;;  %2352 = vmatpush1.bf16.msra.mxu1 %v5040_v3 }
 0xb21   : > { %2312 = vmatprep.subr.bf16.mxu0 %v5035_v50  ;;  %2353 = vmatprep.subr.bf16.mxu1 %v5045_v25 }
 0xb24   : > { %2313 = vmatpush1.bf16.msra.mxu0 %v5050_v26  ;;  %2354 = vmatpush1.bf16.msra.mxu1 %v5058_v28 }
 0xb25   : > { %2421 = vmatprep.subr.bf16.mxu0 %v4901_v36  ;;  %2462 = vmatprep.subr.bf16.mxu1 %v4913_v7 }
 0xbda   : > { %v2209_v43 = vpop.f32.mrb[4].mxu0  ;;  %v2250_v19 = vpop.f32.mrb[4].mxu1 }
 0xbdb   : > { %v2257_v20 = vadd.f32 %v2209_v43, %v2170_v27  ;;  %v2211_v23 = vpop.f32.mrb[5].mxu0  ;;  %v2252_v24 = vpop.f32.mrb[5].mxu1  ;;  %v2259_v54 = vadd.f32 %v2250_v19, %v2172_v46 }
 0xbdc   : > { %v2258_v57 = vadd.f32 %v2211_v23, %v2171_v17  ;;  %v2213_v47 = vpop.f32.mrb[6].mxu0  ;;  %v2254_v53 = vpop.f32.mrb[6].mxu1  ;;  %v2260_v2 = vadd.f32 %v2252_v24, %v2173_v60 }
 0xbdd   : > { %v3398_v16 = vmul.f32 -1.442695, %v2257_v20  ;;  %v2214_v51 = vpop.f32.mrb[7].mxu0  ;;  %v2255_v4 = vpop.f32.mrb[7].mxu1 }
 0xbde   : > { %v3399_v31 = vmul.f32 -1.442695, %v2258_v57  ;;  %v3400_v48 = vmul.f32 -1.442695, %v2260_v2 }
 0xbdf   : > { %3770 = vpow2.f32 %v3398_v16 }
 0xbe0   : > { %3772 = vpow2.f32 %v3399_v31 }
 0xbe1   : > { %3774 = vpow2.f32 %v3400_v48 }
 0xbe2   : > { %3776 = vtanh.f32 %v2259_v54 }
 0xbe9   : > { %v3771_v14 = vpop.eup %3770 }
 0xbea   : > { %v3773_v15 = vpop.eup %3772  ;;  %v2264_v29 = vadd.f32 1.0, %v3771_v14 }
 0xbeb   : > { %v2270_v30 = vadd.f32 1.0, %v3773_v15  ;;  %v3775_v32 = vpop.eup %3774 }
 0xbec   : > { %3778 = vrcp.f32 %v2264_v29  ;;  %v3777_v33 = vpop.eup %3776  ;;  %v2277_v27 = vadd.f32 1.0, %v3775_v32  ;;  %v2296_v29 = vld [vmem:[#allocation2 + $0x58] sm:$0xff]  ;;  %v2295_v32 = vld [vmem:[#allocation2 + $0x50] sm:$0xff] }
 0xbed   : > { %3780 = vrcp.f32 %v2270_v30 }
 0xbee   : > { %3782 = vrcp.f32 %v2277_v27 }
 0xbf6   : > { %v3779_v35 = vpop.eup %3778 }
 0xbf7   : > { %v3781_v9 = vpop.eup %3780  ;;  %v2281_v11 = vmul.f32 %v3779_v35, %v3777_v33 }
 0xbf8   : > { %v2280_v17 = vmul.f32 %v3781_v9, %v5102_v34  ;;  %v3783_v20 = vpop.eup %3782 }
 0xbfa   : > { %v2282_v43 = vadd.f32 %v2281_v11, %v2280_v17 }
 0xbfc   : > { %3784 = vtanh.f32 %v2282_v43  ;;  %v5146_v19 = vsel %vm2289_vm1, %v2282_v43, %v5102_v34  ;;  %v2293_v34 = vld [vmem:[#allocation2 + $0x40] sm:$0xff] }
 0xc06   : > { %v3785_v23 = vpop.eup %3784 }
 0xc07   : > { %v2284_v24 = vmul.f32 %v3785_v23, %v3783_v20  ;;  %v2411_v23 = vstv %s2410_s8 }
 0xc08   : > { %vm2412_vm2 = vcmp.eq.s32.totalorder %v2411_v23, 1 }
 0xc09   : > { %v5149_v57 = vsel %vm2289_vm1, %v2284_v24, %v5105_v41  ;;  %v2294_v41 = vld [vmem:[#allocation2 + $0x48] sm:$0xff] }
 0xc0a   : > { %v2297_v47 = vpack.c.bf16 %v5149_v57, %v5149_v57 }
 0xc0c   : > { %2331 = vmatmul.mubr.bf16.vlgmr.msra.gmra.mrb[8].mxu0 %v2297_v47  ;;  %2372 = vmatmul.mubr.bf16.vlgmr.msra.gmra.mrb[8].mxu1 %v2297_v47 }
 0xc0d   : > { %2422 = vmatpush1.bf16.msra.mxu0 %v4905_v37  ;;  %2463 = vmatpush1.bf16.msra.mxu1 %v4918_v63 }
 0xc0e   : > { %2423 = vmatprep.subr.bf16.mxu0 %v4909_v6  ;;  %2464 = vmatprep.subr.bf16.mxu1 %v4922_v8 }
 0xc0f   : > { %2453 = vmatprep.mubr.bf16.mxu0 %v4101_v44  ;;  %2494 = vmatprep.mubr.bf16.mxu1 %v4101_v44 }
 0xc11   : > { %2424 = vmatpush1.bf16.msra.mxu0 %v4927_v38  ;;  %2465 = vmatpush1.bf16.msra.mxu1 %v4938_v39 }
 0xc12   : > { %2425 = vmatprep.subr.bf16.mxu0 %v4933_v10  ;;  %2466 = vmatprep.subr.bf16.mxu1 %v4943_v42 }
 0xc15   : > { %2426 = vmatpush1.bf16.msra.mxu0 %v4949_v12  ;;  %2467 = vmatpush1.bf16.msra.mxu1 %v4959_v18 }
 0xc16   : > { %2427 = vmatprep.subr.bf16.mxu0 %v4954_v45  ;;  %2468 = vmatprep.subr.bf16.mxu1 %v4964_v21 }
 0xc19   : > { %2428 = vmatpush1.bf16.msra.mxu0 %v4970_v22  ;;  %2469 = vmatpush1.bf16.msra.mxu1 %v4980_v58 }
 0xc1a   : > { %2429 = vmatprep.subr.bf16.mxu0 %v4975_v56  ;;  %2470 = vmatprep.subr.bf16.mxu1 %v4985_v52 }
 0xc1d   : > { %2430 = vmatpush1.bf16.msra.mxu0 %v4990_v13  ;;  %2471 = vmatpush1.bf16.msra.mxu1 %v5000_v62 }
 0xc1e   : > { %2431 = vmatprep.subr.bf16.mxu0 %v4995_v61  ;;  %2472 = vmatprep.subr.bf16.mxu1 %v5005_v5 }
 0xc21   : > { %2432 = vmatpush1.bf16.msra.mxu0 %v5010_v1  ;;  %2473 = vmatpush1.bf16.msra.mxu1 %v5020_v0 }
 0xc22   : > { %2433 = vmatprep.subr.bf16.mxu0 %v5015_v55  ;;  %2474 = vmatprep.subr.bf16.mxu1 %v5025_v59 }
 0xc25   : > { %2434 = vmatpush1.bf16.msra.mxu0 %v5030_v49  ;;  %2475 = vmatpush1.bf16.msra.mxu1 %v5040_v3 }
 0xc26   : > { %2435 = vmatprep.subr.bf16.mxu0 %v5035_v50  ;;  %2476 = vmatprep.subr.bf16.mxu1 %v5045_v25 }
 0xc29   : > { %2436 = vmatpush1.bf16.msra.mxu0 %v5050_v26  ;;  %2477 = vmatpush1.bf16.msra.mxu1 %v5058_v28 }
 0xc2a   : > { %2544 = vmatprep.subr.bf16.mxu0 %v4901_v36  ;;  %2585 = vmatprep.subr.bf16.mxu1 %v4913_v7 }
 0xcdf   : > { %v2332_v53 = vpop.f32.mrb[8].mxu0  ;;  %v2373_v16 = vpop.f32.mrb[8].mxu1 }
 0xce0   : > { %v2380_v51 = vadd.f32 %v2332_v53, %v2293_v34  ;;  %v2334_v4 = vpop.f32.mrb[9].mxu0  ;;  %v2375_v31 = vpop.f32.mrb[9].mxu1  ;;  %v2382_v35 = vadd.f32 %v2373_v16, %v2295_v32 }
 0xce1   : > { %v2381_v60 = vadd.f32 %v2334_v4, %v2294_v41  ;;  %v2336_v2 = vpop.f32.mrb[10].mxu0  ;;  %v2377_v46 = vpop.f32.mrb[10].mxu1  ;;  %v2383_v30 = vadd.f32 %v2375_v31, %v2296_v29 }
 0xce2   : > { %v3401_v48 = vmul.f32 -1.442695, %v2380_v51  ;;  %v2337_v54 = vpop.f32.mrb[11].mxu0  ;;  %v2378_v14 = vpop.f32.mrb[11].mxu1 }
 0xce3   : > { %v3402_v15 = vmul.f32 -1.442695, %v2381_v60  ;;  %v3403_v33 = vmul.f32 -1.442695, %v2383_v30 }
 0xce4   : > { %3786 = vpow2.f32 %v3401_v48 }
 0xce5   : > { %3788 = vpow2.f32 %v3402_v15 }
 0xce6   : > { %3790 = vpow2.f32 %v3403_v33 }
 0xce7   : > { %3792 = vtanh.f32 %v2382_v35 }
 0xcee   : > { %v3787_v40 = vpop.eup %3786 }
 0xcef   : > { %v3789_v9 = vpop.eup %3788  ;;  %v2387_v11 = vadd.f32 1.0, %v3787_v40 }
 0xcf0   : > { %v2393_v27 = vadd.f32 1.0, %v3789_v9  ;;  %v3791_v17 = vpop.eup %3790 }
 0xcf1   : > { %3794 = vrcp.f32 %v2387_v11  ;;  %v3793_v43 = vpop.eup %3792  ;;  %v2400_v34 = vadd.f32 1.0, %v3791_v17  ;;  %v2419_v11 = vld [vmem:[#allocation2 + $0x78] sm:$0xff]  ;;  %v2418_v17 = vld [vmem:[#allocation2 + $0x70] sm:$0xff] }
 0xcf2   : > { %3796 = vrcp.f32 %v2393_v27 }
 0xcf3   : > { %3798 = vrcp.f32 %v2400_v34 }
 0xcfb   : > { %v3795_v20 = vpop.eup %3794 }
 0xcfc   : > { %v3797_v24 = vpop.eup %3796  ;;  %v2404_v47 = vmul.f32 %v3795_v20, %v3793_v43 }
 0xcfd   : > { %v2403_v41 = vmul.f32 %v3797_v24, %v5146_v19  ;;  %v3799_v51 = vpop.eup %3798 }
 0xcff   : > { %v2405_v53 = vadd.f32 %v2404_v47, %v2403_v41 }
 0xd01   : > { %3800 = vtanh.f32 %v2405_v53  ;;  %v5190_v16 = vsel %vm2412_vm2, %v2405_v53, %v5146_v19  ;;  %v2416_v19 = vld [vmem:[#allocation2 + $0x60] sm:$0xff] }
 0xd0b   : > { %v3801_v4 = vpop.eup %3800 }
 0xd0c   : > { %v2407_v31 = vmul.f32 %v3801_v4, %v3799_v51  ;;  %v2534_v4 = vstv %s2533_s12 }
 0xd0d   : > { %vm2535_vm3 = vcmp.eq.s32.totalorder %v2534_v4, 1 }
 0xd0e   : > { %v5193_v60 = vsel %vm2412_vm2, %v2407_v31, %v5149_v57  ;;  %v2417_v57 = vld [vmem:[#allocation2 + $0x68] sm:$0xff] }
 0xd0f   : > { %v2420_v2 = vpack.c.bf16 %v5193_v60, %v5193_v60 }
 0xd11   : > { %2454 = vmatmul.mubr.bf16.vlgmr.msra.gmra.mrb[12].mxu0 %v2420_v2  ;;  %2495 = vmatmul.mubr.bf16.vlgmr.msra.gmra.mrb[12].mxu1 %v2420_v2 }
 0xd12   : > { %2545 = vmatpush1.bf16.msra.mxu0 %v4905_v37  ;;  %2586 = vmatpush1.bf16.msra.mxu1 %v4918_v63 }
 0xd13   : > { %2546 = vmatprep.subr.bf16.mxu0 %v4909_v6  ;;  %2587 = vmatprep.subr.bf16.mxu1 %v4922_v8 }
 0xd14   : > { %2576 = vmatprep.mubr.bf16.mxu0 %v4101_v44  ;;  %2617 = vmatprep.mubr.bf16.mxu1 %v4101_v44 }
 0xd16   : > { %2547 = vmatpush1.bf16.msra.mxu0 %v4927_v38  ;;  %2588 = vmatpush1.bf16.msra.mxu1 %v4938_v39 }
 0xd17   : > { %2548 = vmatprep.subr.bf16.mxu0 %v4933_v10  ;;  %2589 = vmatprep.subr.bf16.mxu1 %v4943_v42 }
 0xd1a   : > { %2549 = vmatpush1.bf16.msra.mxu0 %v4949_v12  ;;  %2590 = vmatpush1.bf16.msra.mxu1 %v4959_v18 }
 0xd1b   : > { %2550 = vmatprep.subr.bf16.mxu0 %v4954_v45  ;;  %2591 = vmatprep.subr.bf16.mxu1 %v4964_v21 }
 0xd1e   : > { %2551 = vmatpush1.bf16.msra.mxu0 %v4970_v22  ;;  %2592 = vmatpush1.bf16.msra.mxu1 %v4980_v58 }
 0xd1f   : > { %2552 = vmatprep.subr.bf16.mxu0 %v4975_v56  ;;  %2593 = vmatprep.subr.bf16.mxu1 %v4985_v52 }
 0xd22   : > { %2553 = vmatpush1.bf16.msra.mxu0 %v4990_v13  ;;  %2594 = vmatpush1.bf16.msra.mxu1 %v5000_v62 }
 0xd23   : > { %2554 = vmatprep.subr.bf16.mxu0 %v4995_v61  ;;  %2595 = vmatprep.subr.bf16.mxu1 %v5005_v5 }
 0xd26   : > { %2555 = vmatpush1.bf16.msra.mxu0 %v5010_v1  ;;  %2596 = vmatpush1.bf16.msra.mxu1 %v5020_v0 }
 0xd27   : > { %2556 = vmatprep.subr.bf16.mxu0 %v5015_v55  ;;  %2597 = vmatprep.subr.bf16.mxu1 %v5025_v59 }
 0xd2a   : > { %2557 = vmatpush1.bf16.msra.mxu0 %v5030_v49  ;;  %2598 = vmatpush1.bf16.msra.mxu1 %v5040_v3 }
 0xd2b   : > { %2558 = vmatprep.subr.bf16.mxu0 %v5035_v50  ;;  %2599 = vmatprep.subr.bf16.mxu1 %v5045_v25 }
 0xd2e   : > { %2559 = vmatpush1.bf16.msra.mxu0 %v5050_v26  ;;  %2600 = vmatpush1.bf16.msra.mxu1 %v5058_v28 }
 0xd2f   : > { %2667 = vmatprep.subr.bf16.mxu0 %v4901_v36  ;;  %2708 = vmatprep.subr.bf16.mxu1 %v4913_v7 }
 0xde4   : > { %v2455_v46 = vpop.f32.mrb[12].mxu0  ;;  %v2496_v48 = vpop.f32.mrb[12].mxu1 }
 0xde5   : > { %v2503_v54 = vadd.f32 %v2455_v46, %v2416_v19  ;;  %v2457_v14 = vpop.f32.mrb[13].mxu0  ;;  %v2498_v15 = vpop.f32.mrb[13].mxu1  ;;  %v2505_v20 = vadd.f32 %v2496_v48, %v2418_v17 }
 0xde6   : > { %v2504_v29 = vadd.f32 %v2457_v14, %v2417_v57  ;;  %v2459_v30 = vpop.f32.mrb[14].mxu0  ;;  %v2500_v32 = vpop.f32.mrb[14].mxu1  ;;  %v2506_v27 = vadd.f32 %v2498_v15, %v2419_v11 }
 0xde7   : > { %v3404_v33 = vmul.f32 -1.442695, %v2503_v54  ;;  %v2460_v35 = vpop.f32.mrb[15].mxu0  ;;  %v2501_v40 = vpop.f32.mrb[15].mxu1 }
 0xde8   : > { %v3405_v9 = vmul.f32 -1.442695, %v2504_v29  ;;  %v3406_v43 = vmul.f32 -1.442695, %v2506_v27 }
 0xde9   : > { %3802 = vpow2.f32 %v3404_v33 }
 0xdea   : > { %3804 = vpow2.f32 %v3405_v9 }
 0xdeb   : > { %3806 = vpow2.f32 %v3406_v43 }
 0xdec   : > { %3808 = vtanh.f32 %v2505_v20 }
 0xdf3   : > { %v3803_v23 = vpop.eup %3802 }
 0xdf4   : > { %v3805_v24 = vpop.eup %3804  ;;  %v2510_v47 = vadd.f32 1.0, %v3803_v23 }
 0xdf5   : > { %v2516_v34 = vadd.f32 1.0, %v3805_v24  ;;  %v3807_v41 = vpop.eup %3806 }
 0xdf6   : > { %3810 = vrcp.f32 %v2510_v47  ;;  %v3809_v53 = vpop.eup %3808  ;;  %v2523_v19 = vadd.f32 1.0, %v3807_v41  ;;  %v2542_v47 = vld [vmem:[#allocation2 + $0x98] sm:$0xff]  ;;  %v2541_v41 = vld [vmem:[#allocation2 + $0x90] sm:$0xff] }
 0xdf7   : > { %3812 = vrcp.f32 %v2516_v34 }
 0xdf8   : > { %3814 = vrcp.f32 %v2523_v19 }
 0xe00   : > { %v3811_v51 = vpop.eup %3810 }
 0xe01   : > { %v3813_v31 = vpop.eup %3812  ;;  %v2527_v2 = vmul.f32 %v3811_v51, %v3809_v53 }
 0xe02   : > { %v2526_v57 = vmul.f32 %v3813_v31, %v5190_v16  ;;  %v3815_v54 = vpop.eup %3814 }
 0xe04   : > { %v2528_v46 = vadd.f32 %v2527_v2, %v2526_v57 }
 0xe06   : > { %3816 = vtanh.f32 %v2528_v46  ;;  %v5234_v48 = vsel %vm2535_vm3, %v2528_v46, %v5190_v16  ;;  %v2539_v16 = vld [vmem:[#allocation2 + $0x80] sm:$0xff] }
 0xe10   : > { %v3817_v14 = vpop.eup %3816 }
 0xe11   : > { %v2530_v15 = vmul.f32 %v3817_v14, %v3815_v54  ;;  %v2657_v14 = vstv %s2656_s7 }
 0xe12   : > { %vm2658_vm4 = vcmp.eq.s32.totalorder %v2657_v14, 1 }
 0xe13   : > { %v5237_v29 = vsel %vm2535_vm3, %v2530_v15, %v5193_v60  ;;  %v2540_v60 = vld [vmem:[#allocation2 + $0x88] sm:$0xff] }
 0xe14   : > { %v2543_v30 = vpack.c.bf16 %v5237_v29, %v5237_v29 }
 0xe16   : > { %2577 = vmatmul.mubr.bf16.vlgmr.msra.gmra.mrb[16].mxu0 %v2543_v30  ;;  %2618 = vmatmul.mubr.bf16.vlgmr.msra.gmra.mrb[16].mxu1 %v2543_v30 }
 0xe17   : > { %2668 = vmatpush1.bf16.msra.mxu0 %v4905_v37  ;;  %2709 = vmatpush1.bf16.msra.mxu1 %v4918_v63 }
 0xe18   : > { %2669 = vmatprep.subr.bf16.mxu0 %v4909_v6  ;;  %2710 = vmatprep.subr.bf16.mxu1 %v4922_v8 }
 0xe19   : > { %2699 = vmatprep.mubr.bf16.mxu0 %v4101_v44  ;;  %2740 = vmatprep.mubr.bf16.mxu1 %v4101_v44 }
 0xe1b   : > { %2670 = vmatpush1.bf16.msra.mxu0 %v4927_v38  ;;  %2711 = vmatpush1.bf16.msra.mxu1 %v4938_v39 }
 0xe1c   : > { %2671 = vmatprep.subr.bf16.mxu0 %v4933_v10  ;;  %2712 = vmatprep.subr.bf16.mxu1 %v4943_v42 }
 0xe1f   : > { %2672 = vmatpush1.bf16.msra.mxu0 %v4949_v12  ;;  %2713 = vmatpush1.bf16.msra.mxu1 %v4959_v18 }
 0xe20   : > { %2673 = vmatprep.subr.bf16.mxu0 %v4954_v45  ;;  %2714 = vmatprep.subr.bf16.mxu1 %v4964_v21 }
 0xe23   : > { %2674 = vmatpush1.bf16.msra.mxu0 %v4970_v22  ;;  %2715 = vmatpush1.bf16.msra.mxu1 %v4980_v58 }
 0xe24   : > { %2675 = vmatprep.subr.bf16.mxu0 %v4975_v56  ;;  %2716 = vmatprep.subr.bf16.mxu1 %v4985_v52 }
 0xe27   : > { %2676 = vmatpush1.bf16.msra.mxu0 %v4990_v13  ;;  %2717 = vmatpush1.bf16.msra.mxu1 %v5000_v62 }
 0xe28   : > { %2677 = vmatprep.subr.bf16.mxu0 %v4995_v61  ;;  %2718 = vmatprep.subr.bf16.mxu1 %v5005_v5 }
 0xe2b   : > { %2678 = vmatpush1.bf16.msra.mxu0 %v5010_v1  ;;  %2719 = vmatpush1.bf16.msra.mxu1 %v5020_v0 }
 0xe2c   : > { %2679 = vmatprep.subr.bf16.mxu0 %v5015_v55  ;;  %2720 = vmatprep.subr.bf16.mxu1 %v5025_v59 }
 0xe2f   : > { %2680 = vmatpush1.bf16.msra.mxu0 %v5030_v49  ;;  %2721 = vmatpush1.bf16.msra.mxu1 %v5040_v3 }
 0xe30   : > { %2681 = vmatprep.subr.bf16.mxu0 %v5035_v50  ;;  %2722 = vmatprep.subr.bf16.mxu1 %v5045_v25 }
 0xe33   : > { %2682 = vmatpush1.bf16.msra.mxu0 %v5050_v26  ;;  %2723 = vmatpush1.bf16.msra.mxu1 %v5058_v28 }
 0xe34   : > { %2790 = vmatprep.subr.bf16.mxu0 %v4901_v36  ;;  %2831 = vmatprep.subr.bf16.mxu1 %v4913_v7 }
 0xee9   : > { %v2578_v32 = vpop.f32.mrb[16].mxu0  ;;  %v2619_v33 = vpop.f32.mrb[16].mxu1 }
 0xeea   : > { %v2626_v35 = vadd.f32 %v2578_v32, %v2539_v16  ;;  %v2580_v40 = vpop.f32.mrb[17].mxu0  ;;  %v2621_v9 = vpop.f32.mrb[17].mxu1  ;;  %v2628_v51 = vadd.f32 %v2619_v33, %v2541_v41 }
 0xeeb   : > { %v2627_v11 = vadd.f32 %v2580_v40, %v2540_v60  ;;  %v2582_v27 = vpop.f32.mrb[18].mxu0  ;;  %v2623_v17 = vpop.f32.mrb[18].mxu1  ;;  %v2629_v34 = vadd.f32 %v2621_v9, %v2542_v47 }
 0xeec   : > { %v3407_v43 = vmul.f32 -1.442695, %v2626_v35  ;;  %v2583_v20 = vpop.f32.mrb[19].mxu0  ;;  %v2624_v23 = vpop.f32.mrb[19].mxu1 }
 0xeed   : > { %v3408_v24 = vmul.f32 -1.442695, %v2627_v11  ;;  %v3409_v53 = vmul.f32 -1.442695, %v2629_v34 }
 0xeee   : > { %3818 = vpow2.f32 %v3407_v43 }
 0xeef   : > { %3820 = vpow2.f32 %v3408_v24 }
 0xef0   : > { %3822 = vpow2.f32 %v3409_v53 }
 0xef1   : > { %3824 = vtanh.f32 %v2628_v51 }
 0xef8   : > { %v3819_v4 = vpop.eup %3818 }
 0xef9   : > { %v3821_v31 = vpop.eup %3820  ;;  %v2633_v2 = vadd.f32 1.0, %v3819_v4 }
 0xefa   : > { %v2639_v19 = vadd.f32 1.0, %v3821_v31  ;;  %v3823_v57 = vpop.eup %3822 }
 0xefb   : > { %3826 = vrcp.f32 %v2633_v2  ;;  %v3825_v46 = vpop.eup %3824  ;;  %v2646_v16 = vadd.f32 1.0, %v3823_v57  ;;  %v2665_v2 = vld [vmem:[#allocation2 + $0xb8] sm:$0xff] }
 0xefc   : > { %3828 = vrcp.f32 %v2639_v19 }
 0xefd   : > { %3830 = vrcp.f32 %v2646_v16 }
 0xf05   : > { %v3827_v54 = vpop.eup %3826 }
 0xf06   : > { %v3829_v15 = vpop.eup %3828  ;;  %v2650_v30 = vmul.f32 %v3827_v54, %v3825_v46 }
 0xf07   : > { %v2649_v60 = vmul.f32 %v3829_v15, %v5234_v48  ;;  %v3831_v35 = vpop.eup %3830 }
 0xf09   : > { %v2651_v32 = vadd.f32 %v2650_v30, %v2649_v60 }
 0xf0b   : > { %3832 = vtanh.f32 %v2651_v32  ;;  %v5278_v33 = vsel %vm2658_vm4, %v2651_v32, %v5234_v48  ;;  %v2662_v48 = vld [vmem:[#allocation2 + $0xa0] sm:$0xff]  ;;  %v2780_v32 = vstv %s2779_s16 }
 0xf0c   : > { %vm2781_vm5 = vcmp.eq.s32.totalorder %v2780_v32, 1 }
 0xf15   : > { %v3833_v40 = vpop.eup %3832 }
 0xf16   : > { %v2653_v9 = vmul.f32 %v3833_v40, %v3831_v35 }
 0xf18   : > { %v5281_v11 = vsel %vm2658_vm4, %v2653_v9, %v5237_v29  ;;  %v2663_v29 = vld [vmem:[#allocation2 + $0xa8] sm:$0xff] }
 0xf19   : > { %v2666_v27 = vpack.c.bf16 %v5281_v11, %v5281_v11 }
 0xf1b   : > { %2700 = vmatmul.mubr.bf16.vlgmr.msra.gmra.mrb[20].mxu0 %v2666_v27  ;;  %2741 = vmatmul.mubr.bf16.vlgmr.msra.gmra.mrb[20].mxu1 %v2666_v27 }
 0xf1c   : > { %2791 = vmatpush1.bf16.msra.mxu0 %v4905_v37  ;;  %2832 = vmatpush1.bf16.msra.mxu1 %v4918_v63 }
 0xf1d   : > { %2792 = vmatprep.subr.bf16.mxu0 %v4909_v6  ;;  %2833 = vmatprep.subr.bf16.mxu1 %v4922_v8 }
 0xf1e   : > { %2822 = vmatprep.mubr.bf16.mxu0 %v4101_v44  ;;  %2863 = vmatprep.mubr.bf16.mxu1 %v4101_v44 }
 0xf20   : > { %2793 = vmatpush1.bf16.msra.mxu0 %v4927_v38  ;;  %2834 = vmatpush1.bf16.msra.mxu1 %v4938_v39 }
 0xf21   : > { %2794 = vmatprep.subr.bf16.mxu0 %v4933_v10  ;;  %2835 = vmatprep.subr.bf16.mxu1 %v4943_v42 }
 0xf24   : > { %2795 = vmatpush1.bf16.msra.mxu0 %v4949_v12  ;;  %2836 = vmatpush1.bf16.msra.mxu1 %v4959_v18 }
 0xf25   : > { %2796 = vmatprep.subr.bf16.mxu0 %v4954_v45  ;;  %2837 = vmatprep.subr.bf16.mxu1 %v4964_v21 }
 0xf28   : > { %2797 = vmatpush1.bf16.msra.mxu0 %v4970_v22  ;;  %2838 = vmatpush1.bf16.msra.mxu1 %v4980_v58 }
 0xf29   : > { %2798 = vmatprep.subr.bf16.mxu0 %v4975_v56  ;;  %2839 = vmatprep.subr.bf16.mxu1 %v4985_v52 }
 0xf2c   : > { %2799 = vmatpush1.bf16.msra.mxu0 %v4990_v13  ;;  %2840 = vmatpush1.bf16.msra.mxu1 %v5000_v62 }
 0xf2d   : > { %2800 = vmatprep.subr.bf16.mxu0 %v4995_v61  ;;  %2841 = vmatprep.subr.bf16.mxu1 %v5005_v5 }
 0xf30   : > { %2801 = vmatpush1.bf16.msra.mxu0 %v5010_v1  ;;  %2842 = vmatpush1.bf16.msra.mxu1 %v5020_v0 }
 0xf31   : > { %2802 = vmatprep.subr.bf16.mxu0 %v5015_v55  ;;  %2843 = vmatprep.subr.bf16.mxu1 %v5025_v59 }
 0xf34   : > { %2803 = vmatpush1.bf16.msra.mxu0 %v5030_v49  ;;  %2844 = vmatpush1.bf16.msra.mxu1 %v5040_v3 }
 0xf35   : > { %2804 = vmatprep.subr.bf16.mxu0 %v5035_v50  ;;  %2845 = vmatprep.subr.bf16.mxu1 %v5045_v25 }
 0xf38   : > { %2805 = vmatpush1.bf16.msra.mxu0 %v5050_v26  ;;  %2846 = vmatpush1.bf16.msra.mxu1 %v5058_v28 }
 0xf39   : > { %2913 = vmatprep.subr.bf16.mxu0 %v4901_v36  ;;  %2954 = vmatprep.subr.bf16.mxu1 %v4913_v7  ;;  %v2664_v7 = vld [vmem:[#allocation2 + $0xb0] sm:$0xff] }
 0xfee   : > { %v2701_v17 = vpop.f32.mrb[20].mxu0  ;;  %v2742_v43 = vpop.f32.mrb[20].mxu1 }
 0xfef   : > { %v2749_v20 = vadd.f32 %v2701_v17, %v2662_v48  ;;  %v2703_v23 = vpop.f32.mrb[21].mxu0  ;;  %v2744_v24 = vpop.f32.mrb[21].mxu1  ;;  %v2751_v57 = vadd.f32 %v2742_v43, %v2664_v7  ;;  %v3749_v7 = vld [vmem:[#allocation11 + $0x18] sm:$0xff]  }
 0xff0   : > { %v2750_v47 = vadd.f32 %v2703_v23, %v2663_v29  ;;  %v2705_v34 = vpop.f32.mrb[22].mxu0  ;;  %v2746_v41 = vpop.f32.mrb[22].mxu1  ;;  %v2752_v36 = vadd.f32 %v2744_v24, %v2665_v2  ;;  %v3747_v2 = vld [vmem:[#allocation11 + $0x8] sm:$0xff]  }
 0xff1   : > { %v3410_v53 = vmul.f32 -1.442695, %v2749_v20  ;;  %v2706_v51 = vpop.f32.mrb[23].mxu0  ;;  %v2747_v4 = vpop.f32.mrb[23].mxu1 }
 0xff2   : > { %v3411_v31 = vmul.f32 -1.442695, %v2750_v47  ;;  %v3412_v19 = vmul.f32 -1.442695, %v2752_v36  ;;  %v3746_v4 = vld [vmem:[#allocation11] sm:$0xff]   ;;  %v3748_v36 = vld [vmem:[#allocation11 + $0x10] sm:$0xff]  }
 0xff3   : > { %3834 = vpow2.f32 %v3410_v53 }
 0xff4   : > { %3836 = vpow2.f32 %v3411_v31  ;;  %v4102_v31 = vmov 0.0  }
 0xff5   : > { %3838 = vpow2.f32 %v3412_v19  ;;  %v3750_v19 = vld [vmem:[#allocation11 + $0x20] sm:$0xff]  }
 0xff6   : > { %3840 = vtanh.f32 %v2751_v57  ;;  %v3751_v57 = vld [vmem:[#allocation11 + $0x28] sm:$0xff]  }
 0xffd   : > { %v3835_v46 = vpop.eup %3834 }
 0xffe   : > { %v3837_v54 = vpop.eup %3836  ;;  %v2756_v14 = vadd.f32 1.0, %v3835_v46  ;;  %v3752_v46 = vld [vmem:[#allocation11 + $0x30] sm:$0xff]  }
 0xfff   : > { %v2762_v15 = vadd.f32 1.0, %v3837_v54  ;;  %v3839_v30 = vpop.eup %3838  ;;  %v3753_v54 = vld [vmem:[#allocation11 + $0x38] sm:$0xff]  }
0x1000   : > { %3842 = vrcp.f32 %v2756_v14  ;;  %v3841_v16 = vpop.eup %3840  ;;  %v2769_v9 = vadd.f32 1.0, %v3839_v30  ;;  %v2908_v14 = vld [vmem:[#allocation2 + $0xe0] sm:$0xff] }
0x1001   : > { %3844 = vrcp.f32 %v2762_v15  ;;  %v2909_v15 = vld [vmem:[#allocation2 + $0xe8] sm:$0xff] }
0x1002   : > { %3846 = vrcp.f32 %v2769_v9 }
0x100a   : > { %v3843_v60 = vpop.eup %3842 }
0x100b   : > { %v3845_v35 = vpop.eup %3844  ;;  %v2773_v40 = vmul.f32 %v3843_v60, %v3841_v16 }
0x100c   : > { %v2772_v27 = vmul.f32 %v3845_v35, %v5278_v33  ;;  %v3847_v17 = vpop.eup %3846 }
0x100e   : > { %v2774_v48 = vadd.f32 %v2773_v40, %v2772_v27 }
0x1010   : > { %3848 = vtanh.f32 %v2774_v48  ;;  %v5322_v29 = vsel %vm2781_vm5, %v2774_v48, %v5278_v33 }
0x101a   : > { %v3849_v43 = vpop.eup %3848 }
0x101b   : > { %v2776_v20 = vmul.f32 %v3849_v43, %v3847_v17 }
0x101d   : > { %v5325_v23 = vsel %vm2781_vm5, %v2776_v20, %v5281_v11  ;;  %v2911_v20 = vld [vmem:[#allocation2 + $0xf8] sm:$0xff] }
0x101e   : > { %v2789_v24 = vpack.c.bf16 %v5325_v23, %v5325_v23 }
0x1020   : > { %2823 = vmatmul.mubr.bf16.vlgmr.msra.gmra.mrb[24].mxu0 %v2789_v24  ;;  %2864 = vmatmul.mubr.bf16.vlgmr.msra.gmra.mrb[24].mxu1 %v2789_v24  ;;  %v2910_v24 = vld [vmem:[#allocation2 + $0xf0] sm:$0xff] }
0x1021   : > { %2914 = vmatpush1.bf16.msra.mxu0 %v4905_v37  ;;  %2955 = vmatpush1.bf16.msra.mxu1 %v4918_v63  ;;  %v2785_v37 = vld [vmem:[#allocation2 + $0xc0] sm:$0xff] }
0x1022   : > { %2915 = vmatprep.subr.bf16.mxu0 %v4909_v6  ;;  %2956 = vmatprep.subr.bf16.mxu1 %v4922_v8  ;;  %v2786_v6 = vld [vmem:[#allocation2 + $0xc8] sm:$0xff] }
0x1023   : > { %2945 = vmatprep.mubr.bf16.mxu0 %v4101_v44  ;;  %2986 = vmatprep.mubr.bf16.mxu1 %v4101_v44 }
0x1025   : > { %2916 = vmatpush1.bf16.msra.mxu0 %v4927_v38  ;;  %2957 = vmatpush1.bf16.msra.mxu1 %v4938_v39 }
0x1026   : > { %2917 = vmatprep.subr.bf16.mxu0 %v4933_v10  ;;  %2958 = vmatprep.subr.bf16.mxu1 %v4943_v42 }
0x1029   : > { %2918 = vmatpush1.bf16.msra.mxu0 %v4949_v12  ;;  %2959 = vmatpush1.bf16.msra.mxu1 %v4959_v18 }
0x102a   : > { %2919 = vmatprep.subr.bf16.mxu0 %v4954_v45  ;;  %2960 = vmatprep.subr.bf16.mxu1 %v4964_v21 }
0x102d   : > { %2920 = vmatpush1.bf16.msra.mxu0 %v4970_v22  ;;  %2961 = vmatpush1.bf16.msra.mxu1 %v4980_v58 }
0x102e   : > { %2921 = vmatprep.subr.bf16.mxu0 %v4975_v56  ;;  %2962 = vmatprep.subr.bf16.mxu1 %v4985_v52  ;;  %v2788_v56 = vld [vmem:[#allocation2 + $0xd8] sm:$0xff]  ;;  %v2787_v52 = vld [vmem:[#allocation2 + $0xd0] sm:$0xff] }
0x1031   : > { %2922 = vmatpush1.bf16.msra.mxu0 %v4990_v13  ;;  %2963 = vmatpush1.bf16.msra.mxu1 %v5000_v62 }
0x1032   : > { %2923 = vmatprep.subr.bf16.mxu0 %v4995_v61  ;;  %2964 = vmatprep.subr.bf16.mxu1 %v5005_v5 }
0x1035   : > { %2924 = vmatpush1.bf16.msra.mxu0 %v5010_v1  ;;  %2965 = vmatpush1.bf16.msra.mxu1 %v5020_v0 }
0x1036   : > { %2925 = vmatprep.subr.bf16.mxu0 %v5015_v55  ;;  %2966 = vmatprep.subr.bf16.mxu1 %v5025_v59 }
0x1039   : > { %2926 = vmatpush1.bf16.msra.mxu0 %v5030_v49  ;;  %2967 = vmatpush1.bf16.msra.mxu1 %v5040_v3 }
0x103a   : > { %2927 = vmatprep.subr.bf16.mxu0 %v5035_v50  ;;  %2968 = vmatprep.subr.bf16.mxu1 %v5045_v25  ;;  %v2903_v50 = vstv %s2902_s17 }
0x103b   : > { %vm2904_vm6 = vcmp.eq.s32.totalorder %v2903_v50, 1 }
0x103d   : > { %2928 = vmatpush1.bf16.msra.mxu0 %v5050_v26  ;;  %2969 = vmatpush1.bf16.msra.mxu1 %v5058_v28 }
0x103e   : > { %3443 = vmatprep.subr.bf16.mxu0 %v4102_v31 }
0x10f3   : > { %v2824_v63 = vpop.f32.mrb[24].mxu0  ;;  %v2865_v8 = vpop.f32.mrb[24].mxu1 }
0x10f4   : > { %v2872_v38 = vadd.f32 %v2824_v63, %v2785_v37  ;;  %v2826_v10 = vpop.f32.mrb[25].mxu0  ;;  %v2867_v39 = vpop.f32.mrb[25].mxu1  ;;  %v2874_v61 = vadd.f32 %v2865_v8, %v2787_v52 }
0x10f5   : > { %v2873_v42 = vadd.f32 %v2826_v10, %v2786_v6  ;;  %v2828_v44 = vpop.f32.mrb[26].mxu0  ;;  %v2869_v12 = vpop.f32.mrb[26].mxu1  ;;  %v2875_v58 = vadd.f32 %v2867_v39, %v2788_v56 }
0x10f6   : > { %v3413_v45 = vmul.f32 -1.442695, %v2872_v38  ;;  %v2829_v18 = vpop.f32.mrb[27].mxu0  ;;  %v2870_v21 = vpop.f32.mrb[27].mxu1  ;;  %v3026_v12 = vstv %s3025_s13 }
0x10f7   : > { %v3414_v22 = vmul.f32 -1.442695, %v2873_v42  ;;  %v3415_v13 = vmul.f32 -1.442695, %v2875_v58  ;;  %vm3027_vm8 = vcmp.eq.s32.totalorder %v3026_v12, 1 }
0x10f8   : > { %3850 = vpow2.f32 %v3413_v45 }
0x10f9   : > { %3852 = vpow2.f32 %v3414_v22 }
0x10fa   : > { %3854 = vpow2.f32 %v3415_v13 }
0x10fb   : > { %3856 = vtanh.f32 %v2874_v61 }
0x1102   : > { %v3851_v62 = vpop.eup %3850 }
0x1103   : > { %v3853_v5 = vpop.eup %3852  ;;  %v2879_v1 = vadd.f32 1.0, %v3851_v62 }
0x1104   : > { %v2885_v55 = vadd.f32 1.0, %v3853_v5  ;;  %v3855_v0 = vpop.eup %3854 }
0x1105   : > { %3858 = vrcp.f32 %v2879_v1  ;;  %v3857_v59 = vpop.eup %3856  ;;  %v2892_v26 = vadd.f32 1.0, %v3855_v0  ;;  %v3419_v1 = vld [vmem:[%s5429_s5] ss:$0 sm:$0xff] }
0x1106   : > { %3860 = vrcp.f32 %v2885_v55 }
0x1107   : > { %3862 = vrcp.f32 %v2892_v26 }
0x110f   : > { %v3859_v49 = vpop.eup %3858 }
0x1110   : > { %v3861_v3 = vpop.eup %3860  ;;  %v2896_v25 = vmul.f32 %v3859_v49, %v3857_v59 }
0x1111   : > { %v2895_v28 = vmul.f32 %v3861_v3, %v5322_v29  ;;  %v3863_v47 = vpop.eup %3862 }
0x1113   : > { %v2897_v33 = vadd.f32 %v2896_v25, %v2895_v28 }
0x1115   : > { %3864 = vtanh.f32 %v2897_v33  ;;  %v5364_v11 = vsel %vm2904_vm6, %v2897_v33, %v5322_v29 }
0x111f   : > { %v3865_v34 = vpop.eup %3864 }
0x1120   : > { %v2899_v41 = vmul.f32 %v3865_v34, %v3863_v47 }
0x1122   : > { %v5367_v53 = vsel %vm2904_vm6, %v2899_v41, %v5325_v23 }
0x1123   : > { %v2912_v51 = vpack.c.bf16 %v5367_v53, %v5367_v53 }
0x1125   : > { %2946 = vmatmul.mubr.bf16.vlgmr.msra.gmra.mrb[28].mxu0 %v2912_v51  ;;  %2987 = vmatmul.mubr.bf16.vlgmr.msra.gmra.mrb[28].mxu1 %v2912_v51 }
0x1126   : > { %3444 = vmatpush3.bf16.msra.mxu0 %v3746_v4  ;;  %3459 = vmatprep.mubr.msk.bf16.mxu0 %vm4103_vm7, %v4102_v31 }
0x1127   : > { %3445 = vmatprep.subr.bf16.mxu0 %v4102_v31 }
0x112a   : > { %3446 = vmatpush3.bf16.msra.mxu0 %v3747_v2 }
0x112b   : > { %3447 = vmatprep.subr.bf16.mxu0 %v4102_v31 }
0x112e   : > { %3448 = vmatpush3.bf16.msra.mxu0 %v3748_v36 }
0x112f   : > { %3449 = vmatprep.subr.bf16.mxu0 %v4102_v31 }
0x1132   : > { %3450 = vmatpush3.bf16.msra.mxu0 %v3749_v7 }
0x1133   : > { %3451 = vmatprep.subr.bf16.mxu0 %v4102_v31 }
0x1136   : > { %3452 = vmatpush3.bf16.msra.mxu0 %v3750_v19 }
0x1137   : > { %3453 = vmatprep.subr.bf16.mxu0 %v4102_v31 }
0x113a   : > { %3454 = vmatpush3.bf16.msra.mxu0 %v3751_v57 }
0x113b   : > { %3455 = vmatprep.subr.bf16.mxu0 %v4102_v31 }
0x113e   : > { %3456 = vmatpush3.bf16.msra.mxu0 %v3752_v46 }
0x113f   : > { %3457 = vmatprep.subr.bf16.mxu0 %v4102_v31 }
0x1142   : > { %3458 = vmatpush3.bf16.msra.mxu0 %v3753_v54 }
0x11f8   : > { %v2947_v30 = vpop.f32.mrb[28].mxu0  ;;  %v2988_v16 = vpop.f32.mrb[28].mxu1 }
0x11f9   : > { %v2995_v60 = vadd.f32 %v2947_v30, %v2908_v14  ;;  %v2949_v32 = vpop.f32.mrb[29].mxu0  ;;  %v2990_v35 = vpop.f32.mrb[29].mxu1  ;;  %v2997_v6 = vadd.f32 %v2988_v16, %v2910_v24 }
0x11fa   : > { %v2996_v40 = vadd.f32 %v2949_v32, %v2909_v15  ;;  %v2951_v9 = vpop.f32.mrb[30].mxu0  ;;  %v2992_v27 = vpop.f32.mrb[30].mxu1  ;;  %v2998_v23 = vadd.f32 %v2990_v35, %v2911_v20 }
0x11fb   : > { %v3416_v48 = vmul.f32 -1.442695, %v2995_v60  ;;  %v2952_v29 = vpop.f32.mrb[31].mxu0  ;;  %v2993_v17 = vpop.f32.mrb[31].mxu1 }
0x11fc   : > { %v3417_v43 = vmul.f32 -1.442695, %v2996_v40  ;;  %v3418_v37 = vmul.f32 -1.442695, %v2998_v23 }
0x11fd   : > { %3866 = vpow2.f32 %v3416_v48 }
0x11fe   : > { %3868 = vpow2.f32 %v3417_v43 }
0x11ff   : > { %3870 = vpow2.f32 %v3418_v37 }
0x1200   : > { %3872 = vtanh.f32 %v2997_v6 }
0x1207   : > { %v3867_v63 = vpop.eup %3866 }
0x1208   : > { %v3869_v8 = vpop.eup %3868  ;;  %v3002_v38 = vadd.f32 1.0, %v3867_v63 }
0x1209   : > { %v3008_v10 = vadd.f32 1.0, %v3869_v8  ;;  %v3871_v39 = vpop.eup %3870 }
0x120a   : > { %3874 = vrcp.f32 %v3002_v38  ;;  %v3873_v42 = vpop.eup %3872  ;;  %v3015_v21 = vadd.f32 1.0, %v3871_v39 }
0x120b   : > { %3876 = vrcp.f32 %v3008_v10 }
0x120c   : > { %3878 = vrcp.f32 %v3015_v21 }
0x1214   : > { %v3875_v44 = vpop.eup %3874 }
0x1215   : > { %v3877_v45 = vpop.eup %3876  ;;  %v3019_v18 = vmul.f32 %v3875_v44, %v3873_v42 }
0x1216   : > { %v3018_v22 = vmul.f32 %v3877_v45, %v5364_v11  ;;  %v3879_v52 = vpop.eup %3878 }
0x1218   : > { %v3020_v56 = vadd.f32 %v3019_v18, %v3018_v22 }
0x121a   : > { %3880 = vtanh.f32 %v3020_v56  ;;  %v3029_v58 = vsel %vm3027_vm8, %v3020_v56, %v5364_v11 }
0x121b   : > { %3031 = vst [vmem:[#allocation4] sm:$0xff] %v3029_v58 }
0x1224   : > { %v3881_v13 = vpop.eup %3880 }
0x1225   : > { %v3022_v61 = vmul.f32 %v3881_v13, %v3879_v52 }
0x1227   : > { %v3028_v62 = vsel %vm3027_vm8, %v3022_v61, %v5367_v53 }
0x1228   : > { %3030 = vst [vmem:[#allocation3] sm:$0xff] %v3028_v62  ;;  %v3033_v5 = vpack.c.bf16 %v3028_v62, %v3028_v62 }
0x122a   : > { %3460 = vmatmul.mubr.bf16.vlgmr.msra.gmra.mrb[32].mxu0 %v3033_v5 }
0x12fd   : > { %v3139_v55 = vpop.f32.mrb[32].mxu0 }
0x12fe   : > { %v3140_v0 = vadd.f32 %v3419_v1, %v3139_v55  ;;  %v3461_v59 = vpop.f32.mrb[33].mxu0 }
0x12ff   : > { %v3142_v49 = vpop.f32.mrb[34].mxu0 }
0x1300   : > { %v3428_v50 = vmul.f32 -1.442695, %v3140_v0  ;;  %v3462_v3 = vpop.f32.mrb[35].mxu0 }
0x1302   : > { %3882 = vpow2.f32 %v3428_v50 }
0x130c   : > { %v3883_v25 = vpop.eup %3882 }
0x130d   : > { %v3148_v26 = vadd.f32 1.0, %v3883_v25 }
0x130f   : > { %3884 = vrcp.f32 %v3148_v26 }
0x1319   : > { %v3885_v28 = vpop.eup %3884 }
0x131a   : > { %3151 = vst [vmem:[#allocation13] sm:$0xff] %v3885_v28 }
0x131b PF: > { %s5544_s30 = sadd.s32 4294967295, %s4088_s26   ;;  %s4104_s11 = smov [#allocation13]  }
0x131c   : > { %p5380_p3 = scmp.eq.s32.totalorder %s5544_s30, 1  ;;  %s3161_s10 = sshll.u32 %s4104_s11, 4  ;;  %s3162_s10 = int_to_ptr.vmem [resolvable:$true] %s3161_s10 }
0x131d   : > { %s4000_s20 = scalar_lea.vmem %s3162_s10, 128  ;;  %p4007_p4 = scmp.lt.s32.totalorder %s3162_s10, %s3162_s10 }
0x131e   : > { %p4001_p8 = scmp.ne.s32.totalorder %s3162_s10, %s4000_s20  ;;  %p4008_p5 = scmp.lt.s32.totalorder %s4000_s20, %s4000_s20 }
0x1320   : > { %p4002_p11 = pnand %p4001_p8, %p5380_p3  ;;  %p4009_p9 = por %p4008_p5, %p4007_p4 }
0x1322   : > { %p4003_p7 = pneg %p4002_p11 }
0x1324   : > { %p4010_p12 = pnand %p4009_p9, %p4003_p7 }
0x1326   : > { %4013 = shalt.err (!%p4010_p12)
}
0x1327   : > { %s4014_s12 = scalar_lea.hbm %s5430_s6, 128 }
0x1328   : > { %p4015_p13 = scmp.ne.s32.totalorder %s5430_s6, %s4014_s12  ;;  %p4020_p6 = scmp.lt.u32.totalorder %s4014_s12, %s5430_s6 }
0x132a   : > { %p4016_p0 = pnand %p4015_p13, %p5380_p3 }
0x132c   : > { %p4017_p2 = pneg %p4016_p0 }
0x132e   : > { %p4022_p10 = pnand %p4020_p6, %p4017_p2 }
0x1330   : > { %4025 = shalt.err (!%p4022_p10)
}
0x1331   : > { %3478 = dma.vmem_to_hbm [thread:$0]  (%p5380_p3), %s3162_s10, 128, %s5430_s6, [#allocation7]  }
0x1332   : > { %4063 = dma.done.wait (%p5380_p3), [#allocation7], 128  }
0x1333   : > { %4065 = vsyncadd (%p5380_p3), [#allocation7], 4294967168 }
0x1334 PF: > { %s22_s26 = sadd.s32 1, %s4088_s26   ;;  %s5546_s18 = smov %s4289_s21 }
0x1335   : > { %p19_p1 = scmp.ge.s32.totalorder %s22_s26, 4   ;;  %s5547_s21 = smov %s4072_s22 }
0x1336   : > { %s5548_s22 = smov %s4076_s23  ;;  %s5549_s23 = smov %s5546_s18 }
0x1337   : > { %s5550_s24 = smov %s4084_s25  ;;  %s5551_s25 = smov %s5553_s27 }
0x1338   :  { %21 = sbr.rel (!%p19_p1) target bundleno = 7 (0x7), region = 120 }
0x133f   :  { %3174 = vsyncpa [#allocation6], 1 }
0x1340   :  { %3176 = vsyncpa [#allocation6 + $0x1], 1 }
0x1341   :  { %3177 = vsyncpa [#allocation9], 1 }
0x1342   :  { %3178 = vsyncpa [#allocation12], 1 }
0x1343   :  { %3179 = vsyncpa [#allocation7], 1 }
0x1344   :  { %3181 = vsyncpa [#allocation7 + $0x1], 1 }

// kernel: tpu_custom_call.1
= control target key start
LH: loop header
LB: loop body
LE: loop exit
PB: predicated region body
PF: predicated region fallthrough
CT: control target
= control target key end

     0   :  { %11 = vsyncpa [#allocation6], 0  ;;  %s5424_s0 = inlined_call_operand.hbm [shape: bf16[16,8,128], index: 0, kind: input, shape index: {}]   ;;  %s5425_s1 = inlined_call_operand.hbm [shape: bf16[128,512], index: 1, kind: input, shape index: {}]   ;;  %s5426_s2 = inlined_call_operand.hbm [shape: bf16[128,512], index: 2, kind: input, shape index: {}]   ;;  %s5427_s3 = inlined_call_operand.vmem [shape: f32[1,512], index: 3, kind: input, shape index: {}]   ;;  %s5428_s4 = inlined_call_operand.hbm [shape: bf16[128,128], index: 4, kind: input, shape index: {}]   ;;  %s5429_s5 = inlined_call_operand.vmem [shape: f32[1,128], index: 5, kind: input, shape index: {}]   ;;  %s5430_s6 = inlined_call_operand.hbm [shape: f32[8,128], index: 6, kind: output, shape index: {}]  }
   0x1   :  { %13 = vsyncpa [#allocation6 + $0x1], 0 }
   0x2   :  { %14 = vsyncpa [#allocation9], 0 }
   0x3   :  { %15 = vsyncpa [#allocation12], 0 }
   0x4   :  { %16 = vsyncpa [#allocation7], 0  ;;  %s4140_s21 = smov 0   ;;  %s4142_s22 = smov 0  }
   0x5   :  { %s4144_s23 = smov 0   ;;  %s4146_s24 = smov 0  }
   0x6   :  { %s4148_s25 = smov 0   ;;  %s4150_s26 = smov 0  }
   0x7 LB: > { %s5433_s27 = sadd.s32 4294967295, %s4088_s26   ;;  %p56_p0 = scmp.ne.s32.totalorder %s4072_s22, %s4068_s21  ;;  %s4088_s26 = sphi %s4150_s26, %s22_s26   ;;  %s4084_s25 = sphi %s4148_s25, %s5551_s25   ;;  %s4080_s24 = sphi %s4146_s24, %s5550_s24   ;;  %s4076_s23 = sphi %s4144_s23, %s5549_s23   ;;  %s4072_s22 = sphi %s4142_s22, %s5548_s22   ;;  %s4068_s21 = sphi %s4140_s21, %s5547_s21  }
   0x8   : > { %p4172_p1 = scmp.eq.s32.totalorder %s5433_s27, 0  ;;  %p3254_p2 = scmp.ge.s32.totalorder %s4088_s26, 1 }
   0x9   : > { %p198_p3 = scmp.lt.s32.totalorder %s4088_s26, 3  ;;  %s4090_s7 = smov [#allocation8]  }
   0xa   : > { %s5486_s28 = scalar_select %p4172_p1, 1, 0 }
   0xb   : > { %p4180_p4 = por %p4172_p1, %p56_p0  ;;  %p4184_p5 = pnand %p3254_p2, %p198_p3 }
   0xc   : > { %s210_s8 = sshll.u32 %s4090_s7, 4  ;;  %s4091_s10 = smov [#allocation10]   ;;  %s4188_s8 = int_to_ptr.vmem [resolvable:$true] %s210_s8 }
   0xd   : > { %s5487_s29 = scalar_select %p4180_p4, 1, 0 }
   0xe   : > { %s5488_s30 = scalar_select %p4184_p5, 1, 0 }
   0xf   : > { %p3481_p6 = pneg %p4184_p5  ;;  %s223_s11 = sshll.u32 %s4091_s10, 4  ;;  %s4198_s11 = int_to_ptr.vmem [resolvable:$true] %s223_s11 }
  0x10   : > { %s4092_s12 = smov [#allocation11]   ;;  %s3886_s16 = scalar_lea.hbm %s5425_s1, 4096 }
  0x11   : > { %p4194_p7 = pnand %p3481_p6, %p4172_p1  ;;  %s4200_s13 = sshll.u32 %s4092_s12, 4  ;;  %s240_s13 = int_to_ptr.vmem [resolvable:$true] %s4200_s13 }
  0x12   : > { %p3887_p8 = scmp.ne.s32.totalorder %s5425_s1, %s3886_s16  ;;  %p3893_p12 = scmp.lt.u32.totalorder %s3886_s16, %s5425_s1 }
  0x13   : > { %p4210_p9 = pneg %p4194_p7 }
  0x15   : > { %p3889_p10 = pnand %p4210_p9, %p3887_p8 }
  0x17   : > { %p3890_p11 = pneg %p3889_p10 }
  0x19   : > { %p3895_p13 = pnand %p3893_p12, %p3890_p11 }
  0x1b   : > { %3898 = shalt.err (!%p3895_p13)
}
  0x1c   : > { %s3899_s7 = scalar_lea.vmem %s4188_s8, 4096  ;;  %p3907_p6 = scmp.lt.s32.totalorder %s4188_s8, %s4188_s8 }
  0x1d   : > { %p3900_p0 = scmp.ne.s32.totalorder %s4188_s8, %s3899_s7  ;;  %p3908_p1 = scmp.lt.s32.totalorder %s3899_s7, %s3899_s7 }
  0x1f   : > { %p3902_p2 = pnand %p3900_p0, %p4210_p9  ;;  %p3909_p8 = por %p3908_p1, %p3907_p6 }
  0x21   : > { %p3903_p3 = pneg %p3902_p2 }
  0x23   : > { %p3910_p10 = pnand %p3909_p8, %p3903_p3 }
  0x25   : > { %3913 = shalt.err (!%p3910_p10)
}
  0x26   : > { %s4093_s10 = smov 256   ;;  %s4094_s12 = smov 16  }
  0x27   : > { %3484 = dma.hbm_to_vmem [thread:$0]  (!%p4194_p7), %s5425_s1, 4096, %s4188_s8, [#allocation9], %s4093_s10, %s4093_s10, %s4094_s12  }
  0x28   : > { %s3914_s18 = scalar_lea.hbm %s5426_s2, 4096 }
  0x29   : > { %p3915_p1 = scmp.ne.s32.totalorder %s5426_s2, %s3914_s18  ;;  %p3921_p13 = scmp.lt.u32.totalorder %s3914_s18, %s5426_s2 }
  0x2b   : > { %p3917_p11 = pnand %p3915_p1, %p4210_p9 }
  0x2d   : > { %p3918_p12 = pneg %p3917_p11 }
  0x2f   : > { %p3923_p0 = pnand %p3921_p13, %p3918_p12 }
  0x31   : > { %3926 = shalt.err (!%p3923_p0)
}
  0x32   : > { %s3927_s8 = scalar_lea.vmem %s4198_s11, 4096  ;;  %p3935_p8 = scmp.lt.s32.totalorder %s4198_s11, %s4198_s11 }
  0x33   : > { %p3928_p2 = scmp.ne.s32.totalorder %s4198_s11, %s3927_s8  ;;  %p3936_p10 = scmp.lt.s32.totalorder %s3927_s8, %s3927_s8 }
  0x35   : > { %p3930_p3 = pnand %p3928_p2, %p4210_p9  ;;  %p3937_p1 = por %p3936_p10, %p3935_p8 }
  0x37   : > { %p3931_p6 = pneg %p3930_p3 }
  0x39   : > { %p3938_p11 = pnand %p3937_p1, %p3931_p6 }
  0x3b   : > { %3941 = shalt.err (!%p3938_p11)
}
  0x3c   : > { %3487 = dma.hbm_to_vmem [thread:$0]  (!%p4194_p7), %s5426_s2, 4096, %s4198_s11, [#allocation9], %s4093_s10, %s4093_s10, %s4094_s12  }
  0x3d   : > { %s3942_s17 = scalar_lea.hbm %s5428_s4, 1024 }
  0x3e   : > { %p3943_p12 = scmp.ne.s32.totalorder %s5428_s4, %s3942_s17  ;;  %p3949_p2 = scmp.lt.u32.totalorder %s3942_s17, %s5428_s4 }
  0x40   : > { %p3945_p13 = pnand %p3943_p12, %p4210_p9 }
  0x42   : > { %p3946_p0 = pneg %p3945_p13 }
  0x44   : > { %p3951_p3 = pnand %p3949_p2, %p3946_p0 }
  0x46   : > { %3954 = shalt.err (!%p3951_p3)
}
  0x47   : > { %s3955_s8 = scalar_lea.vmem %s240_s13, 1024  ;;  %p3963_p1 = scmp.lt.s32.totalorder %s240_s13, %s240_s13 }
  0x48   : > { %p3956_p6 = scmp.ne.s32.totalorder %s240_s13, %s3955_s8  ;;  %p3964_p11 = scmp.lt.s32.totalorder %s3955_s8, %s3955_s8 }
  0x4a   : > { %p3958_p8 = pnand %p3956_p6, %p4210_p9  ;;  %p3965_p4 = por %p3964_p11, %p3963_p1 }
  0x4c   : > { %p3959_p10 = pneg %p3958_p8 }
  0x4e   : > { %p3966_p5 = pnand %p3965_p4, %p3959_p10 }
  0x50   : > { %3969 = shalt.err (!%p3966_p5)
}
  0x51   : > { %s4095_s11 = smov 64   ;;  %s4096_s10 = smov 4  }
  0x52   : > { %3490 = dma.hbm_to_vmem [thread:$0]  (!%p4194_p7), %s5428_s4, 1024, %s240_s13, [#allocation12], %s4095_s11, %s4095_s11, %s4096_s10  }
  0x53   : > { %s31_s27 = sadd.s32 1, %s4084_s25  ;;  %p50_p4 = scmp.ne.s32.totalorder %s4076_s23, %s4072_s22 }
  0x54   : > { %p32_p5 = scmp.ge.s32.totalorder %s31_s27, 2  ;;  %p51_p9 = scmp.eq.s32.totalorder %s4088_s26, 0 }
  0x55   : > { %s43_s14 = sadd.s32 1, %s4076_s23  ;;  %s256_s15 = sand.u32 1, %s4076_s23  }
  0x56   : > { %s5553_s27 = smov (%p32_p5, %s31_s27), 0  ;;  %p52_p12 = por %p51_p9, %p50_p4 }
  0x57   : > { %p3498_p13 = scmp.lt.s32.totalorder %s4088_s26, 2  ;;  %s38_s9 = ssub.s32 %s4084_s25, %s5553_s27 }
  0x58   : > { %s3259_s16 = sshll.u32 %s256_s15, 5  ;;  %p41_p0 = scmp.eq.s32.totalorder %s38_s9, 0 }
  0x59   : > { %s3433_s17 = sshll.u32 %s4084_s25, 9  ;;  %s260_s18 = scalar_lea.vmem [#allocation5], %s3259_s16 }
  0x5a   : > { %s268_s20 = sshll.u32 %s260_s18, 4  ;;  %s4294_s8 = scalar_lea.hbm %s5424_s0, %s3433_s17  ;;  %s4296_s20 = int_to_ptr.vmem [resolvable:$true] %s268_s20 }
  0x5b   : > { %s4289_s21 = scalar_select %p41_p0, %s4076_s23, %s43_s14  }
  0x5c   : > { %p4298_p7 = pnand %p3498_p13, %p52_p12  ;;  %s4302_s12 = scalar_lea.sflag [#allocation6], %s256_s15 }
  0x5d   : > { %s3970_s14 = scalar_lea.hbm %s4294_s8, 512  ;;  %s3975_s17 = scalar_lea.hbm %s5424_s0, 1024 }
  0x5e   : > { %p3971_p2 = scmp.ne.s32.totalorder %s4294_s8, %s3970_s14  ;;  %p3972_p3 = pneg %p4298_p7 }
  0x5f   : > { %p3976_p10 = scmp.lt.u32.totalorder %s4294_s8, %s5424_s0  ;;  %p3977_p1 = scmp.lt.u32.totalorder %s3975_s17, %s3970_s14 }
  0x60   : > { %p3973_p6 = pnand %p3972_p3, %p3971_p2  ;;  %p3979_p4 = scmp.lt.u32.totalorder %s3970_s14, %s4294_s8 }
  0x61   : > { %p3978_p11 = por %p3977_p1, %p3976_p10 }
  0x62   : > { %p3974_p8 = pneg %p3973_p6 }
  0x63   : > { %p3980_p5 = por %p3979_p4, %p3978_p11 }
  0x65   : > { %p3981_p9 = pnand %p3980_p5, %p3974_p8 }
  0x67   : > { %3984 = shalt.err (!%p3981_p9)
}
  0x68   : > { %s3985_s15 = scalar_lea.vmem %s4296_s20, 512  ;;  %s4097_s7 = smov [#allocation5]  }
  0x69   : > { %p3986_p12 = scmp.ne.s32.totalorder %s4296_s20, %s3985_s15  ;;  %s3990_s9 = sshll.u32 %s4097_s7, 4  ;;  %s3991_s9 = int_to_ptr.vmem [resolvable:$false] %s3990_s9 }
  0x6a   : > { %s3992_s16 = scalar_lea.vmem %s3991_s9, 1024  ;;  %p3993_p2 = scmp.lt.s32.totalorder %s4296_s20, %s3991_s9 }
  0x6b   : > { %p3988_p13 = pnand %p3986_p12, %p3972_p3  ;;  %p3994_p6 = scmp.lt.s32.totalorder %s3992_s16, %s3985_s15 }
  0x6d   : > { %p3989_p0 = pneg %p3988_p13  ;;  %p3995_p10 = por %p3994_p6, %p3993_p2 }
  0x6f   : > { %p3996_p1 = pnand %p3995_p10, %p3989_p0 }
  0x71   : > { %3999 = shalt.err (!%p3996_p1)
}
  0x72   : > { %3494 = dma.hbm_to_vmem [thread:$0]  (!%p4298_p7), %s4294_s8, 512, %s4296_s20, %s4302_s12, %s4095_s11, %s4095_s11, %s4096_s10  }
  0x73   : > { %p5492_p3 = scmp.ne.s32.totalorder %s5488_s30, 0 }
  0x75   : > { %280 = sbr.rel (%p5492_p3) target bundleno = 4916 (0x1334), region = 44 }
  0x7c   : > { %s282_s14 = sand.u32 1, %s4072_s22   ;;  %p5493_p8 = scmp.ne.s32.totalorder %s5487_s29, 0 }
  0x7d   : > { %s3263_s17 = sshll.u32 %s282_s14, 5  ;;  %s283_s18 = scalar_lea.sflag [#allocation6], %s282_s14 }
  0x7e   : > { %s4336_s13 = scalar_lea.vmem [#allocation5], %s3263_s17 }
  0x7f   : > { %4051 = dma.done.wait (%p5493_p8), %s283_s18, 512  }
  0x80   : > { %4053 = vsyncadd (%p5493_p8), %s283_s18, 4294966784  ;;  %p5494_p11 = scmp.ne.s32.totalorder %s5486_s28, 0 }
  0x82   : > { %4055 = dma.done.wait (%p5494_p11), [#allocation9], 8192  }
  0x83   : > { %4057 = vsyncadd (%p5494_p11), [#allocation9], 4294959104 }
  0x84   : > { %4059 = dma.done.wait (%p5494_p11), [#allocation12], 1024  }
  0x85   : > { %4061 = vsyncadd (%p5494_p11), [#allocation12], 4294966272  ;;  %p3267_p7 = scmp.ne.s32.totalorder %s4080_s24, 0 }
  0x86   : > { %v4098_v0 = vmov (!%p3267_p7), 0.0  }
  0x87   : > { %327 = sbr.rel (%p3267_p7) target bundleno = 142 (0x8e), region = 64  ;;  %328 = vst [vmem:[#allocation3] sm:$0xff] (!%p3267_p7), %v4098_v0  ;;  %329 = vst [vmem:[#allocation4] sm:$0xff] (!%p3267_p7), %v4098_v0 }
  0x8e PF: > { %v3566_v1 = vld [vmem:[#allocation8 + $0x4] ss:$16 sps:$4 sm:$0xff]   ;;  %v3568_v2 = vld [vmem:[#allocation8 + $0xc] ss:$16 sps:$4 sm:$0xff]   ;;  %v4099_v3 = vmov 0   ;;  %s4370_s28 = sshll.u32 %s4080_s24, 3 }
  0x8f   : > { %608 = vmatprep.mubr.bf16.mxu0 %v4099_v3  ;;  %681 = vmatprep.mubr.bf16.mxu1 %v4099_v3  ;;  %v3570_v4 = vld [vmem:[#allocation8] ss:$16 sps:$4 sm:$0xff]   ;;  %v3571_v5 = vld [vmem:[#allocation8 + $0x8] ss:$16 sps:$4 sm:$0xff]   ;;  %v3572_v6 = vld [vmem:[#allocation8 + $0x24] ss:$16 sps:$4 sm:$0xff]  }
  0x90   : > { %576 = vmatprep.subr.bf16.mxu0 %v3566_v1  ;;  %649 = vmatprep.subr.bf16.mxu1 %v3568_v2  ;;  %v3574_v7 = vld [vmem:[#allocation8 + $0x2c] ss:$16 sps:$4 sm:$0xff]   ;;  %v3576_v8 = vld [vmem:[#allocation8 + $0x20] ss:$16 sps:$4 sm:$0xff]   ;;  %v3577_v9 = vld [vmem:[#allocation8 + $0x28] ss:$16 sps:$4 sm:$0xff]  }
  0x91   : > { %577 = vmatpush1.bf16.msra.mxu0 %v3570_v4  ;;  %650 = vmatpush1.bf16.msra.mxu1 %v3571_v5  ;;  %v3578_v10 = vld [vmem:[#allocation8 + $0x44] ss:$16 sps:$4 sm:$0xff]   ;;  %v3580_v11 = vld [vmem:[#allocation8 + $0x4c] ss:$16 sps:$4 sm:$0xff]   ;;  %v3582_v12 = vld [vmem:[#allocation8 + $0x40] ss:$16 sps:$4 sm:$0xff]  }
  0x92   : > { %578 = vmatprep.subr.bf16.mxu0 %v3572_v6  ;;  %651 = vmatprep.subr.bf16.mxu1 %v3574_v7  ;;  %v3583_v13 = vld [vmem:[#allocation8 + $0x48] ss:$16 sps:$4 sm:$0xff]   ;;  %v3584_v14 = vld [vmem:[#allocation8 + $0x64] ss:$16 sps:$4 sm:$0xff]   ;;  %v3586_v15 = vld [vmem:[#allocation8 + $0x6c] ss:$16 sps:$4 sm:$0xff]   ;;  %v372_v6 = vlaneseq }
  0x93   : > { %v3588_v16 = vld [vmem:[#allocation8 + $0x60] ss:$16 sps:$4 sm:$0xff]   ;;  %v3589_v17 = vld [vmem:[#allocation8 + $0x68] ss:$16 sps:$4 sm:$0xff]   ;;  %v3590_v18 = vld [vmem:[#allocation8 + $0x84] ss:$16 sps:$4 sm:$0xff]  }
  0x94   : > { %v3592_v19 = vld [vmem:[#allocation8 + $0x8c] ss:$16 sps:$4 sm:$0xff]   ;;  %v3594_v20 = vld [vmem:[#allocation8 + $0x80] ss:$16 sps:$4 sm:$0xff]   ;;  %v3595_v21 = vld [vmem:[#allocation8 + $0x88] ss:$16 sps:$4 sm:$0xff]  }
  0x95   : > { %579 = vmatpush1.bf16.msra.mxu0 %v3576_v8  ;;  %652 = vmatpush1.bf16.msra.mxu1 %v3577_v9  ;;  %v3596_v22 = vld [vmem:[#allocation8 + $0xa4] ss:$16 sps:$4 sm:$0xff]   ;;  %v3598_v23 = vld [vmem:[#allocation8 + $0xac] ss:$16 sps:$4 sm:$0xff]   ;;  %v3600_v24 = vld [vmem:[#allocation8 + $0xa0] ss:$16 sps:$4 sm:$0xff]  }
  0x96   : > { %580 = vmatprep.subr.bf16.mxu0 %v3578_v10  ;;  %653 = vmatprep.subr.bf16.mxu1 %v3580_v11  ;;  %v3601_v25 = vld [vmem:[#allocation8 + $0xa8] ss:$16 sps:$4 sm:$0xff]   ;;  %v3602_v26 = vld [vmem:[#allocation8 + $0xc4] ss:$16 sps:$4 sm:$0xff]   ;;  %v3604_v27 = vld [vmem:[#allocation8 + $0xcc] ss:$16 sps:$4 sm:$0xff]  }
  0x97   : > { %v3606_v28 = vld [vmem:[#allocation8 + $0xc0] ss:$16 sps:$4 sm:$0xff]   ;;  %v3607_v29 = vld [vmem:[#allocation8 + $0xc8] ss:$16 sps:$4 sm:$0xff]   ;;  %v3608_v30 = vld [vmem:[#allocation8 + $0xe4] ss:$16 sps:$4 sm:$0xff]  }
  0x98   : > { %v3610_v31 = vld [vmem:[#allocation8 + $0xec] ss:$16 sps:$4 sm:$0xff]   ;;  %v3612_v32 = vld [vmem:[#allocation8 + $0xe0] ss:$16 sps:$4 sm:$0xff]   ;;  %v3613_v33 = vld [vmem:[#allocation8 + $0xe8] ss:$16 sps:$4 sm:$0xff]  }
  0x99   : > { %581 = vmatpush1.bf16.msra.mxu0 %v3582_v12  ;;  %654 = vmatpush1.bf16.msra.mxu1 %v3583_v13  ;;  %v3614_v34 = vld [vmem:[%s4336_s13] sm:$0xff]   ;;  %v3615_v35 = vld [vmem:[%s4336_s13 + $0x8] sm:$0xff]   ;;  %v3616_v36 = vld [vmem:[%s4336_s13 + $0x10] sm:$0xff]   ;;  %v373_v7 = vshrl.u32 %v372_v6, 7  ;;  %p3305_p4 = scmp.ge.s32.totalorder %s4080_s24, 1 }
  0x9a   : > { %582 = vmatprep.subr.bf16.mxu0 %v3584_v14  ;;  %655 = vmatprep.subr.bf16.mxu1 %v3586_v15  ;;  %v3617_v37 = vld [vmem:[%s4336_s13 + $0x18] sm:$0xff]   ;;  %v4363_v38 = vld [vmem:[#allocation10] sm:$0xff]  ;;  %v4365_v39 = vld [vmem:[#allocation10 + $0x8] sm:$0xff] }
  0x9b   : > { %v4367_v40 = vld [vmem:[#allocation10 + $0x10] sm:$0xff]  ;;  %v4372_v41 = vld [vmem:[#allocation10 + $0x18] sm:$0xff]  ;;  %v4374_v42 = vld [vmem:[#allocation10 + $0x20] sm:$0xff]  ;;  %v374_v8 = vsub.s32 0, %v373_v7  ;;  %v382_v9 = vsub.s32 2, %v373_v7  ;;  %v378_v11 = vsub.s32 1, %v373_v7 }
  0x9c   : > { %v4376_v43 = vld [vmem:[#allocation10 + $0x28] sm:$0xff]  ;;  %v4378_v44 = vld [vmem:[#allocation10 + $0x30] sm:$0xff]  ;;  %v4380_v45 = vld [vmem:[#allocation10 + $0x38] sm:$0xff]  ;;  %v386_v12 = vsub.s32 3, %v373_v7 }
  0x9d   : > { %583 = vmatpush1.bf16.msra.mxu0 %v3588_v16  ;;  %656 = vmatpush1.bf16.msra.mxu1 %v3589_v17  ;;  %v4382_v46 = vld [vmem:[#allocation10 + $0x40] sm:$0xff]  ;;  %v4384_v47 = vld [vmem:[#allocation10 + $0x48] sm:$0xff]  ;;  %v4386_v48 = vld [vmem:[#allocation10 + $0x50] sm:$0xff] }
  0x9e   : > { %584 = vmatprep.subr.bf16.mxu0 %v3590_v18  ;;  %657 = vmatprep.subr.bf16.mxu1 %v3592_v19  ;;  %5495 = vst [vmem:[#allocation18_spill] sm:$0xff] %v4382_v46  ;;  %5496 = vst [vmem:[#allocation19_spill] sm:$0xff] %v4384_v47  ;;  %v4388_v49 = vld [vmem:[#allocation10 + $0x58] sm:$0xff]  ;;  %v4390_v50 = vld [vmem:[#allocation10 + $0x60] sm:$0xff] }
  0x9f   : > { %5497 = vst [vmem:[#allocation20_spill] sm:$0xff] %v4386_v48  ;;  %5498 = vst [vmem:[#allocation21_spill] sm:$0xff] %v4388_v49  ;;  %v4392_v51 = vld [vmem:[#allocation10 + $0x68] sm:$0xff]  ;;  %v4394_v52 = vld [vmem:[#allocation10 + $0x70] sm:$0xff] }
  0xa0   : > { %5499 = vst [vmem:[#allocation22_spill] sm:$0xff] %v4390_v50  ;;  %5500 = vst [vmem:[#allocation23_spill] sm:$0xff] %v4392_v51  ;;  %v4396_v53 = vld [vmem:[#allocation10 + $0x78] sm:$0xff]  ;;  %v4398_v54 = vld [vmem:[#allocation10 + $0x80] sm:$0xff] }
  0xa1   : > { %585 = vmatpush1.bf16.msra.mxu0 %v3594_v20  ;;  %658 = vmatpush1.bf16.msra.mxu1 %v3595_v21  ;;  %5501 = vst [vmem:[#allocation24_spill] sm:$0xff] %v4394_v52  ;;  %5502 = vst [vmem:[#allocation25_spill] sm:$0xff] %v4396_v53  ;;  %v4400_v55 = vld [vmem:[#allocation10 + $0x88] sm:$0xff]  ;;  %v4402_v56 = vld [vmem:[#allocation10 + $0x90] sm:$0xff] }
  0xa2   : > { %586 = vmatprep.subr.bf16.mxu0 %v3596_v22  ;;  %659 = vmatprep.subr.bf16.mxu1 %v3598_v23  ;;  %5503 = vst [vmem:[#allocation26_spill] sm:$0xff] %v4398_v54  ;;  %5504 = vst [vmem:[#allocation27_spill] sm:$0xff] %v4400_v55  ;;  %v4404_v57 = vld [vmem:[#allocation10 + $0x98] sm:$0xff]  ;;  %v4406_v58 = vld [vmem:[#allocation10 + $0xa0] sm:$0xff] }
  0xa3   : > { %5505 = vst [vmem:[#allocation28_spill] sm:$0xff] %v4402_v56  ;;  %5506 = vst [vmem:[#allocation29_spill] sm:$0xff] %v4404_v57  ;;  %v4408_v59 = vld [vmem:[#allocation10 + $0xa8] sm:$0xff]  ;;  %v4410_v60 = vld [vmem:[#allocation10 + $0xb0] sm:$0xff] }
  0xa4   : > { %5507 = vst [vmem:[#allocation30_spill] sm:$0xff] %v4406_v58  ;;  %5508 = vst [vmem:[#allocation31_spill] sm:$0xff] %v4408_v59  ;;  %v4412_v61 = vld [vmem:[#allocation10 + $0xb8] sm:$0xff]  ;;  %v4414_v62 = vld [vmem:[#allocation10 + $0xc0] sm:$0xff] }
  0xa5   : > { %587 = vmatpush1.bf16.msra.mxu0 %v3600_v24  ;;  %660 = vmatpush1.bf16.msra.mxu1 %v3601_v25  ;;  %5509 = vst [vmem:[#allocation32_spill] sm:$0xff] %v4410_v60  ;;  %5510 = vst [vmem:[#allocation33_spill] sm:$0xff] %v4412_v61  ;;  %v4416_v63 = vld [vmem:[#allocation10 + $0xc8] sm:$0xff]  ;;  %v4418_v0 = vld [vmem:[#allocation10 + $0xd0] sm:$0xff] }
  0xa6   : > { %588 = vmatprep.subr.bf16.mxu0 %v3602_v26  ;;  %661 = vmatprep.subr.bf16.mxu1 %v3604_v27  ;;  %5511 = vst [vmem:[#allocation34_spill] sm:$0xff] %v4414_v62  ;;  %5512 = vst [vmem:[#allocation35_spill] sm:$0xff] %v4416_v63  ;;  %v4420_v1 = vld [vmem:[#allocation10 + $0xd8] sm:$0xff]  ;;  %v4422_v2 = vld [vmem:[#allocation10 + $0xe0] sm:$0xff] }
  0xa7   : > { %5513 = vst [vmem:[#allocation36_spill] sm:$0xff] %v4418_v0  ;;  %5514 = vst [vmem:[#allocation37_spill] sm:$0xff] %v4420_v1  ;;  %v4426_v4 = vld [vmem:[#allocation10 + $0xf0] sm:$0xff]  ;;  %v4428_v5 = vld [vmem:[#allocation10 + $0xf8] sm:$0xff] }
  0xa8   : > { %5515 = vst [vmem:[#allocation38_spill] sm:$0xff] %v4422_v2  ;;  %5517 = vst [vmem:[#allocation40_spill] sm:$0xff] %v4426_v4  ;;  %v370_v10 = vld [vmem:[%s5427_s3] sm:$0xf] }
  0xa9   : > { %589 = vmatpush1.bf16.msra.mxu0 %v3606_v28  ;;  %662 = vmatpush1.bf16.msra.mxu1 %v3607_v29  ;;  %5518 = vst [vmem:[#allocation41_spill] sm:$0xff] %v4428_v5  ;;  %v4433_v13 = vrot.slane %v370_v10, %v374_v8  ;;  %v4435_v14 = vrot.slane %v370_v10, %v382_v9 }
  0xaa   : > { %590 = vmatprep.subr.bf16.mxu0 %v3608_v30  ;;  %663 = vmatprep.subr.bf16.mxu1 %v3610_v31  ;;  %v4437_v15 = vrot.slane %v370_v10, %v378_v11  ;;  %v4439_v16 = vrot.slane %v370_v10, %v386_v12 }
  0xad   : > { %591 = vmatpush1.bf16.msra.mxu0 %v3612_v32  ;;  %664 = vmatpush1.bf16.msra.mxu1 %v3613_v33 }
  0xb0   : > { %609 = vmatmul.mubr.bf16.vlgmr.msra.gmra.mrb[0].mxu0 %v3614_v34  ;;  %682 = vmatmul.mubr.bf16.vlgmr.msra.gmra.mrb[0].mxu1 %v3614_v34 }
  0xb1   : > { %618 = vmatprep.mubr.bf16.mxu0 %v4099_v3  ;;  %691 = vmatprep.mubr.bf16.mxu1 %v4099_v3 }
  0xb8   : > { %619 = vmatmul.mubr.bf16.gmra.mrb[4].mxu0 %v3615_v35  ;;  %692 = vmatmul.mubr.bf16.gmra.mrb[4].mxu1 %v3615_v35 }
  0xb9   : > { %628 = vmatprep.mubr.bf16.mxu0 %v4099_v3  ;;  %701 = vmatprep.mubr.bf16.mxu1 %v4099_v3 }
  0xc0   : > { %629 = vmatmul.mubr.bf16.gmra.mrb[8].mxu0 %v3616_v36  ;;  %702 = vmatmul.mubr.bf16.gmra.mrb[8].mxu1 %v3616_v36 }
  0xc1   : > { %638 = vmatprep.mubr.bf16.mxu0 %v4099_v3  ;;  %711 = vmatprep.mubr.bf16.mxu1 %v4099_v3  ;;  %v4424_v3 = vld [vmem:[#allocation10 + $0xe8] sm:$0xff] }
  0xc2   : > { %5516 = vst [vmem:[#allocation39_spill] sm:$0xff] %v4424_v3 }
  0xc8   : > { %639 = vmatmul.mubr.bf16.gmra.mrb[12].mxu0 %v3617_v37  ;;  %712 = vmatmul.mubr.bf16.gmra.mrb[12].mxu1 %v3617_v37 }
 0x183   : > { %v610_v17 = vpop.f32.mrb[0].mxu0  ;;  %v683_v18 = vpop.f32.mrb[0].mxu1 }
 0x184   : > { %v611_v19 = vadd.f32 %v610_v17, %v4433_v13  ;;  %v684_v20 = vadd.f32 %v683_v18, %v4435_v14  ;;  %v612_v21 = vpop.f32.mrb[1].mxu0  ;;  %v685_v22 = vpop.f32.mrb[1].mxu1 }
 0x185   : > { %v613_v23 = vadd.f32 %v612_v21, %v4437_v15  ;;  %v686_v24 = vadd.f32 %v685_v22, %v4439_v16  ;;  %v614_v25 = vpop.f32.mrb[2].mxu0  ;;  %v687_v26 = vpop.f32.mrb[2].mxu1 }
 0x186   : > { %722 = vst [vmem:[#allocation2] sm:$0xff] %v611_v19  ;;  %724 = vst [vmem:[#allocation2 + $0x10] sm:$0xff] %v684_v20  ;;  %v615_v27 = vadd.f32 %v614_v25, %v4433_v13  ;;  %v688_v28 = vadd.f32 %v687_v26, %v4435_v14  ;;  %v616_v29 = vpop.f32.mrb[3].mxu0  ;;  %v689_v30 = vpop.f32.mrb[3].mxu1 }
 0x187   : > { %723 = vst [vmem:[#allocation2 + $0x8] sm:$0xff] %v613_v23  ;;  %725 = vst [vmem:[#allocation2 + $0x18] sm:$0xff] %v686_v24  ;;  %v617_v31 = vadd.f32 %v616_v29, %v4437_v15  ;;  %v690_v32 = vadd.f32 %v689_v30, %v4439_v16 }
 0x188   : > { %726 = vst [vmem:[#allocation2 + $0x20] sm:$0xff] %v615_v27  ;;  %728 = vst [vmem:[#allocation2 + $0x30] sm:$0xff] %v688_v28 }
 0x189   : > { %727 = vst [vmem:[#allocation2 + $0x28] sm:$0xff] %v617_v31  ;;  %729 = vst [vmem:[#allocation2 + $0x38] sm:$0xff] %v690_v32 }
 0x18b   : > { %v620_v33 = vpop.f32.mrb[4].mxu0  ;;  %v693_v34 = vpop.f32.mrb[4].mxu1 }
 0x18c   : > { %v621_v35 = vadd.f32 %v620_v33, %v4433_v13  ;;  %v694_v36 = vadd.f32 %v693_v34, %v4435_v14  ;;  %v622_v37 = vpop.f32.mrb[5].mxu0  ;;  %v695_v6 = vpop.f32.mrb[5].mxu1 }
 0x18d   : > { %v623_v7 = vadd.f32 %v622_v37, %v4437_v15  ;;  %v696_v8 = vadd.f32 %v695_v6, %v4439_v16  ;;  %v624_v9 = vpop.f32.mrb[6].mxu0  ;;  %v697_v10 = vpop.f32.mrb[6].mxu1 }
 0x18e   : > { %730 = vst [vmem:[#allocation2 + $0x40] sm:$0xff] %v621_v35  ;;  %732 = vst [vmem:[#allocation2 + $0x50] sm:$0xff] %v694_v36  ;;  %v625_v11 = vadd.f32 %v624_v9, %v4433_v13  ;;  %v698_v12 = vadd.f32 %v697_v10, %v4435_v14  ;;  %v626_v17 = vpop.f32.mrb[7].mxu0  ;;  %v699_v18 = vpop.f32.mrb[7].mxu1 }
 0x18f   : > { %731 = vst [vmem:[#allocation2 + $0x48] sm:$0xff] %v623_v7  ;;  %733 = vst [vmem:[#allocation2 + $0x58] sm:$0xff] %v696_v8  ;;  %v627_v19 = vadd.f32 %v626_v17, %v4437_v15  ;;  %v700_v20 = vadd.f32 %v699_v18, %v4439_v16 }
 0x190   : > { %734 = vst [vmem:[#allocation2 + $0x60] sm:$0xff] %v625_v11  ;;  %736 = vst [vmem:[#allocation2 + $0x70] sm:$0xff] %v698_v12 }
 0x191   : > { %735 = vst [vmem:[#allocation2 + $0x68] sm:$0xff] %v627_v19  ;;  %737 = vst [vmem:[#allocation2 + $0x78] sm:$0xff] %v700_v20 }
 0x193   : > { %v630_v21 = vpop.f32.mrb[8].mxu0  ;;  %v703_v22 = vpop.f32.mrb[8].mxu1 }
 0x194   : > { %v631_v23 = vadd.f32 %v630_v21, %v4433_v13  ;;  %v704_v24 = vadd.f32 %v703_v22, %v4435_v14  ;;  %v632_v25 = vpop.f32.mrb[9].mxu0  ;;  %v705_v26 = vpop.f32.mrb[9].mxu1 }
 0x195   : > { %v633_v27 = vadd.f32 %v632_v25, %v4437_v15  ;;  %v706_v28 = vadd.f32 %v705_v26, %v4439_v16  ;;  %v634_v29 = vpop.f32.mrb[10].mxu0  ;;  %v707_v30 = vpop.f32.mrb[10].mxu1  ;;  %v4493_v25 = vcombine.low (!%p3305_p4), %v4365_v39, %v4372_v41  ;;  %v4497_v26 = vcombine.high (!%p3305_p4), %v4376_v43, %v4380_v45 }
 0x196   : > { %738 = vst [vmem:[#allocation2 + $0x80] sm:$0xff] %v631_v23  ;;  %740 = vst [vmem:[#allocation2 + $0x90] sm:$0xff] %v704_v24  ;;  %v635_v31 = vadd.f32 %v634_v29, %v4433_v13  ;;  %v708_v32 = vadd.f32 %v707_v30, %v4435_v14  ;;  %v636_v33 = vpop.f32.mrb[11].mxu0  ;;  %v709_v34 = vpop.f32.mrb[11].mxu1  ;;  %v4513_v29 = vcombine.low (!%p3305_p4), %v4376_v43, %v4380_v45 }
 0x197   : > { %739 = vst [vmem:[#allocation2 + $0x88] sm:$0xff] %v633_v27  ;;  %741 = vst [vmem:[#allocation2 + $0x98] sm:$0xff] %v706_v28  ;;  %v637_v35 = vadd.f32 %v636_v33, %v4437_v15  ;;  %v710_v36 = vadd.f32 %v709_v34, %v4439_v16  ;;  %v4502_v27 = vcombine.low (!%p3305_p4), %v4374_v42, %v4378_v44 }
 0x198   : > { %742 = vst [vmem:[#allocation2 + $0xa0] sm:$0xff] %v635_v31  ;;  %744 = vst [vmem:[#allocation2 + $0xb0] sm:$0xff] %v708_v32  ;;  %v4508_v28 = vcombine.high (!%p3305_p4), %v4382_v46, %v4386_v48  ;;  %v4518_v30 = vcombine.high (!%p3305_p4), %v4384_v47, %v4388_v49  ;;  %v5436_v31 = vmov (!%p3305_p4), 0   ;;  %v4524_v32 = vcombine.low (!%p3305_p4), %v4382_v46, %v4386_v48 }
 0x199   : > { %743 = vst [vmem:[#allocation2 + $0xa8] sm:$0xff] %v637_v35  ;;  %745 = vst [vmem:[#allocation2 + $0xb8] sm:$0xff] %v710_v36  ;;  %991 = vmatprep.mubr.bf16.mxu0 (!%p3305_p4), %v5436_v31  ;;  %v4529_v33 = vcombine.high (!%p3305_p4), %v4390_v50, %v4394_v52  ;;  %v4534_v34 = vcombine.low (!%p3305_p4), %v4384_v47, %v4388_v49  ;;  %v4539_v35 = vcombine.high (!%p3305_p4), %v4392_v51, %v4396_v53 }
 0x19a   : > { %1032 = vmatprep.mubr.bf16.mxu1 (!%p3305_p4), %v5436_v31  ;;  %v4545_v36 = vcombine.low (!%p3305_p4), %v4390_v50, %v4394_v52  ;;  %v792_v31 = vld [vmem:[#allocation3] sm:$0xff] (!%p3305_p4) }
 0x19b   : > { %v640_v37 = vpop.f32.mrb[12].mxu0  ;;  %v713_v6 = vpop.f32.mrb[12].mxu1  ;;  %791 = sbr.rel (%p3305_p4) target bundleno = 2527 (0x9df), region = 68 }
 0x19c   : > { %v641_v7 = vadd.f32 %v640_v37, %v4433_v13  ;;  %v714_v8 = vadd.f32 %v713_v6, %v4435_v14  ;;  %v642_v9 = vpop.f32.mrb[13].mxu0  ;;  %v715_v10 = vpop.f32.mrb[13].mxu1  ;;  %v4550_v37 = vcombine.high (!%p3305_p4), %v4398_v54, %v4402_v56  ;;  %v4555_v6 = vcombine.low (!%p3305_p4), %v4392_v51, %v4396_v53  ;;  %v796_v53 = vld [vmem:[#allocation2 + $0x10] sm:$0xff] (!%p3305_p4) }
 0x19d   : > { %v643_v11 = vadd.f32 %v642_v9, %v4437_v15  ;;  %v716_v12 = vadd.f32 %v715_v10, %v4439_v16  ;;  %v644_v17 = vpop.f32.mrb[14].mxu0  ;;  %v717_v18 = vpop.f32.mrb[14].mxu1  ;;  %v4570_v9 = vcombine.high (!%p3305_p4), %v4406_v58, %v4410_v60  ;;  %v4575_v10 = vcombine.low (!%p3305_p4), %v4400_v55, %v4404_v57 }
 0x19e   : > { %746 = vst [vmem:[#allocation2 + $0xc0] sm:$0xff] %v641_v7  ;;  %748 = vst [vmem:[#allocation2 + $0xd0] sm:$0xff] %v714_v8  ;;  %v645_v19 = vadd.f32 %v644_v17, %v4433_v13  ;;  %v718_v20 = vadd.f32 %v717_v18, %v4435_v14  ;;  %v646_v21 = vpop.f32.mrb[15].mxu0  ;;  %v719_v22 = vpop.f32.mrb[15].mxu1  ;;  %v4476_v13 = vcombine.high (!%p3305_p4), %v4363_v38, %v4367_v40 }
 0x19f   : > { %747 = vst [vmem:[#allocation2 + $0xc8] sm:$0xff] %v643_v11  ;;  %749 = vst [vmem:[#allocation2 + $0xd8] sm:$0xff] %v716_v12  ;;  %v647_v23 = vadd.f32 %v646_v21, %v4437_v15  ;;  %v720_v24 = vadd.f32 %v719_v22, %v4439_v16  ;;  %v4480_v14 = vcombine.low (!%p3305_p4), %v4363_v38, %v4367_v40 }
 0x1a0   : > { %750 = vst [vmem:[#allocation2 + $0xe0] sm:$0xff] %v645_v19  ;;  %752 = vst [vmem:[#allocation2 + $0xf0] sm:$0xff] %v718_v20  ;;  %v4484_v15 = vcombine.high (!%p3305_p4), %v4374_v42, %v4378_v44  ;;  %v4488_v16 = vcombine.high (!%p3305_p4), %v4365_v39, %v4372_v41  ;;  %959 = vmatprep.subr.bf16.mxu0 (!%p3305_p4), %v4476_v13  ;;  %v4560_v7 = vcombine.high (!%p3305_p4), %v4400_v55, %v4404_v57 }
 0x1a1   : > { %751 = vst [vmem:[#allocation2 + $0xe8] sm:$0xff] %v647_v23  ;;  %753 = vst [vmem:[#allocation2 + $0xf8] sm:$0xff] %v720_v24  ;;  %960 = vmatpush1.bf16.msra.mxu0 (!%p3305_p4), %v4480_v14  ;;  %v4565_v8 = vcombine.low (!%p3305_p4), %v4398_v54, %v4402_v56  ;;  %v4580_v11 = vcombine.high (!%p3305_p4), %v4408_v59, %v4412_v61  ;;  %v4585_v12 = vcombine.low (!%p3305_p4), %v4406_v58, %v4410_v60  ;;  %v797_v54 = vld [vmem:[#allocation2 + $0x18] sm:$0xff] (!%p3305_p4) }
 0x1a2   : > { %1000 = vmatprep.subr.bf16.mxu1 %v4488_v16  ;;  %961 = vmatprep.subr.bf16.mxu0 %v4484_v15  ;;  %v4590_v17 = vcombine.high %v4414_v62, %v4418_v0  ;;  %v4595_v18 = vcombine.low %v4408_v59, %v4412_v61  ;;  %v4600_v19 = vcombine.high %v4416_v63, %v4420_v1 }
 0x1a3   : > { %1001 = vmatpush1.bf16.msra.mxu1 %v4493_v25  ;;  %v4605_v20 = vcombine.low %v4414_v62, %v4418_v0  ;;  %v4610_v21 = vcombine.high %v4422_v2, %v4426_v4  ;;  %v4615_v22 = vcombine.low %v4416_v63, %v4420_v1  ;;  %v4620_v23 = vcombine.high %v4424_v3, %v4428_v5 }
 0x1a4   : > { %1002 = vmatprep.subr.bf16.mxu1 %v4497_v26  ;;  %v4625_v24 = vcombine.low %v4422_v2, %v4426_v4  ;;  %v4631_v63 = vcombine.low %v4424_v3, %v4428_v5  ;;  %v798_v1 = vpack.c.bf16 %v792_v31, %v792_v31  ;;  %v5519_v3 = vmov 0   ;;  %v795_v31 = vld [vmem:[#allocation2 + $0x8] sm:$0xff] }
 0x1a5   : > { %962 = vmatpush1.bf16.msra.mxu0 %v4502_v27 }
 0x1a6   : > { %963 = vmatprep.subr.bf16.mxu0 %v4508_v28 }
 0x1a7   : > { %1003 = vmatpush1.bf16.msra.mxu1 %v4513_v29 }
 0x1a8   : > { %1004 = vmatprep.subr.bf16.mxu1 %v4518_v30 }
 0x1a9   : > { %964 = vmatpush1.bf16.msra.mxu0 %v4524_v32 }
 0x1aa   : > { %965 = vmatprep.subr.bf16.mxu0 %v4529_v33 }
 0x1ab   : > { %1005 = vmatpush1.bf16.msra.mxu1 %v4534_v34 }
 0x1ac   : > { %1006 = vmatprep.subr.bf16.mxu1 %v4539_v35 }
 0x1ad   : > { %966 = vmatpush1.bf16.msra.mxu0 %v4545_v36 }
 0x1ae   : > { %967 = vmatprep.subr.bf16.mxu0 %v4550_v37 }
 0x1af   : > { %1007 = vmatpush1.bf16.msra.mxu1 %v4555_v6 }
 0x1b0   : > { %1008 = vmatprep.subr.bf16.mxu1 %v4560_v7 }
 0x1b1   : > { %968 = vmatpush1.bf16.msra.mxu0 %v4565_v8 }
 0x1b2   : > { %969 = vmatprep.subr.bf16.mxu0 %v4570_v9 }
 0x1b3   : > { %1009 = vmatpush1.bf16.msra.mxu1 %v4575_v10 }
 0x1b4   : > { %1010 = vmatprep.subr.bf16.mxu1 %v4580_v11 }
 0x1b5   : > { %970 = vmatpush1.bf16.msra.mxu0 %v4585_v12 }
 0x1b6   : > { %971 = vmatprep.subr.bf16.mxu0 %v4590_v17 }
 0x1b7   : > { %1011 = vmatpush1.bf16.msra.mxu1 %v4595_v18 }
 0x1b8   : > { %1012 = vmatprep.subr.bf16.mxu1 %v4600_v19 }
 0x1b9   : > { %972 = vmatpush1.bf16.msra.mxu0 %v4605_v20 }
 0x1ba   : > { %973 = vmatprep.subr.bf16.mxu0 %v4610_v21 }
 0x1bb   : > { %1013 = vmatpush1.bf16.msra.mxu1 %v4615_v22 }
 0x1bc   : > { %1014 = vmatprep.subr.bf16.mxu1 %v4620_v23 }
 0x1bd   : > { %974 = vmatpush1.bf16.msra.mxu0 %v4625_v24 }
 0x1be   : > { %1075 = vmatprep.subr.bf16.mxu0 %v4476_v13 }
 0x1bf   : > { %1015 = vmatpush1.bf16.msra.mxu1 %v4631_v63 }
 0x1c0   : > { %1116 = vmatprep.subr.bf16.mxu1 %v4488_v16  ;;  %992 = vmatmul.mubr.bf16.vlgmr.msra.gmra.mrb[0].mxu0 %v798_v1 }
 0x1c1   : > { %1076 = vmatpush1.bf16.msra.mxu0 %v4480_v14  ;;  %1107 = vmatprep.mubr.bf16.mxu0 %v5519_v3 }
 0x1c2   : > { %1033 = vmatmul.mubr.bf16.vlgmr.msra.gmra.mrb[0].mxu1 %v798_v1  ;;  %1077 = vmatprep.subr.bf16.mxu0 %v4484_v15  ;;  %v794_v1 = vld [vmem:[#allocation2] sm:$0xff] }
 0x1c3   : > { %1117 = vmatpush1.bf16.msra.mxu1 %v4493_v25  ;;  %1148 = vmatprep.mubr.bf16.mxu1 %v5519_v3 }
 0x1c4   : > { %1118 = vmatprep.subr.bf16.mxu1 %v4497_v26 }
 0x1c5   : > { %1078 = vmatpush1.bf16.msra.mxu0 %v4502_v27 }
 0x1c6   : > { %1079 = vmatprep.subr.bf16.mxu0 %v4508_v28 }
 0x1c7   : > { %1119 = vmatpush1.bf16.msra.mxu1 %v4513_v29 }
 0x1c8   : > { %1120 = vmatprep.subr.bf16.mxu1 %v4518_v30 }
 0x1c9   : > { %1080 = vmatpush1.bf16.msra.mxu0 %v4524_v32 }
 0x1ca   : > { %1081 = vmatprep.subr.bf16.mxu0 %v4529_v33 }
 0x1cb   : > { %1121 = vmatpush1.bf16.msra.mxu1 %v4534_v34 }
 0x1cc   : > { %1122 = vmatprep.subr.bf16.mxu1 %v4539_v35 }
 0x1cd   : > { %1082 = vmatpush1.bf16.msra.mxu0 %v4545_v36 }
 0x1ce   : > { %1083 = vmatprep.subr.bf16.mxu0 %v4550_v37 }
 0x1cf   : > { %1123 = vmatpush1.bf16.msra.mxu1 %v4555_v6 }
 0x1d0   : > { %1124 = vmatprep.subr.bf16.mxu1 %v4560_v7 }
 0x1d1   : > { %1084 = vmatpush1.bf16.msra.mxu0 %v4565_v8 }
 0x1d2   : > { %1085 = vmatprep.subr.bf16.mxu0 %v4570_v9 }
 0x1d3   : > { %1125 = vmatpush1.bf16.msra.mxu1 %v4575_v10 }
 0x1d4   : > { %1126 = vmatprep.subr.bf16.mxu1 %v4580_v11 }
 0x1d5   : > { %1086 = vmatpush1.bf16.msra.mxu0 %v4585_v12 }
 0x1d6   : > { %1087 = vmatprep.subr.bf16.mxu0 %v4590_v17 }
 0x1d7   : > { %1127 = vmatpush1.bf16.msra.mxu1 %v4595_v18 }
 0x1d8   : > { %1128 = vmatprep.subr.bf16.mxu1 %v4600_v19 }
 0x1d9   : > { %1088 = vmatpush1.bf16.msra.mxu0 %v4605_v20 }
 0x1da   : > { %1089 = vmatprep.subr.bf16.mxu0 %v4610_v21 }
 0x1db   : > { %1129 = vmatpush1.bf16.msra.mxu1 %v4615_v22 }
 0x1dc   : > { %1130 = vmatprep.subr.bf16.mxu1 %v4620_v23 }
 0x1dd   : > { %1090 = vmatpush1.bf16.msra.mxu0 %v4625_v24 }
 0x1de   : > { %1191 = vmatprep.subr.bf16.mxu0 %v4476_v13 }
 0x1df   : > { %1131 = vmatpush1.bf16.msra.mxu1 %v4631_v63 }
 0x1e0   : > { %1232 = vmatprep.subr.bf16.mxu1 %v4488_v16 }
 0x293   : > { %v993_v5 = vpop.f32.mrb[0].mxu0 }
 0x294   : > { %v1041_v2 = vadd.f32 %v993_v5, %v794_v1  ;;  %v995_v4 = vpop.f32.mrb[1].mxu0 }
 0x295   : > { %v1034_v62 = vpop.f32.mrb[0].mxu1  ;;  %v1042_v0 = vadd.f32 %v995_v4, %v795_v31  ;;  %v997_v59 = vpop.f32.mrb[2].mxu0 }
 0x296   : > { %v1036_v61 = vpop.f32.mrb[1].mxu1  ;;  %v3338_v58 = vmul.f32 -1.442695, %v1041_v2  ;;  %v998_v60 = vpop.f32.mrb[3].mxu0  ;;  %v1043_v52 = vadd.f32 %v1034_v62, %v796_v53  ;;  %v1070_v53 = vld [vmem:[#allocation2 + $0x20] sm:$0xff] }
 0x297   : > { %v1038_v55 = vpop.f32.mrb[2].mxu1  ;;  %v3339_v57 = vmul.f32 -1.442695, %v1042_v0  ;;  %v1044_v51 = vadd.f32 %v1036_v61, %v797_v54  ;;  %v1071_v61 = vld [vmem:[#allocation2 + $0x28] sm:$0xff] }
 0x298   : > { %v1039_v56 = vpop.f32.mrb[3].mxu1  ;;  %3618 = vpow2.f32 %v3338_v58  ;;  %v793_v55 = vld [vmem:[#allocation4] sm:$0xff] }
 0x299   : > { %3620 = vpow2.f32 %v3339_v57  ;;  %v3340_v50 = vmul.f32 -1.442695, %v1044_v51 }
 0x29b   : > { %3622 = vpow2.f32 %v3340_v50 }
 0x29c   : > { %3624 = vtanh.f32 %v1043_v52 }
 0x2a2   : > { %v3619_v47 = vpop.eup %3618 }
 0x2a3   : > { %v3621_v5 = vpop.eup %3620  ;;  %v1048_v1 = vadd.f32 1.0, %v3619_v47 }
 0x2a4   : > { %v1054_v4 = vadd.f32 1.0, %v3621_v5 }
 0x2a5   : > { %3626 = vrcp.f32 %v1048_v1  ;;  %v3623_v59 = vpop.eup %3622 }
 0x2a6   : > { %3628 = vrcp.f32 %v1054_v4  ;;  %v3625_v60 = vpop.eup %3624  ;;  %v1061_v2 = vadd.f32 1.0, %v3623_v59 }
 0x2a8   : > { %3630 = vrcp.f32 %v1061_v2 }
 0x2af   : > { %v3627_v0 = vpop.eup %3626 }
 0x2b0   : > { %v3629_v56 = vpop.eup %3628  ;;  %v1065_v58 = vmul.f32 %v3627_v0, %v3625_v60 }
 0x2b1   : > { %v1064_v57 = vmul.f32 %v3629_v56, %v793_v55 }
 0x2b2   : > { %v3631_v50 = vpop.eup %3630 }
 0x2b3   : > { %v4672_v54 = vadd.f32 %v1065_v58, %v1064_v57  ;;  %v1073_v57 = vld [vmem:[#allocation2 + $0x38] sm:$0xff] }
 0x2b5   : > { %3632 = vtanh.f32 %v4672_v54 }
 0x2bf   : > { %v3633_v51 = vpop.eup %3632 }
 0x2c0   : > { %v1068_v47 = vmul.f32 %v3633_v51, %v3631_v50  ;;  %v1072_v51 = vld [vmem:[#allocation2 + $0x30] sm:$0xff] }
 0x2c2   : > { %v1074_v52 = vpack.c.bf16 %v1068_v47, %v1068_v47 }
 0x2c4   : > { %1108 = vmatmul.mubr.bf16.vlgmr.msra.gmra.mrb[4].mxu0 %v1074_v52  ;;  %1149 = vmatmul.mubr.bf16.vlgmr.msra.gmra.mrb[4].mxu1 %v1074_v52 }
 0x2c5   : > { %1192 = vmatpush1.bf16.msra.mxu0 %v4480_v14  ;;  %1233 = vmatpush1.bf16.msra.mxu1 %v4493_v25 }
 0x2c6   : > { %1193 = vmatprep.subr.bf16.mxu0 %v4484_v15  ;;  %1234 = vmatprep.subr.bf16.mxu1 %v4497_v26 }
 0x2c7   : > { %1223 = vmatprep.mubr.bf16.mxu0 %v5519_v3  ;;  %1264 = vmatprep.mubr.bf16.mxu1 %v5519_v3 }
 0x2c9   : > { %1194 = vmatpush1.bf16.msra.mxu0 %v4502_v27  ;;  %1235 = vmatpush1.bf16.msra.mxu1 %v4513_v29 }
 0x2ca   : > { %1195 = vmatprep.subr.bf16.mxu0 %v4508_v28  ;;  %1236 = vmatprep.subr.bf16.mxu1 %v4518_v30 }
 0x2cd   : > { %1196 = vmatpush1.bf16.msra.mxu0 %v4524_v32  ;;  %1237 = vmatpush1.bf16.msra.mxu1 %v4534_v34 }
 0x2ce   : > { %1197 = vmatprep.subr.bf16.mxu0 %v4529_v33  ;;  %1238 = vmatprep.subr.bf16.mxu1 %v4539_v35 }
 0x2d1   : > { %1198 = vmatpush1.bf16.msra.mxu0 %v4545_v36  ;;  %1239 = vmatpush1.bf16.msra.mxu1 %v4555_v6 }
 0x2d2   : > { %1199 = vmatprep.subr.bf16.mxu0 %v4550_v37  ;;  %1240 = vmatprep.subr.bf16.mxu1 %v4560_v7 }
 0x2d5   : > { %1200 = vmatpush1.bf16.msra.mxu0 %v4565_v8  ;;  %1241 = vmatpush1.bf16.msra.mxu1 %v4575_v10 }
 0x2d6   : > { %1201 = vmatprep.subr.bf16.mxu0 %v4570_v9  ;;  %1242 = vmatprep.subr.bf16.mxu1 %v4580_v11 }
 0x2d9   : > { %1202 = vmatpush1.bf16.msra.mxu0 %v4585_v12  ;;  %1243 = vmatpush1.bf16.msra.mxu1 %v4595_v18 }
 0x2da   : > { %1203 = vmatprep.subr.bf16.mxu0 %v4590_v17  ;;  %1244 = vmatprep.subr.bf16.mxu1 %v4600_v19 }
 0x2dd   : > { %1204 = vmatpush1.bf16.msra.mxu0 %v4605_v20  ;;  %1245 = vmatpush1.bf16.msra.mxu1 %v4615_v22 }
 0x2de   : > { %1205 = vmatprep.subr.bf16.mxu0 %v4610_v21  ;;  %1246 = vmatprep.subr.bf16.mxu1 %v4620_v23 }
 0x2e1   : > { %1206 = vmatpush1.bf16.msra.mxu0 %v4625_v24  ;;  %1247 = vmatpush1.bf16.msra.mxu1 %v4631_v63 }
 0x2e2   : > { %1307 = vmatprep.subr.bf16.mxu0 %v4476_v13  ;;  %1348 = vmatprep.subr.bf16.mxu1 %v4488_v16 }
 0x397   : > { %v1109_v62 = vpop.f32.mrb[4].mxu0  ;;  %v1150_v31 = vpop.f32.mrb[4].mxu1 }
 0x398   : > { %v1157_v5 = vadd.f32 %v1109_v62, %v1070_v53  ;;  %v1111_v1 = vpop.f32.mrb[5].mxu0  ;;  %v1152_v4 = vpop.f32.mrb[5].mxu1  ;;  %v1159_v52 = vadd.f32 %v1150_v31, %v1072_v51 }
 0x399   : > { %v1158_v59 = vadd.f32 %v1111_v1, %v1071_v61  ;;  %v1113_v60 = vpop.f32.mrb[6].mxu0  ;;  %v1154_v55 = vpop.f32.mrb[6].mxu1  ;;  %v1160_v50 = vadd.f32 %v1152_v4, %v1073_v57 }
 0x39a   : > { %v3341_v0 = vmul.f32 -1.442695, %v1157_v5  ;;  %v1114_v2 = vpop.f32.mrb[7].mxu0  ;;  %v1155_v56 = vpop.f32.mrb[7].mxu1 }
 0x39b   : > { %v3342_v58 = vmul.f32 -1.442695, %v1158_v59  ;;  %v3343_v47 = vmul.f32 -1.442695, %v1160_v50 }
 0x39c   : > { %3634 = vpow2.f32 %v3341_v0 }
 0x39d   : > { %3636 = vpow2.f32 %v3342_v58 }
 0x39e   : > { %3638 = vpow2.f32 %v3343_v47 }
 0x39f   : > { %3640 = vtanh.f32 %v1159_v52 }
 0x3a6   : > { %v3635_v49 = vpop.eup %3634 }
 0x3a7   : > { %v3637_v46 = vpop.eup %3636  ;;  %v1164_v48 = vadd.f32 1.0, %v3635_v49 }
 0x3a8   : > { %v1170_v53 = vadd.f32 1.0, %v3637_v46  ;;  %v3639_v61 = vpop.eup %3638  ;;  %v1186_v46 = vld [vmem:[#allocation2 + $0x40] sm:$0xff] }
 0x3a9   : > { %3642 = vrcp.f32 %v1164_v48  ;;  %v3641_v62 = vpop.eup %3640  ;;  %v1177_v60 = vadd.f32 1.0, %v3639_v61  ;;  %v1187_v48 = vld [vmem:[#allocation2 + $0x48] sm:$0xff] }
 0x3aa   : > { %3644 = vrcp.f32 %v1170_v53 }
 0x3ab   : > { %3646 = vrcp.f32 %v1177_v60  ;;  %v1188_v60 = vld [vmem:[#allocation2 + $0x50] sm:$0xff] }
 0x3b3   : > { %v3643_v5 = vpop.eup %3642 }
 0x3b4   : > { %v3645_v1 = vpop.eup %3644  ;;  %v1181_v59 = vmul.f32 %v3643_v5, %v3641_v62 }
 0x3b5   : > { %v1180_v55 = vmul.f32 %v3645_v1, %v4672_v54  ;;  %v3647_v31 = vpop.eup %3646  ;;  %v1189_v1 = vld [vmem:[#allocation2 + $0x58] sm:$0xff] }
 0x3b7   : > { %v4710_v4 = vadd.f32 %v1181_v59, %v1180_v55 }
 0x3b9   : > { %3648 = vtanh.f32 %v4710_v4 }
 0x3c3   : > { %v3649_v49 = vpop.eup %3648 }
 0x3c4   : > { %v1184_v0 = vmul.f32 %v3649_v49, %v3647_v31 }
 0x3c6   : > { %v1190_v2 = vpack.c.bf16 %v1184_v0, %v1184_v0 }
 0x3c8   : > { %1224 = vmatmul.mubr.bf16.vlgmr.msra.gmra.mrb[8].mxu0 %v1190_v2  ;;  %1265 = vmatmul.mubr.bf16.vlgmr.msra.gmra.mrb[8].mxu1 %v1190_v2 }
 0x3c9   : > { %1308 = vmatpush1.bf16.msra.mxu0 %v4480_v14  ;;  %1349 = vmatpush1.bf16.msra.mxu1 %v4493_v25 }
 0x3ca   : > { %1309 = vmatprep.subr.bf16.mxu0 %v4484_v15  ;;  %1350 = vmatprep.subr.bf16.mxu1 %v4497_v26 }
 0x3cb   : > { %1339 = vmatprep.mubr.bf16.mxu0 %v5519_v3  ;;  %1380 = vmatprep.mubr.bf16.mxu1 %v5519_v3 }
 0x3cd   : > { %1310 = vmatpush1.bf16.msra.mxu0 %v4502_v27  ;;  %1351 = vmatpush1.bf16.msra.mxu1 %v4513_v29 }
 0x3ce   : > { %1311 = vmatprep.subr.bf16.mxu0 %v4508_v28  ;;  %1352 = vmatprep.subr.bf16.mxu1 %v4518_v30 }
 0x3d1   : > { %1312 = vmatpush1.bf16.msra.mxu0 %v4524_v32  ;;  %1353 = vmatpush1.bf16.msra.mxu1 %v4534_v34 }
 0x3d2   : > { %1313 = vmatprep.subr.bf16.mxu0 %v4529_v33  ;;  %1354 = vmatprep.subr.bf16.mxu1 %v4539_v35 }
 0x3d5   : > { %1314 = vmatpush1.bf16.msra.mxu0 %v4545_v36  ;;  %1355 = vmatpush1.bf16.msra.mxu1 %v4555_v6 }
 0x3d6   : > { %1315 = vmatprep.subr.bf16.mxu0 %v4550_v37  ;;  %1356 = vmatprep.subr.bf16.mxu1 %v4560_v7 }
 0x3d9   : > { %1316 = vmatpush1.bf16.msra.mxu0 %v4565_v8  ;;  %1357 = vmatpush1.bf16.msra.mxu1 %v4575_v10 }
 0x3da   : > { %1317 = vmatprep.subr.bf16.mxu0 %v4570_v9  ;;  %1358 = vmatprep.subr.bf16.mxu1 %v4580_v11 }
 0x3dd   : > { %1318 = vmatpush1.bf16.msra.mxu0 %v4585_v12  ;;  %1359 = vmatpush1.bf16.msra.mxu1 %v4595_v18 }
 0x3de   : > { %1319 = vmatprep.subr.bf16.mxu0 %v4590_v17  ;;  %1360 = vmatprep.subr.bf16.mxu1 %v4600_v19 }
 0x3e1   : > { %1320 = vmatpush1.bf16.msra.mxu0 %v4605_v20  ;;  %1361 = vmatpush1.bf16.msra.mxu1 %v4615_v22 }
 0x3e2   : > { %1321 = vmatprep.subr.bf16.mxu0 %v4610_v21  ;;  %1362 = vmatprep.subr.bf16.mxu1 %v4620_v23 }
 0x3e5   : > { %1322 = vmatpush1.bf16.msra.mxu0 %v4625_v24  ;;  %1363 = vmatpush1.bf16.msra.mxu1 %v4631_v63 }
 0x3e6   : > { %1423 = vmatprep.subr.bf16.mxu0 %v4476_v13  ;;  %1464 = vmatprep.subr.bf16.mxu1 %v4488_v16 }
 0x49b   : > { %v1225_v54 = vpop.f32.mrb[8].mxu0  ;;  %v1266_v56 = vpop.f32.mrb[8].mxu1 }
 0x49c   : > { %v1273_v58 = vadd.f32 %v1225_v54, %v1186_v46  ;;  %v1227_v57 = vpop.f32.mrb[9].mxu0  ;;  %v1268_v50 = vpop.f32.mrb[9].mxu1  ;;  %v1275_v31 = vadd.f32 %v1266_v56, %v1188_v60 }
 0x49d   : > { %v1274_v51 = vadd.f32 %v1227_v57, %v1187_v48  ;;  %v1229_v47 = vpop.f32.mrb[10].mxu0  ;;  %v1270_v52 = vpop.f32.mrb[10].mxu1  ;;  %v1276_v59 = vadd.f32 %v1268_v50, %v1189_v1 }
 0x49e   : > { %v3344_v53 = vmul.f32 -1.442695, %v1273_v58  ;;  %v1230_v61 = vpop.f32.mrb[11].mxu0  ;;  %v1271_v62 = vpop.f32.mrb[11].mxu1 }
 0x49f   : > { %v3345_v5 = vmul.f32 -1.442695, %v1274_v51  ;;  %v3346_v55 = vmul.f32 -1.442695, %v1276_v59 }
 0x4a0   : > { %3650 = vpow2.f32 %v3344_v53 }
 0x4a1   : > { %3652 = vpow2.f32 %v3345_v5  ;;  %v1303_v5 = vld [vmem:[#allocation2 + $0x68] sm:$0xff] }
 0x4a2   : > { %3654 = vpow2.f32 %v3346_v55 }
 0x4a3   : > { %3656 = vtanh.f32 %v1275_v31 }
 0x4aa   : > { %v3651_v49 = vpop.eup %3650 }
 0x4ab   : > { %v3653_v0 = vpop.eup %3652  ;;  %v1280_v2 = vadd.f32 1.0, %v3651_v49 }
 0x4ac   : > { %v1286_v46 = vadd.f32 1.0, %v3653_v0  ;;  %v3655_v48 = vpop.eup %3654 }
 0x4ad   : > { %3658 = vrcp.f32 %v1280_v2  ;;  %v3657_v54 = vpop.eup %3656  ;;  %v1293_v47 = vadd.f32 1.0, %v3655_v48 }
 0x4ae   : > { %3660 = vrcp.f32 %v1286_v46 }
 0x4af   : > { %3662 = vrcp.f32 %v1293_v47  ;;  %v1304_v47 = vld [vmem:[#allocation2 + $0x70] sm:$0xff] }
 0x4b7   : > { %v3659_v58 = vpop.eup %3658 }
 0x4b8   : > { %v3661_v57 = vpop.eup %3660  ;;  %v1297_v51 = vmul.f32 %v3659_v58, %v3657_v54 }
 0x4b9   : > { %v1296_v52 = vmul.f32 %v3661_v57, %v4710_v4  ;;  %v3663_v56 = vpop.eup %3662  ;;  %v1302_v4 = vld [vmem:[#allocation2 + $0x60] sm:$0xff]  ;;  %v1305_v57 = vld [vmem:[#allocation2 + $0x78] sm:$0xff] }
 0x4bb   : > { %v4748_v50 = vadd.f32 %v1297_v51, %v1296_v52 }
 0x4bd   : > { %3664 = vtanh.f32 %v4748_v50 }
 0x4c7   : > { %v3665_v53 = vpop.eup %3664 }
 0x4c8   : > { %v1300_v61 = vmul.f32 %v3665_v53, %v3663_v56 }
 0x4ca   : > { %v1306_v62 = vpack.c.bf16 %v1300_v61, %v1300_v61 }
 0x4cc   : > { %1340 = vmatmul.mubr.bf16.vlgmr.msra.gmra.mrb[12].mxu0 %v1306_v62  ;;  %1381 = vmatmul.mubr.bf16.vlgmr.msra.gmra.mrb[12].mxu1 %v1306_v62 }
 0x4cd   : > { %1424 = vmatpush1.bf16.msra.mxu0 %v4480_v14  ;;  %1465 = vmatpush1.bf16.msra.mxu1 %v4493_v25 }
 0x4ce   : > { %1425 = vmatprep.subr.bf16.mxu0 %v4484_v15  ;;  %1466 = vmatprep.subr.bf16.mxu1 %v4497_v26 }
 0x4cf   : > { %1455 = vmatprep.mubr.bf16.mxu0 %v5519_v3  ;;  %1496 = vmatprep.mubr.bf16.mxu1 %v5519_v3 }
 0x4d1   : > { %1426 = vmatpush1.bf16.msra.mxu0 %v4502_v27  ;;  %1467 = vmatpush1.bf16.msra.mxu1 %v4513_v29 }
 0x4d2   : > { %1427 = vmatprep.subr.bf16.mxu0 %v4508_v28  ;;  %1468 = vmatprep.subr.bf16.mxu1 %v4518_v30 }
 0x4d5   : > { %1428 = vmatpush1.bf16.msra.mxu0 %v4524_v32  ;;  %1469 = vmatpush1.bf16.msra.mxu1 %v4534_v34 }
 0x4d6   : > { %1429 = vmatprep.subr.bf16.mxu0 %v4529_v33  ;;  %1470 = vmatprep.subr.bf16.mxu1 %v4539_v35 }
 0x4d9   : > { %1430 = vmatpush1.bf16.msra.mxu0 %v4545_v36  ;;  %1471 = vmatpush1.bf16.msra.mxu1 %v4555_v6 }
 0x4da   : > { %1431 = vmatprep.subr.bf16.mxu0 %v4550_v37  ;;  %1472 = vmatprep.subr.bf16.mxu1 %v4560_v7 }
 0x4dd   : > { %1432 = vmatpush1.bf16.msra.mxu0 %v4565_v8  ;;  %1473 = vmatpush1.bf16.msra.mxu1 %v4575_v10 }
 0x4de   : > { %1433 = vmatprep.subr.bf16.mxu0 %v4570_v9  ;;  %1474 = vmatprep.subr.bf16.mxu1 %v4580_v11 }
 0x4e1   : > { %1434 = vmatpush1.bf16.msra.mxu0 %v4585_v12  ;;  %1475 = vmatpush1.bf16.msra.mxu1 %v4595_v18 }
 0x4e2   : > { %1435 = vmatprep.subr.bf16.mxu0 %v4590_v17  ;;  %1476 = vmatprep.subr.bf16.mxu1 %v4600_v19 }
 0x4e5   : > { %1436 = vmatpush1.bf16.msra.mxu0 %v4605_v20  ;;  %1477 = vmatpush1.bf16.msra.mxu1 %v4615_v22 }
 0x4e6   : > { %1437 = vmatprep.subr.bf16.mxu0 %v4610_v21  ;;  %1478 = vmatprep.subr.bf16.mxu1 %v4620_v23 }
 0x4e9   : > { %1438 = vmatpush1.bf16.msra.mxu0 %v4625_v24  ;;  %1479 = vmatpush1.bf16.msra.mxu1 %v4631_v63 }
 0x4ea   : > { %1539 = vmatprep.subr.bf16.mxu0 %v4476_v13  ;;  %1580 = vmatprep.subr.bf16.mxu1 %v4488_v16 }
 0x59f   : > { %v1341_v1 = vpop.f32.mrb[12].mxu0  ;;  %v1382_v59 = vpop.f32.mrb[12].mxu1 }
 0x5a0   : > { %v1389_v60 = vadd.f32 %v1341_v1, %v1302_v4  ;;  %v1343_v55 = vpop.f32.mrb[13].mxu0  ;;  %v1384_v31 = vpop.f32.mrb[13].mxu1  ;;  %v1391_v56 = vadd.f32 %v1382_v59, %v1304_v47 }
 0x5a1   : > { %v1390_v49 = vadd.f32 %v1343_v55, %v1303_v5  ;;  %v1345_v0 = vpop.f32.mrb[14].mxu0  ;;  %v1386_v2 = vpop.f32.mrb[14].mxu1  ;;  %v1392_v51 = vadd.f32 %v1384_v31, %v1305_v57 }
 0x5a2   : > { %v3347_v46 = vmul.f32 -1.442695, %v1389_v60  ;;  %v1346_v48 = vpop.f32.mrb[15].mxu0  ;;  %v1387_v54 = vpop.f32.mrb[15].mxu1 }
 0x5a3   : > { %v3348_v58 = vmul.f32 -1.442695, %v1390_v49  ;;  %v3349_v52 = vmul.f32 -1.442695, %v1392_v51 }
 0x5a4   : > { %3666 = vpow2.f32 %v3347_v46 }
 0x5a5   : > { %3668 = vpow2.f32 %v3348_v58  ;;  %v1419_v58 = vld [vmem:[#allocation2 + $0x88] sm:$0xff] }
 0x5a6   : > { %3670 = vpow2.f32 %v3349_v52 }
 0x5a7   : > { %3672 = vtanh.f32 %v1391_v56 }
 0x5ae   : > { %v3667_v53 = vpop.eup %3666 }
 0x5af   : > { %v3669_v61 = vpop.eup %3668  ;;  %v1396_v62 = vadd.f32 1.0, %v3667_v53 }
 0x5b0   : > { %v1402_v4 = vadd.f32 1.0, %v3669_v61  ;;  %v3671_v5 = vpop.eup %3670 }
 0x5b1   : > { %3674 = vrcp.f32 %v1396_v62  ;;  %v3673_v1 = vpop.eup %3672  ;;  %v1409_v0 = vadd.f32 1.0, %v3671_v5 }
 0x5b2   : > { %3676 = vrcp.f32 %v1402_v4 }
 0x5b3   : > { %3678 = vrcp.f32 %v1409_v0  ;;  %v1420_v0 = vld [vmem:[#allocation2 + $0x90] sm:$0xff] }
 0x5bb   : > { %v3675_v60 = vpop.eup %3674 }
 0x5bc   : > { %v3677_v55 = vpop.eup %3676  ;;  %v1413_v49 = vmul.f32 %v3675_v60, %v3673_v1 }
 0x5bd   : > { %v1412_v2 = vmul.f32 %v3677_v55, %v4748_v50  ;;  %v3679_v59 = vpop.eup %3678  ;;  %v1418_v50 = vld [vmem:[#allocation2 + $0x80] sm:$0xff]  ;;  %v1421_v55 = vld [vmem:[#allocation2 + $0x98] sm:$0xff] }
 0x5bf   : > { %v4786_v31 = vadd.f32 %v1413_v49, %v1412_v2 }
 0x5c1   : > { %3680 = vtanh.f32 %v4786_v31 }
 0x5cb   : > { %v3681_v46 = vpop.eup %3680 }
 0x5cc   : > { %v1416_v48 = vmul.f32 %v3681_v46, %v3679_v59 }
 0x5ce   : > { %v1422_v54 = vpack.c.bf16 %v1416_v48, %v1416_v48 }
 0x5d0   : > { %1456 = vmatmul.mubr.bf16.vlgmr.msra.gmra.mrb[16].mxu0 %v1422_v54  ;;  %1497 = vmatmul.mubr.bf16.vlgmr.msra.gmra.mrb[16].mxu1 %v1422_v54 }
 0x5d1   : > { %1540 = vmatpush1.bf16.msra.mxu0 %v4480_v14  ;;  %1581 = vmatpush1.bf16.msra.mxu1 %v4493_v25 }
 0x5d2   : > { %1541 = vmatprep.subr.bf16.mxu0 %v4484_v15  ;;  %1582 = vmatprep.subr.bf16.mxu1 %v4497_v26 }
 0x5d3   : > { %1571 = vmatprep.mubr.bf16.mxu0 %v5519_v3  ;;  %1612 = vmatprep.mubr.bf16.mxu1 %v5519_v3 }
 0x5d5   : > { %1542 = vmatpush1.bf16.msra.mxu0 %v4502_v27  ;;  %1583 = vmatpush1.bf16.msra.mxu1 %v4513_v29 }
 0x5d6   : > { %1543 = vmatprep.subr.bf16.mxu0 %v4508_v28  ;;  %1584 = vmatprep.subr.bf16.mxu1 %v4518_v30 }
 0x5d9   : > { %1544 = vmatpush1.bf16.msra.mxu0 %v4524_v32  ;;  %1585 = vmatpush1.bf16.msra.mxu1 %v4534_v34 }
 0x5da   : > { %1545 = vmatprep.subr.bf16.mxu0 %v4529_v33  ;;  %1586 = vmatprep.subr.bf16.mxu1 %v4539_v35 }
 0x5dd   : > { %1546 = vmatpush1.bf16.msra.mxu0 %v4545_v36  ;;  %1587 = vmatpush1.bf16.msra.mxu1 %v4555_v6 }
 0x5de   : > { %1547 = vmatprep.subr.bf16.mxu0 %v4550_v37  ;;  %1588 = vmatprep.subr.bf16.mxu1 %v4560_v7 }
 0x5e1   : > { %1548 = vmatpush1.bf16.msra.mxu0 %v4565_v8  ;;  %1589 = vmatpush1.bf16.msra.mxu1 %v4575_v10 }
 0x5e2   : > { %1549 = vmatprep.subr.bf16.mxu0 %v4570_v9  ;;  %1590 = vmatprep.subr.bf16.mxu1 %v4580_v11 }
 0x5e5   : > { %1550 = vmatpush1.bf16.msra.mxu0 %v4585_v12  ;;  %1591 = vmatpush1.bf16.msra.mxu1 %v4595_v18 }
 0x5e6   : > { %1551 = vmatprep.subr.bf16.mxu0 %v4590_v17  ;;  %1592 = vmatprep.subr.bf16.mxu1 %v4600_v19 }
 0x5e9   : > { %1552 = vmatpush1.bf16.msra.mxu0 %v4605_v20  ;;  %1593 = vmatpush1.bf16.msra.mxu1 %v4615_v22 }
 0x5ea   : > { %1553 = vmatprep.subr.bf16.mxu0 %v4610_v21  ;;  %1594 = vmatprep.subr.bf16.mxu1 %v4620_v23 }
 0x5ed   : > { %1554 = vmatpush1.bf16.msra.mxu0 %v4625_v24  ;;  %1595 = vmatpush1.bf16.msra.mxu1 %v4631_v63 }
 0x5ee   : > { %1655 = vmatprep.subr.bf16.mxu0 %v4476_v13  ;;  %1696 = vmatprep.subr.bf16.mxu1 %v4488_v16 }
 0x6a3   : > { %v1457_v57 = vpop.f32.mrb[16].mxu0  ;;  %v1498_v51 = vpop.f32.mrb[16].mxu1 }
 0x6a4   : > { %v1505_v47 = vadd.f32 %v1457_v57, %v1418_v50  ;;  %v1459_v52 = vpop.f32.mrb[17].mxu0  ;;  %v1500_v56 = vpop.f32.mrb[17].mxu1  ;;  %v1507_v59 = vadd.f32 %v1498_v51, %v1420_v0 }
 0x6a5   : > { %v1506_v53 = vadd.f32 %v1459_v52, %v1419_v58  ;;  %v1461_v61 = vpop.f32.mrb[18].mxu0  ;;  %v1502_v62 = vpop.f32.mrb[18].mxu1  ;;  %v1508_v49 = vadd.f32 %v1500_v56, %v1421_v55 }
 0x6a6   : > { %v3350_v4 = vmul.f32 -1.442695, %v1505_v47  ;;  %v1462_v5 = vpop.f32.mrb[19].mxu0  ;;  %v1503_v1 = vpop.f32.mrb[19].mxu1 }
 0x6a7   : > { %v3351_v60 = vmul.f32 -1.442695, %v1506_v53  ;;  %v3352_v2 = vmul.f32 -1.442695, %v1508_v49 }
 0x6a8   : > { %3682 = vpow2.f32 %v3350_v4 }
 0x6a9   : > { %3684 = vpow2.f32 %v3351_v60  ;;  %v1535_v60 = vld [vmem:[#allocation2 + $0xa8] sm:$0xff] }
 0x6aa   : > { %3686 = vpow2.f32 %v3352_v2 }
 0x6ab   : > { %3688 = vtanh.f32 %v1507_v59 }
 0x6b2   : > { %v3683_v46 = vpop.eup %3682 }
 0x6b3   : > { %v3685_v48 = vpop.eup %3684  ;;  %v1512_v54 = vadd.f32 1.0, %v3683_v46 }
 0x6b4   : > { %v1518_v50 = vadd.f32 1.0, %v3685_v48  ;;  %v3687_v58 = vpop.eup %3686 }
 0x6b5   : > { %3690 = vrcp.f32 %v1512_v54  ;;  %v3689_v57 = vpop.eup %3688  ;;  %v1525_v61 = vadd.f32 1.0, %v3687_v58 }
 0x6b6   : > { %3692 = vrcp.f32 %v1518_v50 }
 0x6b7   : > { %3694 = vrcp.f32 %v1525_v61 }
 0x6bf   : > { %v3691_v47 = vpop.eup %3690 }
 0x6c0   : > { %v3693_v52 = vpop.eup %3692  ;;  %v1529_v53 = vmul.f32 %v3691_v47, %v3689_v57 }
 0x6c1   : > { %v1528_v62 = vmul.f32 %v3693_v52, %v4786_v31  ;;  %v3695_v51 = vpop.eup %3694  ;;  %v1534_v31 = vld [vmem:[#allocation2 + $0xa0] sm:$0xff]  ;;  %v1537_v52 = vld [vmem:[#allocation2 + $0xb8] sm:$0xff] }
 0x6c3   : > { %v4824_v56 = vadd.f32 %v1529_v53, %v1528_v62  ;;  %v1536_v53 = vld [vmem:[#allocation2 + $0xb0] sm:$0xff] }
 0x6c5   : > { %3696 = vtanh.f32 %v4824_v56 }
 0x6cf   : > { %v3697_v4 = vpop.eup %3696 }
 0x6d0   : > { %v1532_v5 = vmul.f32 %v3697_v4, %v3695_v51 }
 0x6d2   : > { %v1538_v1 = vpack.c.bf16 %v1532_v5, %v1532_v5 }
 0x6d4   : > { %1572 = vmatmul.mubr.bf16.vlgmr.msra.gmra.mrb[20].mxu0 %v1538_v1  ;;  %1613 = vmatmul.mubr.bf16.vlgmr.msra.gmra.mrb[20].mxu1 %v1538_v1 }
 0x6d5   : > { %1656 = vmatpush1.bf16.msra.mxu0 %v4480_v14  ;;  %1697 = vmatpush1.bf16.msra.mxu1 %v4493_v25 }
 0x6d6   : > { %1657 = vmatprep.subr.bf16.mxu0 %v4484_v15  ;;  %1698 = vmatprep.subr.bf16.mxu1 %v4497_v26 }
 0x6d7   : > { %1687 = vmatprep.mubr.bf16.mxu0 %v5519_v3  ;;  %1728 = vmatprep.mubr.bf16.mxu1 %v5519_v3 }
 0x6d9   : > { %1658 = vmatpush1.bf16.msra.mxu0 %v4502_v27  ;;  %1699 = vmatpush1.bf16.msra.mxu1 %v4513_v29 }
 0x6da   : > { %1659 = vmatprep.subr.bf16.mxu0 %v4508_v28  ;;  %1700 = vmatprep.subr.bf16.mxu1 %v4518_v30 }
 0x6dd   : > { %1660 = vmatpush1.bf16.msra.mxu0 %v4524_v32  ;;  %1701 = vmatpush1.bf16.msra.mxu1 %v4534_v34 }
 0x6de   : > { %1661 = vmatprep.subr.bf16.mxu0 %v4529_v33  ;;  %1702 = vmatprep.subr.bf16.mxu1 %v4539_v35 }
 0x6e1   : > { %1662 = vmatpush1.bf16.msra.mxu0 %v4545_v36  ;;  %1703 = vmatpush1.bf16.msra.mxu1 %v4555_v6 }
 0x6e2   : > { %1663 = vmatprep.subr.bf16.mxu0 %v4550_v37  ;;  %1704 = vmatprep.subr.bf16.mxu1 %v4560_v7 }
 0x6e5   : > { %1664 = vmatpush1.bf16.msra.mxu0 %v4565_v8  ;;  %1705 = vmatpush1.bf16.msra.mxu1 %v4575_v10 }
 0x6e6   : > { %1665 = vmatprep.subr.bf16.mxu0 %v4570_v9  ;;  %1706 = vmatprep.subr.bf16.mxu1 %v4580_v11 }
 0x6e9   : > { %1666 = vmatpush1.bf16.msra.mxu0 %v4585_v12  ;;  %1707 = vmatpush1.bf16.msra.mxu1 %v4595_v18 }
 0x6ea   : > { %1667 = vmatprep.subr.bf16.mxu0 %v4590_v17  ;;  %1708 = vmatprep.subr.bf16.mxu1 %v4600_v19 }
 0x6ed   : > { %1668 = vmatpush1.bf16.msra.mxu0 %v4605_v20  ;;  %1709 = vmatpush1.bf16.msra.mxu1 %v4615_v22 }
 0x6ee   : > { %1669 = vmatprep.subr.bf16.mxu0 %v4610_v21  ;;  %1710 = vmatprep.subr.bf16.mxu1 %v4620_v23 }
 0x6f1   : > { %1670 = vmatpush1.bf16.msra.mxu0 %v4625_v24  ;;  %1711 = vmatpush1.bf16.msra.mxu1 %v4631_v63 }
 0x6f2   : > { %1771 = vmatprep.subr.bf16.mxu0 %v4476_v13  ;;  %1812 = vmatprep.subr.bf16.mxu1 %v4488_v16 }
 0x7a7   : > { %v1573_v55 = vpop.f32.mrb[20].mxu0  ;;  %v1614_v49 = vpop.f32.mrb[20].mxu1 }
 0x7a8   : > { %v1621_v0 = vadd.f32 %v1573_v55, %v1534_v31  ;;  %v1575_v2 = vpop.f32.mrb[21].mxu0  ;;  %v1616_v59 = vpop.f32.mrb[21].mxu1  ;;  %v1623_v61 = vadd.f32 %v1614_v49, %v1536_v53 }
 0x7a9   : > { %v1622_v46 = vadd.f32 %v1575_v2, %v1535_v60  ;;  %v1577_v48 = vpop.f32.mrb[22].mxu0  ;;  %v1618_v54 = vpop.f32.mrb[22].mxu1  ;;  %v1624_v13 = vadd.f32 %v1616_v59, %v1537_v52  ;;  %v1766_v52 = vld [vmem:[#allocation2 + $0xe0] sm:$0xff] }
 0x7aa   : > { %v3353_v50 = vmul.f32 -1.442695, %v1621_v0  ;;  %v1578_v58 = vpop.f32.mrb[23].mxu0  ;;  %v1619_v57 = vpop.f32.mrb[23].mxu1 }
 0x7ab   : > { %v3354_v47 = vmul.f32 -1.442695, %v1622_v46  ;;  %v3355_v16 = vmul.f32 -1.442695, %v1624_v13  ;;  %v1767_v13 = vld [vmem:[#allocation2 + $0xe8] sm:$0xff] }
 0x7ac   : > { %3698 = vpow2.f32 %v3353_v50 }
 0x7ad   : > { %3700 = vpow2.f32 %v3354_v47 }
 0x7ae   : > { %3702 = vpow2.f32 %v3355_v16 }
 0x7af   : > { %3704 = vtanh.f32 %v1623_v61 }
 0x7b6   : > { %v3699_v62 = vpop.eup %3698 }
 0x7b7   : > { %v3701_v51 = vpop.eup %3700  ;;  %v1628_v4 = vadd.f32 1.0, %v3699_v62 }
 0x7b8   : > { %v1634_v5 = vadd.f32 1.0, %v3701_v51  ;;  %v3703_v1 = vpop.eup %3702 }
 0x7b9   : > { %3706 = vrcp.f32 %v1628_v4  ;;  %v3705_v31 = vpop.eup %3704  ;;  %v1641_v2 = vadd.f32 1.0, %v3703_v1 }
 0x7ba   : > { %3708 = vrcp.f32 %v1634_v5 }
 0x7bb   : > { %3710 = vrcp.f32 %v1641_v2  ;;  %v1769_v2 = vld [vmem:[#allocation2 + $0xf8] sm:$0xff] }
 0x7c3   : > { %v3707_v60 = vpop.eup %3706 }
 0x7c4   : > { %v3709_v55 = vpop.eup %3708  ;;  %v1645_v0 = vmul.f32 %v3707_v60, %v3705_v31 }
 0x7c5   : > { %v1644_v46 = vmul.f32 %v3709_v55, %v4824_v56  ;;  %v3711_v49 = vpop.eup %3710 }
 0x7c7   : > { %v4862_v59 = vadd.f32 %v1645_v0, %v1644_v46 }
 0x7c9   : > { %3712 = vtanh.f32 %v4862_v59 }
 0x7d3   : > { %v3713_v48 = vpop.eup %3712 }
 0x7d4   : > { %v1648_v54 = vmul.f32 %v3713_v48, %v3711_v49 }
 0x7d6   : > { %v1654_v50 = vpack.c.bf16 %v1648_v54, %v1648_v54 }
 0x7d8   : > { %1688 = vmatmul.mubr.bf16.vlgmr.msra.gmra.mrb[24].mxu0 %v1654_v50  ;;  %1729 = vmatmul.mubr.bf16.vlgmr.msra.gmra.mrb[24].mxu1 %v1654_v50 }
 0x7d9   : > { %1772 = vmatpush1.bf16.msra.mxu0 %v4480_v14  ;;  %1813 = vmatpush1.bf16.msra.mxu1 %v4493_v25  ;;  %v1651_v14 = vld [vmem:[#allocation2 + $0xc8] sm:$0xff] }
 0x7da   : > { %1773 = vmatprep.subr.bf16.mxu0 %v4484_v15  ;;  %1814 = vmatprep.subr.bf16.mxu1 %v4497_v26 }
 0x7db   : > { %1803 = vmatprep.mubr.bf16.mxu0 %v5519_v3  ;;  %1844 = vmatprep.mubr.bf16.mxu1 %v5519_v3  ;;  %v1650_v3 = vld [vmem:[#allocation2 + $0xc0] sm:$0xff] }
 0x7dd   : > { %1774 = vmatpush1.bf16.msra.mxu0 %v4502_v27  ;;  %1815 = vmatpush1.bf16.msra.mxu1 %v4513_v29 }
 0x7de   : > { %1775 = vmatprep.subr.bf16.mxu0 %v4508_v28  ;;  %1816 = vmatprep.subr.bf16.mxu1 %v4518_v30 }
 0x7e1   : > { %1776 = vmatpush1.bf16.msra.mxu0 %v4524_v32  ;;  %1817 = vmatpush1.bf16.msra.mxu1 %v4534_v34 }
 0x7e2   : > { %1777 = vmatprep.subr.bf16.mxu0 %v4529_v33  ;;  %1818 = vmatprep.subr.bf16.mxu1 %v4539_v35 }
 0x7e5   : > { %1778 = vmatpush1.bf16.msra.mxu0 %v4545_v36  ;;  %1819 = vmatpush1.bf16.msra.mxu1 %v4555_v6 }
 0x7e6   : > { %1779 = vmatprep.subr.bf16.mxu0 %v4550_v37  ;;  %1820 = vmatprep.subr.bf16.mxu1 %v4560_v7  ;;  %v1653_v37 = vld [vmem:[#allocation2 + $0xd8] sm:$0xff]  ;;  %v1652_v7 = vld [vmem:[#allocation2 + $0xd0] sm:$0xff] }
 0x7e9   : > { %1780 = vmatpush1.bf16.msra.mxu0 %v4565_v8  ;;  %1821 = vmatpush1.bf16.msra.mxu1 %v4575_v10 }
 0x7ea   : > { %1781 = vmatprep.subr.bf16.mxu0 %v4570_v9  ;;  %1822 = vmatprep.subr.bf16.mxu1 %v4580_v11 }
 0x7ed   : > { %1782 = vmatpush1.bf16.msra.mxu0 %v4585_v12  ;;  %1823 = vmatpush1.bf16.msra.mxu1 %v4595_v18 }
 0x7ee   : > { %1783 = vmatprep.subr.bf16.mxu0 %v4590_v17  ;;  %1824 = vmatprep.subr.bf16.mxu1 %v4600_v19 }
 0x7f1   : > { %1784 = vmatpush1.bf16.msra.mxu0 %v4605_v20  ;;  %1825 = vmatpush1.bf16.msra.mxu1 %v4615_v22 }
 0x7f2   : > { %1785 = vmatprep.subr.bf16.mxu0 %v4610_v21  ;;  %1826 = vmatprep.subr.bf16.mxu1 %v4620_v23 }
 0x7f5   : > { %1786 = vmatpush1.bf16.msra.mxu0 %v4625_v24  ;;  %1827 = vmatpush1.bf16.msra.mxu1 %v4631_v63 }
 0x8ab   : > { %v1689_v15 = vpop.f32.mrb[24].mxu0  ;;  %v1730_v25 = vpop.f32.mrb[24].mxu1 }
 0x8ac   : > { %v1737_v26 = vadd.f32 %v1689_v15, %v1650_v3  ;;  %v1691_v27 = vpop.f32.mrb[25].mxu0  ;;  %v1732_v28 = vpop.f32.mrb[25].mxu1  ;;  %v1739_v8 = vadd.f32 %v1730_v25, %v1652_v7 }
 0x8ad   : > { %v1738_v29 = vadd.f32 %v1691_v27, %v1651_v14  ;;  %v1693_v30 = vpop.f32.mrb[26].mxu0  ;;  %v1734_v32 = vpop.f32.mrb[26].mxu1  ;;  %v1740_v6 = vadd.f32 %v1732_v28, %v1653_v37 }
 0x8ae   : > { %v3356_v33 = vmul.f32 -1.442695, %v1737_v26  ;;  %v1694_v34 = vpop.f32.mrb[27].mxu0  ;;  %v1735_v35 = vpop.f32.mrb[27].mxu1 }
 0x8af   : > { %v3357_v36 = vmul.f32 -1.442695, %v1738_v29  ;;  %v3358_v63 = vmul.f32 -1.442695, %v1740_v6 }
 0x8b0   : > { %3714 = vpow2.f32 %v3356_v33 }
 0x8b1   : > { %3716 = vpow2.f32 %v3357_v36 }
 0x8b2   : > { %3718 = vpow2.f32 %v3358_v63 }
 0x8b3   : > { %3720 = vtanh.f32 %v1739_v8 }
 0x8ba   : > { %v3715_v9 = vpop.eup %3714 }
 0x8bb   : > { %v3717_v10 = vpop.eup %3716  ;;  %v1744_v11 = vadd.f32 1.0, %v3715_v9 }
 0x8bc   : > { %v1750_v12 = vadd.f32 1.0, %v3717_v10  ;;  %v3719_v17 = vpop.eup %3718 }
 0x8bd   : > { %3722 = vrcp.f32 %v1744_v11  ;;  %v3721_v18 = vpop.eup %3720  ;;  %v1757_v22 = vadd.f32 1.0, %v3719_v17 }
 0x8be   : > { %3724 = vrcp.f32 %v1750_v12 }
 0x8bf   : > { %3726 = vrcp.f32 %v1757_v22 }
 0x8c7   : > { %v3723_v19 = vpop.eup %3722 }
 0x8c8   : > { %v3725_v20 = vpop.eup %3724  ;;  %v1761_v21 = vmul.f32 %v3723_v19, %v3721_v18 }
 0x8c9   : > { %v1760_v23 = vmul.f32 %v3725_v20, %v4862_v59  ;;  %v3727_v56 = vpop.eup %3726  ;;  %v1768_v59 = vld [vmem:[#allocation2 + $0xf0] sm:$0xff] }
 0x8cb   : > { %v1762_v24 = vadd.f32 %v1761_v21, %v1760_v23 }
 0x8cd   : > { %3728 = vtanh.f32 %v1762_v24 }
 0x8d7   : > { %v3729_v58 = vpop.eup %3728 }
 0x8d8   : > { %v1764_v57 = vmul.f32 %v3729_v58, %v3727_v56 }
 0x8da   : > { %v1770_v47 = vpack.c.bf16 %v1764_v57, %v1764_v57 }
 0x8dc   : > { %1804 = vmatmul.mubr.bf16.vlgmr.msra.gmra.mrb[28].mxu0 %v1770_v47  ;;  %1845 = vmatmul.mubr.bf16.vlgmr.msra.gmra.mrb[28].mxu1 %v1770_v47 }
 0x9af   : > { %v1805_v53 = vpop.f32.mrb[28].mxu0  ;;  %v1846_v16 = vpop.f32.mrb[28].mxu1 }
 0x9b0   : > { %v1853_v61 = vadd.f32 %v1805_v53, %v1766_v52  ;;  %v1807_v62 = vpop.f32.mrb[29].mxu0  ;;  %v1848_v51 = vpop.f32.mrb[29].mxu1  ;;  %v1855_v48 = vadd.f32 %v1846_v16, %v1768_v59 }
 0x9b1   : > { %v1854_v4 = vadd.f32 %v1807_v62, %v1767_v13  ;;  %v1809_v5 = vpop.f32.mrb[30].mxu0  ;;  %v1850_v1 = vpop.f32.mrb[30].mxu1  ;;  %v1856_v46 = vadd.f32 %v1848_v51, %v1769_v2 }
 0x9b2   : > { %v3359_v31 = vmul.f32 -1.442695, %v1853_v61  ;;  %v1810_v60 = vpop.f32.mrb[31].mxu0  ;;  %v1851_v55 = vpop.f32.mrb[31].mxu1 }
 0x9b3   : > { %v3360_v0 = vmul.f32 -1.442695, %v1854_v4  ;;  %v3361_v49 = vmul.f32 -1.442695, %v1856_v46 }
 0x9b4   : > { %3730 = vpow2.f32 %v3359_v31 }
 0x9b5   : > { %3732 = vpow2.f32 %v3360_v0 }
 0x9b6   : > { %3734 = vpow2.f32 %v3361_v49 }
 0x9b7   : > { %3736 = vtanh.f32 %v1855_v48 }
 0x9be   : > { %v3731_v54 = vpop.eup %3730 }
 0x9bf   : > { %v3733_v50 = vpop.eup %3732  ;;  %v1860_v3 = vadd.f32 1.0, %v3731_v54 }
 0x9c0   : > { %v1866_v14 = vadd.f32 1.0, %v3733_v50  ;;  %v3735_v15 = vpop.eup %3734 }
 0x9c1   : > { %3738 = vrcp.f32 %v1860_v3  ;;  %v3737_v25 = vpop.eup %3736  ;;  %v1873_v29 = vadd.f32 1.0, %v3735_v15 }
 0x9c2   : > { %3740 = vrcp.f32 %v1866_v14 }
 0x9c3   : > { %3742 = vrcp.f32 %v1873_v29 }
 0x9cb   : > { %v3739_v26 = vpop.eup %3738 }
 0x9cc   : > { %v3741_v27 = vpop.eup %3740  ;;  %v1877_v28 = vmul.f32 %v3739_v26, %v3737_v25 }
 0x9cd   : > { %v1876_v30 = vmul.f32 %v3741_v27, %v1762_v24  ;;  %v3743_v33 = vpop.eup %3742 }
 0x9cf   : > { %v1878_v32 = vadd.f32 %v1877_v28, %v1876_v30 }
 0x9d1   : > { %3744 = vtanh.f32 %v1878_v32  ;;  %1882 = vst [vmem:[#allocation4] sm:$0xff] %v1878_v32 }
 0x9db   : > { %v3745_v34 = vpop.eup %3744 }
 0x9dc   : > { %v1880_v35 = vmul.f32 %v3745_v34, %v3743_v33 }
 0x9de   : > { %1881 = vst [vmem:[#allocation3] sm:$0xff] %v1880_v35 }
 0x9df PF: > { %p3362_p5 = scmp.ne.s32.totalorder %s4080_s24, 1 }
 0x9e0   : > { %v4901_v36 = vcombine.high (!%p3362_p5), %v4363_v38, %v4367_v40  ;;  %v4905_v37 = vcombine.low (!%p3362_p5), %v4363_v38, %v4367_v40  ;;  %v4909_v6 = vcombine.high (!%p3362_p5), %v4374_v42, %v4378_v44  ;;  %v4913_v7 = vcombine.high (!%p3362_p5), %v4365_v39, %v4372_v41  ;;  %v5520_v40 = vld [vmem:[#allocation20_spill] sm:$0xff] (!%p3362_p5)  ;;  %v5521_v9 = vld [vmem:[#allocation18_spill] sm:$0xff] (!%p3362_p5)  ;;  %v5523_v11 = vld [vmem:[#allocation19_spill] sm:$0xff] (!%p3362_p5)  ;;  %p2163_p9 = scmp.lt.s32.totalorder (!%p3362_p5), %s4370_s28, 12  ;;  %s2285_s11 = sadd.s32 (!%p3362_p5), 1, %s4370_s28 }
 0x9e1   : > { %1885 = sbr.rel (%p3362_p5) target bundleno = 4891 (0x131b), region = 72  ;;  %v4918_v63 = vcombine.low (!%p3362_p5), %v4365_v39, %v4372_v41  ;;  %v4922_v8 = vcombine.high (!%p3362_p5), %v4376_v43, %v4380_v45  ;;  %v4927_v38 = vcombine.low (!%p3362_p5), %v4374_v42, %v4378_v44  ;;  %v4933_v10 = vcombine.high (!%p3362_p5), %v5521_v9, %v5520_v40  ;;  %v5522_v41 = vld [vmem:[#allocation21_spill] sm:$0xff] (!%p3362_p5)  ;;  %v5524_v17 = vld [vmem:[#allocation24_spill] sm:$0xff] (!%p3362_p5)  ;;  %v5527_v20 = vld [vmem:[#allocation23_spill] sm:$0xff] (!%p3362_p5)  ;;  %p2286_p12 = scmp.lt.s32.totalorder (!%p3362_p5), %s2285_s11, 12 }
 0x9e2   : > { %2053 = vmatprep.subr.bf16.mxu0 (!%p3362_p5), %v4901_v36  ;;  %2094 = vmatprep.subr.bf16.mxu1 (!%p3362_p5), %v4913_v7  ;;  %v4938_v39 = vcombine.low (!%p3362_p5), %v4376_v43, %v4380_v45  ;;  %v4943_v42 = vcombine.high (!%p3362_p5), %v5523_v11, %v5522_v41  ;;  %v4101_v44 = vmov (!%p3362_p5), 0   ;;  %v4949_v12 = vcombine.low (!%p3362_p5), %v5521_v9, %v5520_v40  ;;  %v5525_v43 = vld [vmem:[#allocation22_spill] sm:$0xff] (!%p3362_p5)  ;;  %v5526_v19 = vld [vmem:[#allocation25_spill] sm:$0xff] (!%p3362_p5)  ;;  %v5528_v23 = vld [vmem:[#allocation28_spill] sm:$0xff] (!%p3362_p5)  ;;  %s2408_s20 = sadd.s32 (!%p3362_p5), 2, %s4370_s28  ;;  %s2531_s19 = sadd.s32 (!%p3362_p5), 3, %s4370_s28 }
 0x9e3   : > { %2054 = vmatpush1.bf16.msra.mxu0 (!%p3362_p5), %v4905_v37  ;;  %2095 = vmatpush1.bf16.msra.mxu1 (!%p3362_p5), %v4918_v63  ;;  %v4954_v45 = vcombine.high (!%p3362_p5), %v5525_v43, %v5524_v17  ;;  %v4959_v18 = vcombine.low (!%p3362_p5), %v5523_v11, %v5522_v41  ;;  %v4964_v21 = vcombine.high (!%p3362_p5), %v5527_v20, %v5526_v19  ;;  %v5529_v24 = vld [vmem:[#allocation26_spill] sm:$0xff] (!%p3362_p5)  ;;  %v5530_v57 = vld [vmem:[#allocation29_spill] sm:$0xff] (!%p3362_p5)  ;;  %v5531_v47 = vld [vmem:[#allocation27_spill] sm:$0xff] (!%p3362_p5)  ;;  %p2409_p13 = scmp.lt.s32.totalorder (!%p3362_p5), %s2408_s20, 12  ;;  %p2532_p0 = scmp.lt.s32.totalorder (!%p3362_p5), %s2531_s19, 12  ;;  %vm4103_vm7 = vmmov (!%p3362_p5), 0  }
 0x9e4   : > { %2055 = vmatprep.subr.bf16.mxu0 (!%p3362_p5), %v4909_v6  ;;  %2096 = vmatprep.subr.bf16.mxu1 (!%p3362_p5), %v4922_v8  ;;  %v4970_v22 = vcombine.low (!%p3362_p5), %v5525_v43, %v5524_v17  ;;  %v4975_v56 = vcombine.high (!%p3362_p5), %v5529_v24, %v5528_v23  ;;  %v4980_v58 = vcombine.low (!%p3362_p5), %v5527_v20, %v5526_v19  ;;  %v5532_v53 = vld [vmem:[#allocation32_spill] sm:$0xff] (!%p3362_p5)  ;;  %v5533_v16 = vld [vmem:[#allocation30_spill] sm:$0xff] (!%p3362_p5)  ;;  %v5534_v51 = vld [vmem:[#allocation33_spill] sm:$0xff] (!%p3362_p5)  ;;  %s2654_s15 = sadd.s32 (!%p3362_p5), 4, %s4370_s28  ;;  %s2777_s9 = sadd.s32 (!%p3362_p5), 5, %s4370_s28 }
 0x9e5   : > { %2085 = vmatprep.mubr.bf16.mxu0 (!%p3362_p5), %v4101_v44  ;;  %2126 = vmatprep.mubr.bf16.mxu1 (!%p3362_p5), %v4101_v44  ;;  %v4985_v52 = vcombine.high (!%p3362_p5), %v5531_v47, %v5530_v57  ;;  %v4990_v13 = vcombine.low (!%p3362_p5), %v5529_v24, %v5528_v23  ;;  %v4995_v61 = vcombine.high (!%p3362_p5), %v5533_v16, %v5532_v53  ;;  %v5535_v4 = vld [vmem:[#allocation31_spill] sm:$0xff] (!%p3362_p5)  ;;  %v5536_v31 = vld [vmem:[#allocation36_spill] sm:$0xff] (!%p3362_p5)  ;;  %v5537_v60 = vld [vmem:[#allocation34_spill] sm:$0xff] (!%p3362_p5)  ;;  %p2655_p2 = scmp.lt.s32.totalorder (!%p3362_p5), %s2654_s15, 12  ;;  %p2778_p6 = scmp.lt.s32.totalorder (!%p3362_p5), %s2777_s9, 12 }
 0x9e6   : > { %v5000_v62 = vcombine.low (!%p3362_p5), %v5531_v47, %v5530_v57  ;;  %v5005_v5 = vcombine.high (!%p3362_p5), %v5535_v4, %v5534_v51  ;;  %v5010_v1 = vcombine.low (!%p3362_p5), %v5533_v16, %v5532_v53  ;;  %v5015_v55 = vcombine.high (!%p3362_p5), %v5537_v60, %v5536_v31  ;;  %v5538_v2 = vld [vmem:[#allocation37_spill] sm:$0xff] (!%p3362_p5)  ;;  %v5539_v46 = vld [vmem:[#allocation35_spill] sm:$0xff] (!%p3362_p5)  ;;  %v5540_v48 = vld [vmem:[#allocation40_spill] sm:$0xff] (!%p3362_p5)  ;;  %s2900_s14 = sadd.s32 (!%p3362_p5), 6, %s4370_s28  ;;  %s3023_s18 = sadd.s32 (!%p3362_p5), 7, %s4370_s28 }
 0x9e7   : > { %2056 = vmatpush1.bf16.msra.mxu0 (!%p3362_p5), %v4927_v38  ;;  %2097 = vmatpush1.bf16.msra.mxu1 (!%p3362_p5), %v4938_v39  ;;  %v5020_v0 = vcombine.low (!%p3362_p5), %v5535_v4, %v5534_v51  ;;  %v5025_v59 = vcombine.high (!%p3362_p5), %v5539_v46, %v5538_v2  ;;  %v5030_v49 = vcombine.low (!%p3362_p5), %v5537_v60, %v5536_v31  ;;  %v5541_v54 = vld [vmem:[#allocation38_spill] sm:$0xff] (!%p3362_p5)  ;;  %v5542_v14 = vld [vmem:[#allocation41_spill] sm:$0xff] (!%p3362_p5)  ;;  %v5543_v15 = vld [vmem:[#allocation39_spill] sm:$0xff] (!%p3362_p5)  ;;  %p2901_p10 = scmp.lt.s32.totalorder (!%p3362_p5), %s2900_s14, 12  ;;  %p3024_p1 = scmp.lt.s32.totalorder (!%p3362_p5), %s3023_s18, 12 }
 0x9e8   : > { %2057 = vmatprep.subr.bf16.mxu0 %v4933_v10  ;;  %2098 = vmatprep.subr.bf16.mxu1 %v4943_v42  ;;  %v5035_v50 = vcombine.high %v5541_v54, %v5540_v48  ;;  %v5040_v3 = vcombine.low %v5539_v46, %v5538_v2  ;;  %v5045_v25 = vcombine.high %v5543_v15, %v5542_v14  ;;  %v5052_v27 = vld [vmem:[#allocation3] sm:$0xff]  ;;  %v1889_v32 = vld [vmem:[#allocation2 + $0x8] sm:$0xff]  ;;  %v1891_v23 = vld [vmem:[#allocation2 + $0x18] sm:$0xff]  ;;  %s2164_s24 = scalar_select %p2163_p9, 1, 0 }
 0x9e9   : > { %v5050_v26 = vcombine.low %v5541_v54, %v5540_v48  ;;  %v5058_v28 = vcombine.low %v5543_v15, %v5542_v14  ;;  %v1892_v29 = vpack.c.bf16 %v5052_v27, %v5052_v27  ;;  %v1888_v30 = vld [vmem:[#allocation2] sm:$0xff]  ;;  %v1890_v47 = vld [vmem:[#allocation2 + $0x10] sm:$0xff]  ;;  %v1887_v48 = vld [vmem:[#allocation4] sm:$0xff]  ;;  %s2287_s10 = scalar_select %p2286_p12, 1, 0 }
 0x9ea   : > { %v2165_v15 = vstv %s2164_s24  ;;  %s2410_s8 = scalar_select %p2409_p13, 1, 0 }
 0x9eb   : > { %2058 = vmatpush1.bf16.msra.mxu0 %v4949_v12  ;;  %2099 = vmatpush1.bf16.msra.mxu1 %v4959_v18  ;;  %vm2166_vm0 = vcmp.eq.s32.totalorder %v2165_v15, 1  ;;  %s2533_s12 = scalar_select %p2532_p0, 1, 0 }
 0x9ec   : > { %2059 = vmatprep.subr.bf16.mxu0 %v4954_v45  ;;  %2100 = vmatprep.subr.bf16.mxu1 %v4964_v21  ;;  %s2656_s7 = scalar_select %p2655_p2, 1, 0 }
 0x9ed   : > { %s2779_s16 = scalar_select %p2778_p6, 1, 0 }
 0x9ee   : > { %s2902_s17 = scalar_select %p2901_p10, 1, 0 }
 0x9ef   : > { %2060 = vmatpush1.bf16.msra.mxu0 %v4970_v22  ;;  %2101 = vmatpush1.bf16.msra.mxu1 %v4980_v58  ;;  %s3025_s13 = scalar_select %p3024_p1, 1, 0 }
 0x9f0   : > { %2061 = vmatprep.subr.bf16.mxu0 %v4975_v56  ;;  %2102 = vmatprep.subr.bf16.mxu1 %v4985_v52 }
 0x9f3   : > { %2062 = vmatpush1.bf16.msra.mxu0 %v4990_v13  ;;  %2103 = vmatpush1.bf16.msra.mxu1 %v5000_v62 }
 0x9f4   : > { %2063 = vmatprep.subr.bf16.mxu0 %v4995_v61  ;;  %2104 = vmatprep.subr.bf16.mxu1 %v5005_v5 }
 0x9f7   : > { %2064 = vmatpush1.bf16.msra.mxu0 %v5010_v1  ;;  %2105 = vmatpush1.bf16.msra.mxu1 %v5020_v0 }
 0x9f8   : > { %2065 = vmatprep.subr.bf16.mxu0 %v5015_v55  ;;  %2106 = vmatprep.subr.bf16.mxu1 %v5025_v59 }
 0x9fb   : > { %2066 = vmatpush1.bf16.msra.mxu0 %v5030_v49  ;;  %2107 = vmatpush1.bf16.msra.mxu1 %v5040_v3 }
 0x9fc   : > { %2067 = vmatprep.subr.bf16.mxu0 %v5035_v50  ;;  %2108 = vmatprep.subr.bf16.mxu1 %v5045_v25 }
 0x9ff   : > { %2068 = vmatpush1.bf16.msra.mxu0 %v5050_v26  ;;  %2109 = vmatpush1.bf16.msra.mxu1 %v5058_v28 }
 0xa00   : > { %2175 = vmatprep.subr.bf16.mxu0 %v4901_v36  ;;  %2216 = vmatprep.subr.bf16.mxu1 %v4913_v7 }
 0xa02   : > { %2086 = vmatmul.mubr.bf16.vlgmr.msra.gmra.mrb[0].mxu0 %v1892_v29  ;;  %2127 = vmatmul.mubr.bf16.vlgmr.msra.gmra.mrb[0].mxu1 %v1892_v29 }
 0xa03   : > { %2176 = vmatpush1.bf16.msra.mxu0 %v4905_v37  ;;  %2217 = vmatpush1.bf16.msra.mxu1 %v4918_v63 }
 0xa04   : > { %2177 = vmatprep.subr.bf16.mxu0 %v4909_v6  ;;  %2218 = vmatprep.subr.bf16.mxu1 %v4922_v8 }
 0xa05   : > { %2207 = vmatprep.mubr.bf16.mxu0 %v4101_v44  ;;  %2248 = vmatprep.mubr.bf16.mxu1 %v4101_v44 }
 0xa07   : > { %2178 = vmatpush1.bf16.msra.mxu0 %v4927_v38  ;;  %2219 = vmatpush1.bf16.msra.mxu1 %v4938_v39 }
 0xa08   : > { %2179 = vmatprep.subr.bf16.mxu0 %v4933_v10  ;;  %2220 = vmatprep.subr.bf16.mxu1 %v4943_v42 }
 0xa0b   : > { %2180 = vmatpush1.bf16.msra.mxu0 %v4949_v12  ;;  %2221 = vmatpush1.bf16.msra.mxu1 %v4959_v18 }
 0xa0c   : > { %2181 = vmatprep.subr.bf16.mxu0 %v4954_v45  ;;  %2222 = vmatprep.subr.bf16.mxu1 %v4964_v21 }
 0xa0f   : > { %2182 = vmatpush1.bf16.msra.mxu0 %v4970_v22  ;;  %2223 = vmatpush1.bf16.msra.mxu1 %v4980_v58 }
 0xa10   : > { %2183 = vmatprep.subr.bf16.mxu0 %v4975_v56  ;;  %2224 = vmatprep.subr.bf16.mxu1 %v4985_v52 }
 0xa13   : > { %2184 = vmatpush1.bf16.msra.mxu0 %v4990_v13  ;;  %2225 = vmatpush1.bf16.msra.mxu1 %v5000_v62 }
 0xa14   : > { %2185 = vmatprep.subr.bf16.mxu0 %v4995_v61  ;;  %2226 = vmatprep.subr.bf16.mxu1 %v5005_v5 }
 0xa17   : > { %2186 = vmatpush1.bf16.msra.mxu0 %v5010_v1  ;;  %2227 = vmatpush1.bf16.msra.mxu1 %v5020_v0 }
 0xa18   : > { %2187 = vmatprep.subr.bf16.mxu0 %v5015_v55  ;;  %2228 = vmatprep.subr.bf16.mxu1 %v5025_v59 }
 0xa1b   : > { %2188 = vmatpush1.bf16.msra.mxu0 %v5030_v49  ;;  %2229 = vmatpush1.bf16.msra.mxu1 %v5040_v3 }
 0xa1c   : > { %2189 = vmatprep.subr.bf16.mxu0 %v5035_v50  ;;  %2230 = vmatprep.subr.bf16.mxu1 %v5045_v25 }
 0xa1f   : > { %2190 = vmatpush1.bf16.msra.mxu0 %v5050_v26  ;;  %2231 = vmatpush1.bf16.msra.mxu1 %v5058_v28 }
 0xa20   : > { %2298 = vmatprep.subr.bf16.mxu0 %v4901_v36  ;;  %2339 = vmatprep.subr.bf16.mxu1 %v4913_v7 }
 0xad5   : > { %v2087_v33 = vpop.f32.mrb[0].mxu0  ;;  %v2128_v40 = vpop.f32.mrb[0].mxu1 }
 0xad6   : > { %v2135_v34 = vadd.f32 %v2087_v33, %v1888_v30  ;;  %v2089_v35 = vpop.f32.mrb[1].mxu0  ;;  %v2130_v11 = vpop.f32.mrb[1].mxu1  ;;  %v2137_v16 = vadd.f32 %v2128_v40, %v1890_v47 }
 0xad7   : > { %v2136_v9 = vadd.f32 %v2089_v35, %v1889_v32  ;;  %v2091_v41 = vpop.f32.mrb[2].mxu0  ;;  %v2132_v19 = vpop.f32.mrb[2].mxu1  ;;  %v2138_v57 = vadd.f32 %v2130_v11, %v1891_v23 }
 0xad8   : > { %v3395_v17 = vmul.f32 -1.442695, %v2135_v34  ;;  %v2092_v43 = vpop.f32.mrb[3].mxu0  ;;  %v2133_v24 = vpop.f32.mrb[3].mxu1 }
 0xad9   : > { %v3396_v20 = vmul.f32 -1.442695, %v2136_v9  ;;  %v3397_v53 = vmul.f32 -1.442695, %v2138_v57 }
 0xada   : > { %3754 = vpow2.f32 %v3395_v17  ;;  %v2171_v17 = vld [vmem:[#allocation2 + $0x28] sm:$0xff] }
 0xadb   : > { %3756 = vpow2.f32 %v3396_v20 }
 0xadc   : > { %3758 = vpow2.f32 %v3397_v53 }
 0xadd   : > { %3760 = vtanh.f32 %v2137_v16 }
 0xae4   : > { %v3755_v51 = vpop.eup %3754 }
 0xae5   : > { %v3757_v4 = vpop.eup %3756  ;;  %v2142_v31 = vadd.f32 1.0, %v3755_v51 }
 0xae6   : > { %v2148_v60 = vadd.f32 1.0, %v3757_v4  ;;  %v3759_v2 = vpop.eup %3758 }
 0xae7   : > { %3762 = vrcp.f32 %v2142_v31  ;;  %v3761_v46 = vpop.eup %3760  ;;  %v2155_v14 = vadd.f32 1.0, %v3759_v2 }
 0xae8   : > { %3764 = vrcp.f32 %v2148_v60  ;;  %v2173_v60 = vld [vmem:[#allocation2 + $0x38] sm:$0xff] }
 0xae9   : > { %3766 = vrcp.f32 %v2155_v14 }
 0xaf1   : > { %v3763_v54 = vpop.eup %3762 }
 0xaf2   : > { %v3765_v29 = vpop.eup %3764  ;;  %v2159_v30 = vmul.f32 %v3763_v54, %v3761_v46  ;;  %v2172_v46 = vld [vmem:[#allocation2 + $0x30] sm:$0xff] }
 0xaf3   : > { %v2158_v32 = vmul.f32 %v3765_v29, %v1887_v48  ;;  %v3767_v35 = vpop.eup %3766 }
 0xaf5   : > { %v2160_v33 = vadd.f32 %v2159_v30, %v2158_v32 }
 0xaf7   : > { %3768 = vtanh.f32 %v2160_v33  ;;  %v5102_v34 = vsel %vm2166_vm0, %v2160_v33, %v1887_v48 }
 0xb01   : > { %v3769_v40 = vpop.eup %3768 }
 0xb02   : > { %v2162_v9 = vmul.f32 %v3769_v40, %v3767_v35  ;;  %v2288_v40 = vstv %s2287_s10 }
 0xb03   : > { %vm2289_vm1 = vcmp.eq.s32.totalorder %v2288_v40, 1 }
 0xb04   : > { %v5105_v41 = vsel %vm2166_vm0, %v2162_v9, %v5052_v27  ;;  %v2170_v27 = vld [vmem:[#allocation2 + $0x20] sm:$0xff] }
 0xb05   : > { %v2174_v11 = vpack.c.bf16 %v5105_v41, %v5105_v41 }
 0xb07   : > { %2208 = vmatmul.mubr.bf16.vlgmr.msra.gmra.mrb[4].mxu0 %v2174_v11  ;;  %2249 = vmatmul.mubr.bf16.vlgmr.msra.gmra.mrb[4].mxu1 %v2174_v11 }
 0xb08   : > { %2299 = vmatpush1.bf16.msra.mxu0 %v4905_v37  ;;  %2340 = vmatpush1.bf16.msra.mxu1 %v4918_v63 }
 0xb09   : > { %2300 = vmatprep.subr.bf16.mxu0 %v4909_v6  ;;  %2341 = vmatprep.subr.bf16.mxu1 %v4922_v8 }
 0xb0a   : > { %2330 = vmatprep.mubr.bf16.mxu0 %v4101_v44  ;;  %2371 = vmatprep.mubr.bf16.mxu1 %v4101_v44 }
 0xb0c   : > { %2301 = vmatpush1.bf16.msra.mxu0 %v4927_v38  ;;  %2342 = vmatpush1.bf16.msra.mxu1 %v4938_v39 }
 0xb0d   : > { %2302 = vmatprep.subr.bf16.mxu0 %v4933_v10  ;;  %2343 = vmatprep.subr.bf16.mxu1 %v4943_v42 }
 0xb10   : > { %2303 = vmatpush1.bf16.msra.mxu0 %v4949_v12  ;;  %2344 = vmatpush1.bf16.msra.mxu1 %v4959_v18 }
 0xb11   : > { %2304 = vmatprep.subr.bf16.mxu0 %v4954_v45  ;;  %2345 = vmatprep.subr.bf16.mxu1 %v4964_v21 }
 0xb14   : > { %2305 = vmatpush1.bf16.msra.mxu0 %v4970_v22  ;;  %2346 = vmatpush1.bf16.msra.mxu1 %v4980_v58 }
 0xb15   : > { %2306 = vmatprep.subr.bf16.mxu0 %v4975_v56  ;;  %2347 = vmatprep.subr.bf16.mxu1 %v4985_v52 }
 0xb18   : > { %2307 = vmatpush1.bf16.msra.mxu0 %v4990_v13  ;;  %2348 = vmatpush1.bf16.msra.mxu1 %v5000_v62 }
 0xb19   : > { %2308 = vmatprep.subr.bf16.mxu0 %v4995_v61  ;;  %2349 = vmatprep.subr.bf16.mxu1 %v5005_v5 }
 0xb1c   : > { %2309 = vmatpush1.bf16.msra.mxu0 %v5010_v1  ;;  %2350 = vmatpush1.bf16.msra.mxu1 %v5020_v0 }
 0xb1d   : > { %2310 = vmatprep.subr.bf16.mxu0 %v5015_v55  ;;  %2351 = vmatprep.subr.bf16.mxu1 %v5025_v59 }
 0xb20   : > { %2311 = vmatpush1.bf16.msra.mxu0 %v5030_v49  ;;  %2352 = vmatpush1.bf16.msra.mxu1 %v5040_v3 }
 0xb21   : > { %2312 = vmatprep.subr.bf16.mxu0 %v5035_v50  ;;  %2353 = vmatprep.subr.bf16.mxu1 %v5045_v25 }
 0xb24   : > { %2313 = vmatpush1.bf16.msra.mxu0 %v5050_v26  ;;  %2354 = vmatpush1.bf16.msra.mxu1 %v5058_v28 }
 0xb25   : > { %2421 = vmatprep.subr.bf16.mxu0 %v4901_v36  ;;  %2462 = vmatprep.subr.bf16.mxu1 %v4913_v7 }
 0xbda   : > { %v2209_v43 = vpop.f32.mrb[4].mxu0  ;;  %v2250_v19 = vpop.f32.mrb[4].mxu1 }
 0xbdb   : > { %v2257_v20 = vadd.f32 %v2209_v43, %v2170_v27  ;;  %v2211_v23 = vpop.f32.mrb[5].mxu0  ;;  %v2252_v24 = vpop.f32.mrb[5].mxu1  ;;  %v2259_v54 = vadd.f32 %v2250_v19, %v2172_v46 }
 0xbdc   : > { %v2258_v57 = vadd.f32 %v2211_v23, %v2171_v17  ;;  %v2213_v47 = vpop.f32.mrb[6].mxu0  ;;  %v2254_v53 = vpop.f32.mrb[6].mxu1  ;;  %v2260_v2 = vadd.f32 %v2252_v24, %v2173_v60 }
 0xbdd   : > { %v3398_v16 = vmul.f32 -1.442695, %v2257_v20  ;;  %v2214_v51 = vpop.f32.mrb[7].mxu0  ;;  %v2255_v4 = vpop.f32.mrb[7].mxu1 }
 0xbde   : > { %v3399_v31 = vmul.f32 -1.442695, %v2258_v57  ;;  %v3400_v48 = vmul.f32 -1.442695, %v2260_v2 }
 0xbdf   : > { %3770 = vpow2.f32 %v3398_v16 }
 0xbe0   : > { %3772 = vpow2.f32 %v3399_v31 }
 0xbe1   : > { %3774 = vpow2.f32 %v3400_v48 }
 0xbe2   : > { %3776 = vtanh.f32 %v2259_v54 }
 0xbe9   : > { %v3771_v14 = vpop.eup %3770 }
 0xbea   : > { %v3773_v15 = vpop.eup %3772  ;;  %v2264_v29 = vadd.f32 1.0, %v3771_v14 }
 0xbeb   : > { %v2270_v30 = vadd.f32 1.0, %v3773_v15  ;;  %v3775_v32 = vpop.eup %3774 }
 0xbec   : > { %3778 = vrcp.f32 %v2264_v29  ;;  %v3777_v33 = vpop.eup %3776  ;;  %v2277_v27 = vadd.f32 1.0, %v3775_v32  ;;  %v2296_v29 = vld [vmem:[#allocation2 + $0x58] sm:$0xff]  ;;  %v2295_v32 = vld [vmem:[#allocation2 + $0x50] sm:$0xff] }
 0xbed   : > { %3780 = vrcp.f32 %v2270_v30 }
 0xbee   : > { %3782 = vrcp.f32 %v2277_v27 }
 0xbf6   : > { %v3779_v35 = vpop.eup %3778 }
 0xbf7   : > { %v3781_v9 = vpop.eup %3780  ;;  %v2281_v11 = vmul.f32 %v3779_v35, %v3777_v33 }
 0xbf8   : > { %v2280_v17 = vmul.f32 %v3781_v9, %v5102_v34  ;;  %v3783_v20 = vpop.eup %3782 }
 0xbfa   : > { %v2282_v43 = vadd.f32 %v2281_v11, %v2280_v17 }
 0xbfc   : > { %3784 = vtanh.f32 %v2282_v43  ;;  %v5146_v19 = vsel %vm2289_vm1, %v2282_v43, %v5102_v34  ;;  %v2293_v34 = vld [vmem:[#allocation2 + $0x40] sm:$0xff] }
 0xc06   : > { %v3785_v23 = vpop.eup %3784 }
 0xc07   : > { %v2284_v24 = vmul.f32 %v3785_v23, %v3783_v20  ;;  %v2411_v23 = vstv %s2410_s8 }
 0xc08   : > { %vm2412_vm2 = vcmp.eq.s32.totalorder %v2411_v23, 1 }
 0xc09   : > { %v5149_v57 = vsel %vm2289_vm1, %v2284_v24, %v5105_v41  ;;  %v2294_v41 = vld [vmem:[#allocation2 + $0x48] sm:$0xff] }
 0xc0a   : > { %v2297_v47 = vpack.c.bf16 %v5149_v57, %v5149_v57 }
 0xc0c   : > { %2331 = vmatmul.mubr.bf16.vlgmr.msra.gmra.mrb[8].mxu0 %v2297_v47  ;;  %2372 = vmatmul.mubr.bf16.vlgmr.msra.gmra.mrb[8].mxu1 %v2297_v47 }
 0xc0d   : > { %2422 = vmatpush1.bf16.msra.mxu0 %v4905_v37  ;;  %2463 = vmatpush1.bf16.msra.mxu1 %v4918_v63 }
 0xc0e   : > { %2423 = vmatprep.subr.bf16.mxu0 %v4909_v6  ;;  %2464 = vmatprep.subr.bf16.mxu1 %v4922_v8 }
 0xc0f   : > { %2453 = vmatprep.mubr.bf16.mxu0 %v4101_v44  ;;  %2494 = vmatprep.mubr.bf16.mxu1 %v4101_v44 }
 0xc11   : > { %2424 = vmatpush1.bf16.msra.mxu0 %v4927_v38  ;;  %2465 = vmatpush1.bf16.msra.mxu1 %v4938_v39 }
 0xc12   : > { %2425 = vmatprep.subr.bf16.mxu0 %v4933_v10  ;;  %2466 = vmatprep.subr.bf16.mxu1 %v4943_v42 }
 0xc15   : > { %2426 = vmatpush1.bf16.msra.mxu0 %v4949_v12  ;;  %2467 = vmatpush1.bf16.msra.mxu1 %v4959_v18 }
 0xc16   : > { %2427 = vmatprep.subr.bf16.mxu0 %v4954_v45  ;;  %2468 = vmatprep.subr.bf16.mxu1 %v4964_v21 }
 0xc19   : > { %2428 = vmatpush1.bf16.msra.mxu0 %v4970_v22  ;;  %2469 = vmatpush1.bf16.msra.mxu1 %v4980_v58 }
 0xc1a   : > { %2429 = vmatprep.subr.bf16.mxu0 %v4975_v56  ;;  %2470 = vmatprep.subr.bf16.mxu1 %v4985_v52 }
 0xc1d   : > { %2430 = vmatpush1.bf16.msra.mxu0 %v4990_v13  ;;  %2471 = vmatpush1.bf16.msra.mxu1 %v5000_v62 }
 0xc1e   : > { %2431 = vmatprep.subr.bf16.mxu0 %v4995_v61  ;;  %2472 = vmatprep.subr.bf16.mxu1 %v5005_v5 }
 0xc21   : > { %2432 = vmatpush1.bf16.msra.mxu0 %v5010_v1  ;;  %2473 = vmatpush1.bf16.msra.mxu1 %v5020_v0 }
 0xc22   : > { %2433 = vmatprep.subr.bf16.mxu0 %v5015_v55  ;;  %2474 = vmatprep.subr.bf16.mxu1 %v5025_v59 }
 0xc25   : > { %2434 = vmatpush1.bf16.msra.mxu0 %v5030_v49  ;;  %2475 = vmatpush1.bf16.msra.mxu1 %v5040_v3 }
 0xc26   : > { %2435 = vmatprep.subr.bf16.mxu0 %v5035_v50  ;;  %2476 = vmatprep.subr.bf16.mxu1 %v5045_v25 }
 0xc29   : > { %2436 = vmatpush1.bf16.msra.mxu0 %v5050_v26  ;;  %2477 = vmatpush1.bf16.msra.mxu1 %v5058_v28 }
 0xc2a   : > { %2544 = vmatprep.subr.bf16.mxu0 %v4901_v36  ;;  %2585 = vmatprep.subr.bf16.mxu1 %v4913_v7 }
 0xcdf   : > { %v2332_v53 = vpop.f32.mrb[8].mxu0  ;;  %v2373_v16 = vpop.f32.mrb[8].mxu1 }
 0xce0   : > { %v2380_v51 = vadd.f32 %v2332_v53, %v2293_v34  ;;  %v2334_v4 = vpop.f32.mrb[9].mxu0  ;;  %v2375_v31 = vpop.f32.mrb[9].mxu1  ;;  %v2382_v35 = vadd.f32 %v2373_v16, %v2295_v32 }
 0xce1   : > { %v2381_v60 = vadd.f32 %v2334_v4, %v2294_v41  ;;  %v2336_v2 = vpop.f32.mrb[10].mxu0  ;;  %v2377_v46 = vpop.f32.mrb[10].mxu1  ;;  %v2383_v30 = vadd.f32 %v2375_v31, %v2296_v29 }
 0xce2   : > { %v3401_v48 = vmul.f32 -1.442695, %v2380_v51  ;;  %v2337_v54 = vpop.f32.mrb[11].mxu0  ;;  %v2378_v14 = vpop.f32.mrb[11].mxu1 }
 0xce3   : > { %v3402_v15 = vmul.f32 -1.442695, %v2381_v60  ;;  %v3403_v33 = vmul.f32 -1.442695, %v2383_v30 }
 0xce4   : > { %3786 = vpow2.f32 %v3401_v48 }
 0xce5   : > { %3788 = vpow2.f32 %v3402_v15 }
 0xce6   : > { %3790 = vpow2.f32 %v3403_v33 }
 0xce7   : > { %3792 = vtanh.f32 %v2382_v35 }
 0xcee   : > { %v3787_v40 = vpop.eup %3786 }
 0xcef   : > { %v3789_v9 = vpop.eup %3788  ;;  %v2387_v11 = vadd.f32 1.0, %v3787_v40 }
 0xcf0   : > { %v2393_v27 = vadd.f32 1.0, %v3789_v9  ;;  %v3791_v17 = vpop.eup %3790 }
 0xcf1   : > { %3794 = vrcp.f32 %v2387_v11  ;;  %v3793_v43 = vpop.eup %3792  ;;  %v2400_v34 = vadd.f32 1.0, %v3791_v17  ;;  %v2419_v11 = vld [vmem:[#allocation2 + $0x78] sm:$0xff]  ;;  %v2418_v17 = vld [vmem:[#allocation2 + $0x70] sm:$0xff] }
 0xcf2   : > { %3796 = vrcp.f32 %v2393_v27 }
 0xcf3   : > { %3798 = vrcp.f32 %v2400_v34 }
 0xcfb   : > { %v3795_v20 = vpop.eup %3794 }
 0xcfc   : > { %v3797_v24 = vpop.eup %3796  ;;  %v2404_v47 = vmul.f32 %v3795_v20, %v3793_v43 }
 0xcfd   : > { %v2403_v41 = vmul.f32 %v3797_v24, %v5146_v19  ;;  %v3799_v51 = vpop.eup %3798 }
 0xcff   : > { %v2405_v53 = vadd.f32 %v2404_v47, %v2403_v41 }
 0xd01   : > { %3800 = vtanh.f32 %v2405_v53  ;;  %v5190_v16 = vsel %vm2412_vm2, %v2405_v53, %v5146_v19  ;;  %v2416_v19 = vld [vmem:[#allocation2 + $0x60] sm:$0xff] }
 0xd0b   : > { %v3801_v4 = vpop.eup %3800 }
 0xd0c   : > { %v2407_v31 = vmul.f32 %v3801_v4, %v3799_v51  ;;  %v2534_v4 = vstv %s2533_s12 }
 0xd0d   : > { %vm2535_vm3 = vcmp.eq.s32.totalorder %v2534_v4, 1 }
 0xd0e   : > { %v5193_v60 = vsel %vm2412_vm2, %v2407_v31, %v5149_v57  ;;  %v2417_v57 = vld [vmem:[#allocation2 + $0x68] sm:$0xff] }
 0xd0f   : > { %v2420_v2 = vpack.c.bf16 %v5193_v60, %v5193_v60 }
 0xd11   : > { %2454 = vmatmul.mubr.bf16.vlgmr.msra.gmra.mrb[12].mxu0 %v2420_v2  ;;  %2495 = vmatmul.mubr.bf16.vlgmr.msra.gmra.mrb[12].mxu1 %v2420_v2 }
 0xd12   : > { %2545 = vmatpush1.bf16.msra.mxu0 %v4905_v37  ;;  %2586 = vmatpush1.bf16.msra.mxu1 %v4918_v63 }
 0xd13   : > { %2546 = vmatprep.subr.bf16.mxu0 %v4909_v6  ;;  %2587 = vmatprep.subr.bf16.mxu1 %v4922_v8 }
 0xd14   : > { %2576 = vmatprep.mubr.bf16.mxu0 %v4101_v44  ;;  %2617 = vmatprep.mubr.bf16.mxu1 %v4101_v44 }
 0xd16   : > { %2547 = vmatpush1.bf16.msra.mxu0 %v4927_v38  ;;  %2588 = vmatpush1.bf16.msra.mxu1 %v4938_v39 }
 0xd17   : > { %2548 = vmatprep.subr.bf16.mxu0 %v4933_v10  ;;  %2589 = vmatprep.subr.bf16.mxu1 %v4943_v42 }
 0xd1a   : > { %2549 = vmatpush1.bf16.msra.mxu0 %v4949_v12  ;;  %2590 = vmatpush1.bf16.msra.mxu1 %v4959_v18 }
 0xd1b   : > { %2550 = vmatprep.subr.bf16.mxu0 %v4954_v45  ;;  %2591 = vmatprep.subr.bf16.mxu1 %v4964_v21 }
 0xd1e   : > { %2551 = vmatpush1.bf16.msra.mxu0 %v4970_v22  ;;  %2592 = vmatpush1.bf16.msra.mxu1 %v4980_v58 }
 0xd1f   : > { %2552 = vmatprep.subr.bf16.mxu0 %v4975_v56  ;;  %2593 = vmatprep.subr.bf16.mxu1 %v4985_v52 }
 0xd22   : > { %2553 = vmatpush1.bf16.msra.mxu0 %v4990_v13  ;;  %2594 = vmatpush1.bf16.msra.mxu1 %v5000_v62 }
 0xd23   : > { %2554 = vmatprep.subr.bf16.mxu0 %v4995_v61  ;;  %2595 = vmatprep.subr.bf16.mxu1 %v5005_v5 }
 0xd26   : > { %2555 = vmatpush1.bf16.msra.mxu0 %v5010_v1  ;;  %2596 = vmatpush1.bf16.msra.mxu1 %v5020_v0 }
 0xd27   : > { %2556 = vmatprep.subr.bf16.mxu0 %v5015_v55  ;;  %2597 = vmatprep.subr.bf16.mxu1 %v5025_v59 }
 0xd2a   : > { %2557 = vmatpush1.bf16.msra.mxu0 %v5030_v49  ;;  %2598 = vmatpush1.bf16.msra.mxu1 %v5040_v3 }
 0xd2b   : > { %2558 = vmatprep.subr.bf16.mxu0 %v5035_v50  ;;  %2599 = vmatprep.subr.bf16.mxu1 %v5045_v25 }
 0xd2e   : > { %2559 = vmatpush1.bf16.msra.mxu0 %v5050_v26  ;;  %2600 = vmatpush1.bf16.msra.mxu1 %v5058_v28 }
 0xd2f   : > { %2667 = vmatprep.subr.bf16.mxu0 %v4901_v36  ;;  %2708 = vmatprep.subr.bf16.mxu1 %v4913_v7 }
 0xde4   : > { %v2455_v46 = vpop.f32.mrb[12].mxu0  ;;  %v2496_v48 = vpop.f32.mrb[12].mxu1 }
 0xde5   : > { %v2503_v54 = vadd.f32 %v2455_v46, %v2416_v19  ;;  %v2457_v14 = vpop.f32.mrb[13].mxu0  ;;  %v2498_v15 = vpop.f32.mrb[13].mxu1  ;;  %v2505_v20 = vadd.f32 %v2496_v48, %v2418_v17 }
 0xde6   : > { %v2504_v29 = vadd.f32 %v2457_v14, %v2417_v57  ;;  %v2459_v30 = vpop.f32.mrb[14].mxu0  ;;  %v2500_v32 = vpop.f32.mrb[14].mxu1  ;;  %v2506_v27 = vadd.f32 %v2498_v15, %v2419_v11 }
 0xde7   : > { %v3404_v33 = vmul.f32 -1.442695, %v2503_v54  ;;  %v2460_v35 = vpop.f32.mrb[15].mxu0  ;;  %v2501_v40 = vpop.f32.mrb[15].mxu1 }
 0xde8   : > { %v3405_v9 = vmul.f32 -1.442695, %v2504_v29  ;;  %v3406_v43 = vmul.f32 -1.442695, %v2506_v27 }
 0xde9   : > { %3802 = vpow2.f32 %v3404_v33 }
 0xdea   : > { %3804 = vpow2.f32 %v3405_v9 }
 0xdeb   : > { %3806 = vpow2.f32 %v3406_v43 }
 0xdec   : > { %3808 = vtanh.f32 %v2505_v20 }
 0xdf3   : > { %v3803_v23 = vpop.eup %3802 }
 0xdf4   : > { %v3805_v24 = vpop.eup %3804  ;;  %v2510_v47 = vadd.f32 1.0, %v3803_v23 }
 0xdf5   : > { %v2516_v34 = vadd.f32 1.0, %v3805_v24  ;;  %v3807_v41 = vpop.eup %3806 }
 0xdf6   : > { %3810 = vrcp.f32 %v2510_v47  ;;  %v3809_v53 = vpop.eup %3808  ;;  %v2523_v19 = vadd.f32 1.0, %v3807_v41  ;;  %v2542_v47 = vld [vmem:[#allocation2 + $0x98] sm:$0xff]  ;;  %v2541_v41 = vld [vmem:[#allocation2 + $0x90] sm:$0xff] }
 0xdf7   : > { %3812 = vrcp.f32 %v2516_v34 }
 0xdf8   : > { %3814 = vrcp.f32 %v2523_v19 }
 0xe00   : > { %v3811_v51 = vpop.eup %3810 }
 0xe01   : > { %v3813_v31 = vpop.eup %3812  ;;  %v2527_v2 = vmul.f32 %v3811_v51, %v3809_v53 }
 0xe02   : > { %v2526_v57 = vmul.f32 %v3813_v31, %v5190_v16  ;;  %v3815_v54 = vpop.eup %3814 }
 0xe04   : > { %v2528_v46 = vadd.f32 %v2527_v2, %v2526_v57 }
 0xe06   : > { %3816 = vtanh.f32 %v2528_v46  ;;  %v5234_v48 = vsel %vm2535_vm3, %v2528_v46, %v5190_v16  ;;  %v2539_v16 = vld [vmem:[#allocation2 + $0x80] sm:$0xff] }
 0xe10   : > { %v3817_v14 = vpop.eup %3816 }
 0xe11   : > { %v2530_v15 = vmul.f32 %v3817_v14, %v3815_v54  ;;  %v2657_v14 = vstv %s2656_s7 }
 0xe12   : > { %vm2658_vm4 = vcmp.eq.s32.totalorder %v2657_v14, 1 }
 0xe13   : > { %v5237_v29 = vsel %vm2535_vm3, %v2530_v15, %v5193_v60  ;;  %v2540_v60 = vld [vmem:[#allocation2 + $0x88] sm:$0xff] }
 0xe14   : > { %v2543_v30 = vpack.c.bf16 %v5237_v29, %v5237_v29 }
 0xe16   : > { %2577 = vmatmul.mubr.bf16.vlgmr.msra.gmra.mrb[16].mxu0 %v2543_v30  ;;  %2618 = vmatmul.mubr.bf16.vlgmr.msra.gmra.mrb[16].mxu1 %v2543_v30 }
 0xe17   : > { %2668 = vmatpush1.bf16.msra.mxu0 %v4905_v37  ;;  %2709 = vmatpush1.bf16.msra.mxu1 %v4918_v63 }
 0xe18   : > { %2669 = vmatprep.subr.bf16.mxu0 %v4909_v6  ;;  %2710 = vmatprep.subr.bf16.mxu1 %v4922_v8 }
 0xe19   : > { %2699 = vmatprep.mubr.bf16.mxu0 %v4101_v44  ;;  %2740 = vmatprep.mubr.bf16.mxu1 %v4101_v44 }
 0xe1b   : > { %2670 = vmatpush1.bf16.msra.mxu0 %v4927_v38  ;;  %2711 = vmatpush1.bf16.msra.mxu1 %v4938_v39 }
 0xe1c   : > { %2671 = vmatprep.subr.bf16.mxu0 %v4933_v10  ;;  %2712 = vmatprep.subr.bf16.mxu1 %v4943_v42 }
 0xe1f   : > { %2672 = vmatpush1.bf16.msra.mxu0 %v4949_v12  ;;  %2713 = vmatpush1.bf16.msra.mxu1 %v4959_v18 }
 0xe20   : > { %2673 = vmatprep.subr.bf16.mxu0 %v4954_v45  ;;  %2714 = vmatprep.subr.bf16.mxu1 %v4964_v21 }
 0xe23   : > { %2674 = vmatpush1.bf16.msra.mxu0 %v4970_v22  ;;  %2715 = vmatpush1.bf16.msra.mxu1 %v4980_v58 }
 0xe24   : > { %2675 = vmatprep.subr.bf16.mxu0 %v4975_v56  ;;  %2716 = vmatprep.subr.bf16.mxu1 %v4985_v52 }
 0xe27   : > { %2676 = vmatpush1.bf16.msra.mxu0 %v4990_v13  ;;  %2717 = vmatpush1.bf16.msra.mxu1 %v5000_v62 }
 0xe28   : > { %2677 = vmatprep.subr.bf16.mxu0 %v4995_v61  ;;  %2718 = vmatprep.subr.bf16.mxu1 %v5005_v5 }
 0xe2b   : > { %2678 = vmatpush1.bf16.msra.mxu0 %v5010_v1  ;;  %2719 = vmatpush1.bf16.msra.mxu1 %v5020_v0 }
 0xe2c   : > { %2679 = vmatprep.subr.bf16.mxu0 %v5015_v55  ;;  %2720 = vmatprep.subr.bf16.mxu1 %v5025_v59 }
 0xe2f   : > { %2680 = vmatpush1.bf16.msra.mxu0 %v5030_v49  ;;  %2721 = vmatpush1.bf16.msra.mxu1 %v5040_v3 }
 0xe30   : > { %2681 = vmatprep.subr.bf16.mxu0 %v5035_v50  ;;  %2722 = vmatprep.subr.bf16.mxu1 %v5045_v25 }
 0xe33   : > { %2682 = vmatpush1.bf16.msra.mxu0 %v5050_v26  ;;  %2723 = vmatpush1.bf16.msra.mxu1 %v5058_v28 }
 0xe34   : > { %2790 = vmatprep.subr.bf16.mxu0 %v4901_v36  ;;  %2831 = vmatprep.subr.bf16.mxu1 %v4913_v7 }
 0xee9   : > { %v2578_v32 = vpop.f32.mrb[16].mxu0  ;;  %v2619_v33 = vpop.f32.mrb[16].mxu1 }
 0xeea   : > { %v2626_v35 = vadd.f32 %v2578_v32, %v2539_v16  ;;  %v2580_v40 = vpop.f32.mrb[17].mxu0  ;;  %v2621_v9 = vpop.f32.mrb[17].mxu1  ;;  %v2628_v51 = vadd.f32 %v2619_v33, %v2541_v41 }
 0xeeb   : > { %v2627_v11 = vadd.f32 %v2580_v40, %v2540_v60  ;;  %v2582_v27 = vpop.f32.mrb[18].mxu0  ;;  %v2623_v17 = vpop.f32.mrb[18].mxu1  ;;  %v2629_v34 = vadd.f32 %v2621_v9, %v2542_v47 }
 0xeec   : > { %v3407_v43 = vmul.f32 -1.442695, %v2626_v35  ;;  %v2583_v20 = vpop.f32.mrb[19].mxu0  ;;  %v2624_v23 = vpop.f32.mrb[19].mxu1 }
 0xeed   : > { %v3408_v24 = vmul.f32 -1.442695, %v2627_v11  ;;  %v3409_v53 = vmul.f32 -1.442695, %v2629_v34 }
 0xeee   : > { %3818 = vpow2.f32 %v3407_v43 }
 0xeef   : > { %3820 = vpow2.f32 %v3408_v24 }
 0xef0   : > { %3822 = vpow2.f32 %v3409_v53 }
 0xef1   : > { %3824 = vtanh.f32 %v2628_v51 }
 0xef8   : > { %v3819_v4 = vpop.eup %3818 }
 0xef9   : > { %v3821_v31 = vpop.eup %3820  ;;  %v2633_v2 = vadd.f32 1.0, %v3819_v4 }
 0xefa   : > { %v2639_v19 = vadd.f32 1.0, %v3821_v31  ;;  %v3823_v57 = vpop.eup %3822 }
 0xefb   : > { %3826 = vrcp.f32 %v2633_v2  ;;  %v3825_v46 = vpop.eup %3824  ;;  %v2646_v16 = vadd.f32 1.0, %v3823_v57  ;;  %v2665_v2 = vld [vmem:[#allocation2 + $0xb8] sm:$0xff] }
 0xefc   : > { %3828 = vrcp.f32 %v2639_v19 }
 0xefd   : > { %3830 = vrcp.f32 %v2646_v16 }
 0xf05   : > { %v3827_v54 = vpop.eup %3826 }
 0xf06   : > { %v3829_v15 = vpop.eup %3828  ;;  %v2650_v30 = vmul.f32 %v3827_v54, %v3825_v46 }
 0xf07   : > { %v2649_v60 = vmul.f32 %v3829_v15, %v5234_v48  ;;  %v3831_v35 = vpop.eup %3830 }
 0xf09   : > { %v2651_v32 = vadd.f32 %v2650_v30, %v2649_v60 }
 0xf0b   : > { %3832 = vtanh.f32 %v2651_v32  ;;  %v5278_v33 = vsel %vm2658_vm4, %v2651_v32, %v5234_v48  ;;  %v2662_v48 = vld [vmem:[#allocation2 + $0xa0] sm:$0xff]  ;;  %v2780_v32 = vstv %s2779_s16 }
 0xf0c   : > { %vm2781_vm5 = vcmp.eq.s32.totalorder %v2780_v32, 1 }
 0xf15   : > { %v3833_v40 = vpop.eup %3832 }
 0xf16   : > { %v2653_v9 = vmul.f32 %v3833_v40, %v3831_v35 }
 0xf18   : > { %v5281_v11 = vsel %vm2658_vm4, %v2653_v9, %v5237_v29  ;;  %v2663_v29 = vld [vmem:[#allocation2 + $0xa8] sm:$0xff] }
 0xf19   : > { %v2666_v27 = vpack.c.bf16 %v5281_v11, %v5281_v11 }
 0xf1b   : > { %2700 = vmatmul.mubr.bf16.vlgmr.msra.gmra.mrb[20].mxu0 %v2666_v27  ;;  %2741 = vmatmul.mubr.bf16.vlgmr.msra.gmra.mrb[20].mxu1 %v2666_v27 }
 0xf1c   : > { %2791 = vmatpush1.bf16.msra.mxu0 %v4905_v37  ;;  %2832 = vmatpush1.bf16.msra.mxu1 %v4918_v63 }
 0xf1d   : > { %2792 = vmatprep.subr.bf16.mxu0 %v4909_v6  ;;  %2833 = vmatprep.subr.bf16.mxu1 %v4922_v8 }
 0xf1e   : > { %2822 = vmatprep.mubr.bf16.mxu0 %v4101_v44  ;;  %2863 = vmatprep.mubr.bf16.mxu1 %v4101_v44 }
 0xf20   : > { %2793 = vmatpush1.bf16.msra.mxu0 %v4927_v38  ;;  %2834 = vmatpush1.bf16.msra.mxu1 %v4938_v39 }
 0xf21   : > { %2794 = vmatprep.subr.bf16.mxu0 %v4933_v10  ;;  %2835 = vmatprep.subr.bf16.mxu1 %v4943_v42 }
 0xf24   : > { %2795 = vmatpush1.bf16.msra.mxu0 %v4949_v12  ;;  %2836 = vmatpush1.bf16.msra.mxu1 %v4959_v18 }
 0xf25   : > { %2796 = vmatprep.subr.bf16.mxu0 %v4954_v45  ;;  %2837 = vmatprep.subr.bf16.mxu1 %v4964_v21 }
 0xf28   : > { %2797 = vmatpush1.bf16.msra.mxu0 %v4970_v22  ;;  %2838 = vmatpush1.bf16.msra.mxu1 %v4980_v58 }
 0xf29   : > { %2798 = vmatprep.subr.bf16.mxu0 %v4975_v56  ;;  %2839 = vmatprep.subr.bf16.mxu1 %v4985_v52 }
 0xf2c   : > { %2799 = vmatpush1.bf16.msra.mxu0 %v4990_v13  ;;  %2840 = vmatpush1.bf16.msra.mxu1 %v5000_v62 }
 0xf2d   : > { %2800 = vmatprep.subr.bf16.mxu0 %v4995_v61  ;;  %2841 = vmatprep.subr.bf16.mxu1 %v5005_v5 }
 0xf30   : > { %2801 = vmatpush1.bf16.msra.mxu0 %v5010_v1  ;;  %2842 = vmatpush1.bf16.msra.mxu1 %v5020_v0 }
 0xf31   : > { %2802 = vmatprep.subr.bf16.mxu0 %v5015_v55  ;;  %2843 = vmatprep.subr.bf16.mxu1 %v5025_v59 }
 0xf34   : > { %2803 = vmatpush1.bf16.msra.mxu0 %v5030_v49  ;;  %2844 = vmatpush1.bf16.msra.mxu1 %v5040_v3 }
 0xf35   : > { %2804 = vmatprep.subr.bf16.mxu0 %v5035_v50  ;;  %2845 = vmatprep.subr.bf16.mxu1 %v5045_v25 }
 0xf38   : > { %2805 = vmatpush1.bf16.msra.mxu0 %v5050_v26  ;;  %2846 = vmatpush1.bf16.msra.mxu1 %v5058_v28 }
 0xf39   : > { %2913 = vmatprep.subr.bf16.mxu0 %v4901_v36  ;;  %2954 = vmatprep.subr.bf16.mxu1 %v4913_v7  ;;  %v2664_v7 = vld [vmem:[#allocation2 + $0xb0] sm:$0xff] }
 0xfee   : > { %v2701_v17 = vpop.f32.mrb[20].mxu0  ;;  %v2742_v43 = vpop.f32.mrb[20].mxu1 }
 0xfef   : > { %v2749_v20 = vadd.f32 %v2701_v17, %v2662_v48  ;;  %v2703_v23 = vpop.f32.mrb[21].mxu0  ;;  %v2744_v24 = vpop.f32.mrb[21].mxu1  ;;  %v2751_v57 = vadd.f32 %v2742_v43, %v2664_v7  ;;  %v3749_v7 = vld [vmem:[#allocation11 + $0x18] sm:$0xff]  }
 0xff0   : > { %v2750_v47 = vadd.f32 %v2703_v23, %v2663_v29  ;;  %v2705_v34 = vpop.f32.mrb[22].mxu0  ;;  %v2746_v41 = vpop.f32.mrb[22].mxu1  ;;  %v2752_v36 = vadd.f32 %v2744_v24, %v2665_v2  ;;  %v3747_v2 = vld [vmem:[#allocation11 + $0x8] sm:$0xff]  }
 0xff1   : > { %v3410_v53 = vmul.f32 -1.442695, %v2749_v20  ;;  %v2706_v51 = vpop.f32.mrb[23].mxu0  ;;  %v2747_v4 = vpop.f32.mrb[23].mxu1 }
 0xff2   : > { %v3411_v31 = vmul.f32 -1.442695, %v2750_v47  ;;  %v3412_v19 = vmul.f32 -1.442695, %v2752_v36  ;;  %v3746_v4 = vld [vmem:[#allocation11] sm:$0xff]   ;;  %v3748_v36 = vld [vmem:[#allocation11 + $0x10] sm:$0xff]  }
 0xff3   : > { %3834 = vpow2.f32 %v3410_v53 }
 0xff4   : > { %3836 = vpow2.f32 %v3411_v31  ;;  %v4102_v31 = vmov 0.0  }
 0xff5   : > { %3838 = vpow2.f32 %v3412_v19  ;;  %v3750_v19 = vld [vmem:[#allocation11 + $0x20] sm:$0xff]  }
 0xff6   : > { %3840 = vtanh.f32 %v2751_v57  ;;  %v3751_v57 = vld [vmem:[#allocation11 + $0x28] sm:$0xff]  }
 0xffd   : > { %v3835_v46 = vpop.eup %3834 }
 0xffe   : > { %v3837_v54 = vpop.eup %3836  ;;  %v2756_v14 = vadd.f32 1.0, %v3835_v46  ;;  %v3752_v46 = vld [vmem:[#allocation11 + $0x30] sm:$0xff]  }
 0xfff   : > { %v2762_v15 = vadd.f32 1.0, %v3837_v54  ;;  %v3839_v30 = vpop.eup %3838  ;;  %v3753_v54 = vld [vmem:[#allocation11 + $0x38] sm:$0xff]  }
0x1000   : > { %3842 = vrcp.f32 %v2756_v14  ;;  %v3841_v16 = vpop.eup %3840  ;;  %v2769_v9 = vadd.f32 1.0, %v3839_v30  ;;  %v2908_v14 = vld [vmem:[#allocation2 + $0xe0] sm:$0xff] }
0x1001   : > { %3844 = vrcp.f32 %v2762_v15  ;;  %v2909_v15 = vld [vmem:[#allocation2 + $0xe8] sm:$0xff] }
0x1002   : > { %3846 = vrcp.f32 %v2769_v9 }
0x100a   : > { %v3843_v60 = vpop.eup %3842 }
0x100b   : > { %v3845_v35 = vpop.eup %3844  ;;  %v2773_v40 = vmul.f32 %v3843_v60, %v3841_v16 }
0x100c   : > { %v2772_v27 = vmul.f32 %v3845_v35, %v5278_v33  ;;  %v3847_v17 = vpop.eup %3846 }
0x100e   : > { %v2774_v48 = vadd.f32 %v2773_v40, %v2772_v27 }
0x1010   : > { %3848 = vtanh.f32 %v2774_v48  ;;  %v5322_v29 = vsel %vm2781_vm5, %v2774_v48, %v5278_v33 }
0x101a   : > { %v3849_v43 = vpop.eup %3848 }
0x101b   : > { %v2776_v20 = vmul.f32 %v3849_v43, %v3847_v17 }
0x101d   : > { %v5325_v23 = vsel %vm2781_vm5, %v2776_v20, %v5281_v11  ;;  %v2911_v20 = vld [vmem:[#allocation2 + $0xf8] sm:$0xff] }
0x101e   : > { %v2789_v24 = vpack.c.bf16 %v5325_v23, %v5325_v23 }
0x1020   : > { %2823 = vmatmul.mubr.bf16.vlgmr.msra.gmra.mrb[24].mxu0 %v2789_v24  ;;  %2864 = vmatmul.mubr.bf16.vlgmr.msra.gmra.mrb[24].mxu1 %v2789_v24  ;;  %v2910_v24 = vld [vmem:[#allocation2 + $0xf0] sm:$0xff] }
0x1021   : > { %2914 = vmatpush1.bf16.msra.mxu0 %v4905_v37  ;;  %2955 = vmatpush1.bf16.msra.mxu1 %v4918_v63  ;;  %v2785_v37 = vld [vmem:[#allocation2 + $0xc0] sm:$0xff] }
0x1022   : > { %2915 = vmatprep.subr.bf16.mxu0 %v4909_v6  ;;  %2956 = vmatprep.subr.bf16.mxu1 %v4922_v8  ;;  %v2786_v6 = vld [vmem:[#allocation2 + $0xc8] sm:$0xff] }
0x1023   : > { %2945 = vmatprep.mubr.bf16.mxu0 %v4101_v44  ;;  %2986 = vmatprep.mubr.bf16.mxu1 %v4101_v44 }
0x1025   : > { %2916 = vmatpush1.bf16.msra.mxu0 %v4927_v38  ;;  %2957 = vmatpush1.bf16.msra.mxu1 %v4938_v39 }
0x1026   : > { %2917 = vmatprep.subr.bf16.mxu0 %v4933_v10  ;;  %2958 = vmatprep.subr.bf16.mxu1 %v4943_v42 }
0x1029   : > { %2918 = vmatpush1.bf16.msra.mxu0 %v4949_v12  ;;  %2959 = vmatpush1.bf16.msra.mxu1 %v4959_v18 }
0x102a   : > { %2919 = vmatprep.subr.bf16.mxu0 %v4954_v45  ;;  %2960 = vmatprep.subr.bf16.mxu1 %v4964_v21 }
0x102d   : > { %2920 = vmatpush1.bf16.msra.mxu0 %v4970_v22  ;;  %2961 = vmatpush1.bf16.msra.mxu1 %v4980_v58 }
0x102e   : > { %2921 = vmatprep.subr.bf16.mxu0 %v4975_v56  ;;  %2962 = vmatprep.subr.bf16.mxu1 %v4985_v52  ;;  %v2788_v56 = vld [vmem:[#allocation2 + $0xd8] sm:$0xff]  ;;  %v2787_v52 = vld [vmem:[#allocation2 + $0xd0] sm:$0xff] }
0x1031   : > { %2922 = vmatpush1.bf16.msra.mxu0 %v4990_v13  ;;  %2963 = vmatpush1.bf16.msra.mxu1 %v5000_v62 }
0x1032   : > { %2923 = vmatprep.subr.bf16.mxu0 %v4995_v61  ;;  %2964 = vmatprep.subr.bf16.mxu1 %v5005_v5 }
0x1035   : > { %2924 = vmatpush1.bf16.msra.mxu0 %v5010_v1  ;;  %2965 = vmatpush1.bf16.msra.mxu1 %v5020_v0 }
0x1036   : > { %2925 = vmatprep.subr.bf16.mxu0 %v5015_v55  ;;  %2966 = vmatprep.subr.bf16.mxu1 %v5025_v59 }
0x1039   : > { %2926 = vmatpush1.bf16.msra.mxu0 %v5030_v49  ;;  %2967 = vmatpush1.bf16.msra.mxu1 %v5040_v3 }
0x103a   : > { %2927 = vmatprep.subr.bf16.mxu0 %v5035_v50  ;;  %2968 = vmatprep.subr.bf16.mxu1 %v5045_v25  ;;  %v2903_v50 = vstv %s2902_s17 }
0x103b   : > { %vm2904_vm6 = vcmp.eq.s32.totalorder %v2903_v50, 1 }
0x103d   : > { %2928 = vmatpush1.bf16.msra.mxu0 %v5050_v26  ;;  %2969 = vmatpush1.bf16.msra.mxu1 %v5058_v28 }
0x103e   : > { %3443 = vmatprep.subr.bf16.mxu0 %v4102_v31 }
0x10f3   : > { %v2824_v63 = vpop.f32.mrb[24].mxu0  ;;  %v2865_v8 = vpop.f32.mrb[24].mxu1 }
0x10f4   : > { %v2872_v38 = vadd.f32 %v2824_v63, %v2785_v37  ;;  %v2826_v10 = vpop.f32.mrb[25].mxu0  ;;  %v2867_v39 = vpop.f32.mrb[25].mxu1  ;;  %v2874_v61 = vadd.f32 %v2865_v8, %v2787_v52 }
0x10f5   : > { %v2873_v42 = vadd.f32 %v2826_v10, %v2786_v6  ;;  %v2828_v44 = vpop.f32.mrb[26].mxu0  ;;  %v2869_v12 = vpop.f32.mrb[26].mxu1  ;;  %v2875_v58 = vadd.f32 %v2867_v39, %v2788_v56 }
0x10f6   : > { %v3413_v45 = vmul.f32 -1.442695, %v2872_v38  ;;  %v2829_v18 = vpop.f32.mrb[27].mxu0  ;;  %v2870_v21 = vpop.f32.mrb[27].mxu1  ;;  %v3026_v12 = vstv %s3025_s13 }
0x10f7   : > { %v3414_v22 = vmul.f32 -1.442695, %v2873_v42  ;;  %v3415_v13 = vmul.f32 -1.442695, %v2875_v58  ;;  %vm3027_vm8 = vcmp.eq.s32.totalorder %v3026_v12, 1 }
0x10f8   : > { %3850 = vpow2.f32 %v3413_v45 }
0x10f9   : > { %3852 = vpow2.f32 %v3414_v22 }
0x10fa   : > { %3854 = vpow2.f32 %v3415_v13 }
0x10fb   : > { %3856 = vtanh.f32 %v2874_v61 }
0x1102   : > { %v3851_v62 = vpop.eup %3850 }
0x1103   : > { %v3853_v5 = vpop.eup %3852  ;;  %v2879_v1 = vadd.f32 1.0, %v3851_v62 }
0x1104   : > { %v2885_v55 = vadd.f32 1.0, %v3853_v5  ;;  %v3855_v0 = vpop.eup %3854 }
0x1105   : > { %3858 = vrcp.f32 %v2879_v1  ;;  %v3857_v59 = vpop.eup %3856  ;;  %v2892_v26 = vadd.f32 1.0, %v3855_v0  ;;  %v3419_v1 = vld [vmem:[%s5429_s5] ss:$0 sm:$0xff] }
0x1106   : > { %3860 = vrcp.f32 %v2885_v55 }
0x1107   : > { %3862 = vrcp.f32 %v2892_v26 }
0x110f   : > { %v3859_v49 = vpop.eup %3858 }
0x1110   : > { %v3861_v3 = vpop.eup %3860  ;;  %v2896_v25 = vmul.f32 %v3859_v49, %v3857_v59 }
0x1111   : > { %v2895_v28 = vmul.f32 %v3861_v3, %v5322_v29  ;;  %v3863_v47 = vpop.eup %3862 }
0x1113   : > { %v2897_v33 = vadd.f32 %v2896_v25, %v2895_v28 }
0x1115   : > { %3864 = vtanh.f32 %v2897_v33  ;;  %v5364_v11 = vsel %vm2904_vm6, %v2897_v33, %v5322_v29 }
0x111f   : > { %v3865_v34 = vpop.eup %3864 }
0x1120   : > { %v2899_v41 = vmul.f32 %v3865_v34, %v3863_v47 }
0x1122   : > { %v5367_v53 = vsel %vm2904_vm6, %v2899_v41, %v5325_v23 }
0x1123   : > { %v2912_v51 = vpack.c.bf16 %v5367_v53, %v5367_v53 }
0x1125   : > { %2946 = vmatmul.mubr.bf16.vlgmr.msra.gmra.mrb[28].mxu0 %v2912_v51  ;;  %2987 = vmatmul.mubr.bf16.vlgmr.msra.gmra.mrb[28].mxu1 %v2912_v51 }
0x1126   : > { %3444 = vmatpush3.bf16.msra.mxu0 %v3746_v4  ;;  %3459 = vmatprep.mubr.msk.bf16.mxu0 %vm4103_vm7, %v4102_v31 }
0x1127   : > { %3445 = vmatprep.subr.bf16.mxu0 %v4102_v31 }
0x112a   : > { %3446 = vmatpush3.bf16.msra.mxu0 %v3747_v2 }
0x112b   : > { %3447 = vmatprep.subr.bf16.mxu0 %v4102_v31 }
0x112e   : > { %3448 = vmatpush3.bf16.msra.mxu0 %v3748_v36 }
0x112f   : > { %3449 = vmatprep.subr.bf16.mxu0 %v4102_v31 }
0x1132   : > { %3450 = vmatpush3.bf16.msra.mxu0 %v3749_v7 }
0x1133   : > { %3451 = vmatprep.subr.bf16.mxu0 %v4102_v31 }
0x1136   : > { %3452 = vmatpush3.bf16.msra.mxu0 %v3750_v19 }
0x1137   : > { %3453 = vmatprep.subr.bf16.mxu0 %v4102_v31 }
0x113a   : > { %3454 = vmatpush3.bf16.msra.mxu0 %v3751_v57 }
0x113b   : > { %3455 = vmatprep.subr.bf16.mxu0 %v4102_v31 }
0x113e   : > { %3456 = vmatpush3.bf16.msra.mxu0 %v3752_v46 }
0x113f   : > { %3457 = vmatprep.subr.bf16.mxu0 %v4102_v31 }
0x1142   : > { %3458 = vmatpush3.bf16.msra.mxu0 %v3753_v54 }
0x11f8   : > { %v2947_v30 = vpop.f32.mrb[28].mxu0  ;;  %v2988_v16 = vpop.f32.mrb[28].mxu1 }
0x11f9   : > { %v2995_v60 = vadd.f32 %v2947_v30, %v2908_v14  ;;  %v2949_v32 = vpop.f32.mrb[29].mxu0  ;;  %v2990_v35 = vpop.f32.mrb[29].mxu1  ;;  %v2997_v6 = vadd.f32 %v2988_v16, %v2910_v24 }
0x11fa   : > { %v2996_v40 = vadd.f32 %v2949_v32, %v2909_v15  ;;  %v2951_v9 = vpop.f32.mrb[30].mxu0  ;;  %v2992_v27 = vpop.f32.mrb[30].mxu1  ;;  %v2998_v23 = vadd.f32 %v2990_v35, %v2911_v20 }
0x11fb   : > { %v3416_v48 = vmul.f32 -1.442695, %v2995_v60  ;;  %v2952_v29 = vpop.f32.mrb[31].mxu0  ;;  %v2993_v17 = vpop.f32.mrb[31].mxu1 }
0x11fc   : > { %v3417_v43 = vmul.f32 -1.442695, %v2996_v40  ;;  %v3418_v37 = vmul.f32 -1.442695, %v2998_v23 }
0x11fd   : > { %3866 = vpow2.f32 %v3416_v48 }
0x11fe   : > { %3868 = vpow2.f32 %v3417_v43 }
0x11ff   : > { %3870 = vpow2.f32 %v3418_v37 }
0x1200   : > { %3872 = vtanh.f32 %v2997_v6 }
0x1207   : > { %v3867_v63 = vpop.eup %3866 }
0x1208   : > { %v3869_v8 = vpop.eup %3868  ;;  %v3002_v38 = vadd.f32 1.0, %v3867_v63 }
0x1209   : > { %v3008_v10 = vadd.f32 1.0, %v3869_v8  ;;  %v3871_v39 = vpop.eup %3870 }
0x120a   : > { %3874 = vrcp.f32 %v3002_v38  ;;  %v3873_v42 = vpop.eup %3872  ;;  %v3015_v21 = vadd.f32 1.0, %v3871_v39 }
0x120b   : > { %3876 = vrcp.f32 %v3008_v10 }
0x120c   : > { %3878 = vrcp.f32 %v3015_v21 }
0x1214   : > { %v3875_v44 = vpop.eup %3874 }
0x1215   : > { %v3877_v45 = vpop.eup %3876  ;;  %v3019_v18 = vmul.f32 %v3875_v44, %v3873_v42 }
0x1216   : > { %v3018_v22 = vmul.f32 %v3877_v45, %v5364_v11  ;;  %v3879_v52 = vpop.eup %3878 }
0x1218   : > { %v3020_v56 = vadd.f32 %v3019_v18, %v3018_v22 }
0x121a   : > { %3880 = vtanh.f32 %v3020_v56  ;;  %v3029_v58 = vsel %vm3027_vm8, %v3020_v56, %v5364_v11 }
0x121b   : > { %3031 = vst [vmem:[#allocation4] sm:$0xff] %v3029_v58 }
0x1224   : > { %v3881_v13 = vpop.eup %3880 }
0x1225   : > { %v3022_v61 = vmul.f32 %v3881_v13, %v3879_v52 }
0x1227   : > { %v3028_v62 = vsel %vm3027_vm8, %v3022_v61, %v5367_v53 }
0x1228   : > { %3030 = vst [vmem:[#allocation3] sm:$0xff] %v3028_v62  ;;  %v3033_v5 = vpack.c.bf16 %v3028_v62, %v3028_v62 }
0x122a   : > { %3460 = vmatmul.mubr.bf16.vlgmr.msra.gmra.mrb[32].mxu0 %v3033_v5 }
0x12fd   : > { %v3139_v55 = vpop.f32.mrb[32].mxu0 }
0x12fe   : > { %v3140_v0 = vadd.f32 %v3419_v1, %v3139_v55  ;;  %v3461_v59 = vpop.f32.mrb[33].mxu0 }
0x12ff   : > { %v3142_v49 = vpop.f32.mrb[34].mxu0 }
0x1300   : > { %v3428_v50 = vmul.f32 -1.442695, %v3140_v0  ;;  %v3462_v3 = vpop.f32.mrb[35].mxu0 }
0x1302   : > { %3882 = vpow2.f32 %v3428_v50 }
0x130c   : > { %v3883_v25 = vpop.eup %3882 }
0x130d   : > { %v3148_v26 = vadd.f32 1.0, %v3883_v25 }
0x130f   : > { %3884 = vrcp.f32 %v3148_v26 }
0x1319   : > { %v3885_v28 = vpop.eup %3884 }
0x131a   : > { %3151 = vst [vmem:[#allocation13] sm:$0xff] %v3885_v28 }
0x131b PF: > { %s5544_s30 = sadd.s32 4294967295, %s4088_s26   ;;  %s4104_s11 = smov [#allocation13]  }
0x131c   : > { %p5380_p3 = scmp.eq.s32.totalorder %s5544_s30, 1  ;;  %s3161_s10 = sshll.u32 %s4104_s11, 4  ;;  %s3162_s10 = int_to_ptr.vmem [resolvable:$true] %s3161_s10 }
0x131d   : > { %s4000_s20 = scalar_lea.vmem %s3162_s10, 128  ;;  %p4007_p4 = scmp.lt.s32.totalorder %s3162_s10, %s3162_s10 }
0x131e   : > { %p4001_p8 = scmp.ne.s32.totalorder %s3162_s10, %s4000_s20  ;;  %p4008_p5 = scmp.lt.s32.totalorder %s4000_s20, %s4000_s20 }
0x1320   : > { %p4002_p11 = pnand %p4001_p8, %p5380_p3  ;;  %p4009_p9 = por %p4008_p5, %p4007_p4 }
0x1322   : > { %p4003_p7 = pneg %p4002_p11 }
0x1324   : > { %p4010_p12 = pnand %p4009_p9, %p4003_p7 }
0x1326   : > { %4013 = shalt.err (!%p4010_p12)
}
0x1327   : > { %s4014_s12 = scalar_lea.hbm %s5430_s6, 128 }
0x1328   : > { %p4015_p13 = scmp.ne.s32.totalorder %s5430_s6, %s4014_s12  ;;  %p4020_p6 = scmp.lt.u32.totalorder %s4014_s12, %s5430_s6 }
0x132a   : > { %p4016_p0 = pnand %p4015_p13, %p5380_p3 }
0x132c   : > { %p4017_p2 = pneg %p4016_p0 }
0x132e   : > { %p4022_p10 = pnand %p4020_p6, %p4017_p2 }
0x1330   : > { %4025 = shalt.err (!%p4022_p10)
}
0x1331   : > { %3478 = dma.vmem_to_hbm [thread:$0]  (%p5380_p3), %s3162_s10, 128, %s5430_s6, [#allocation7]  }
0x1332   : > { %4063 = dma.done.wait (%p5380_p3), [#allocation7], 128  }
0x1333   : > { %4065 = vsyncadd (%p5380_p3), [#allocation7], 4294967168 }
0x1334 PF: > { %s22_s26 = sadd.s32 1, %s4088_s26   ;;  %s5546_s18 = smov %s4289_s21 }
0x1335   : > { %p19_p1 = scmp.ge.s32.totalorder %s22_s26, 4   ;;  %s5547_s21 = smov %s4072_s22 }
0x1336   : > { %s5548_s22 = smov %s4076_s23  ;;  %s5549_s23 = smov %s5546_s18 }
0x1337   : > { %s5550_s24 = smov %s4084_s25  ;;  %s5551_s25 = smov %s5553_s27 }
0x1338   :  { %21 = sbr.rel (!%p19_p1) target bundleno = 7 (0x7), region = 120 }
0x133f   :  { %3174 = vsyncpa [#allocation6], 1 }
0x1340   :  { %3176 = vsyncpa [#allocation6 + $0x1], 1 }
0x1341   :  { %3177 = vsyncpa [#allocation9], 1 }
0x1342   :  { %3178 = vsyncpa [#allocation12], 1 }
0x1343   :  { %3179 = vsyncpa [#allocation7], 1 }
0x1344   :  { %3181 = vsyncpa [#allocation7 + $0x1], 1 }

</bundles_post_ra>
